<compile_context>
chip_gen: v5e
topology: v5e:2x2
jax: 0.10.0
libtpu: 0.0.40
codegen_flags: <defaults>
</compile_context>

<pallas_src>
import jax
import jax.numpy as jnp
from jax import lax
from jax.experimental import pallas as pl
from jax.experimental.pallas import tpu as pltpu

NUM_PITCHES = 88
MID_SIZE = 80
BN_EPS = 1e-5


def _pick_tile(total, target, align):
    """Largest multiple of `align` that divides `total` and is <= target.
    Falls back to the full extent (always a legal block size)."""
    if total <= target:
        return total
    best = None
    t = align
    while t <= target:
        if total % t == 0:
            best = t
        t += align
    return best if best is not None else total


# ----------------------------------------------------------------------------
# Kernel 1: fused conv stack (3x [Conv(1,3) + folded BN + ReLU], 2x MaxPool(1,2))
#   Activation layout inside the kernel: (W, th, C)  -> W outer (conv/pool axis,
#   so taps and pooling are free outer-dim slices/reshapes), th sublanes,
#   channels on lanes (matmul-friendly).
# ----------------------------------------------------------------------------
def _pool_w(y):
    # MaxPool2d((1,2)) along the leading (outer) W axis: free reshape + max.
    Wd, th, C = y.shape
    y4 = y.reshape(Wd // 2, 2, th, C)
    return jnp.maximum(y4[:, 0, :, :], y4[:, 1, :, :])


def _conv_bn_relu(y, w_taps, scale, shift):
    # y: (Wd, th, Cin) f32; w_taps: (3, Cin, Cout); scale/shift: (1, Cout)
    # Three accumulated K=Cin dots (one per tap) -> no lane-axis concat, no 3x
    # activation copy (conv stack is vld/vst bound, not MXU bound).
    Wd, th, Cin = y.shape
    Cout = w_taps.shape[2]
    rows = Wd * th
    zero = jnp.zeros((1, th, Cin), jnp.float32)
    yp = jnp.concatenate([zero, y, zero], axis=0)           # pad conv axis 1|1
    acc = jnp.dot(yp[0:Wd].reshape(rows, Cin), w_taps[0],
                  preferred_element_type=jnp.float32)
    acc = acc + jnp.dot(yp[1:Wd + 1].reshape(rows, Cin), w_taps[1],
                        preferred_element_type=jnp.float32)
    acc = acc + jnp.dot(yp[2:Wd + 2].reshape(rows, Cin), w_taps[2],
                        preferred_element_type=jnp.float32)
    acc = jnp.maximum(acc * scale + shift, 0.0)
    return acc.reshape(Wd, th, Cout)


def conv_stack_kernel(x_ref, w0_ref, s0_ref, t0_ref,
                      w1_ref, s1_ref, t1_ref,
                      w2_ref, s2_ref, t2_ref, o_ref):
    # x_ref: (Wp, th, 1) f32 (batch dim squeezed; W pre-padded by 1|1)
    # o_ref: (W//4, th, 128) bf16
    Wp, th, _ = x_ref.shape
    W = Wp - 2
    rows0 = W * th

    # ---- layer 1: Cin=1 -> taps as VPU broadcast multiplies ------------------
    x = x_ref[...]
    w0 = w0_ref[...]                                        # (3, 32)
    acc0 = (x[0:W].reshape(rows0, 1) * w0[0:1, :]
            + x[1:W + 1].reshape(rows0, 1) * w0[1:2, :]
            + x[2:W + 2].reshape(rows0, 1) * w0[2:3, :])    # (rows0, 32)
    y = jnp.maximum(acc0 * s0_ref[...] + t0_ref[...], 0.0).reshape(W, th, 32)
    y = _pool_w(y)                                          # (W//2, th, 32)

    # ---- layers 2 & 3: 3 accumulated tap-dots on the MXU ---------------------
    y = _conv_bn_relu(y, w1_ref[...], s1_ref[...], t1_ref[...])   # (W//2, th, 64)
    y = _pool_w(y)                                                # (W//4, th, 64)
    y = _conv_bn_relu(y, w2_ref[...], s2_ref[...], t2_ref[...])   # (W//4, th, 128)

    o_ref[...] = y.astype(o_ref.dtype)                      # bf16 feature store


def conv_stack(x_pad, prep, *, th):
    B, Wp, H, _ = x_pad.shape
    W = Wp - 2
    W4 = W // 4

    def _full(arr):
        return pl.BlockSpec(arr.shape, lambda b, h: (0,) * arr.ndim)

    return pl.pallas_call(
        conv_stack_kernel,
        out_shape=jax.ShapeDtypeStruct((B, W4, H, 128), jnp.bfloat16),
        grid_spec=pltpu.PrefetchScalarGridSpec(
            num_scalar_prefetch=0,
            grid=(B, H // th),
            in_specs=[
                pl.BlockSpec((pl.Squeezed(), Wp, th, 1), lambda b, h: (b, 0, h, 0)),
                _full(prep["w0"]), _full(prep["s0"]), _full(prep["t0"]),
                _full(prep["w1"]), _full(prep["s1"]), _full(prep["t1"]),
                _full(prep["w2"]), _full(prep["s2"]), _full(prep["t2"]),
            ],
            out_specs=pl.BlockSpec((pl.Squeezed(), W4, th, 128),
                                   lambda b, h: (b, 0, h, 0)),
        ),
        compiler_params=pltpu.CompilerParams(
            dimension_semantics=("parallel", "parallel"),
            # padded input buffers + intermediates exceed v5e's 16 MiB scoped
            # default at production H; 48 MiB is safe on every generation.
            vmem_limit_bytes=48 * 1024 * 1024),
    )(x_pad, prep["w0"], prep["s0"], prep["t0"],
      prep["w1"], prep["s1"], prep["t1"],
      prep["w2"], prep["s2"], prep["t2"])


# ----------------------------------------------------------------------------
# Kernel 2: Linear(F, 256) + ReLU.
#   Weight-streaming (HBM-bandwidth bound) layer: bf16 weights AND bf16
#   activations, f32 MXU accumulation.  Grid = (N-blocks=2 "parallel",
#   K-blocks "arbitrary"): the output split lets v7x's two TensorCores each
#   stream half the weights; tk=32768 keeps per-step overhead negligible.
# ----------------------------------------------------------------------------
def fc1_kernel(x_ref, w_ref, b_ref, o_ref, acc_ref):
    k = pl.program_id(1)

    @pl.when(k == 0)
    def _():
        acc_ref[...] = jnp.zeros_like(acc_ref)

    acc_ref[...] += jnp.dot(x_ref[...], w_ref[...],
                            preferred_element_type=jnp.float32)

    @pl.when(k == pl.num_programs(1) - 1)
    def _():
        o_ref[...] = jnp.maximum(acc_ref[...] + b_ref[...], 0.0)


def fc1(x, w, b, *, tk_target=32768, tn_target=128):
    B, F = x.shape
    H1 = w.shape[1]
    tk = _pick_tile(F, tk_target, 128)    # exact divisor, lane-aligned
    tn = _pick_tile(H1, tn_target, 128)
    return pl.pallas_call(
        fc1_kernel,
        out_shape=jax.ShapeDtypeStruct((B, H1), jnp.float32),
        grid_spec=pltpu.PrefetchScalarGridSpec(
            num_scalar_prefetch=0,
            grid=(H1 // tn, F // tk),
            in_specs=[pl.BlockSpec((B, tk), lambda n, k: (0, k)),
                      pl.BlockSpec((tk, tn), lambda n, k: (k, n)),
                      pl.BlockSpec((1, tn), lambda n, k: (0, n))],
            out_specs=pl.BlockSpec((B, tn), lambda n, k: (0, n)),
            scratch_shapes=[pltpu.VMEM((B, tn), jnp.float32)]),
        compiler_params=pltpu.CompilerParams(
            dimension_semantics=("parallel", "arbitrary"),
            # 8 MB bf16 weight tile x2 buffers (~17 MB total) exceeds v5e's
            # 16 MiB scoped default; 40 MiB is safe on every generation.
            vmem_limit_bytes=40 * 1024 * 1024),
    )(x, w, b[None, :])


# ----------------------------------------------------------------------------
# Kernel 3: Linear(256, mid*pitches) + Sigmoid.  bf16 weights, single grid step
# (the whole 3.6 MB bf16 weight fits VMEM on every generation).
# ----------------------------------------------------------------------------
def fc2_kernel(x_ref, w_ref, b_ref, o_ref):
    y = jnp.dot(x_ref[...].astype(jnp.bfloat16), w_ref[...],
                preferred_element_type=jnp.float32) + b_ref[...]
    # sigmoid(y) = 0.5 * (tanh(y/2) + 1): EUP tanh instead of a VALU divide.
    o_ref[...] = 0.5 * (jnp.tanh(0.5 * y) + 1.0)


def fc2(x, w, b, *, tn_target=MID_SIZE * NUM_PITCHES):
    B, H1 = x.shape
    NP = w.shape[1]
    tn = _pick_tile(NP, tn_target, 128)   # full width -> one grid step
    return pl.pallas_call(
        fc2_kernel,
        out_shape=jax.ShapeDtypeStruct((B, NP), jnp.float32),
        grid_spec=pltpu.PrefetchScalarGridSpec(
            num_scalar_prefetch=0,
            grid=(NP // tn,),
            in_specs=[pl.BlockSpec((B, H1), lambda j: (0, 0)),
                      pl.BlockSpec((H1, tn), lambda j: (0, j)),
                      pl.BlockSpec((1, tn), lambda j: (0, j))],
            out_specs=pl.BlockSpec((B, tn), lambda j: (0, j))),
        compiler_params=pltpu.CompilerParams(
            dimension_semantics=("parallel",)),
    )(x, w, b[None, :])


# ----------------------------------------------------------------------------
# One-time (offline) parameter preparation: fold BN, split conv taps,
# permute + bf16 fc1 weights (no runtime feature transpose), bf16 fc2 weights.
# ----------------------------------------------------------------------------
def prepare_params(params, H, W):
    prep = {}
    for i in range(3):
        w = params[f"conv{i}_w"]                          # (Cout, Cin, 1, 3) OIHW
        cout, cin = w.shape[0], w.shape[1]
        scale = params[f"bn{i}_g"] / jnp.sqrt(params[f"bn{i}_v"] + BN_EPS)
        shift = (params[f"conv{i}_b"] - params[f"bn{i}_m"]) * scale + params[f"bn{i}_b"]
        taps = jnp.transpose(w[:, :, 0, :], (2, 1, 0))    # (3, Cin, Cout)
        prep[f"w{i}"] = taps[:, 0, :] if i == 0 else taps  # layer 1 keeps (3, 32)
        prep[f"s{i}"] = scale[None, :]
        prep[f"t{i}"] = shift[None, :]

    # fc1 weight rows are stored in PyTorch flatten order (c, h, w); permute
    # them ONCE to the kernel's natural (w4, h, c) feature order.
    C3, Wf = 128, W // 4
    F, H1 = params["fc1_w"].shape
    assert F == C3 * H * Wf, (F, C3, H, Wf)
    wfc1 = params["fc1_w"].reshape(C3, H, Wf, H1)
    wfc1 = jnp.transpose(wfc1, (2, 1, 0, 3)).reshape(F, H1)
    prep["fc1_w"] = wfc1.astype(jnp.bfloat16)
    prep["fc1_b"] = params["fc1_b"]
    prep["fc2_w"] = params["fc2_w"].astype(jnp.bfloat16)   # bandwidth-bound too
    prep["fc2_b"] = params["fc2_b"]
    return prep


# ----------------------------------------------------------------------------
# Full forward
# ----------------------------------------------------------------------------
@jax.jit
def pitch_detection_forward(x_nchw, prep):
    B, _, H, W = x_nchw.shape
    assert W % 4 == 0, "two MaxPool2d((1,2)) stages require W % 4 == 0"
    # NCHW -> (B, W, H, C); pad the conv axis by 1|1
    x = jnp.transpose(x_nchw, (0, 3, 2, 1))
    x = jnp.pad(x, ((0, 0), (1, 1), (0, 0), (0, 0)))

    th = _pick_tile(H, 40, 8)                         # H-tile (sublane-aligned)
    feats = conv_stack(x, prep, th=th)                # (B, W//4, H, 128) bf16
    feat = feats.reshape(B, -1)                       # (w4, h, c) flatten, bf16

    h = fc1(feat, prep["fc1_w"], prep["fc1_b"])
    # Dropout(0.5) is identity in eval mode.
    out = fc2(h, prep["fc2_w"], prep["fc2_b"])
    return out.reshape(B, MID_SIZE, NUM_PITCHES)


# ----------------------------------------------------------------------------
# Pure-JAX/XLA reference (mirrors the PyTorch forward in eval mode)
# ----------------------------------------------------------------------------
def ref_forward(x, params):
    y = x
    for i in range(3):
        w = params[f"conv{i}_w"]
        y = lax.conv_general_dilated(
            y, w, window_strides=(1, 1), padding=((0, 0), (1, 1)),
            dimension_numbers=("NCHW", "OIHW", "NCHW"))
        y = y + params[f"conv{i}_b"][None, :, None, None]
        g = params[f"bn{i}_g"][None, :, None, None]
        beta = params[f"bn{i}_b"][None, :, None, None]
        mu = params[f"bn{i}_m"][None, :, None, None]
        var = params[f"bn{i}_v"][None, :, None, None]
        y = g * (y - mu) / jnp.sqrt(var + BN_EPS) + beta
        y = jnp.maximum(y, 0.0)
        if i < 2:
            B_, C_, H_, W_ = y.shape
            y = jnp.max(y.reshape(B_, C_, H_, W_ // 2, 2), axis=-1)
    B_ = y.shape[0]
    feat = y.reshape(B_, -1)
    w1 = params["fc1_w"].astype(jnp.float32)          # model stores fc1_w in bf16
    h = jnp.maximum(feat @ w1 + params["fc1_b"], 0.0)
    o = jax.nn.sigmoid(h @ params["fc2_w"] + params["fc2_b"])
    return o.reshape(B_, MID_SIZE, NUM_PITCHES)


# ----------------------------------------------------------------------------
# Deterministic synthetic parameter init (fc1_w stored in bf16)
# ----------------------------------------------------------------------------
def init_params(key, H, W):
    chans = [1, 32, 64, 128]
    keys = iter(jax.random.split(key, 24))
    p = {}
    for i in range(3):
        cin, cout = chans[i], chans[i + 1]
        p[f"conv{i}_w"] = 0.15 * jax.random.normal(next(keys), (cout, cin, 1, 3), jnp.float32)
        p[f"conv{i}_b"] = 0.05 * jax.random.normal(next(keys), (cout,), jnp.float32)
        p[f"bn{i}_g"] = 1.0 + 0.1 * jax.random.normal(next(keys), (cout,), jnp.float32)
        p[f"bn{i}_b"] = 0.05 * jax.random.normal(next(keys), (cout,), jnp.float32)
        p[f"bn{i}_m"] = 0.05 * jax.random.normal(next(keys), (cout,), jnp.float32)
        p[f"bn{i}_v"] = jax.random.uniform(next(keys), (cout,), jnp.float32, 0.5, 1.5)
    F = 128 * H * (W // 4)
    p["fc1_w"] = (0.02 * jax.random.normal(next(keys), (F, 256), jnp.float32)
                  ).astype(jnp.bfloat16)               # bf16 storage (HBM-BW bound)
    p["fc1_b"] = 0.05 * jax.random.normal(next(keys), (256,), jnp.float32)
    p["fc2_w"] = 0.05 * jax.random.normal(next(keys), (256, MID_SIZE * NUM_PITCHES), jnp.float32)
    p["fc2_b"] = 0.05 * jax.random.normal(next(keys), (MID_SIZE * NUM_PITCHES,), jnp.float32)
    return p


if __name__ == "__main__":
    B, H, W = 2, 8, 32                       # scaled-down (original: H=240, W=512)
    key = jax.random.PRNGKey(0)
    pkey, xkey = jax.random.split(key)
    params = init_params(pkey, H, W)
    prep = prepare_params(params, H, W)      # offline, one-time weight prep
    x = jax.random.normal(xkey, (B, 1, H, W), jnp.float32)

    out = jax.block_until_ready(pitch_detection_forward(x, prep))
    ref = jax.block_until_ready(ref_forward(x, params))

    assert out.shape == (B, MID_SIZE, NUM_PITCHES), out.shape
    max_err = float(jnp.max(jnp.abs(out - ref)))
    # bf16 feature map + bf16 fc1/fc2 weights vs the f32/bf16-mixed reference
    # give ~1e-3-level error at the sigmoid output.
    assert max_err < 5e-3, f"max abs error {max_err}"
    print("KERNEL_OK")
</pallas_src>

<mosaic_0001>
module attributes {stable_mosaic.version = 11 : i64} {
  func.func @conv_stack_kernel(%arg0: i32, %arg1: i32, %arg2: memref<1x34x8x1xf32, #tpu.memory_space<vmem>>, %arg3: memref<3x32xf32, #tpu.memory_space<vmem>>, %arg4: memref<1x32xf32, #tpu.memory_space<vmem>>, %arg5: memref<1x32xf32, #tpu.memory_space<vmem>>, %arg6: memref<3x32x64xf32, #tpu.memory_space<vmem>>, %arg7: memref<1x64xf32, #tpu.memory_space<vmem>>, %arg8: memref<1x64xf32, #tpu.memory_space<vmem>>, %arg9: memref<3x64x128xf32, #tpu.memory_space<vmem>>, %arg10: memref<1x128xf32, #tpu.memory_space<vmem>>, %arg11: memref<1x128xf32, #tpu.memory_space<vmem>>, %arg12: memref<1x8x8x128xbf16, #tpu.memory_space<vmem>>) attributes {dimension_semantics = [#tpu.dimension_semantics<parallel>, #tpu.dimension_semantics<parallel>], iteration_bounds = array<i64: 2, 1>, scalar_prefetch = 0 : i64, scratch_operands = 0 : i64, tpu.core_type = #tpu.core_type<tc>, window_params = [{transform_indices = @transform_0, window_bounds = array<i64: 1, 34, 8, 1>}, {pipeline_mode = #tpu.pipeline_mode<synchronous>, transform_indices = @transform_1, window_bounds = array<i64: 3, 32>}, {pipeline_mode = #tpu.pipeline_mode<synchronous>, transform_indices = @transform_2, window_bounds = array<i64: 1, 32>}, {pipeline_mode = #tpu.pipeline_mode<synchronous>, transform_indices = @transform_3, window_bounds = array<i64: 1, 32>}, {pipeline_mode = #tpu.pipeline_mode<synchronous>, transform_indices = @transform_4, window_bounds = array<i64: 3, 32, 64>}, {pipeline_mode = #tpu.pipeline_mode<synchronous>, transform_indices = @transform_5, window_bounds = array<i64: 1, 64>}, {pipeline_mode = #tpu.pipeline_mode<synchronous>, transform_indices = @transform_6, window_bounds = array<i64: 1, 64>}, {pipeline_mode = #tpu.pipeline_mode<synchronous>, transform_indices = @transform_7, window_bounds = array<i64: 3, 64, 128>}, {pipeline_mode = #tpu.pipeline_mode<synchronous>, transform_indices = @transform_8, window_bounds = array<i64: 1, 128>}, {pipeline_mode = #tpu.pipeline_mode<synchronous>, transform_indices = @transform_9, window_bounds = array<i64: 1, 128>}, {transform_indices = @transform_10, window_bounds = array<i64: 1, 8, 8, 128>}]} {
    %c0 = arith.constant 0 : index
    %c0_0 = arith.constant 0 : index
    %c0_1 = arith.constant 0 : index
    %c0_2 = arith.constant 0 : index
    %0 = vector.load %arg2[%c0, %c0_0, %c0_1, %c0_2] : memref<1x34x8x1xf32, #tpu.memory_space<vmem>>, vector<1x34x8x1xf32>
    %1 = vector.shape_cast %0 : vector<1x34x8x1xf32> to vector<34x8x1xf32>
    %c0_3 = arith.constant 0 : index
    %c0_4 = arith.constant 0 : index
    %2 = vector.load %arg3[%c0_3, %c0_4] : memref<3x32xf32, #tpu.memory_space<vmem>>, vector<3x32xf32>
    %3 = vector.extract_strided_slice %1 {offsets = [0, 0, 0], sizes = [32, 8, 1], strides = [1, 1, 1]} : vector<34x8x1xf32> to vector<32x8x1xf32>
    %4 = vector.shape_cast %3 : vector<32x8x1xf32> to vector<256x1xf32>
    %5 = vector.extract_strided_slice %2 {offsets = [0, 0], sizes = [1, 32], strides = [1, 1]} : vector<3x32xf32> to vector<1x32xf32>
    %6 = vector.broadcast %4 : vector<256x1xf32> to vector<256x32xf32>
    %7 = vector.broadcast %5 : vector<1x32xf32> to vector<256x32xf32>
    %8 = arith.mulf %6, %7 : vector<256x32xf32>
    %9 = vector.extract_strided_slice %1 {offsets = [1, 0, 0], sizes = [32, 8, 1], strides = [1, 1, 1]} : vector<34x8x1xf32> to vector<32x8x1xf32>
    %10 = vector.shape_cast %9 : vector<32x8x1xf32> to vector<256x1xf32>
    %11 = vector.extract_strided_slice %2 {offsets = [1, 0], sizes = [1, 32], strides = [1, 1]} : vector<3x32xf32> to vector<1x32xf32>
    %12 = vector.broadcast %10 : vector<256x1xf32> to vector<256x32xf32>
    %13 = vector.broadcast %11 : vector<1x32xf32> to vector<256x32xf32>
    %14 = arith.mulf %12, %13 : vector<256x32xf32>
    %15 = arith.addf %8, %14 : vector<256x32xf32>
    %16 = vector.extract_strided_slice %1 {offsets = [2, 0, 0], sizes = [32, 8, 1], strides = [1, 1, 1]} : vector<34x8x1xf32> to vector<32x8x1xf32>
    %17 = vector.shape_cast %16 : vector<32x8x1xf32> to vector<256x1xf32>
    %18 = vector.extract_strided_slice %2 {offsets = [2, 0], sizes = [1, 32], strides = [1, 1]} : vector<3x32xf32> to vector<1x32xf32>
    %19 = vector.broadcast %17 : vector<256x1xf32> to vector<256x32xf32>
    %20 = vector.broadcast %18 : vector<1x32xf32> to vector<256x32xf32>
    %21 = arith.mulf %19, %20 : vector<256x32xf32>
    %22 = arith.addf %15, %21 : vector<256x32xf32>
    %c0_5 = arith.constant 0 : index
    %c0_6 = arith.constant 0 : index
    %23 = vector.load %arg4[%c0_5, %c0_6] : memref<1x32xf32, #tpu.memory_space<vmem>>, vector<1x32xf32>
    %24 = vector.broadcast %23 : vector<1x32xf32> to vector<256x32xf32>
    %25 = arith.mulf %22, %24 : vector<256x32xf32>
    %c0_7 = arith.constant 0 : index
    %c0_8 = arith.constant 0 : index
    %26 = vector.load %arg5[%c0_7, %c0_8] : memref<1x32xf32, #tpu.memory_space<vmem>>, vector<1x32xf32>
    %27 = vector.broadcast %26 : vector<1x32xf32> to vector<256x32xf32>
    %28 = arith.addf %25, %27 : vector<256x32xf32>
    %cst = arith.constant 0.000000e+00 : f32
    %29 = vector.broadcast %cst : f32 to vector<256x32xf32>
    %30 = arith.maximumf %28, %29 : vector<256x32xf32>
    %31 = vector.shape_cast %30 : vector<256x32xf32> to vector<32x8x32xf32>
    %32 = vector.shape_cast %31 : vector<32x8x32xf32> to vector<16x2x8x32xf32>
    %33 = vector.extract_strided_slice %32 {offsets = [0, 0, 0, 0], sizes = [16, 1, 8, 32], strides = [1, 1, 1, 1]} : vector<16x2x8x32xf32> to vector<16x1x8x32xf32>
    %34 = vector.shape_cast %33 : vector<16x1x8x32xf32> to vector<16x8x32xf32>
    %35 = vector.extract_strided_slice %32 {offsets = [0, 1, 0, 0], sizes = [16, 1, 8, 32], strides = [1, 1, 1, 1]} : vector<16x2x8x32xf32> to vector<16x1x8x32xf32>
    %36 = vector.shape_cast %35 : vector<16x1x8x32xf32> to vector<16x8x32xf32>
    %37 = arith.maximumf %34, %36 : vector<16x8x32xf32>
    %c0_9 = arith.constant 0 : index
    %c0_10 = arith.constant 0 : index
    %c0_11 = arith.constant 0 : index
    %38 = vector.load %arg6[%c0_9, %c0_10, %c0_11] : memref<3x32x64xf32, #tpu.memory_space<vmem>>, vector<3x32x64xf32>
    %c0_12 = arith.constant 0 : index
    %c0_13 = arith.constant 0 : index
    %39 = vector.load %arg7[%c0_12, %c0_13] : memref<1x64xf32, #tpu.memory_space<vmem>>, vector<1x64xf32>
    %c0_14 = arith.constant 0 : index
    %c0_15 = arith.constant 0 : index
    %40 = vector.load %arg8[%c0_14, %c0_15] : memref<1x64xf32, #tpu.memory_space<vmem>>, vector<1x64xf32>
    %cst_16 = arith.constant 0.000000e+00 : f32
    %41 = vector.broadcast %cst_16 : f32 to vector<1x8x32xf32>
    %42 = tpu.concatenate %41, %37, %41 in 0 : vector<1x8x32xf32>, vector<16x8x32xf32>, vector<1x8x32xf32> -> vector<18x8x32xf32>
    %43 = vector.extract_strided_slice %42 {offsets = [0, 0, 0], sizes = [16, 8, 32], strides = [1, 1, 1]} : vector<18x8x32xf32> to vector<16x8x32xf32>
    %44 = vector.shape_cast %43 : vector<16x8x32xf32> to vector<128x32xf32>
    %45 = vector.extract_strided_slice %38 {offsets = [0, 0, 0], sizes = [1, 32, 64], strides = [1, 1, 1]} : vector<3x32x64xf32> to vector<1x32x64xf32>
    %46 = vector.shape_cast %45 : vector<1x32x64xf32> to vector<32x64xf32>
    %cst_17 = arith.constant dense<0.000000e+00> : vector<128x64xf32>
    %47 = tpu.matmul %44, %46, %cst_17 {dimension_numbers = #tpu.dot_dimension_numbers<[1], [0], [0], [1], [0, 0, 1, 1], [], []>} : vector<128x32xf32>, vector<32x64xf32>, vector<128x64xf32> -> vector<128x64xf32>
    %48 = vector.extract_strided_slice %42 {offsets = [1, 0, 0], sizes = [16, 8, 32], strides = [1, 1, 1]} : vector<18x8x32xf32> to vector<16x8x32xf32>
    %49 = vector.shape_cast %48 : vector<16x8x32xf32> to vector<128x32xf32>
    %50 = vector.extract_strided_slice %38 {offsets = [1, 0, 0], sizes = [1, 32, 64], strides = [1, 1, 1]} : vector<3x32x64xf32> to vector<1x32x64xf32>
    %51 = vector.shape_cast %50 : vector<1x32x64xf32> to vector<32x64xf32>
    %cst_18 = arith.constant dense<0.000000e+00> : vector<128x64xf32>
    %52 = tpu.matmul %49, %51, %cst_18 {dimension_numbers = #tpu.dot_dimension_numbers<[1], [0], [0], [1], [0, 0, 1, 1], [], []>} : vector<128x32xf32>, vector<32x64xf32>, vector<128x64xf32> -> vector<128x64xf32>
    %53 = arith.addf %47, %52 : vector<128x64xf32>
    %54 = vector.extract_strided_slice %42 {offsets = [2, 0, 0], sizes = [16, 8, 32], strides = [1, 1, 1]} : vector<18x8x32xf32> to vector<16x8x32xf32>
    %55 = vector.shape_cast %54 : vector<16x8x32xf32> to vector<128x32xf32>
    %56 = vector.extract_strided_slice %38 {offsets = [2, 0, 0], sizes = [1, 32, 64], strides = [1, 1, 1]} : vector<3x32x64xf32> to vector<1x32x64xf32>
    %57 = vector.shape_cast %56 : vector<1x32x64xf32> to vector<32x64xf32>
    %cst_19 = arith.constant dense<0.000000e+00> : vector<128x64xf32>
    %58 = tpu.matmul %55, %57, %cst_19 {dimension_numbers = #tpu.dot_dimension_numbers<[1], [0], [0], [1], [0, 0, 1, 1], [], []>} : vector<128x32xf32>, vector<32x64xf32>, vector<128x64xf32> -> vector<128x64xf32>
    %59 = arith.addf %53, %58 : vector<128x64xf32>
    %60 = vector.broadcast %39 : vector<1x64xf32> to vector<128x64xf32>
    %61 = arith.mulf %59, %60 : vector<128x64xf32>
    %62 = vector.broadcast %40 : vector<1x64xf32> to vector<128x64xf32>
    %63 = arith.addf %61, %62 : vector<128x64xf32>
    %cst_20 = arith.constant 0.000000e+00 : f32
    %64 = vector.broadcast %cst_20 : f32 to vector<128x64xf32>
    %65 = arith.maximumf %63, %64 : vector<128x64xf32>
    %66 = vector.shape_cast %65 : vector<128x64xf32> to vector<16x8x64xf32>
    %67 = vector.shape_cast %66 : vector<16x8x64xf32> to vector<8x2x8x64xf32>
    %68 = vector.extract_strided_slice %67 {offsets = [0, 0, 0, 0], sizes = [8, 1, 8, 64], strides = [1, 1, 1, 1]} : vector<8x2x8x64xf32> to vector<8x1x8x64xf32>
    %69 = vector.shape_cast %68 : vector<8x1x8x64xf32> to vector<8x8x64xf32>
    %70 = vector.extract_strided_slice %67 {offsets = [0, 1, 0, 0], sizes = [8, 1, 8, 64], strides = [1, 1, 1, 1]} : vector<8x2x8x64xf32> to vector<8x1x8x64xf32>
    %71 = vector.shape_cast %70 : vector<8x1x8x64xf32> to vector<8x8x64xf32>
    %72 = arith.maximumf %69, %71 : vector<8x8x64xf32>
    %c0_21 = arith.constant 0 : index
    %c0_22 = arith.constant 0 : index
    %c0_23 = arith.constant 0 : index
    %73 = vector.load %arg9[%c0_21, %c0_22, %c0_23] : memref<3x64x128xf32, #tpu.memory_space<vmem>>, vector<3x64x128xf32>
    %c0_24 = arith.constant 0 : index
    %c0_25 = arith.constant 0 : index
    %74 = vector.load %arg10[%c0_24, %c0_25] : memref<1x128xf32, #tpu.memory_space<vmem>>, vector<1x128xf32>
    %c0_26 = arith.constant 0 : index
    %c0_27 = arith.constant 0 : index
    %75 = vector.load %arg11[%c0_26, %c0_27] : memref<1x128xf32, #tpu.memory_space<vmem>>, vector<1x128xf32>
    %cst_28 = arith.constant 0.000000e+00 : f32
    %76 = vector.broadcast %cst_28 : f32 to vector<1x8x64xf32>
    %77 = tpu.concatenate %76, %72, %76 in 0 : vector<1x8x64xf32>, vector<8x8x64xf32>, vector<1x8x64xf32> -> vector<10x8x64xf32>
    %78 = vector.extract_strided_slice %77 {offsets = [0, 0, 0], sizes = [8, 8, 64], strides = [1, 1, 1]} : vector<10x8x64xf32> to vector<8x8x64xf32>
    %79 = vector.shape_cast %78 : vector<8x8x64xf32> to vector<64x64xf32>
    %80 = vector.extract_strided_slice %73 {offsets = [0, 0, 0], sizes = [1, 64, 128], strides = [1, 1, 1]} : vector<3x64x128xf32> to vector<1x64x128xf32>
    %81 = vector.shape_cast %80 : vector<1x64x128xf32> to vector<64x128xf32>
    %cst_29 = arith.constant dense<0.000000e+00> : vector<64x128xf32>
    %82 = tpu.matmul %79, %81, %cst_29 {dimension_numbers = #tpu.dot_dimension_numbers<[1], [0], [0], [1], [0, 0, 1, 1], [], []>} : vector<64x64xf32>, vector<64x128xf32>, vector<64x128xf32> -> vector<64x128xf32>
    %83 = vector.extract_strided_slice %77 {offsets = [1, 0, 0], sizes = [8, 8, 64], strides = [1, 1, 1]} : vector<10x8x64xf32> to vector<8x8x64xf32>
    %84 = vector.shape_cast %83 : vector<8x8x64xf32> to vector<64x64xf32>
    %85 = vector.extract_strided_slice %73 {offsets = [1, 0, 0], sizes = [1, 64, 128], strides = [1, 1, 1]} : vector<3x64x128xf32> to vector<1x64x128xf32>
    %86 = vector.shape_cast %85 : vector<1x64x128xf32> to vector<64x128xf32>
    %cst_30 = arith.constant dense<0.000000e+00> : vector<64x128xf32>
    %87 = tpu.matmul %84, %86, %cst_30 {dimension_numbers = #tpu.dot_dimension_numbers<[1], [0], [0], [1], [0, 0, 1, 1], [], []>} : vector<64x64xf32>, vector<64x128xf32>, vector<64x128xf32> -> vector<64x128xf32>
    %88 = arith.addf %82, %87 : vector<64x128xf32>
    %89 = vector.extract_strided_slice %77 {offsets = [2, 0, 0], sizes = [8, 8, 64], strides = [1, 1, 1]} : vector<10x8x64xf32> to vector<8x8x64xf32>
    %90 = vector.shape_cast %89 : vector<8x8x64xf32> to vector<64x64xf32>
    %91 = vector.extract_strided_slice %73 {offsets = [2, 0, 0], sizes = [1, 64, 128], strides = [1, 1, 1]} : vector<3x64x128xf32> to vector<1x64x128xf32>
    %92 = vector.shape_cast %91 : vector<1x64x128xf32> to vector<64x128xf32>
    %cst_31 = arith.constant dense<0.000000e+00> : vector<64x128xf32>
    %93 = tpu.matmul %90, %92, %cst_31 {dimension_numbers = #tpu.dot_dimension_numbers<[1], [0], [0], [1], [0, 0, 1, 1], [], []>} : vector<64x64xf32>, vector<64x128xf32>, vector<64x128xf32> -> vector<64x128xf32>
    %94 = arith.addf %88, %93 : vector<64x128xf32>
    %95 = vector.broadcast %74 : vector<1x128xf32> to vector<64x128xf32>
    %96 = arith.mulf %94, %95 : vector<64x128xf32>
    %97 = vector.broadcast %75 : vector<1x128xf32> to vector<64x128xf32>
    %98 = arith.addf %96, %97 : vector<64x128xf32>
    %cst_32 = arith.constant 0.000000e+00 : f32
    %99 = vector.broadcast %cst_32 : f32 to vector<64x128xf32>
    %100 = arith.maximumf %98, %99 : vector<64x128xf32>
    %101 = vector.shape_cast %100 : vector<64x128xf32> to vector<8x8x128xf32>
    %102 = arith.truncf %101 : vector<8x8x128xf32> to vector<8x8x128xbf16>
    %c0_33 = arith.constant 0 : index
    %c0_34 = arith.constant 0 : index
    %c0_35 = arith.constant 0 : index
    %c0_36 = arith.constant 0 : index
    %103 = vector.load %arg12[%c0_33, %c0_34, %c0_35, %c0_36] : memref<1x8x8x128xbf16, #tpu.memory_space<vmem>>, vector<1x8x8x128xbf16>
    %104 = vector.shape_cast %103 : vector<1x8x8x128xbf16> to vector<8x8x128xbf16>
    %105 = vector.shape_cast %102 : vector<8x8x128xbf16> to vector<1x8x8x128xbf16>
    tpu.vector_store %arg12[%c0_33, %c0_34, %c0_35, %c0_36], %105 {strides = array<i32>} : memref<1x8x8x128xbf16, #tpu.memory_space<vmem>>, vector<1x8x8x128xbf16>,
    return
  }
  func.func @transform_0(%arg0: i32, %arg1: i32) -> (i32, i32, i32, i32) {
    %c0_i32 = arith.constant 0 : i32
    %c0_i32_0 = arith.constant 0 : i32
    %c0_i32_1 = arith.constant 0 : i32
    return %arg0, %c0_i32, %arg1, %c0_i32_0 : i32, i32, i32, i32
  }
  func.func @transform_1(%arg0: i32, %arg1: i32) -> (i32, i32) {
    %c0_i32 = arith.constant 0 : i32
    %c0_i32_0 = arith.constant 0 : i32
    %c0_i32_1 = arith.constant 0 : i32
    return %c0_i32, %c0_i32_0 : i32, i32
  }
  func.func @transform_2(%arg0: i32, %arg1: i32) -> (i32, i32) {
    %c0_i32 = arith.constant 0 : i32
    %c0_i32_0 = arith.constant 0 : i32
    %c0_i32_1 = arith.constant 0 : i32
    return %c0_i32, %c0_i32_0 : i32, i32
  }
  func.func @transform_3(%arg0: i32, %arg1: i32) -> (i32, i32) {
    %c0_i32 = arith.constant 0 : i32
    %c0_i32_0 = arith.constant 0 : i32
    %c0_i32_1 = arith.constant 0 : i32
    return %c0_i32, %c0_i32_0 : i32, i32
  }
  func.func @transform_4(%arg0: i32, %arg1: i32) -> (i32, i32, i32) {
    %c0_i32 = arith.constant 0 : i32
    %c0_i32_0 = arith.constant 0 : i32
    %c0_i32_1 = arith.constant 0 : i32
    %c0_i32_2 = arith.constant 0 : i32
    return %c0_i32, %c0_i32_0, %c0_i32_1 : i32, i32, i32
  }
  func.func @transform_5(%arg0: i32, %arg1: i32) -> (i32, i32) {
    %c0_i32 = arith.constant 0 : i32
    %c0_i32_0 = arith.constant 0 : i32
    %c0_i32_1 = arith.constant 0 : i32
    return %c0_i32, %c0_i32_0 : i32, i32
  }
  func.func @transform_6(%arg0: i32, %arg1: i32) -> (i32, i32) {
    %c0_i32 = arith.constant 0 : i32
    %c0_i32_0 = arith.constant 0 : i32
    %c0_i32_1 = arith.constant 0 : i32
    return %c0_i32, %c0_i32_0 : i32, i32
  }
  func.func @transform_7(%arg0: i32, %arg1: i32) -> (i32, i32, i32) {
    %c0_i32 = arith.constant 0 : i32
    %c0_i32_0 = arith.constant 0 : i32
    %c0_i32_1 = arith.constant 0 : i32
    %c0_i32_2 = arith.constant 0 : i32
    return %c0_i32, %c0_i32_0, %c0_i32_1 : i32, i32, i32
  }
  func.func @transform_8(%arg0: i32, %arg1: i32) -> (i32, i32) {
    %c0_i32 = arith.constant 0 : i32
    %c0_i32_0 = arith.constant 0 : i32
    %c0_i32_1 = arith.constant 0 : i32
    return %c0_i32, %c0_i32_0 : i32, i32
  }
  func.func @transform_9(%arg0: i32, %arg1: i32) -> (i32, i32) {
    %c0_i32 = arith.constant 0 : i32
    %c0_i32_0 = arith.constant 0 : i32
    %c0_i32_1 = arith.constant 0 : i32
    return %c0_i32, %c0_i32_0 : i32, i32
  }
  func.func @transform_10(%arg0: i32, %arg1: i32) -> (i32, i32, i32, i32) {
    %c0_i32 = arith.constant 0 : i32
    %c0_i32_0 = arith.constant 0 : i32
    %c0_i32_1 = arith.constant 0 : i32
    return %arg0, %c0_i32, %arg1, %c0_i32_0 : i32, i32, i32, i32
  }
}

module attributes {stable_mosaic.version = 11 : i64} {
  func.func @fc1_kernel(%arg0: i32, %arg1: i32, %arg2: memref<2x8192xbf16, #tpu.memory_space<vmem>>, %arg3: memref<8192x128xbf16, #tpu.memory_space<vmem>>, %arg4: memref<1x128xf32, #tpu.memory_space<vmem>>, %arg5: memref<2x128xf32, #tpu.memory_space<vmem>>, %arg6: memref<2x128xf32, #tpu.memory_space<vmem>>) attributes {dimension_semantics = [#tpu.dimension_semantics<parallel>, #tpu.dimension_semantics<arbitrary>], iteration_bounds = array<i64: 2, 1>, scalar_prefetch = 0 : i64, scratch_operands = 1 : i64, tpu.core_type = #tpu.core_type<tc>, window_params = [{transform_indices = @transform_0, window_bounds = array<i64: 2, 8192>}, {transform_indices = @transform_1, window_bounds = array<i64: 8192, 128>}, {transform_indices = @transform_2, window_bounds = array<i64: 1, 128>}, {transform_indices = @transform_3, window_bounds = array<i64: 2, 128>}]} {
    %c0_i32 = arith.constant 0 : i32
    %0 = arith.cmpi eq, %arg1, %c0_i32 : i32
    %1 = arith.extui %0 : i1 to i32
    %c0_i32_0 = arith.constant 0 : i32
    %2 = arith.cmpi ne, %1, %c0_i32_0 : i32
    scf.if %2 {
      %cst_10 = arith.constant 0.000000e+00 : f32
      %12 = vector.broadcast %cst_10 : f32 to vector<2x128xf32>
      %c0_11 = arith.constant 0 : index
      %c0_12 = arith.constant 0 : index
      %13 = vector.load %arg6[%c0_11, %c0_12] : memref<2x128xf32, #tpu.memory_space<vmem>>, vector<2x128xf32>
      tpu.vector_store %arg6[%c0_11, %c0_12], %12 {strides = array<i32>} : memref<2x128xf32, #tpu.memory_space<vmem>>, vector<2x128xf32>,
    } else {
    }
    %c0 = arith.constant 0 : index
    %c0_1 = arith.constant 0 : index
    %3 = vector.load %arg6[%c0, %c0_1] : memref<2x128xf32, #tpu.memory_space<vmem>>, vector<2x128xf32>
    %c0_2 = arith.constant 0 : index
    %c0_3 = arith.constant 0 : index
    %4 = vector.load %arg2[%c0_2, %c0_3] : memref<2x8192xbf16, #tpu.memory_space<vmem>>, vector<2x8192xbf16>
    %c0_4 = arith.constant 0 : index
    %c0_5 = arith.constant 0 : index
    %5 = vector.load %arg3[%c0_4, %c0_5] : memref<8192x128xbf16, #tpu.memory_space<vmem>>, vector<8192x128xbf16>
    %cst = arith.constant dense<0.000000e+00> : vector<2x128xf32>
    %6 = tpu.matmul %4, %5, %cst {dimension_numbers = #tpu.dot_dimension_numbers<[1], [0], [0], [1], [0, 0, 1, 1], [], []>} : vector<2x8192xbf16>, vector<8192x128xbf16>, vector<2x128xf32> -> vector<2x128xf32>
    %7 = arith.addf %3, %6 : vector<2x128xf32>
    %c0_6 = arith.constant 0 : index
    %c0_7 = arith.constant 0 : index
    %8 = vector.load %arg6[%c0_6, %c0_7] : memref<2x128xf32, #tpu.memory_space<vmem>>, vector<2x128xf32>
    tpu.vector_store %arg6[%c0_6, %c0_7], %7 {strides = array<i32>} : memref<2x128xf32, #tpu.memory_space<vmem>>, vector<2x128xf32>,
    %c0_i32_8 = arith.constant 0 : i32
    %9 = arith.cmpi eq, %arg1, %c0_i32_8 : i32
    %10 = arith.extui %9 : i1 to i32
    %c0_i32_9 = arith.constant 0 : i32
    %11 = arith.cmpi ne, %10, %c0_i32_9 : i32
    scf.if %11 {
      %c0_10 = arith.constant 0 : index
      %c0_11 = arith.constant 0 : index
      %12 = vector.load %arg6[%c0_10, %c0_11] : memref<2x128xf32, #tpu.memory_space<vmem>>, vector<2x128xf32>
      %c0_12 = arith.constant 0 : index
      %c0_13 = arith.constant 0 : index
      %13 = vector.load %arg4[%c0_12, %c0_13] : memref<1x128xf32, #tpu.memory_space<vmem>>, vector<1x128xf32>
      %14 = vector.broadcast %13 : vector<1x128xf32> to vector<2x128xf32>
      %15 = arith.addf %12, %14 : vector<2x128xf32>
      %cst_14 = arith.constant 0.000000e+00 : f32
      %16 = vector.broadcast %cst_14 : f32 to vector<2x128xf32>
      %17 = arith.maximumf %15, %16 : vector<2x128xf32>
      %c0_15 = arith.constant 0 : index
      %c0_16 = arith.constant 0 : index
      %18 = vector.load %arg5[%c0_15, %c0_16] : memref<2x128xf32, #tpu.memory_space<vmem>>, vector<2x128xf32>
      tpu.vector_store %arg5[%c0_15, %c0_16], %17 {strides = array<i32>} : memref<2x128xf32, #tpu.memory_space<vmem>>, vector<2x128xf32>,
    } else {
    }
    return
  }
  func.func @transform_0(%arg0: i32, %arg1: i32) -> (i32, i32) {
    %c0_i32 = arith.constant 0 : i32
    %c0_i32_0 = arith.constant 0 : i32
    return %c0_i32, %arg1 : i32, i32
  }
  func.func @transform_1(%arg0: i32, %arg1: i32) -> (i32, i32) {
    %c0_i32 = arith.constant 0 : i32
    return %arg1, %arg0 : i32, i32
  }
  func.func @transform_2(%arg0: i32, %arg1: i32) -> (i32, i32) {
    %c0_i32 = arith.constant 0 : i32
    %c0_i32_0 = arith.constant 0 : i32
    return %c0_i32, %arg0 : i32, i32
  }
  func.func @transform_3(%arg0: i32, %arg1: i32) -> (i32, i32) {
    %c0_i32 = arith.constant 0 : i32
    %c0_i32_0 = arith.constant 0 : i32
    return %c0_i32, %arg0 : i32, i32
  }
}

module attributes {stable_mosaic.version = 11 : i64} {
  func.func @fc2_kernel(%arg0: i32, %arg1: memref<2x256xf32, #tpu.memory_space<vmem>>, %arg2: memref<256x7040xbf16, #tpu.memory_space<vmem>>, %arg3: memref<1x7040xf32, #tpu.memory_space<vmem>>, %arg4: memref<2x7040xf32, #tpu.memory_space<vmem>>) attributes {dimension_semantics = [#tpu.dimension_semantics<parallel>], iteration_bounds = array<i64: 1>, scalar_prefetch = 0 : i64, scratch_operands = 0 : i64, tpu.core_type = #tpu.core_type<tc>, window_params = [{pipeline_mode = #tpu.pipeline_mode<synchronous>, transform_indices = @transform_0, window_bounds = array<i64: 2, 256>}, {transform_indices = @transform_1, window_bounds = array<i64: 256, 7040>}, {transform_indices = @transform_2, window_bounds = array<i64: 1, 7040>}, {transform_indices = @transform_3, window_bounds = array<i64: 2, 7040>}]} {
    %c0 = arith.constant 0 : index
    %c0_0 = arith.constant 0 : index
    %0 = vector.load %arg1[%c0, %c0_0] : memref<2x256xf32, #tpu.memory_space<vmem>>, vector<2x256xf32>
    %1 = arith.truncf %0 : vector<2x256xf32> to vector<2x256xbf16>
    %c0_1 = arith.constant 0 : index
    %c0_2 = arith.constant 0 : index
    %2 = vector.load %arg2[%c0_1, %c0_2] : memref<256x7040xbf16, #tpu.memory_space<vmem>>, vector<256x7040xbf16>
    %cst = arith.constant dense<0.000000e+00> : vector<2x7040xf32>
    %3 = tpu.matmul %1, %2, %cst {dimension_numbers = #tpu.dot_dimension_numbers<[1], [0], [0], [1], [0, 0, 1, 1], [], []>} : vector<2x256xbf16>, vector<256x7040xbf16>, vector<2x7040xf32> -> vector<2x7040xf32>
    %c0_3 = arith.constant 0 : index
    %c0_4 = arith.constant 0 : index
    %4 = vector.load %arg3[%c0_3, %c0_4] : memref<1x7040xf32, #tpu.memory_space<vmem>>, vector<1x7040xf32>
    %5 = vector.broadcast %4 : vector<1x7040xf32> to vector<2x7040xf32>
    %6 = arith.addf %3, %5 : vector<2x7040xf32>
    %cst_5 = arith.constant 5.000000e-01 : f32
    %7 = vector.broadcast %cst_5 : f32 to vector<2x7040xf32>
    %8 = arith.mulf %7, %6 : vector<2x7040xf32>
    %9 = math.tanh %8 : vector<2x7040xf32>
    %cst_6 = arith.constant 1.000000e+00 : f32
    %10 = vector.broadcast %cst_6 : f32 to vector<2x7040xf32>
    %11 = arith.addf %9, %10 : vector<2x7040xf32>
    %cst_7 = arith.constant 5.000000e-01 : f32
    %12 = vector.broadcast %cst_7 : f32 to vector<2x7040xf32>
    %13 = arith.mulf %12, %11 : vector<2x7040xf32>
    %c0_8 = arith.constant 0 : index
    %c0_9 = arith.constant 0 : index
    %14 = vector.load %arg4[%c0_8, %c0_9] : memref<2x7040xf32, #tpu.memory_space<vmem>>, vector<2x7040xf32>
    tpu.vector_store %arg4[%c0_8, %c0_9], %13 {strides = array<i32>} : memref<2x7040xf32, #tpu.memory_space<vmem>>, vector<2x7040xf32>,
    return
  }
  func.func @transform_0(%arg0: i32) -> (i32, i32) {
    %c0_i32 = arith.constant 0 : i32
    %c0_i32_0 = arith.constant 0 : i32
    %c0_i32_1 = arith.constant 0 : i32
    return %c0_i32, %c0_i32_0 : i32, i32
  }
  func.func @transform_1(%arg0: i32) -> (i32, i32) {
    %c0_i32 = arith.constant 0 : i32
    %c0_i32_0 = arith.constant 0 : i32
    return %c0_i32, %arg0 : i32, i32
  }
  func.func @transform_2(%arg0: i32) -> (i32, i32) {
    %c0_i32 = arith.constant 0 : i32
    %c0_i32_0 = arith.constant 0 : i32
    return %c0_i32, %arg0 : i32, i32
  }
  func.func @transform_3(%arg0: i32) -> (i32, i32) {
    %c0_i32 = arith.constant 0 : i32
    %c0_i32_0 = arith.constant 0 : i32
    return %c0_i32, %arg0 : i32, i32
  }
}

</mosaic_0001>

<bundles_post_ra>
// kernel: pitch_detection_forward.3
= control target key start
LH: loop header
LB: loop body
LE: loop exit
PB: predicated region body
PF: predicated region fallthrough
CT: control target
= control target key end

     0   :  { %15 = vsyncpa [#allocation3], 0  ;;  %s2958_s0 = inlined_call_operand.vmem [shape: f32[2,34,8,1], index: 0, kind: input, shape index: {}]   ;;  %s2959_s1 = inlined_call_operand.hbm [shape: f32[3,32], index: 1, kind: input, shape index: {}]   ;;  %s2960_s2 = inlined_call_operand.hbm [shape: f32[1,32], index: 2, kind: input, shape index: {}]   ;;  %s2961_s3 = inlined_call_operand.hbm [shape: f32[1,32], index: 3, kind: input, shape index: {}]   ;;  %s2962_s4 = inlined_call_operand.hbm [shape: f32[3,32,64], index: 4, kind: input, shape index: {}]   ;;  %s2963_s5 = inlined_call_operand.hbm [shape: f32[1,64], index: 5, kind: input, shape index: {}]   ;;  %s2964_s6 = inlined_call_operand.hbm [shape: f32[1,64], index: 6, kind: input, shape index: {}]   ;;  %s2965_s7 = inlined_call_operand.hbm [shape: f32[3,64,128], index: 7, kind: input, shape index: {}]   ;;  %s2966_s8 = inlined_call_operand.hbm [shape: f32[1,128], index: 8, kind: input, shape index: {}]   ;;  %s2967_s9 = inlined_call_operand.hbm [shape: f32[1,128], index: 9, kind: input, shape index: {}]   ;;  %s2968_s10 = inlined_call_operand.vmem [shape: bf16[2,8,8,128], index: 10, kind: output, shape index: {}]  }
   0x1   :  { %16 = vsyncpa [#allocation5], 0 }
   0x2   :  { %17 = vsyncpa [#allocation8], 0 }
   0x3   :  { %18 = vsyncpa [#allocation11], 0 }
   0x4   :  { %19 = vsyncpa [#allocation14], 0  ;;  %s2394_s13 = smov 0   ;;  %s2396_s14 = smov 0  }
   0x5   :  { %s2398_s15 = smov 0  }
   0x6 LB: > { %s311_s18 = sshll.u32 %s2960_s2, 4  ;;  %s1755_s19 = sadd.s32 4294967295, %s2324_s15   ;;  %s2324_s15 = sphi %s2398_s15, %s25_s15   ;;  %s2320_s14 = sphi %s2396_s14, %s2977_s14   ;;  %s2316_s13 = sphi %s2394_s13, %s2976_s13   ;;  %s312_s18 = int_to_ptr.hbm [resolvable:$true] %s311_s18 }
   0x7   : > { %p1757_p0 = scmp.ge.s32.totalorder %s2324_s15, 1  ;;  %p287_p1 = scmp.lt.s32.totalorder %s2324_s15, 3 }
   0x8   : > { %p2415_p2 = scmp.eq.s32.totalorder %s1755_s19, 0  ;;  %s2326_s22 = smov [#allocation4]  }
   0x9   : > { %p2419_p3 = pnand %p1757_p0, %p287_p1  ;;  %s313_s23 = sshll.u32 %s2326_s22, 4  ;;  %s314_s23 = int_to_ptr.vmem [resolvable:$true] %s313_s23 }
   0xa   : > { %s334_s26 = sshll.u32 %s2962_s4, 4  ;;  %s2327_s28 = smov [#allocation7]   ;;  %s335_s26 = int_to_ptr.hbm [resolvable:$true] %s334_s26 }
   0xb   : > { %p1920_p4 = pneg %p2419_p3  ;;  %s336_s29 = sshll.u32 %s2327_s28, 4  ;;  %s337_s29 = int_to_ptr.vmem [resolvable:$true] %s336_s29 }
   0xc   : > { %s361_s12 = sshll.u32 %s2964_s6, 4  ;;  %s2969_s16 = smov 128   ;;  %s362_s12 = int_to_ptr.hbm [resolvable:$true] %s361_s12 }
   0xd   : > { %p2430_p5 = pnand %p2415_p2, %p1920_p4  ;;  %s2970_s17 = smov 8  }
   0xe   : > { %s2330_s19 = smov [#allocation10]   ;;  %s387_s28 = sshll.u32 %s2966_s8, 4  ;;  %s388_s28 = int_to_ptr.hbm [resolvable:$true] %s387_s28 }
   0xf   : > { %1926 = dma.hbm_to_vmem [thread:$0]  (!%p2430_p5), %s312_s18, 16, %s314_s23, [#allocation5]  }
  0x10   : > { %1932 = dma.hbm_to_vmem [thread:$0]  (!%p2430_p5), %s335_s26, 1536, %s337_s29, [#allocation8], %s2969_s16, %s2969_s16, %s2970_s17  }
  0x11   : > { %s363_s22 = sshll.u32 %s2330_s19, 4  ;;  %s2331_s18 = smov [#allocation13]   ;;  %s364_s22 = int_to_ptr.vmem [resolvable:$true] %s363_s22 }
  0x12   : > { %1938 = dma.hbm_to_vmem [thread:$0]  (!%p2430_p5), %s362_s12, 16, %s364_s22, [#allocation11]  }
  0x13   : > { %s389_s23 = sshll.u32 %s2331_s18, 4  ;;  %s37_s30 = sadd.s32 1, %s2320_s14  ;;  %s390_s23 = int_to_ptr.vmem [resolvable:$true] %s389_s23 }
  0x14   : > { %1944 = dma.hbm_to_vmem [thread:$0]  (!%p2430_p5), %s388_s28, 16, %s390_s23, [#allocation14]  }
  0x15   : > { %p39_p6 = scmp.ge.s32.totalorder %s37_s30, 2  ;;  %s299_s11 = sshll.u32 %s2959_s1, 4  ;;  %s300_s11 = int_to_ptr.hbm [resolvable:$true] %s299_s11 }
  0x16   : > { %s2332_s19 = smov [#allocation2]   ;;  %s323_s12 = sshll.u32 %s2961_s3, 4  ;;  %s324_s12 = int_to_ptr.hbm [resolvable:$true] %s323_s12 }
  0x17   : > { %s2979_s30 = smov (%p39_p6, %s37_s30), 0  ;;  %s301_s24 = sshll.u32 %s2332_s19, 4  ;;  %s302_s24 = int_to_ptr.vmem [resolvable:$true] %s301_s24 }
  0x18   : > { %1923 = dma.hbm_to_vmem [thread:$0]  (!%p2430_p5), %s300_s11, 64, %s302_s24, [#allocation3]  }
  0x19   : > { %s349_s18 = sshll.u32 %s2963_s5, 4  ;;  %s2333_s23 = smov [#allocation6]   ;;  %s350_s18 = int_to_ptr.hbm [resolvable:$true] %s349_s18 }
  0x1a   : > { %s325_s26 = sshll.u32 %s2333_s23, 4  ;;  %s2334_s29 = smov [#allocation9]   ;;  %s326_s26 = int_to_ptr.vmem [resolvable:$true] %s325_s26 }
  0x1b   : > { %1929 = dma.hbm_to_vmem [thread:$0]  (!%p2430_p5), %s324_s12, 16, %s326_s26, [#allocation5]  }
  0x1c   : > { %s351_s16 = sshll.u32 %s2334_s29, 4  ;;  %s372_s17 = sshll.u32 %s2965_s7, 4  ;;  %s352_s16 = int_to_ptr.vmem [resolvable:$true] %s351_s16  ;;  %s373_s17 = int_to_ptr.hbm [resolvable:$true] %s372_s17 }
  0x1d   : > { %1935 = dma.hbm_to_vmem [thread:$0]  (!%p2430_p5), %s350_s18, 16, %s352_s16, [#allocation8]  }
  0x1e   : > { %s399_s22 = sshll.u32 %s2967_s9, 4  ;;  %s2335_s28 = smov [#allocation12]   ;;  %s400_s22 = int_to_ptr.hbm [resolvable:$true] %s399_s22 }
  0x1f   : > { %s374_s23 = sshll.u32 %s2335_s28, 4  ;;  %s2974_s12 = smov 8   ;;  %s375_s23 = int_to_ptr.vmem [resolvable:$true] %s374_s23 }
  0x20   : > { %s2975_s26 = smov 128   ;;  %s2336_s29 = smov [#allocation15]  }
  0x21   : > { %1941 = dma.hbm_to_vmem [thread:$0]  (!%p2430_p5), %s373_s17, 3072, %s375_s23, [#allocation11], %s2975_s26, %s2975_s26, %s2974_s12  }
  0x22   : > { %s401_s19 = sshll.u32 %s2336_s29, 4  ;;  %425 = sbr.rel (%p2419_p3) target bundleno = 693 (0x2b5), region = 60  ;;  %s402_s19 = int_to_ptr.vmem [resolvable:$true] %s401_s19 }
  0x23   : > { %1947 = dma.hbm_to_vmem [thread:$0]  (!%p2430_p5), %s400_s22, 16, %s402_s19, [#allocation14]  }
  0x27   : > { %2295 = dma.done.wait (%p2415_p2), [#allocation3], 64  }
  0x28   : > { %2297 = vsyncadd (%p2415_p2), [#allocation3], 4294967232 }
  0x29   : > { %2299 = dma.done.wait (%p2415_p2), [#allocation5], 32  }
  0x2a   : > { %2301 = vsyncadd (%p2415_p2), [#allocation5], 4294967264 }
  0x2b   : > { %2303 = dma.done.wait (%p2415_p2), [#allocation8], 1552  }
  0x2c   : > { %2305 = vsyncadd (%p2415_p2), [#allocation8], 4294965744 }
  0x2d   : > { %2307 = dma.done.wait (%p2415_p2), [#allocation11], 3088  }
  0x2e   : > { %2309 = vsyncadd (%p2415_p2), [#allocation11], 4294964208 }
  0x2f   : > { %2311 = dma.done.wait (%p2415_p2), [#allocation14], 32  }
  0x30   : > { %2313 = vsyncadd (%p2415_p2), [#allocation14], 4294967264  ;;  %p510_p7 = scmp.lt.s32.totalorder %s2316_s13, 1  ;;  %v2337_v0 = vmov 0   ;;  %v1021_v35 = vld [vmem:[#allocation7 + $0x38] sm:$0xff]  ;;  %v1020_v37 = vld [vmem:[#allocation7 + $0x30] sm:$0xff] }
  0x31   : > { %2005 = vset.pattern.permute.xlu2 %v2337_v0  ;;  %2004 = vset.pattern.permute.xlu1 %v2337_v0  ;;  %v1019_v38 = vld [vmem:[#allocation7 + $0x28] sm:$0xff]  ;;  %v1018_v39 = vld [vmem:[#allocation7 + $0x20] sm:$0xff]  ;;  %v560_v43 = vld [vmem:[#allocation2] sm:$0x7]  ;;  %vm1028_vm0 = vcmask 261120   ;;  %vm1379_vm1 = vcmask 523264  }
  0x32   : > { %2003 = vset.pattern.permute.xlu0 %v2337_v0  ;;  %s2981_s13 = smov (!%p510_p7, %s2316_s13), 1  ;;  %1875 = vmatpush.msra.mxu1 %v1021_v35  ;;  %v2556_v45 = vperm.slane %v560_v43, 0  ;;  %v2558_v46 = vperm.slane %v560_v43, 1  ;;  %v1017_v48 = vld [vmem:[#allocation7 + $0x18] sm:$0xff]  ;;  %v2560_v50 = vperm.slane %v560_v43, 2  ;;  %v1016_v52 = vld [vmem:[#allocation7 + $0x10] sm:$0xff] }
  0x33   : > { %s1883_s21 = smul.u32 272, %s2981_s13  ;;  %1876 = vmatpush.msra.mxu2 %v1021_v35  ;;  %1089 = vmatpush.msra.mxu0 %v1021_v35  ;;  %v1025_v49 = vld [vmem:[#allocation7 + $0x58] sm:$0xff]  ;;  %s1851_s20 = sshll.u32 %s2981_s13, 5 }
  0x34   : > { %1877 = vmatpush.msra.mxu1 %v1020_v37  ;;  %v2573_v61 = vld [vmem:[#allocation4] ss:$0 sm:$0xff]  ;;  %s2943_s11 = scalar_lea.vmem %s2968_s10, %s1851_s20 }
  0x35   : > { %s2512_s18 = scalar_lea.vmem %s2958_s0, %s1883_s21  ;;  %1878 = vmatpush.msra.mxu2 %v1020_v37  ;;  %1090 = vmatpush.msra.mxu0 %v1020_v37 }
  0x36   : > { %v554_v1 = vld [vmem:[%s2512_s18 + $0xe0] sm:$0xff]  ;;  %v548_v3 = vld [vmem:[%s2512_s18 + $0xb0] sm:$0xff]  ;;  %v555_v4 = vld [vmem:[%s2512_s18 + $0xe8] sm:$0xff]  ;;  %1879 = vmatpush.msra.mxu1 %v1019_v38 }
  0x37   : > { %v550_v2 = vld [vmem:[%s2512_s18 + $0xc0] sm:$0xff]  ;;  %703 = vperm.xlu2 %2005, %v554_v1   ;;  %673 = vperm.xlu0 %2003, %v548_v3   ;;  %v551_v5 = vld [vmem:[%s2512_s18 + $0xc8] sm:$0xff]  ;;  %v549_v6 = vld [vmem:[%s2512_s18 + $0xb8] sm:$0xff] }
  0x38   : > { %683 = vperm.xlu1 %2004, %v550_v2   ;;  %v552_v7 = vld [vmem:[%s2512_s18 + $0xd0] sm:$0xff]  ;;  %v557_v8 = vld [vmem:[%s2512_s18 + $0xf8] sm:$0xff]  ;;  %v559_v10 = vld [vmem:[%s2512_s18 + $0x108] sm:$0xff]  ;;  %1880 = vmatpush.msra.mxu2 %v1019_v38 }
  0x39   : > { %v556_v9 = vld [vmem:[%s2512_s18 + $0xf0] sm:$0xff]  ;;  %v558_v11 = vld [vmem:[%s2512_s18 + $0x100] sm:$0xff]  ;;  %v553_v12 = vld [vmem:[%s2512_s18 + $0xd8] sm:$0xff]  ;;  %1091 = vmatpush.msra.mxu0 %v1019_v38  ;;  %1881 = vmatpush.msra.mxu1 %v1018_v39 }
  0x3a   : > { %v530_v13 = vld [vmem:[%s2512_s18 + $0x20] sm:$0xff]  ;;  %v529_v14 = vld [vmem:[%s2512_s18 + $0x18] sm:$0xff]  ;;  %v528_v15 = vld [vmem:[%s2512_s18 + $0x10] sm:$0xff]  ;;  %1882 = vmatpush.msra.mxu2 %v1018_v39 }
  0x3b   : > { %v533_v16 = vld [vmem:[%s2512_s18 + $0x38] sm:$0xff]  ;;  %v532_v17 = vld [vmem:[%s2512_s18 + $0x30] sm:$0xff]  ;;  %v531_v18 = vld [vmem:[%s2512_s18 + $0x28] sm:$0xff]  ;;  %1092 = vmatpush.msra.mxu0 %v1018_v39  ;;  %1157 = vmatpush.msrb.mxu1 %v1017_v48 }
  0x3c   : > { %v534_v19 = vld [vmem:[%s2512_s18 + $0x40] sm:$0xff]  ;;  %v527_v20 = vld [vmem:[%s2512_s18 + $0x8] sm:$0xff]  ;;  %v537_v22 = vld [vmem:[%s2512_s18 + $0x58] sm:$0xff]  ;;  %1222 = vmatpush.msrb.mxu2 %v1025_v49 }
  0x3d   : > { %v526_v21 = vld [vmem:[%s2512_s18] sm:$0xff]  ;;  %v536_v23 = vld [vmem:[%s2512_s18 + $0x50] sm:$0xff]  ;;  %v535_v24 = vld [vmem:[%s2512_s18 + $0x48] sm:$0xff]  ;;  %1158 = vmatpush.msrb.mxu1 %v1016_v52 }
  0x3e   : > { %v540_v25 = vld [vmem:[%s2512_s18 + $0x70] sm:$0xff]  ;;  %v539_v26 = vld [vmem:[%s2512_s18 + $0x68] sm:$0xff]  ;;  %v538_v27 = vld [vmem:[%s2512_s18 + $0x60] sm:$0xff] }
  0x3f   : > { %708 = vperm.xlu2 %2005, %v555_v4   ;;  %678 = vperm.xlu0 %2003, %v549_v6   ;;  %v543_v28 = vld [vmem:[%s2512_s18 + $0x88] sm:$0xff]  ;;  %v542_v29 = vld [vmem:[%s2512_s18 + $0x80] sm:$0xff]  ;;  %v541_v30 = vld [vmem:[%s2512_s18 + $0x78] sm:$0xff] }
  0x40   : > { %688 = vperm.xlu1 %2004, %v551_v5   ;;  %v546_v31 = vld [vmem:[%s2512_s18 + $0xa0] sm:$0xff]  ;;  %v545_v32 = vld [vmem:[%s2512_s18 + $0x98] sm:$0xff]  ;;  %v544_v33 = vld [vmem:[%s2512_s18 + $0x90] sm:$0xff] }
  0x41   : > { %v547_v34 = vld [vmem:[%s2512_s18 + $0xa8] sm:$0xff]  ;;  %v2580_v4 = vld [vmem:[#allocation6] ss:$0 sm:$0xff] }
  0x42   : > { %v1014_v48 = vld [vmem:[#allocation7] sm:$0xff] }
  0x47   : > { %693 = vperm.xlu2 %2005, %v552_v7   ;;  %713 = vperm.xlu0 %2003, %v556_v9  }
  0x48   : > { %718 = vperm.xlu1 %2004, %v557_v8  }
  0x4f   : > { %826 = vperm.xlu2 %2005, %v559_v10   ;;  %698 = vperm.xlu0 %2003, %v553_v12   ;;  %v1024_v10 = vld [vmem:[#allocation7 + $0x50] sm:$0xff]  ;;  %v1023_v12 = vld [vmem:[#allocation7 + $0x48] sm:$0xff] }
  0x50   : > { %756 = vperm.xlu1 %2004, %v558_v11   ;;  %v1015_v11 = vld [vmem:[#allocation7 + $0x8] sm:$0xff]  ;;  %1223 = vmatpush.msrb.mxu2 %v1024_v10 }
  0x51   : > { %1159 = vmatpush.msrb.mxu1 %v1015_v11 }
  0x52   : > { %1224 = vmatpush.msrb.mxu2 %v1023_v12 }
  0x53   : > { %1160 = vmatpush.msrb.mxu1 %v1014_v48 }
  0x57   : > { %583 = vperm.xlu2 %2005, %v530_v13   ;;  %573 = vperm.xlu0 %2003, %v528_v15  }
  0x58   : > { %578 = vperm.xlu1 %2004, %v529_v14  }
  0x5f   : > { %598 = vperm.xlu2 %2005, %v533_v16   ;;  %588 = vperm.xlu0 %2003, %v531_v18  }
  0x60   : > { %593 = vperm.xlu1 %2004, %v532_v17  }
  0x67   : > { %603 = vperm.xlu2 %2005, %v534_v19   ;;  %563 = vperm.xlu0 %2003, %v526_v21  }
  0x68   : > { %568 = vperm.xlu1 %2004, %v527_v20  }
  0x6f   : > { %618 = vperm.xlu2 %2005, %v537_v22   ;;  %608 = vperm.xlu0 %2003, %v535_v24  }
  0x70   : > { %613 = vperm.xlu1 %2004, %v536_v23  }
  0x77   : > { %633 = vperm.xlu2 %2005, %v540_v25   ;;  %623 = vperm.xlu0 %2003, %v538_v27  }
  0x78   : > { %628 = vperm.xlu1 %2004, %v539_v26  }
  0x7f   : > { %648 = vperm.xlu2 %2005, %v543_v28   ;;  %638 = vperm.xlu0 %2003, %v541_v30  }
  0x80   : > { %643 = vperm.xlu1 %2004, %v542_v29  }
  0x87   : > { %663 = vperm.xlu2 %2005, %v546_v31   ;;  %653 = vperm.xlu0 %2003, %v544_v33  }
  0x88   : > { %658 = vperm.xlu1 %2004, %v545_v32   ;;  %v1022_v32 = vld [vmem:[#allocation7 + $0x40] sm:$0xff] }
  0x89   : > { %1225 = vmatpush.msrb.mxu2 %v1022_v32 }
  0x8f   : > { %668 = vperm.xlu0 %2003, %v547_v34  }
  0x91   : > { %v2548_v36 = vpop.permute.xlu2 %703 }
  0x92   : > { %v750_v62 = vmul.f32 %v2556_v45, %v2548_v36  ;;  %v787_v17 = vmul.f32 %v2558_v46, %v2548_v36  ;;  %v856_v33 = vmul.f32 %v2560_v50, %v2548_v36 }
  0x99   : > { %v2550_v40 = vpop.permute.xlu2 %708 }
  0x9a   : > { %v788_v63 = vmul.f32 %v2558_v46, %v2550_v40  ;;  %v751_v13 = vmul.f32 %v2556_v45, %v2550_v40 }
  0x9c   : > { %v820_v14 = vadd.f32 %v788_v63, %v750_v62 }
  0xa1   : > { %v2554_v44 = vpop.permute.xlu2 %693 }
  0xa2   : > { %v854_v21 = vmul.f32 %v2560_v50, %v2554_v44  ;;  %v748_v34 = vmul.f32 %v2556_v45, %v2554_v44  ;;  %v785_v38 = vmul.f32 %v2558_v46, %v2554_v44 }
  0xa9   : > { %v2552_v42 = vpop.permute.xlu0 %673  ;;  %v827_v2 = vpop.permute.xlu2 %826 }
  0xaa   : > { %v684_v41 = vpop.permute.xlu1 %683  ;;  %v744_v54 = vmul.f32 %v2556_v45, %v2552_v42  ;;  %v861_v39 = vmul.f32 %v2560_v50, %v827_v2 }
  0xab   : > { %v783_v53 = vmul.f32 %v2558_v46, %v684_v41  ;;  %v852_v57 = vmul.f32 %v2560_v50, %v684_v41  ;;  %v746_v8 = vmul.f32 %v2556_v45, %v684_v41 }
  0xb1   : > { %v2562_v51 = vpop.permute.xlu0 %678  ;;  %v584_v49 = vpop.permute.xlu2 %583 }
  0xb2   : > { %v689_v47 = vpop.permute.xlu1 %688  ;;  %v745_v55 = vmul.f32 %v2556_v45, %v2562_v51  ;;  %v782_v56 = vmul.f32 %v2558_v46, %v2562_v51  ;;  %v726_v48 = vmul.f32 %v2556_v45, %v584_v49 }
  0xb3   : > { %v853_v58 = vmul.f32 %v2560_v50, %v689_v47  ;;  %v784_v3 = vmul.f32 %v2558_v46, %v689_v47  ;;  %v747_v29 = vmul.f32 %v2556_v45, %v689_v47 }
  0xb4   : > { %v814_v59 = vadd.f32 %v782_v56, %v744_v54  ;;  %v815_v60 = vadd.f32 %v783_v53, %v745_v55 }
  0xb5   : > { %v816_v18 = vadd.f32 %v784_v3, %v746_v8  ;;  %v817_v55 = vadd.f32 %v785_v38, %v747_v29 }
  0xb6   : > { %v884_v0 = vadd.f32 %v852_v57, %v814_v59  ;;  %v885_v1 = vadd.f32 %v853_v58, %v815_v60 }
  0xb7   : > { %v886_v35 = vadd.f32 %v854_v21, %v816_v18 }
  0xb8   : > { %v920_v6 = vmul.f32 %v2573_v61, %v884_v0  ;;  %v921_v7 = vmul.f32 %v2573_v61, %v885_v1  ;;  %v857_v0 = vmul.f32 %v2560_v50, %v2550_v40 }
  0xb9   : > { %v714_v9 = vpop.permute.xlu0 %713  ;;  %v922_v63 = vmul.f32 %v2573_v61, %v886_v35 }
  0xba   : > { %v719_v5 = vpop.permute.xlu1 %718  ;;  %v789_v15 = vmul.f32 %v2558_v46, %v714_v9  ;;  %v858_v16 = vmul.f32 %v2560_v50, %v714_v9  ;;  %v956_v19 = vadd.f32 %v2580_v4, %v920_v6  ;;  %v957_v20 = vadd.f32 %v2580_v4, %v921_v7 }
  0xbb   : > { %v859_v22 = vmul.f32 %v2560_v50, %v719_v5  ;;  %v790_v25 = vmul.f32 %v2558_v46, %v719_v5  ;;  %v752_v26 = vmul.f32 %v2556_v45, %v714_v9  ;;  %v753_v41 = vmul.f32 %v2556_v45, %v719_v5 }
  0xbc   : > { %v821_v23 = vadd.f32 %v789_v15, %v751_v13  ;;  %v890_v24 = vadd.f32 %v858_v16, %v820_v14  ;;  %v988_v27 = vmax.f32 %v956_v19, 0.0  ;;  %v989_v28 = vmax.f32 %v957_v20, 0.0 }
  0xbd   : > { %v822_v36 = vadd.f32 %v790_v25, %v752_v26  ;;  %v958_v14 = vadd.f32 %v2580_v4, %v922_v63  ;;  %v832_v26 = vmul.f32 %v2560_v50, %v584_v49 }
  0xbe   : > { %v891_v30 = vadd.f32 %v859_v22, %v821_v23  ;;  %v926_v31 = vmul.f32 %v2573_v61, %v890_v24  ;;  %v2604_v37 = vmax.f32 %v988_v27, %v989_v28  ;;  %v2640_v22 = vpop.permute.xlu2 %598 }
  0xbf   : > { %v990_v23 = vmax.f32 %v958_v14, 0.0 }
  0xc0   : > { %v927_v47 = vmul.f32 %v2573_v61, %v891_v30  ;;  %1792 = vmatmul.msk.f32.vlgmr.msra.gmra.mxu1 %vm1028_vm0, %v2604_v37  ;;  %v962_v44 = vadd.f32 %v2580_v4, %v926_v31 }
  0xc1   : > { %v699_v54 = vpop.permute.xlu0 %698 }
  0xc2   : > { %v757_v43 = vpop.permute.xlu1 %756  ;;  %v749_v56 = vmul.f32 %v2556_v45, %v699_v54  ;;  %v786_v57 = vmul.f32 %v2558_v46, %v699_v54  ;;  %v855_v58 = vmul.f32 %v2560_v50, %v699_v54  ;;  %v963_v62 = vadd.f32 %v2580_v4, %v927_v47 }
  0xc3   : > { %v791_v52 = vmul.f32 %v2558_v46, %v757_v43  ;;  %v860_v53 = vmul.f32 %v2560_v50, %v757_v43  ;;  %v994_v7 = vmax.f32 %v962_v44, 0.0 }
  0xc4   : > { %v818_v1 = vadd.f32 %v786_v57, %v748_v34  ;;  %v819_v2 = vadd.f32 %v787_v17, %v749_v56  ;;  %v887_v3 = vadd.f32 %v855_v58, %v817_v55  ;;  %v995_v8 = vmax.f32 %v963_v62, 0.0 }
  0xc5   : > { %v823_v59 = vadd.f32 %v791_v52, %v753_v41  ;;  %v892_v60 = vadd.f32 %v860_v53, %v822_v36  ;;  %v835_v56 = vmul.f32 %v2560_v50, %v2640_v22 }
  0xc6   : > { %v888_v9 = vadd.f32 %v856_v33, %v818_v1  ;;  %v889_v10 = vadd.f32 %v857_v0, %v819_v2  ;;  %v923_v11 = vmul.f32 %v2573_v61, %v887_v3  ;;  %v2626_v13 = vmax.f32 %v994_v7, %v995_v8 }
  0xc7   : > { %v893_v5 = vadd.f32 %v861_v39, %v823_v59  ;;  %v928_v6 = vmul.f32 %v2573_v61, %v892_v60  ;;  %v763_v39 = vmul.f32 %v2558_v46, %v584_v49  ;;  %v604_v60 = vpop.permute.xlu2 %603 }
  0xc8   : > { %v959_v40 = vadd.f32 %v2580_v4, %v923_v11  ;;  %1795 = vmatmul.msk.f32.vlgmr.msra.gmra.mxu2 %vm1028_vm0, %v2626_v13  ;;  %v924_v18 = vmul.f32 %v2573_v61, %v888_v9  ;;  %v925_v19 = vmul.f32 %v2573_v61, %v889_v10 }
  0xc9   : > { %v929_v12 = vmul.f32 %v2573_v61, %v893_v5  ;;  %v964_v16 = vadd.f32 %v2580_v4, %v928_v6  ;;  %v574_v17 = vpop.permute.xlu0 %573  ;;  %v766_v6 = vmul.f32 %v2558_v46, %v2640_v22 }
  0xca   : > { %v2629_v15 = vpop.permute.xlu1 %578  ;;  %v724_v21 = vmul.f32 %v2556_v45, %v574_v17  ;;  %v991_v24 = vmax.f32 %v959_v40, 0.0  ;;  %v960_v31 = vadd.f32 %v2580_v4, %v924_v18  ;;  %v961_v32 = vadd.f32 %v2580_v4, %v925_v19 }
  0xcb   : > { %v762_v20 = vmul.f32 %v2558_v46, %v2629_v15  ;;  %v965_v25 = vadd.f32 %v2580_v4, %v929_v12  ;;  %v996_v28 = vmax.f32 %v964_v16, 0.0  ;;  %v725_v33 = vmul.f32 %v2556_v45, %v2629_v15 }
  0xcc   : > { %v2644_v29 = vmax.f32 %v990_v23, %v991_v24  ;;  %v992_v43 = vmax.f32 %v960_v31, 0.0  ;;  %v993_v47 = vmax.f32 %v961_v32, 0.0  ;;  %v761_v11 = vmul.f32 %v2558_v46, %v574_v17 }
  0xcd   : > { %v794_v27 = vadd.f32 %v762_v20, %v724_v21  ;;  %v997_v30 = vmax.f32 %v965_v25, 0.0  ;;  %v795_v54 = vadd.f32 %v763_v39, %v725_v33  ;;  %v831_v20 = vmul.f32 %v2560_v50, %v2629_v15 }
  0xce   : > { %1793 = vmatmul.msk.f32.gmra.mxu1 %vm1028_vm0, %v2644_v29  ;;  %v2666_v62 = vmax.f32 %v992_v43, %v993_v47  ;;  %v830_v21 = vmul.f32 %v2560_v50, %v574_v17  ;;  %v836_v25 = vmul.f32 %v2560_v50, %v604_v60  ;;  %v2338_v15 = vmov 0.0  }
  0xcf   : > { %v864_v34 = vadd.f32 %v832_v26, %v794_v27  ;;  %v2652_v35 = vmax.f32 %v996_v28, %v997_v30  ;;  %v767_v30 = vmul.f32 %v2558_v46, %v604_v60  ;;  %v619_v33 = vpop.permute.xlu2 %618  ;;  %v729_v17 = vmul.f32 %v2556_v45, %v2640_v22 }
  0xd0   : > { %v730_v43 = vmul.f32 %v2556_v45, %v604_v60 }
  0xd1   : > { %1796 = vmatmul.msk.f32.gmra.mxu2 %vm1028_vm0, %v2652_v35  ;;  %v589_v41 = vpop.permute.xlu0 %588  ;;  %v900_v44 = vmul.f32 %v2573_v61, %v864_v34 }
  0xd2   : > { %v594_v38 = vpop.permute.xlu1 %593  ;;  %v727_v52 = vmul.f32 %v2556_v45, %v589_v41  ;;  %v764_v53 = vmul.f32 %v2558_v46, %v589_v41  ;;  %v833_v55 = vmul.f32 %v2560_v50, %v589_v41 }
  0xd3   : > { %v765_v36 = vmul.f32 %v2558_v46, %v594_v38  ;;  %v834_v57 = vmul.f32 %v2560_v50, %v594_v38  ;;  %v728_v1 = vmul.f32 %v2556_v45, %v594_v38  ;;  %v936_v3 = vadd.f32 %v2580_v4, %v900_v44 }
  0xd4   : > { %v796_v58 = vadd.f32 %v764_v53, %v726_v48  ;;  %v865_v49 = vadd.f32 %v833_v55, %v795_v54 }
  0xd5   : > { %v797_v59 = vadd.f32 %v765_v36, %v727_v52  ;;  %v798_v16 = vadd.f32 %v766_v6, %v728_v1  ;;  %v968_v18 = vmax.f32 %v936_v3, 0.0  ;;  %v799_v52 = vadd.f32 %v767_v30, %v729_v17 }
  0xd6   : > { %v866_v63 = vadd.f32 %v834_v57, %v796_v58  ;;  %v901_v2 = vmul.f32 %v2573_v61, %v865_v49  ;;  %1794 = vmatmul.msk.f32.gmra.mxu1 %vm1028_vm0, %v2666_v62  ;;  %v839_v58 = vmul.f32 %v2560_v50, %v619_v33 }
  0xd7   : > { %v867_v0 = vadd.f32 %v835_v56, %v797_v59  ;;  %v868_v34 = vadd.f32 %v836_v25, %v798_v16 }
  0xd8   : > { %v937_v7 = vadd.f32 %v2580_v4, %v901_v2  ;;  %v902_v9 = vmul.f32 %v2573_v61, %v866_v63 }
  0xd9   : > { %v564_v8 = vpop.permute.xlu0 %563  ;;  %v903_v10 = vmul.f32 %v2573_v61, %v867_v0  ;;  %v904_v57 = vmul.f32 %v2573_v61, %v868_v34 }
  0xda   : > { %v569_v5 = vpop.permute.xlu1 %568  ;;  %v722_v40 = vmul.f32 %v2556_v45, %v564_v8  ;;  %v969_v19 = vmax.f32 %v937_v7, 0.0  ;;  %v938_v27 = vadd.f32 %v2580_v4, %v902_v9 }
  0xdb   : > { %v723_v12 = vmul.f32 %v2556_v45, %v569_v5  ;;  %v760_v14 = vmul.f32 %v2558_v46, %v569_v5  ;;  %v939_v28 = vadd.f32 %v2580_v4, %v903_v10  ;;  %v940_v8 = vadd.f32 %v2580_v4, %v904_v57 }
  0xdc   : > { %v2686_v26 = vmax.f32 %v968_v18, %v969_v19  ;;  %v970_v48 = vmax.f32 %v938_v27, 0.0  ;;  %v733_v10 = vmul.f32 %v2556_v45, %v619_v33 }
  0xdd   : > { %v793_v23 = vadd.f32 %v761_v11, %v723_v12  ;;  %v792_v24 = vadd.f32 %v760_v14, %v722_v40  ;;  %v971_v36 = vmax.f32 %v939_v28, 0.0  ;;  %v634_v11 = vpop.permute.xlu2 %633 }
  0xde   : > { %1812 = vmatmul.msk.f32.vlgmr.msrb.gmra.mxu2 %vm1028_vm0, %v2686_v26  ;;  %1161 = vmatmul.f32.vlgmr.msrb.gmra.mxu1 %v2338_v15 }
  0xdf   : > { %v863_v31 = vadd.f32 %v831_v20, %v793_v23  ;;  %v862_v32 = vadd.f32 %v830_v21, %v792_v24  ;;  %v2708_v0 = vmax.f32 %v970_v48, %v971_v36  ;;  %v770_v20 = vmul.f32 %v2558_v46, %v619_v33 }
  0xe0   : > { %v972_v21 = vmax.f32 %v940_v8, 0.0 }
  0xe1   : > { %v899_v38 = vmul.f32 %v2573_v61, %v863_v31  ;;  %v898_v39 = vmul.f32 %v2573_v61, %v862_v32  ;;  %v609_v47 = vpop.permute.xlu0 %608 }
  0xe2   : > { %v614_v41 = vpop.permute.xlu1 %613  ;;  %v731_v54 = vmul.f32 %v2556_v45, %v609_v47  ;;  %v768_v44 = vmul.f32 %v2558_v46, %v609_v47  ;;  %v837_v55 = vmul.f32 %v2560_v50, %v609_v47 }
  0xe3   : > { %v769_v53 = vmul.f32 %v2558_v46, %v614_v41  ;;  %v934_v22 = vadd.f32 %v2580_v4, %v898_v39  ;;  %v935_v56 = vadd.f32 %v2580_v4, %v899_v38  ;;  %v838_v59 = vmul.f32 %v2560_v50, %v614_v41 }
  0xe4   : > { %v800_v60 = vadd.f32 %v768_v44, %v730_v43  ;;  %v869_v63 = vadd.f32 %v837_v55, %v799_v52  ;;  %v732_v12 = vmul.f32 %v2556_v45, %v614_v41  ;;  %v773_v41 = vmul.f32 %v2558_v46, %v634_v11 }
  0xe5   : > { %v801_v49 = vadd.f32 %v769_v53, %v731_v54  ;;  %v966_v1 = vmax.f32 %v934_v22, 0.0  ;;  %v967_v2 = vmax.f32 %v935_v56, 0.0  ;;  %v649_v54 = vpop.permute.xlu2 %648  ;;  %v842_v56 = vmul.f32 %v2560_v50, %v634_v11 }
  0xe6   : > { %v870_v3 = vadd.f32 %v838_v59, %v800_v60  ;;  %v905_v6 = vmul.f32 %v2573_v61, %v869_v63  ;;  %1813 = vmatmul.msk.f32.gmra.mxu2 %vm1028_vm0, %v2708_v0  ;;  %v802_v28 = vadd.f32 %v770_v20, %v732_v12  ;;  %v736_v63 = vmul.f32 %v2556_v45, %v634_v11 }
  0xe7   : > { %v871_v5 = vadd.f32 %v839_v58, %v801_v49  ;;  %v998_v7 = vmax.f32 %v966_v1, %v967_v2 }
  0xe8   : > { %v941_v16 = vadd.f32 %v2580_v4, %v905_v6  ;;  %v906_v18 = vmul.f32 %v2573_v61, %v870_v3 }
  0xe9   : > { %1781 = vmatmul.msk.f32.vlgmr.msra.gmra.mxu0 %vm1028_vm0, %v998_v7  ;;  %1797 = vmatmul.msk.f32.gmra.mxu1 %vm1028_vm0, %v998_v7  ;;  %v624_v14 = vpop.permute.xlu0 %623  ;;  %v907_v19 = vmul.f32 %v2573_v61, %v871_v5 }
  0xea   : > { %v629_v9 = vpop.permute.xlu1 %628  ;;  %v771_v40 = vmul.f32 %v2558_v46, %v624_v14  ;;  %v840_v25 = vmul.f32 %v2560_v50, %v624_v14  ;;  %v973_v27 = vmax.f32 %v941_v16, 0.0  ;;  %v942_v32 = vadd.f32 %v2580_v4, %v906_v18 }
  0xeb   : > { %v841_v23 = vmul.f32 %v2560_v50, %v629_v9  ;;  %v943_v34 = vadd.f32 %v2580_v4, %v907_v19  ;;  %v772_v17 = vmul.f32 %v2558_v46, %v629_v9  ;;  %v734_v38 = vmul.f32 %v2556_v45, %v624_v14 }
  0xec   : > { %v803_v24 = vadd.f32 %v771_v40, %v733_v10  ;;  %v1001_v31 = vmax.f32 %v972_v21, %v973_v27  ;;  %v735_v33 = vmul.f32 %v2556_v45, %v629_v9  ;;  %v872_v39 = vadd.f32 %v840_v25, %v802_v28 }
  0xed   : > { %v974_v36 = vmax.f32 %v942_v32, 0.0  ;;  %v975_v52 = vmax.f32 %v943_v34, 0.0  ;;  %v804_v44 = vadd.f32 %v772_v17, %v734_v38  ;;  %v845_v9 = vmul.f32 %v2560_v50, %v649_v54  ;;  %v664_v14 = vpop.permute.xlu2 %663 }
  0xee   : > { %v873_v30 = vadd.f32 %v841_v23, %v803_v24  ;;  %1814 = vmatmul.msk.f32.gmra.mxu2 %vm1028_vm0, %v1001_v31  ;;  %v805_v55 = vadd.f32 %v773_v41, %v735_v33  ;;  %v908_v22 = vmul.f32 %v2573_v61, %v872_v39  ;;  %v781_v21 = vmul.f32 %v2558_v46, %v2552_v42 }
  0xef   : > { %v2743_v60 = vmax.f32 %v974_v36, %v975_v52  ;;  %v874_v1 = vadd.f32 %v842_v56, %v804_v44  ;;  %v739_v23 = vmul.f32 %v2556_v45, %v649_v54  ;;  %v742_v24 = vmul.f32 %v2556_v45, %v664_v14 }
  0xf0   : > { %v909_v53 = vmul.f32 %v2573_v61, %v873_v30  ;;  %v944_v2 = vadd.f32 %v2580_v4, %v908_v22  ;;  %v850_v39 = vmul.f32 %v2560_v50, %v2552_v42  ;;  %v851_v41 = vmul.f32 %v2560_v50, %v2562_v51 }
  0xf1   : > { %1782 = vmatmul.msk.f32.gmra.mxu0 %vm1028_vm0, %v2686_v26  ;;  %1798 = vmatmul.msk.f32.gmra.mxu1 %vm1028_vm0, %v2686_v26  ;;  %v639_v43 = vpop.permute.xlu0 %638  ;;  %v910_v11 = vmul.f32 %v2573_v61, %v874_v1 }
  0xf2   : > { %v644_v47 = vpop.permute.xlu1 %643  ;;  %v843_v48 = vmul.f32 %v2560_v50, %v639_v43  ;;  %v737_v58 = vmul.f32 %v2556_v45, %v639_v43  ;;  %v774_v26 = vmul.f32 %v2558_v46, %v639_v43  ;;  %v945_v49 = vadd.f32 %v2580_v4, %v909_v53 }
  0xf3   : > { %v775_v57 = vmul.f32 %v2558_v46, %v644_v47  ;;  %v844_v10 = vmul.f32 %v2560_v50, %v644_v47  ;;  %v976_v12 = vmax.f32 %v944_v2, 0.0  ;;  %v946_v20 = vadd.f32 %v2580_v4, %v910_v11 }
  0xf4   : > { %v875_v59 = vadd.f32 %v843_v48, %v805_v55  ;;  %v806_v3 = vadd.f32 %v774_v26, %v736_v63  ;;  %v977_v8 = vmax.f32 %v945_v49, 0.0  ;;  %v738_v25 = vmul.f32 %v2556_v45, %v644_v47 }
  0xf5   : > { %v807_v5 = vadd.f32 %v775_v57, %v737_v58  ;;  %v776_v43 = vmul.f32 %v2558_v46, %v649_v54  ;;  %v779_v63 = vmul.f32 %v2558_v46, %v664_v14  ;;  %v848_v11 = vmul.f32 %v2560_v50, %v664_v14 }
  0xf6   : > { %1815 = vmatmul.msk.f32.gmra.mxu2 %vm1028_vm0, %v2743_v60  ;;  %v911_v7 = vmul.f32 %v2573_v61, %v875_v59  ;;  %v876_v40 = vadd.f32 %v844_v10, %v806_v3  ;;  %v2759_v19 = vmax.f32 %v976_v12, %v977_v8 }
  0xf7   : > { %v877_v16 = vadd.f32 %v845_v9, %v807_v5  ;;  %v808_v53 = vadd.f32 %v776_v43, %v738_v25 }
  0xf8   : > { %v912_v30 = vmul.f32 %v2573_v61, %v876_v40 }
  0xf9   : > { %1783 = vmatmul.msk.f32.gmra.mxu0 %vm1028_vm0, %v2708_v0  ;;  %1799 = vmatmul.msk.f32.gmra.mxu1 %vm1028_vm0, %v2708_v0  ;;  %v654_v6 = vpop.permute.xlu0 %653  ;;  %v947_v0 = vadd.f32 %v2580_v4, %v911_v7  ;;  %v913_v32 = vmul.f32 %v2573_v61, %v877_v16 }
  0xfa   : > { %v777_v18 = vmul.f32 %v2558_v46, %v654_v6  ;;  %v659_v27 = vpop.permute.xlu1 %658  ;;  %v846_v48 = vmul.f32 %v2560_v50, %v654_v6  ;;  %v948_v44 = vadd.f32 %v2580_v4, %v912_v30  ;;  %v740_v58 = vmul.f32 %v2556_v45, %v654_v6 }
  0xfb   : > { %v979_v33 = vmax.f32 %v947_v0, 0.0  ;;  %v847_v47 = vmul.f32 %v2560_v50, %v659_v27  ;;  %v949_v55 = vadd.f32 %v2580_v4, %v913_v32  ;;  %v741_v51 = vmul.f32 %v2556_v45, %v659_v27  ;;  %v1367_v32 = vld [vmem:[#allocation12 + $0x70] sm:$0xff] }
  0xfc   : > { %v809_v34 = vadd.f32 %v777_v18, %v739_v23  ;;  %v778_v54 = vmul.f32 %v2558_v46, %v659_v27  ;;  %v878_v26 = vadd.f32 %v846_v48, %v808_v53  ;;  %v980_v1 = vmax.f32 %v948_v44, 0.0 }
  0xfd   : > { %v981_v2 = vmax.f32 %v949_v55, 0.0  ;;  %v811_v7 = vadd.f32 %v779_v63, %v741_v51  ;;  %v2855_v51 = vld [vmem:[#allocation9] ss:$0 sm:$0xff] }
  0xfe   : > { %1816 = vmatmul.msk.f32.gmra.mxu2 %vm1028_vm0, %v2759_v19  ;;  %v879_v22 = vadd.f32 %v847_v47, %v809_v34  ;;  %v810_v8 = vadd.f32 %v778_v54, %v740_v58  ;;  %v1374_v47 = vld [vmem:[#allocation12 + $0xa8] sm:$0xff] }
 0x100   : > { %v880_v18 = vadd.f32 %v848_v11, %v810_v8 }
 0x101   : > { %1784 = vmatmul.msk.f32.gmra.mxu0 %vm1028_vm0, %v1001_v31  ;;  %1800 = vmatmul.msk.f32.gmra.mxu1 %vm1028_vm0, %v1001_v31  ;;  %v669_v28 = vpop.permute.xlu0 %668  ;;  %v978_v31 = vmax.f32 %v946_v20, 0.0 }
 0x102   : > { %v743_v17 = vmul.f32 %v2556_v45, %v669_v28  ;;  %v780_v38 = vmul.f32 %v2558_v46, %v669_v28  ;;  %v849_v3 = vmul.f32 %v2560_v50, %v669_v28  ;;  %v915_v45 = vmul.f32 %v2573_v61, %v879_v22  ;;  %v1370_v22 = vld [vmem:[#allocation12 + $0x88] sm:$0xff] }
 0x103   : > { %v1004_v57 = vmax.f32 %v978_v31, %v979_v33  ;;  %v914_v46 = vmul.f32 %v2573_v61, %v878_v26  ;;  %v916_v14 = vmul.f32 %v2573_v61, %v880_v18  ;;  %v1363_v33 = vld [vmem:[#allocation12 + $0x50] sm:$0xff] }
 0x104   : > { %v812_v36 = vadd.f32 %v780_v38, %v742_v24  ;;  %v813_v52 = vadd.f32 %v781_v21, %v743_v17  ;;  %v881_v12 = vadd.f32 %v849_v3, %v811_v7  ;;  %v951_v40 = vadd.f32 %v2580_v4, %v915_v45  ;;  %v1365_v17 = vld [vmem:[#allocation12 + $0x60] sm:$0xff]  ;;  %v1364_v38 = vld [vmem:[#allocation12 + $0x58] sm:$0xff]  ;;  %v1375_v31 = vld [vmem:[#allocation12 + $0xb0] sm:$0xff] }
 0x105   : > { %v950_v0 = vadd.f32 %v2580_v4, %v914_v46  ;;  %v952_v25 = vadd.f32 %v2580_v4, %v916_v14 }
 0x106   : > { %v882_v56 = vadd.f32 %v850_v39, %v812_v36  ;;  %v883_v42 = vadd.f32 %v851_v41, %v813_v52  ;;  %1817 = vmatmul.msk.f32.gmra.mxu2 %vm1028_vm0, %v1004_v57  ;;  %v917_v20 = vmul.f32 %v2573_v61, %v881_v12  ;;  %v983_v21 = vmax.f32 %v951_v40, 0.0  ;;  %v1362_v39 = vld [vmem:[#allocation12 + $0x48] sm:$0xff]  ;;  %v1361_v41 = vld [vmem:[#allocation12 + $0x40] sm:$0xff]  ;;  %v1372_v52 = vld [vmem:[#allocation12 + $0x98] sm:$0xff] }
 0x107   : > { %v982_v50 = vmax.f32 %v950_v0, 0.0  ;;  %v984_v28 = vmax.f32 %v952_v25, 0.0  ;;  %v1373_v36 = vld [vmem:[#allocation12 + $0xa0] sm:$0xff] }
 0x108   : > { %v918_v59 = vmul.f32 %v2573_v61, %v882_v56  ;;  %v919_v49 = vmul.f32 %v2573_v61, %v883_v42  ;;  %v953_v24 = vadd.f32 %v2580_v4, %v917_v20  ;;  %v1369_v42 = vld [vmem:[#allocation12 + $0x80] sm:$0xff] }
 0x109   : > { %1785 = vmatmul.msk.f32.gmra.mxu0 %vm1028_vm0, %v2743_v60  ;;  %1801 = vmatmul.msk.f32.gmra.mxu1 %vm1028_vm0, %v2743_v60  ;;  %v1005_v60 = vmax.f32 %v980_v1, %v981_v2  ;;  %v1006_v23 = vmax.f32 %v982_v50, %v983_v21 }
 0x10a   : > { %v954_v5 = vadd.f32 %v2580_v4, %v918_v59  ;;  %v955_v6 = vadd.f32 %v2580_v4, %v919_v49  ;;  %v985_v27 = vmax.f32 %v953_v24, 0.0  ;;  %v1368_v4 = vld [vmem:[#allocation12 + $0x78] sm:$0xff] }
 0x10b   : > { %1412 = vmatpush.msra.mxu3 %v1368_v4  ;;  %v2858_v49 = vld [vmem:[#allocation10] ss:$0 sm:$0xff] }
 0x10c   : > { %v986_v9 = vmax.f32 %v954_v5, 0.0  ;;  %v987_v10 = vmax.f32 %v955_v6, 0.0 }
 0x10d   : > { %1413 = vmatpush.msra.mxu3 %v1367_v32  ;;  %v1360_v32 = vld [vmem:[#allocation12 + $0x38] sm:$0xff] }
 0x10e   : > { %v1008_v16 = vmax.f32 %v986_v9, %v987_v10  ;;  %1818 = vmatmul.msk.f32.gmra.mxu2 %vm1028_vm0, %v1005_v60 }
 0x111   : > { %1786 = vmatmul.msk.f32.gmra.mxu0 %vm1028_vm0, %v2759_v19  ;;  %1802 = vmatmul.msk.f32.gmra.mxu1 %vm1028_vm0, %v2759_v19  ;;  %v1007_v19 = vmax.f32 %v984_v28, %v985_v27 }
 0x116   : > { %1819 = vmatmul.msk.f32.gmra.mxu2 %vm1028_vm0, %v1006_v23 }
 0x119   : > { %1787 = vmatmul.msk.f32.gmra.mxu0 %vm1028_vm0, %v1004_v57  ;;  %1803 = vmatmul.msk.f32.gmra.mxu1 %vm1028_vm0, %v1004_v57 }
 0x11e   : > { %1820 = vmatmul.msk.f32.gmra.mxu2 %vm1028_vm0, %v1007_v19 }
 0x121   : > { %1788 = vmatmul.msk.f32.gmra.mxu0 %vm1028_vm0, %v1005_v60  ;;  %1804 = vmatmul.msk.f32.gmra.mxu1 %vm1028_vm0, %v1005_v60 }
 0x126   : > { %1821 = vmatmul.msk.f32.gmra.mxu2 %vm1028_vm0, %v1008_v16 }
 0x129   : > { %1789 = vmatmul.msk.f32.gmra.mxu0 %vm1028_vm0, %v1006_v23  ;;  %1805 = vmatmul.msk.f32.gmra.mxu1 %vm1028_vm0, %v1006_v23 }
 0x12e   : > { %1822 = vmatmul.msk.f32.gmra.mxu2 %vm1028_vm0, %v2604_v37 }
 0x131   : > { %1790 = vmatmul.msk.f32.gmra.mxu0 %vm1028_vm0, %v1007_v19  ;;  %1806 = vmatmul.msk.f32.gmra.mxu1 %vm1028_vm0, %v1007_v19 }
 0x136   : > { %1823 = vmatmul.msk.f32.gmra.mxu2 %vm1028_vm0, %v2644_v29 }
 0x139   : > { %1791 = vmatmul.msk.f32.gmra.mxu0 %vm1028_vm0, %v1008_v16  ;;  %1807 = vmatmul.msk.f32.gmra.mxu1 %vm1028_vm0, %v1008_v16 }
 0x13d   : > { %v2834_v61 = vpop.f32.mrf.mxu1 }
 0x13e   : > { %1824 = vmatmul.msk.f32.gmra.mxu2 %vm1028_vm0, %v2666_v62 }
 0x141   : > { %1808 = vmatmul.msk.f32.gmra.mxu1 %vm1028_vm0, %v2604_v37  ;;  %v1366_v37 = vld [vmem:[#allocation12 + $0x68] sm:$0xff] }
 0x142   : > { %1414 = vmatpush.msra.mxu3 %v1366_v37 }
 0x144   : > { %1415 = vmatpush.msra.mxu3 %v1365_v17 }
 0x146   : > { %1825 = vmatmul.msk.f32.gmra.mxu2 %vm1028_vm0, %v2626_v13  ;;  %1416 = vmatpush.msra.mxu3 %v1364_v38 }
 0x148   : > { %1417 = vmatpush.msra.mxu3 %v1363_v33 }
 0x149   : > { %1809 = vmatmul.msk.f32.gmra.mxu1 %vm1028_vm0, %v2644_v29 }
 0x14a   : > { %1418 = vmatpush.msra.mxu3 %v1362_v39 }
 0x14b   : > { %v2840_v30 = vpop.f32.mrf.mxu1  ;;  %v2842_v34 = vpop.f32.mrf.mxu2 }
 0x14c   : > { %1419 = vmatpush.msra.mxu3 %v1361_v41 }
 0x14e   : > { %1826 = vmatmul.msk.f32.gmra.mxu2 %vm1028_vm0, %v2652_v35  ;;  %1455 = vmatpush.msrb.mxu3 %v1360_v32 }
 0x151   : > { %1810 = vmatmul.msk.f32.gmra.mxu1 %vm1028_vm0, %v2666_v62  ;;  %v1376_v62 = vld [vmem:[#allocation12 + $0xb8] sm:$0xff] }
 0x152   : > { %1496 = vmatpush.msrb.mxu0 %v1376_v62 }
 0x153   : > { %v2848_v29 = vpop.f32.mrf.mxu1 }
 0x154   : > { %v2853_v35 = vpop.f32.mrf.mxu2  ;;  %1497 = vmatpush.msrb.mxu0 %v1375_v31  ;;  %v1359_v31 = vld [vmem:[#allocation12 + $0x30] sm:$0xff] }
 0x155   : > { %1456 = vmatpush.msrb.mxu3 %v1359_v31 }
 0x156   : > { %1271 = vmatmul.f32.gmra.mxu2 %v2338_v15  ;;  %1498 = vmatpush.msrb.mxu0 %v1374_v47 }
 0x158   : > { %1499 = vmatpush.msrb.mxu0 %v1373_v36 }
 0x159   : > { %1811 = vmatmul.msk.f32.gmra.mxu1 %vm1028_vm0, %v2626_v13  ;;  %v1371_v13 = vld [vmem:[#allocation12 + $0x90] sm:$0xff] }
 0x15a   : > { %1500 = vmatpush.msrb.mxu0 %v1372_v52 }
 0x15b   : > { %v1162_v43 = vpop.f32.mrf.mxu1 }
 0x15c   : > { %1501 = vmatpush.msrb.mxu0 %v1371_v13 }
 0x15e   : > { %1502 = vmatpush.msrb.mxu0 %v1370_v22 }
 0x160   : > { %1503 = vmatpush.msrb.mxu0 %v1369_v42 }
 0x161   : > { %v1227_v48 = vpop.f32.mrf.mxu2 }
 0x166   : > { %v1094_v53 = vpop.f32.mrf.mxu0  ;;  %v1165_v44 = vpop.f32.mrf.mxu1 }
 0x167   : > { %v1163_v55 = vadd.f32 %v1162_v43, %v1094_v53 }
 0x169   : > { %v1230_v56 = vpop.f32.mrf.mxu2  ;;  %v1275_v57 = vadd.f32 %v1227_v48, %v1163_v55 }
 0x16b   : > { %v1294_v26 = vmul.f32 %v2855_v51, %v1275_v57 }
 0x16d   : > { %v1313_v3 = vadd.f32 %v2858_v49, %v1294_v26  ;;  %v1358_v26 = vld [vmem:[#allocation12 + $0x28] sm:$0xff] }
 0x16e   : > { %v1097_v54 = vpop.f32.mrf.mxu0  ;;  %v1168_v58 = vpop.f32.mrf.mxu1  ;;  %1457 = vmatpush.msrb.mxu3 %v1358_v26 }
 0x16f   : > { %v1166_v59 = vadd.f32 %v1165_v44, %v1097_v54  ;;  %v1329_v8 = vmax.f32 %v1313_v3, 0.0 }
 0x171   : > { %v1276_v63 = vadd.f32 %v1230_v56, %v1166_v59  ;;  %v1233_v2 = vpop.f32.mrf.mxu2 }
 0x173   : > { %v1295_v1 = vmul.f32 %v2855_v51, %v1276_v63 }
 0x175   : > { %v1314_v45 = vadd.f32 %v2858_v49, %v1295_v1 }
 0x176   : > { %v1100_v5 = vpop.f32.mrf.mxu0  ;;  %v1171_v6 = vpop.f32.mrf.mxu1 }
 0x177   : > { %v1169_v7 = vadd.f32 %v1168_v58, %v1100_v5  ;;  %v1330_v46 = vmax.f32 %v1314_v45, 0.0 }
 0x179   : > { %v2863_v9 = vmax.f32 %v1329_v8, %v1330_v46  ;;  %v1277_v10 = vadd.f32 %v1233_v2, %v1169_v7  ;;  %v1236_v11 = vpop.f32.mrf.mxu2  ;;  %v1357_v46 = vld [vmem:[#allocation12 + $0x20] sm:$0xff] }
 0x17a   : > { %1458 = vmatpush.msrb.mxu3 %v1357_v46 }
 0x17b   : > { %1827 = vmatmul.msk.f32.vlgmr.msra.gmra.mxu3 %vm1379_vm1, %v2863_v9  ;;  %v1296_v40 = vmul.f32 %v2855_v51, %v1277_v10 }
 0x17d   : > { %v1315_v21 = vadd.f32 %v2858_v49, %v1296_v40 }
 0x17e   : > { %v1103_v12 = vpop.f32.mrf.mxu0  ;;  %v1174_v60 = vpop.f32.mrf.mxu1 }
 0x17f   : > { %v1172_v16 = vadd.f32 %v1171_v6, %v1103_v12  ;;  %v1331_v25 = vmax.f32 %v1315_v21, 0.0 }
 0x181   : > { %v1278_v18 = vadd.f32 %v1236_v11, %v1172_v16  ;;  %v1239_v20 = vpop.f32.mrf.mxu2 }
 0x183   : > { %v1297_v0 = vmul.f32 %v2855_v51, %v1278_v18 }
 0x185   : > { %v1316_v50 = vadd.f32 %v2858_v49, %v1297_v0  ;;  %v1356_v0 = vld [vmem:[#allocation12 + $0x18] sm:$0xff] }
 0x186   : > { %v1106_v14 = vpop.f32.mrf.mxu0  ;;  %v1177_v23 = vpop.f32.mrf.mxu1  ;;  %1459 = vmatpush.msrb.mxu3 %v1356_v0 }
 0x187   : > { %v1175_v24 = vadd.f32 %v1174_v60, %v1106_v14  ;;  %v1332_v27 = vmax.f32 %v1316_v50, 0.0 }
 0x189   : > { %v2871_v28 = vmax.f32 %v1331_v25, %v1332_v27  ;;  %v1279_v19 = vadd.f32 %v1239_v20, %v1175_v24  ;;  %v1242_v4 = vpop.f32.mrf.mxu2 }
 0x18b   : > { %1828 = vmatmul.msk.f32.gmra.mxu3 %vm1379_vm1, %v2871_v28  ;;  %1842 = vmatmul.msk.f32.vlgmr.msrb.gmra.mxu0 %vm1379_vm1, %v2871_v28  ;;  %v1298_v38 = vmul.f32 %v2855_v51, %v1279_v19 }
 0x18d   : > { %v1317_v43 = vadd.f32 %v2858_v49, %v1298_v38 }
 0x18e   : > { %v1109_v37 = vpop.f32.mrf.mxu0  ;;  %v1180_v17 = vpop.f32.mrf.mxu1 }
 0x18f   : > { %v1178_v33 = vadd.f32 %v1177_v23, %v1109_v37  ;;  %v1333_v53 = vmax.f32 %v1317_v43, 0.0 }
 0x191   : > { %v1280_v39 = vadd.f32 %v1242_v4, %v1178_v33  ;;  %v1245_v62 = vpop.f32.mrf.mxu2 }
 0x193   : > { %v1299_v41 = vmul.f32 %v2855_v51, %v1280_v39 }
 0x195   : > { %v1318_v47 = vadd.f32 %v2858_v49, %v1299_v41 }
 0x196   : > { %v1112_v48 = vpop.f32.mrf.mxu0  ;;  %v1183_v36 = vpop.f32.mrf.mxu1 }
 0x197   : > { %v1181_v52 = vadd.f32 %v1180_v17, %v1112_v48  ;;  %v1334_v44 = vmax.f32 %v1318_v47, 0.0  ;;  %v1355_v17 = vld [vmem:[#allocation12 + $0x10] sm:$0xff] }
 0x198   : > { %1460 = vmatpush.msrb.mxu3 %v1355_v17 }
 0x199   : > { %v2881_v13 = vmax.f32 %v1333_v53, %v1334_v44  ;;  %v1281_v55 = vadd.f32 %v1245_v62, %v1181_v52  ;;  %v1248_v22 = vpop.f32.mrf.mxu2 }
 0x19b   : > { %1829 = vmatmul.msk.f32.gmra.mxu3 %vm1379_vm1, %v2881_v13  ;;  %1843 = vmatmul.msk.f32.gmra.mxu0 %vm1379_vm1, %v2881_v13  ;;  %v1300_v57 = vmul.f32 %v2855_v51, %v1281_v55 }
 0x19d   : > { %v1319_v1 = vadd.f32 %v2858_v49, %v1300_v57 }
 0x19e   : > { %v1115_v56 = vpop.f32.mrf.mxu0  ;;  %v1186_v42 = vpop.f32.mrf.mxu1 }
 0x19f   : > { %v1184_v54 = vadd.f32 %v1183_v36, %v1115_v56  ;;  %v1335_v6 = vmax.f32 %v1319_v1, 0.0 }
 0x1a1   : > { %v1282_v58 = vadd.f32 %v1248_v22, %v1184_v54  ;;  %v1251_v63 = vpop.f32.mrf.mxu2  ;;  %v1353_v22 = vld [vmem:[#allocation12] sm:$0xff] }
 0x1a3   : > { %v1301_v59 = vmul.f32 %v2855_v51, %v1282_v58 }
 0x1a5   : > { %v1320_v2 = vadd.f32 %v2858_v49, %v1301_v59 }
 0x1a6   : > { %v1118_v3 = vpop.f32.mrf.mxu0  ;;  %v1189_v45 = vpop.f32.mrf.mxu1 }
 0x1a7   : > { %v1187_v5 = vadd.f32 %v1186_v42, %v1118_v3  ;;  %v1336_v7 = vmax.f32 %v1320_v2, 0.0 }
 0x1a9   : > { %v2891_v8 = vmax.f32 %v1335_v6, %v1336_v7  ;;  %v1283_v10 = vadd.f32 %v1251_v63, %v1187_v5  ;;  %v1254_v11 = vpop.f32.mrf.mxu2 }
 0x1ab   : > { %1830 = vmatmul.msk.f32.gmra.mxu3 %vm1379_vm1, %v2891_v8  ;;  %1844 = vmatmul.msk.f32.gmra.mxu0 %vm1379_vm1, %v2891_v8  ;;  %v1302_v40 = vmul.f32 %v2855_v51, %v1283_v10 }
 0x1ad   : > { %v1321_v50 = vadd.f32 %v2858_v49, %v1302_v40 }
 0x1ae   : > { %v1121_v12 = vpop.f32.mrf.mxu0  ;;  %v1192_v60 = vpop.f32.mrf.mxu1 }
 0x1af   : > { %v1190_v16 = vadd.f32 %v1189_v45, %v1121_v12  ;;  %v1337_v27 = vmax.f32 %v1321_v50, 0.0 }
 0x1b1   : > { %v1284_v18 = vadd.f32 %v1254_v11, %v1190_v16  ;;  %v1257_v21 = vpop.f32.mrf.mxu2 }
 0x1b3   : > { %v1303_v20 = vmul.f32 %v2855_v51, %v1284_v18 }
 0x1b5   : > { %v1322_v14 = vadd.f32 %v2858_v49, %v1303_v20 }
 0x1b6   : > { %v1124_v23 = vpop.f32.mrf.mxu0  ;;  %v1195_v24 = vpop.f32.mrf.mxu1 }
 0x1b7   : > { %v1193_v25 = vadd.f32 %v1192_v60, %v1124_v23  ;;  %v1338_v19 = vmax.f32 %v1322_v14, 0.0  ;;  %v1196_v37 = vadd.f32 %v1195_v24, %v2834_v61  ;;  %v1354_v61 = vld [vmem:[#allocation12 + $0x8] sm:$0xff] }
 0x1b8   : > { %1461 = vmatpush.msrb.mxu3 %v1354_v61 }
 0x1b9   : > { %v1285_v4 = vadd.f32 %v1257_v21, %v1193_v25  ;;  %v1349_v32 = vmax.f32 %v1337_v27, %v1338_v19  ;;  %v1260_v33 = vpop.f32.mrf.mxu2  ;;  %v2011_v25 = vld [vmem:[#allocation15] ss:$0 sm:$0xff] }
 0x1ba   : > { %v1286_v39 = vadd.f32 %v1260_v33, %v1196_v37  ;;  %1462 = vmatpush.msrb.mxu3 %v1353_v22 }
 0x1bb   : > { %v1304_v38 = vmul.f32 %v2855_v51, %v1285_v4  ;;  %1831 = vmatmul.msk.f32.gmra.mxu3 %vm1379_vm1, %v1349_v32  ;;  %1845 = vmatmul.msk.f32.gmra.mxu0 %vm1379_vm1, %v1349_v32 }
 0x1bc   : > { %v1305_v41 = vmul.f32 %v2855_v51, %v1286_v39 }
 0x1bd   : > { %v1323_v43 = vadd.f32 %v2858_v49, %v1304_v38 }
 0x1be   : > { %v1198_v62 = vpop.f32.mrf.mxu1  ;;  %v1324_v31 = vadd.f32 %v2858_v49, %v1305_v41 }
 0x1bf   : > { %v1339_v48 = vmax.f32 %v1323_v43, 0.0  ;;  %v1199_v52 = vadd.f32 %v1198_v62, %v2840_v30 }
 0x1c0   : > { %v1340_v47 = vmax.f32 %v1324_v31, 0.0 }
 0x1c1   : > { %v1263_v36 = vpop.f32.mrf.mxu2 }
 0x1c2   : > { %v1350_v53 = vmax.f32 %v1339_v48, %v1340_v47  ;;  %v1287_v44 = vadd.f32 %v1263_v36, %v1199_v52 }
 0x1c4   : > { %1832 = vmatmul.msk.f32.gmra.mxu3 %vm1379_vm1, %v1350_v53  ;;  %1846 = vmatmul.msk.f32.gmra.mxu0 %vm1379_vm1, %v1350_v53  ;;  %v1306_v56 = vmul.f32 %v2855_v51, %v1287_v44 }
 0x1c6   : > { %v1201_v55 = vpop.f32.mrf.mxu1  ;;  %v1325_v58 = vadd.f32 %v2858_v49, %v1306_v56 }
 0x1c7   : > { %v1202_v42 = vadd.f32 %v1201_v55, %v2848_v29 }
 0x1c8   : > { %v1341_v63 = vmax.f32 %v1325_v58, 0.0 }
 0x1c9   : > { %v1266_v57 = vpop.f32.mrf.mxu2 }
 0x1ca   : > { %v1288_v54 = vadd.f32 %v1266_v57, %v1202_v42 }
 0x1cc   : > { %v1307_v26 = vmul.f32 %v2855_v51, %v1288_v54 }
 0x1ce   : > { %v1204_v30 = vpop.f32.mrf.mxu1  ;;  %v1326_v59 = vadd.f32 %v2858_v49, %v1307_v26 }
 0x1cf   : > { %v1205_v3 = vadd.f32 %v1204_v30, %v2842_v34 }
 0x1d0   : > { %v1342_v1 = vmax.f32 %v1326_v59, 0.0 }
 0x1d1   : > { %v1269_v2 = vpop.f32.mrf.mxu2 }
 0x1d2   : > { %v1351_v45 = vmax.f32 %v1341_v63, %v1342_v1  ;;  %v1289_v5 = vadd.f32 %v1269_v2, %v1205_v3 }
 0x1d4   : > { %1833 = vmatmul.msk.f32.gmra.mxu3 %vm1379_vm1, %v1351_v45  ;;  %1847 = vmatmul.msk.f32.gmra.mxu0 %vm1379_vm1, %v1351_v45  ;;  %v1308_v6 = vmul.f32 %v2855_v51, %v1289_v5 }
 0x1d6   : > { %v1207_v29 = vpop.f32.mrf.mxu1  ;;  %v1327_v11 = vadd.f32 %v2858_v49, %v1308_v6 }
 0x1d7   : > { %v1208_v7 = vadd.f32 %v1207_v29, %v2853_v35 }
 0x1d8   : > { %v1343_v34 = vmax.f32 %v1327_v11, 0.0 }
 0x1d9   : > { %v1272_v46 = vpop.f32.mrf.mxu2 }
 0x1da   : > { %v1290_v10 = vadd.f32 %v1272_v46, %v1208_v7 }
 0x1dc   : > { %v1309_v12 = vmul.f32 %v2855_v51, %v1290_v10 }
 0x1de   : > { %v1328_v60 = vadd.f32 %v2858_v49, %v1309_v12 }
 0x1e0   : > { %v1344_v40 = vmax.f32 %v1328_v60, 0.0 }
 0x1e2   : > { %v1352_v16 = vmax.f32 %v1343_v34, %v1344_v40 }
 0x1e4   : > { %1834 = vmatmul.msk.f32.gmra.mxu3 %vm1379_vm1, %v1352_v16  ;;  %1848 = vmatmul.msk.f32.gmra.mxu0 %vm1379_vm1, %v1352_v16 }
 0x1ec   : > { %1463 = vmatmul.f32.vlgmr.msrb.gmra.mxu3 %v2338_v15  ;;  %1525 = vmatmul.f32.gmra.mxu0 %v2338_v15 }
 0x1f4   : > { %1835 = vmatmul.msk.f32.gmra.mxu3 %vm1379_vm1, %v2863_v9 }
 0x1fc   : > { %1836 = vmatmul.msk.f32.gmra.mxu3 %vm1379_vm1, %v2871_v28 }
 0x1fe   : > { %v1421_v35 = vpop.f32.mrf.mxu3 }
 0x204   : > { %1837 = vmatmul.msk.f32.gmra.mxu3 %vm1379_vm1, %v2881_v13 }
 0x208   : > { %v1505_v20 = vpop.f32.mrf.mxu0 }
 0x20c   : > { %1838 = vmatmul.msk.f32.gmra.mxu3 %vm1379_vm1, %v2891_v8  ;;  %v2010_v8 = vld [vmem:[#allocation13] ss:$0 sm:$0xff] }
 0x20e   : > { %v1424_v15 = vpop.f32.mrf.mxu3 }
 0x214   : > { %1839 = vmatmul.msk.f32.gmra.mxu3 %vm1379_vm1, %v1349_v32 }
 0x218   : > { %v1508_v14 = vpop.f32.mrf.mxu0 }
 0x21c   : > { %1840 = vmatmul.msk.f32.gmra.mxu3 %vm1379_vm1, %v1350_v53 }
 0x21e   : > { %v1427_v51 = vpop.f32.mrf.mxu3 }
 0x224   : > { %1841 = vmatmul.msk.f32.gmra.mxu3 %vm1379_vm1, %v1351_v45 }
 0x228   : > { %v1511_v17 = vpop.f32.mrf.mxu0 }
 0x22e   : > { %v1430_v49 = vpop.f32.mrf.mxu3 }
 0x238   : > { %v1514_v31 = vpop.f32.mrf.mxu0 }
 0x23e   : > { %v1433_v9 = vpop.f32.mrf.mxu3 }
 0x241   : > { %v1517_v55 = vpop.f32.mrf.mxu0 }
 0x247   : > { %v1436_v18 = vpop.f32.mrf.mxu3 }
 0x251   : > { %v1520_v26 = vpop.f32.mrf.mxu0 }
 0x257   : > { %v1439_v28 = vpop.f32.mrf.mxu3 }
 0x261   : > { %v1523_v5 = vpop.f32.mrf.mxu0 }
 0x267   : > { %v1442_v0 = vpop.f32.mrf.mxu3 }
 0x269   : > { %v1526_v60 = vpop.f32.mrf.mxu0 }
 0x26f   : > { %v1464_v13 = vpop.f32.mrf.mxu3 }
 0x270   : > { %v1465_v21 = vadd.f32 %v1464_v13, %v1421_v35 }
 0x272   : > { %v1529_v50 = vadd.f32 %v1505_v20, %v1465_v21 }
 0x274   : > { %v1540_v24 = vmul.f32 %v2010_v8, %v1529_v50 }
 0x276   : > { %v1551_v4 = vadd.f32 %v2011_v25, %v1540_v24 }
 0x277   : > { %v1467_v23 = vpop.f32.mrf.mxu3 }
 0x278   : > { %v1468_v27 = vadd.f32 %v1467_v23, %v1424_v15  ;;  %v1559_v33 = vmax.f32 %v1551_v4, 0.0 }
 0x27a   : > { %v1530_v19 = vadd.f32 %v1508_v14, %v1468_v27 }
 0x27c   : > { %v1541_v32 = vmul.f32 %v2010_v8, %v1530_v19 }
 0x27e   : > { %v1552_v37 = vadd.f32 %v2011_v25, %v1541_v32 }
 0x27f   : > { %v1470_v38 = vpop.f32.mrf.mxu3 }
 0x280   : > { %v1560_v39 = vmax.f32 %v1552_v37, 0.0  ;;  %v1471_v41 = vadd.f32 %v1470_v38, %v1427_v51 }
 0x282   : > { %v1855_v62 = vpack.c.bf16 %v1560_v39, %v1559_v33  ;;  %v1531_v43 = vadd.f32 %v1511_v17, %v1471_v41 }
 0x284   : > { %1856 = vst [vmem:[%s2943_s11] sm:$0xff] %v1855_v62   ;;  %v1542_v48 = vmul.f32 %v2010_v8, %v1531_v43 }
 0x286   : > { %v1553_v52 = vadd.f32 %v2011_v25, %v1542_v48 }
 0x287   : > { %v1473_v47 = vpop.f32.mrf.mxu3 }
 0x288   : > { %v1474_v61 = vadd.f32 %v1473_v47, %v1430_v49  ;;  %v1561_v56 = vmax.f32 %v1553_v52, 0.0 }
 0x28a   : > { %v1532_v36 = vadd.f32 %v1514_v31, %v1474_v61 }
 0x28c   : > { %v1543_v53 = vmul.f32 %v2010_v8, %v1532_v36 }
 0x28e   : > { %v1554_v44 = vadd.f32 %v2011_v25, %v1543_v53 }
 0x28f   : > { %v1476_v22 = vpop.f32.mrf.mxu3 }
 0x290   : > { %v1562_v42 = vmax.f32 %v1554_v44, 0.0  ;;  %v1477_v57 = vadd.f32 %v1476_v22, %v1433_v9 }
 0x292   : > { %v1860_v54 = vpack.c.bf16 %v1562_v42, %v1561_v56  ;;  %v1533_v58 = vadd.f32 %v1517_v55, %v1477_v57 }
 0x294   : > { %1872 = vst [vmem:[%s2943_s11 + $0x8] sm:$0xff] %v1860_v54   ;;  %v1544_v59 = vmul.f32 %v2010_v8, %v1533_v58 }
 0x296   : > { %v1555_v2 = vadd.f32 %v2011_v25, %v1544_v59 }
 0x297   : > { %v1479_v30 = vpop.f32.mrf.mxu3 }
 0x298   : > { %v1480_v63 = vadd.f32 %v1479_v30, %v1436_v18  ;;  %v1563_v6 = vmax.f32 %v1555_v2, 0.0 }
 0x29a   : > { %v1534_v1 = vadd.f32 %v1520_v26, %v1480_v63 }
 0x29c   : > { %v1545_v3 = vmul.f32 %v2010_v8, %v1534_v1 }
 0x29e   : > { %v1556_v45 = vadd.f32 %v2011_v25, %v1545_v3 }
 0x29f   : > { %v1482_v29 = vpop.f32.mrf.mxu3 }
 0x2a0   : > { %v1564_v7 = vmax.f32 %v1556_v45, 0.0  ;;  %v1483_v46 = vadd.f32 %v1482_v29, %v1439_v28 }
 0x2a2   : > { %v1865_v10 = vpack.c.bf16 %v1564_v7, %v1563_v6  ;;  %v1535_v11 = vadd.f32 %v1523_v5, %v1483_v46 }
 0x2a4   : > { %1873 = vst [vmem:[%s2943_s11 + $0x10] sm:$0xff] %v1865_v10   ;;  %v1546_v34 = vmul.f32 %v2010_v8, %v1535_v11 }
 0x2a6   : > { %v1557_v35 = vadd.f32 %v2011_v25, %v1546_v34 }
 0x2a7   : > { %v1485_v12 = vpop.f32.mrf.mxu3 }
 0x2a8   : > { %v1486_v40 = vadd.f32 %v1485_v12, %v1442_v0  ;;  %v1565_v49 = vmax.f32 %v1557_v35, 0.0 }
 0x2aa   : > { %v1536_v16 = vadd.f32 %v1526_v60, %v1486_v40 }
 0x2ac   : > { %v1547_v15 = vmul.f32 %v2010_v8, %v1536_v16 }
 0x2ae   : > { %v1558_v51 = vadd.f32 %v2011_v25, %v1547_v15 }
 0x2b0   : > { %v1566_v9 = vmax.f32 %v1558_v51, 0.0 }
 0x2b2   : > { %v1870_v18 = vpack.c.bf16 %v1566_v9, %v1565_v49 }
 0x2b4   : > { %1874 = vst [vmem:[%s2943_s11 + $0x18] sm:$0xff] %v1870_v18  }
 0x2b5 PF: > { %s25_s15 = sadd.s32 1, %s2324_s15   ;;  %s2976_s13 = smov %s2320_s14 }
 0x2b6   : > { %p22_p8 = scmp.ge.s32.totalorder %s25_s15, 4   ;;  %s2977_s14 = smov %s2979_s30 }
 0x2b8   :  { %24 = sbr.rel (!%p22_p8) target bundleno = 6 (0x6), region = 127 }
 0x2bd   :  { %1610 = vsyncpa [#allocation3], 1 }
 0x2be   :  { %1612 = vsyncpa [#allocation3 + $0x1], 1 }
 0x2bf   :  { %1613 = vsyncpa [#allocation5], 1 }
 0x2c0   :  { %1614 = vsyncpa [#allocation8], 1 }
 0x2c1   :  { %1615 = vsyncpa [#allocation11], 1 }
 0x2c2   :  { %1616 = vsyncpa [#allocation14], 1 }

// kernel: pitch_detection_forward.4
= control target key start
LH: loop header
LB: loop body
LE: loop exit
PB: predicated region body
PF: predicated region fallthrough
CT: control target
= control target key end

     0   :  { %8 = vsyncpa [#allocation4], 0  ;;  %s8909_s0 = inlined_call_operand.vmem [shape: bf16[2,8192], index: 0, kind: input, shape index: {}]   ;;  %s8910_s1 = inlined_call_operand.hbm [shape: bf16[8192,256], index: 1, kind: input, shape index: {}]   ;;  %s8911_s2 = inlined_call_operand.hbm [shape: f32[1,256], index: 2, kind: input, shape index: {}]   ;;  %s8912_s3 = inlined_call_operand.vmem [shape: f32[2,256], index: 3, kind: output, shape index: {}]  }
   0x1   :  { %10 = vsyncpa [#allocation4 + $0x1], 0 }
   0x2   :  { %11 = vsyncpa [#allocation6], 0 }
   0x3   :  { %13 = vsyncpa [#allocation6 + $0x1], 0  ;;  %s8244_s12 = smov 0   ;;  %s8246_s13 = smov 0  }
   0x4   :  { %s8248_s14 = smov 0   ;;  %s8250_s15 = smov 0  }
   0x5   :  { %s8252_s16 = smov 0   ;;  %s8254_s17 = smov 0  }
   0x6 LB: > { %s5467_s18 = sadd.s32 4294967295, %s8218_s17   ;;  %s31_s19 = sadd.s32 1, %s8214_s16  ;;  %s8218_s17 = sphi %s8254_s17, %s19_s17   ;;  %s8214_s16 = sphi %s8252_s16, %s8920_s16   ;;  %s8210_s15 = sphi %s8250_s15, %s8919_s15   ;;  %s8206_s14 = sphi %s8248_s14, %s8918_s14   ;;  %s8202_s13 = sphi %s8246_s13, %s8917_s13   ;;  %s8198_s12 = sphi %s8244_s12, %s8916_s12  }
   0x7   : > { %p33_p0 = scmp.ge.s32.totalorder %s31_s19, 2  ;;  %s66_s20 = sadd.s32 1, %s8206_s14 }
   0x8   : > { %p73_p1 = scmp.ne.s32.totalorder %s8206_s14, %s8202_s13  ;;  %p74_p2 = scmp.eq.s32.totalorder %s8218_s17, 0 }
   0x9   : > { %s8922_s19 = smov (%p33_p0, %s31_s19), 0  ;;  %p79_p4 = scmp.ne.s32.totalorder %s8202_s13, %s8198_s12 }
   0xa   : > { %p8280_p3 = por %p74_p2, %p73_p1  ;;  %s62_s22 = ssub.s32 %s8214_s16, %s8922_s19 }
   0xb   : > { %p80_p5 = scmp.eq.s32.totalorder %s5467_s18, 0  ;;  %p64_p6 = scmp.eq.s32.totalorder %s62_s22, 0 }
   0xc   : > { %p8050_p8 = scmp.lt.s32.totalorder %s8218_s17, 2  ;;  %s163_s25 = sand.u32 1, %s8206_s14  }
   0xd   : > { %p8287_p7 = por %p80_p5, %p79_p4  ;;  %s5473_s26 = sshll.u32 %s8214_s16, 2 }
   0xe   : > { %s8293_s24 = scalar_select %p64_p6, %s8206_s14, %s66_s20  }
   0xf   : > { %s5472_s27 = sshll.u32 %s163_s25, 12  ;;  %s174_s30 = scalar_lea.hbm %s8910_s1, %s5473_s26 }
  0x10   : > { %s175_s4 = sshll.u32 %s174_s30, 4  ;;  %s167_s5 = scalar_lea.vmem [#allocation3], %s5472_s27  ;;  %s176_s4 = int_to_ptr.hbm [resolvable:$true] %s175_s4 }
  0x11   : > { %s177_s6 = sshll.u32 %s167_s5, 4  ;;  %p8302_p9 = pnand %p8050_p8, %p8280_p3  ;;  %s178_s6 = int_to_ptr.vmem [resolvable:$true] %s177_s6 }
  0x12   : > { %p5474_p10 = scmp.ge.s32.totalorder %s8218_s17, 1  ;;  %s164_s8 = scalar_lea.sflag [#allocation4], %s163_s25 }
  0x13   : > { %s8220_s9 = smov 128   ;;  %s8221_s10 = smov 64  }
  0x14   : > { %s8222_s11 = smov 4   ;;  %p202_p11 = scmp.lt.s32.totalorder %s8218_s17, 3 }
  0x15   : > { %8046 = dma.hbm_to_vmem [thread:$0]  (!%p8302_p9), %s176_s4, 65536, %s178_s6, %s164_s8, %s8220_s9, %s8221_s10, %s8222_s11  }
  0x16   : > { %s193_s20 = scalar_lea.hbm %s8911_s2, %s8214_s16  ;;  %p203_p12 = pnand %p5474_p10, %p202_p11 }
  0x17   : > { %s195_s21 = sshll.u32 %s193_s20, 4  ;;  %s190_s22 = scalar_lea.vmem [#allocation5], %s163_s25  ;;  %s196_s21 = int_to_ptr.hbm [resolvable:$true] %s195_s21 }
  0x18   : > { %s197_s26 = sshll.u32 %s190_s22, 4  ;;  %s188_s27 = scalar_lea.sflag [#allocation6], %s163_s25  ;;  %s198_s26 = int_to_ptr.vmem [resolvable:$true] %s197_s26 }
  0x19   : > { %8049 = dma.hbm_to_vmem [thread:$0]  (!%p8302_p9), %s196_s21, 16, %s198_s26, %s188_s27  }
  0x1a   : > { %206 = sbr.rel (%p203_p12) target bundleno = 699 (0x2bb), region = 32  ;;  %s8317_s28 = sand.u32 (!%p203_p12), 1, %s8202_s13  }
  0x1b   : > { %s5475_s29 = sshll.u32 (!%p203_p12), %s8317_s28, 12  ;;  %s209_s30 = scalar_lea.sflag (!%p203_p12), [#allocation4], %s8317_s28 }
  0x1c   : > { %s8321_s4 = scalar_lea.vmem (!%p203_p12), [#allocation3], %s5475_s29 }
  0x1f   : > { %8189 = dma.done.wait (%p8287_p7), %s209_s30, 65536  }
  0x20   : > { %8191 = vsyncadd (%p8287_p7), %s209_s30, 4294901760  ;;  %s219_s25 = scalar_lea.sflag [#allocation6], %s8317_s28  ;;  %s221_s5 = scalar_lea.vmem [#allocation5], %s8317_s28 }
  0x21   : > { %8193 = dma.done.wait (%p8287_p7), %s219_s25, 16  }
  0x22   : > { %8195 = vsyncadd (%p8287_p7), %s219_s25, 4294967280  ;;  %v7534_v0 = vld [vmem:[%s8321_s4 + $0x38] sm:$0xff]  ;;  %v7533_v4 = vld [vmem:[%s8321_s4 + $0x30] sm:$0xff]  ;;  %p258_p13 = scmp.lt.s32.totalorder %s8210_s15, 1 }
  0x23   : > { %v7542_v1 = vld [vmem:[%s8321_s4 + $0x78] sm:$0xff]  ;;  %4516 = vmatpush.bf16.msra.mxu0 %v7534_v0  ;;  %v7541_v5 = vld [vmem:[%s8321_s4 + $0x70] sm:$0xff]  ;;  %v7532_v8 = vld [vmem:[%s8321_s4 + $0x28] sm:$0xff] }
  0x24   : > { %v7550_v2 = vld [vmem:[%s8321_s4 + $0xb8] sm:$0xff]  ;;  %4529 = vmatpush.bf16.msra.mxu1 %v7542_v1  ;;  %v7549_v6 = vld [vmem:[%s8321_s4 + $0xb0] sm:$0xff]  ;;  %v7540_v9 = vld [vmem:[%s8321_s4 + $0x68] sm:$0xff]  ;;  %s8924_s15 = smov (!%p258_p13, %s8210_s15), 1 }
  0x25   : > { %v7558_v3 = vld [vmem:[%s8321_s4 + $0xf8] sm:$0xff]  ;;  %4542 = vmatpush.bf16.msra.mxu2 %v7550_v2  ;;  %v7557_v7 = vld [vmem:[%s8321_s4 + $0xf0] sm:$0xff]  ;;  %v7548_v10 = vld [vmem:[%s8321_s4 + $0xa8] sm:$0xff] }
  0x26   : > { %4555 = vmatpush.bf16.msra.mxu3 %v7558_v3  ;;  %v7556_v11 = vld [vmem:[%s8321_s4 + $0xe8] sm:$0xff]  ;;  %v7531_v12 = vld [vmem:[%s8321_s4 + $0x20] sm:$0xff]  ;;  %v7530_v16 = vld [vmem:[%s8321_s4 + $0x18] sm:$0xff] }
  0x27   : > { %4517 = vmatpush.bf16.msra.mxu0 %v7533_v4  ;;  %v7539_v13 = vld [vmem:[%s8321_s4 + $0x60] sm:$0xff]  ;;  %v7538_v17 = vld [vmem:[%s8321_s4 + $0x58] sm:$0xff]  ;;  %v7529_v21 = vld [vmem:[%s8321_s4 + $0x10] sm:$0xff] }
  0x28   : > { %4530 = vmatpush.bf16.msra.mxu1 %v7541_v5  ;;  %v7547_v14 = vld [vmem:[%s8321_s4 + $0xa0] sm:$0xff]  ;;  %v7546_v18 = vld [vmem:[%s8321_s4 + $0x98] sm:$0xff]  ;;  %v7537_v22 = vld [vmem:[%s8321_s4 + $0x50] sm:$0xff] }
  0x29   : > { %4543 = vmatpush.bf16.msra.mxu2 %v7549_v6  ;;  %v7555_v15 = vld [vmem:[%s8321_s4 + $0xe0] sm:$0xff]  ;;  %v7554_v19 = vld [vmem:[%s8321_s4 + $0xd8] sm:$0xff]  ;;  %v7545_v23 = vld [vmem:[%s8321_s4 + $0x90] sm:$0xff] }
  0x2a   : > { %4556 = vmatpush.bf16.msra.mxu3 %v7557_v7  ;;  %v268_v20 = vld [vmem:[%s8909_s0] sm:$0xff]  ;;  %v7528_v25 = vld [vmem:[%s8321_s4 + $0x8] sm:$0xff]  ;;  %v7527_v29 = vld [vmem:[%s8321_s4] sm:$0xff] }
  0x2b   : > { %4518 = vmatpush.bf16.msra.mxu0 %v7532_v8  ;;  %1301 = vst [vmem:[#allocation1] ss:$9 sm:$0xff] %v268_v20  ;;  %v7553_v24 = vld [vmem:[%s8321_s4 + $0xd0] sm:$0xff]  ;;  %v7536_v26 = vld [vmem:[%s8321_s4 + $0x48] sm:$0xff]  ;;  %v7535_v30 = vld [vmem:[%s8321_s4 + $0x40] sm:$0xff] }
  0x2c   : > { %4531 = vmatpush.bf16.msra.mxu1 %v7540_v9  ;;  %v7544_v27 = vld [vmem:[%s8321_s4 + $0x88] sm:$0xff]  ;;  %v7543_v31 = vld [vmem:[%s8321_s4 + $0x80] sm:$0xff]  ;;  %v7566_v33 = vld [vmem:[%s8321_s4 + $0x138] sm:$0xff] }
  0x2d   : > { %4544 = vmatpush.bf16.msra.mxu2 %v7548_v10  ;;  %v7552_v28 = vld [vmem:[%s8321_s4 + $0xc8] sm:$0xff]  ;;  %v7551_v32 = vld [vmem:[%s8321_s4 + $0xc0] sm:$0xff]  ;;  %v7574_v34 = vld [vmem:[%s8321_s4 + $0x178] sm:$0xff] }
  0x2e   : > { %4557 = vmatpush.bf16.msra.mxu3 %v7556_v11  ;;  %v7582_v35 = vld [vmem:[%s8321_s4 + $0x1b8] sm:$0xff]  ;;  %v7565_v37 = vld [vmem:[%s8321_s4 + $0x130] sm:$0xff]  ;;  %v7564_v45 = vld [vmem:[%s8321_s4 + $0x128] sm:$0xff] }
  0x2f   : > { %4519 = vmatpush.bf16.msra.mxu0 %v7531_v12  ;;  %v7590_v36 = vld [vmem:[%s8321_s4 + $0x1f8] sm:$0xff]  ;;  %v7573_v40 = vld [vmem:[%s8321_s4 + $0x170] sm:$0xff]  ;;  %v7572_v46 = vld [vmem:[%s8321_s4 + $0x168] sm:$0xff] }
  0x30   : > { %4532 = vmatpush.bf16.msra.mxu1 %v7539_v13  ;;  %v7581_v43 = vld [vmem:[%s8321_s4 + $0x1b0] sm:$0xff]  ;;  %v7580_v47 = vld [vmem:[%s8321_s4 + $0x1a8] sm:$0xff]  ;;  %v7563_v49 = vld [vmem:[%s8321_s4 + $0x120] sm:$0xff] }
  0x31   : > { %4545 = vmatpush.bf16.msra.mxu2 %v7547_v14  ;;  %v7589_v44 = vld [vmem:[%s8321_s4 + $0x1f0] sm:$0xff]  ;;  %v7588_v48 = vld [vmem:[%s8321_s4 + $0x1e8] sm:$0xff]  ;;  %v7571_v50 = vld [vmem:[%s8321_s4 + $0x160] sm:$0xff] }
  0x32   : > { %4558 = vmatpush.bf16.msra.mxu3 %v7555_v15  ;;  %v1304_v38 = vld [vmem:[#allocation1 + $0x12] sm:$0xff]  ;;  %v1302_v39 = vld [vmem:[#allocation1] sm:$0xff]  ;;  %v1303_v42 = vld [vmem:[#allocation1 + $0x9] sm:$0xff] }
  0x33   : > { %4520 = vmatpush.bf16.msra.mxu0 %v7530_v16  ;;  %v1305_v41 = vld [vmem:[#allocation1 + $0x1b] sm:$0xff]  ;;  %v7579_v51 = vld [vmem:[%s8321_s4 + $0x1a0] sm:$0xff]  ;;  %v7560_v61 = vld [vmem:[%s8321_s4 + $0x108] sm:$0xff] }
  0x34   : > { %4533 = vmatpush.bf16.msra.mxu1 %v7538_v17  ;;  %v7587_v52 = vld [vmem:[%s8321_s4 + $0x1e0] sm:$0xff]  ;;  %v7562_v53 = vld [vmem:[%s8321_s4 + $0x118] sm:$0xff]  ;;  %v7561_v57 = vld [vmem:[%s8321_s4 + $0x110] sm:$0xff] }
  0x35   : > { %4546 = vmatpush.bf16.msra.mxu2 %v7546_v18  ;;  %v7570_v54 = vld [vmem:[%s8321_s4 + $0x158] sm:$0xff]  ;;  %v7569_v58 = vld [vmem:[%s8321_s4 + $0x150] sm:$0xff]  ;;  %v7568_v62 = vld [vmem:[%s8321_s4 + $0x148] sm:$0xff] }
  0x36   : > { %4559 = vmatpush.bf16.msra.mxu3 %v7554_v19  ;;  %v7578_v55 = vld [vmem:[%s8321_s4 + $0x198] sm:$0xff]  ;;  %v7577_v59 = vld [vmem:[%s8321_s4 + $0x190] sm:$0xff]  ;;  %v7576_v63 = vld [vmem:[%s8321_s4 + $0x188] sm:$0xff] }
  0x37   : > { %4521 = vmatpush.bf16.msra.mxu0 %v7529_v21  ;;  %v7586_v56 = vld [vmem:[%s8321_s4 + $0x1d8] sm:$0xff]  ;;  %v7585_v60 = vld [vmem:[%s8321_s4 + $0x1d0] sm:$0xff]  ;;  %v7584_v0 = vld [vmem:[%s8321_s4 + $0x1c8] sm:$0xff] }
  0x38   : > { %4534 = vmatpush.bf16.msra.mxu1 %v7537_v22  ;;  %v1308_v1 = vld [vmem:[#allocation1 + $0x36] sm:$0xff]  ;;  %v1306_v2 = vld [vmem:[#allocation1 + $0x24] sm:$0xff]  ;;  %v1307_v4 = vld [vmem:[#allocation1 + $0x2d] sm:$0xff] }
  0x39   : > { %4547 = vmatpush.bf16.msra.mxu2 %v7545_v23  ;;  %v1309_v3 = vld [vmem:[#allocation1 + $0x3f] sm:$0xff]  ;;  %v269_v5 = vld [vmem:[%s8909_s0 + $0x8] sm:$0xff]  ;;  %v7596_v18 = vld [vmem:[%s8321_s4 + $0x228] sm:$0xff] }
  0x3a   : > { %4560 = vmatpush.bf16.msra.mxu3 %v7553_v24  ;;  %1311 = vst [vmem:[#allocation1] ss:$9 sm:$0xff] %v269_v5  ;;  %v7559_v6 = vld [vmem:[%s8321_s4 + $0x100] sm:$0xff]  ;;  %v7598_v10 = vld [vmem:[%s8321_s4 + $0x238] sm:$0xff]  ;;  %v7597_v14 = vld [vmem:[%s8321_s4 + $0x230] sm:$0xff] }
  0x3b   : > { %4522 = vmatpush.bf16.msra.mxu0 %v7528_v25  ;;  %v7567_v7 = vld [vmem:[%s8321_s4 + $0x140] sm:$0xff]  ;;  %v7606_v11 = vld [vmem:[%s8321_s4 + $0x278] sm:$0xff]  ;;  %v7605_v15 = vld [vmem:[%s8321_s4 + $0x270] sm:$0xff] }
  0x3c   : > { %4535 = vmatpush.bf16.msra.mxu1 %v7536_v26  ;;  %v7575_v8 = vld [vmem:[%s8321_s4 + $0x180] sm:$0xff]  ;;  %v7614_v12 = vld [vmem:[%s8321_s4 + $0x2b8] sm:$0xff]  ;;  %v7613_v16 = vld [vmem:[%s8321_s4 + $0x2b0] sm:$0xff] }
  0x3d   : > { %4548 = vmatpush.bf16.msra.mxu2 %v7544_v27  ;;  %v7583_v9 = vld [vmem:[%s8321_s4 + $0x1c0] sm:$0xff]  ;;  %v7622_v13 = vld [vmem:[%s8321_s4 + $0x2f8] sm:$0xff]  ;;  %v7621_v17 = vld [vmem:[%s8321_s4 + $0x2f0] sm:$0xff] }
  0x3e   : > { %4561 = vmatpush.bf16.msra.mxu3 %v7552_v28  ;;  %v7604_v19 = vld [vmem:[%s8321_s4 + $0x268] sm:$0xff]  ;;  %v7595_v22 = vld [vmem:[%s8321_s4 + $0x220] sm:$0xff]  ;;  %v7594_v26 = vld [vmem:[%s8321_s4 + $0x218] sm:$0xff] }
  0x3f   : > { %4523 = vmatpush.bf16.msra.mxu0 %v7527_v29  ;;  %v7612_v20 = vld [vmem:[%s8321_s4 + $0x2a8] sm:$0xff]  ;;  %v7603_v23 = vld [vmem:[%s8321_s4 + $0x260] sm:$0xff]  ;;  %v7602_v27 = vld [vmem:[%s8321_s4 + $0x258] sm:$0xff] }
  0x40   : > { %4536 = vmatpush.bf16.msra.mxu1 %v7535_v30  ;;  %v7620_v21 = vld [vmem:[%s8321_s4 + $0x2e8] sm:$0xff]  ;;  %v7611_v24 = vld [vmem:[%s8321_s4 + $0x2a0] sm:$0xff]  ;;  %v7610_v28 = vld [vmem:[%s8321_s4 + $0x298] sm:$0xff] }
  0x41   : > { %4549 = vmatpush.bf16.msra.mxu2 %v7543_v31  ;;  %v7619_v25 = vld [vmem:[%s8321_s4 + $0x2e0] sm:$0xff]  ;;  %v7618_v29 = vld [vmem:[%s8321_s4 + $0x2d8] sm:$0xff]  ;;  %v7593_v30 = vld [vmem:[%s8321_s4 + $0x210] sm:$0xff] }
  0x42   : > { %4562 = vmatpush.bf16.msra.mxu3 %v7551_v32  ;;  %4524 = vmatmul.bf16.vlgmr.msra.gmra.mxu0 %v1302_v39  ;;  %v7601_v31 = vld [vmem:[%s8321_s4 + $0x250] sm:$0xff]  ;;  %v7599_v39 = vld [vmem:[%s8321_s4 + $0x240] sm:$0xff] }
  0x43   : > { %4568 = vmatpush.bf16.msrb.mxu0 %v7566_v33  ;;  %4537 = vmatmul.bf16.vlgmr.msra.gmra.mxu1 %v1303_v42  ;;  %v7609_v32 = vld [vmem:[%s8321_s4 + $0x290] sm:$0xff]  ;;  %v7630_v42 = vld [vmem:[%s8321_s4 + $0x338] sm:$0xff] }
  0x44   : > { %4581 = vmatpush.bf16.msrb.mxu1 %v7574_v34  ;;  %4550 = vmatmul.bf16.vlgmr.msra.gmra.mxu2 %v1304_v38  ;;  %v7617_v33 = vld [vmem:[%s8321_s4 + $0x2d0] sm:$0xff]  ;;  %v7592_v34 = vld [vmem:[%s8321_s4 + $0x208] sm:$0xff]  ;;  %v7591_v38 = vld [vmem:[%s8321_s4 + $0x200] sm:$0xff] }
  0x45   : > { %4594 = vmatpush.bf16.msrb.mxu2 %v7582_v35  ;;  %4563 = vmatmul.bf16.vlgmr.msra.gmra.mxu3 %v1305_v41  ;;  %v7600_v35 = vld [vmem:[%s8321_s4 + $0x248] sm:$0xff]  ;;  %v7615_v41 = vld [vmem:[%s8321_s4 + $0x2c0] sm:$0xff]  ;;  %v7649_v5 = vld [vmem:[%s8321_s4 + $0x3d0] sm:$0xff] }
  0x46   : > { %4607 = vmatpush.bf16.msrb.mxu3 %v7590_v36  ;;  %v7608_v36 = vld [vmem:[%s8321_s4 + $0x288] sm:$0xff] }
  0x47   : > { %4569 = vmatpush.bf16.msrb.mxu0 %v7565_v37  ;;  %v7616_v37 = vld [vmem:[%s8321_s4 + $0x2c8] sm:$0xff] }
  0x48   : > { %4582 = vmatpush.bf16.msrb.mxu1 %v7573_v40  ;;  %v7607_v40 = vld [vmem:[%s8321_s4 + $0x280] sm:$0xff] }
  0x49   : > { %4595 = vmatpush.bf16.msrb.mxu2 %v7581_v43  ;;  %v7638_v43 = vld [vmem:[%s8321_s4 + $0x378] sm:$0xff] }
  0x4a   : > { %4608 = vmatpush.bf16.msrb.mxu3 %v7589_v44  ;;  %v7646_v44 = vld [vmem:[%s8321_s4 + $0x3b8] sm:$0xff] }
  0x4b   : > { %4570 = vmatpush.bf16.msrb.mxu0 %v7564_v45  ;;  %v7654_v45 = vld [vmem:[%s8321_s4 + $0x3f8] sm:$0xff] }
  0x4c   : > { %4583 = vmatpush.bf16.msrb.mxu1 %v7572_v46  ;;  %v1312_v46 = vld [vmem:[#allocation1] sm:$0xff] }
  0x4d   : > { %4596 = vmatpush.bf16.msrb.mxu2 %v7580_v47  ;;  %v1314_v47 = vld [vmem:[#allocation1 + $0x12] sm:$0xff] }
  0x4e   : > { %4609 = vmatpush.bf16.msrb.mxu3 %v7588_v48  ;;  %v1313_v48 = vld [vmem:[#allocation1 + $0x9] sm:$0xff] }
  0x4f   : > { %4571 = vmatpush.bf16.msrb.mxu0 %v7563_v49  ;;  %v1315_v49 = vld [vmem:[#allocation1 + $0x1b] sm:$0xff] }
  0x50   : > { %4584 = vmatpush.bf16.msrb.mxu1 %v7571_v50  ;;  %v7629_v50 = vld [vmem:[%s8321_s4 + $0x330] sm:$0xff] }
  0x51   : > { %4597 = vmatpush.bf16.msrb.mxu2 %v7579_v51  ;;  %v7637_v51 = vld [vmem:[%s8321_s4 + $0x370] sm:$0xff] }
  0x52   : > { %4610 = vmatpush.bf16.msrb.mxu3 %v7587_v52  ;;  %v7645_v52 = vld [vmem:[%s8321_s4 + $0x3b0] sm:$0xff] }
  0x53   : > { %4572 = vmatpush.bf16.msrb.mxu0 %v7562_v53  ;;  %v7653_v53 = vld [vmem:[%s8321_s4 + $0x3f0] sm:$0xff] }
  0x54   : > { %4585 = vmatpush.bf16.msrb.mxu1 %v7570_v54  ;;  %v7628_v54 = vld [vmem:[%s8321_s4 + $0x328] sm:$0xff] }
  0x55   : > { %4598 = vmatpush.bf16.msrb.mxu2 %v7578_v55  ;;  %v7636_v55 = vld [vmem:[%s8321_s4 + $0x368] sm:$0xff] }
  0x56   : > { %4611 = vmatpush.bf16.msrb.mxu3 %v7586_v56  ;;  %v7644_v56 = vld [vmem:[%s8321_s4 + $0x3a8] sm:$0xff] }
  0x57   : > { %4573 = vmatpush.bf16.msrb.mxu0 %v7561_v57  ;;  %v7652_v57 = vld [vmem:[%s8321_s4 + $0x3e8] sm:$0xff] }
  0x58   : > { %4586 = vmatpush.bf16.msrb.mxu1 %v7569_v58  ;;  %v7627_v58 = vld [vmem:[%s8321_s4 + $0x320] sm:$0xff] }
  0x59   : > { %4599 = vmatpush.bf16.msrb.mxu2 %v7577_v59  ;;  %v7635_v59 = vld [vmem:[%s8321_s4 + $0x360] sm:$0xff] }
  0x5a   : > { %4612 = vmatpush.bf16.msrb.mxu3 %v7585_v60  ;;  %v7643_v60 = vld [vmem:[%s8321_s4 + $0x3a0] sm:$0xff] }
  0x5b   : > { %4574 = vmatpush.bf16.msrb.mxu0 %v7560_v61  ;;  %v7651_v61 = vld [vmem:[%s8321_s4 + $0x3e0] sm:$0xff] }
  0x5c   : > { %4587 = vmatpush.bf16.msrb.mxu1 %v7568_v62  ;;  %v7626_v62 = vld [vmem:[%s8321_s4 + $0x318] sm:$0xff] }
  0x5d   : > { %4600 = vmatpush.bf16.msrb.mxu2 %v7576_v63  ;;  %v7634_v63 = vld [vmem:[%s8321_s4 + $0x358] sm:$0xff] }
  0x5e   : > { %4613 = vmatpush.bf16.msrb.mxu3 %v7584_v0  ;;  %v7642_v0 = vld [vmem:[%s8321_s4 + $0x398] sm:$0xff] }
  0x5f   : > { %4575 = vmatpush.bf16.msrb.mxu0 %v7559_v6  ;;  %v7624_v6 = vld [vmem:[%s8321_s4 + $0x308] sm:$0xff] }
  0x60   : > { %4588 = vmatpush.bf16.msrb.mxu1 %v7567_v7  ;;  %v7632_v7 = vld [vmem:[%s8321_s4 + $0x348] sm:$0xff] }
  0x61   : > { %4601 = vmatpush.bf16.msrb.mxu2 %v7575_v8  ;;  %v7640_v8 = vld [vmem:[%s8321_s4 + $0x388] sm:$0xff] }
  0x62   : > { %4614 = vmatpush.bf16.msrb.mxu3 %v7583_v9  ;;  %4576 = vmatmul.bf16.vlgmr.msrb.gmra.mxu0 %v1306_v2  ;;  %v7625_v2 = vld [vmem:[%s8321_s4 + $0x310] sm:$0xff]  ;;  %v7648_v9 = vld [vmem:[%s8321_s4 + $0x3c8] sm:$0xff] }
  0x63   : > { %4620 = vmatpush.bf16.msra.mxu0 %v7598_v10  ;;  %4589 = vmatmul.bf16.vlgmr.msrb.gmra.mxu1 %v1307_v4  ;;  %v7641_v4 = vld [vmem:[%s8321_s4 + $0x390] sm:$0xff]  ;;  %v1316_v10 = vld [vmem:[#allocation1 + $0x24] sm:$0xff] }
  0x64   : > { %4633 = vmatpush.bf16.msra.mxu1 %v7606_v11  ;;  %4602 = vmatmul.bf16.vlgmr.msrb.gmra.mxu2 %v1308_v1  ;;  %v7650_v1 = vld [vmem:[%s8321_s4 + $0x3d8] sm:$0xff]  ;;  %v1318_v11 = vld [vmem:[#allocation1 + $0x36] sm:$0xff] }
  0x65   : > { %4646 = vmatpush.bf16.msra.mxu2 %v7614_v12  ;;  %4615 = vmatmul.bf16.vlgmr.msrb.gmra.mxu3 %v1309_v3  ;;  %v7633_v3 = vld [vmem:[%s8321_s4 + $0x350] sm:$0xff]  ;;  %v1317_v12 = vld [vmem:[#allocation1 + $0x2d] sm:$0xff] }
  0x66   : > { %4659 = vmatpush.bf16.msra.mxu3 %v7622_v13  ;;  %v1319_v13 = vld [vmem:[#allocation1 + $0x3f] sm:$0xff] }
  0x67   : > { %4621 = vmatpush.bf16.msra.mxu0 %v7597_v14  ;;  %v270_v14 = vld [vmem:[%s8909_s0 + $0x10] sm:$0xff] }
  0x68   : > { %4634 = vmatpush.bf16.msra.mxu1 %v7605_v15  ;;  %1321 = vst [vmem:[#allocation1] ss:$9 sm:$0xff] %v270_v14  ;;  %v7623_v15 = vld [vmem:[%s8321_s4 + $0x300] sm:$0xff] }
  0x69   : > { %4647 = vmatpush.bf16.msra.mxu2 %v7613_v16  ;;  %v7631_v16 = vld [vmem:[%s8321_s4 + $0x340] sm:$0xff] }
  0x6a   : > { %4660 = vmatpush.bf16.msra.mxu3 %v7621_v17  ;;  %v7639_v17 = vld [vmem:[%s8321_s4 + $0x380] sm:$0xff] }
  0x6b   : > { %4622 = vmatpush.bf16.msra.mxu0 %v7596_v18  ;;  %v7647_v18 = vld [vmem:[%s8321_s4 + $0x3c0] sm:$0xff] }
  0x6c   : > { %4635 = vmatpush.bf16.msra.mxu1 %v7604_v19  ;;  %v7662_v19 = vld [vmem:[%s8321_s4 + $0x438] sm:$0xff] }
  0x6d   : > { %4648 = vmatpush.bf16.msra.mxu2 %v7612_v20  ;;  %v7670_v20 = vld [vmem:[%s8321_s4 + $0x478] sm:$0xff] }
  0x6e   : > { %4661 = vmatpush.bf16.msra.mxu3 %v7620_v21  ;;  %v7678_v21 = vld [vmem:[%s8321_s4 + $0x4b8] sm:$0xff] }
  0x6f   : > { %4623 = vmatpush.bf16.msra.mxu0 %v7595_v22  ;;  %v7686_v22 = vld [vmem:[%s8321_s4 + $0x4f8] sm:$0xff] }
  0x70   : > { %4636 = vmatpush.bf16.msra.mxu1 %v7603_v23  ;;  %v7661_v23 = vld [vmem:[%s8321_s4 + $0x430] sm:$0xff] }
  0x71   : > { %4649 = vmatpush.bf16.msra.mxu2 %v7611_v24  ;;  %v7669_v24 = vld [vmem:[%s8321_s4 + $0x470] sm:$0xff] }
  0x72   : > { %4662 = vmatpush.bf16.msra.mxu3 %v7619_v25  ;;  %v7677_v25 = vld [vmem:[%s8321_s4 + $0x4b0] sm:$0xff] }
  0x73   : > { %4624 = vmatpush.bf16.msra.mxu0 %v7594_v26  ;;  %v7685_v26 = vld [vmem:[%s8321_s4 + $0x4f0] sm:$0xff] }
  0x74   : > { %4637 = vmatpush.bf16.msra.mxu1 %v7602_v27  ;;  %v7660_v27 = vld [vmem:[%s8321_s4 + $0x428] sm:$0xff] }
  0x75   : > { %4650 = vmatpush.bf16.msra.mxu2 %v7610_v28  ;;  %v7668_v28 = vld [vmem:[%s8321_s4 + $0x468] sm:$0xff] }
  0x76   : > { %4663 = vmatpush.bf16.msra.mxu3 %v7618_v29  ;;  %v7676_v29 = vld [vmem:[%s8321_s4 + $0x4a8] sm:$0xff] }
  0x77   : > { %4625 = vmatpush.bf16.msra.mxu0 %v7593_v30  ;;  %v7684_v30 = vld [vmem:[%s8321_s4 + $0x4e8] sm:$0xff] }
  0x78   : > { %4638 = vmatpush.bf16.msra.mxu1 %v7601_v31  ;;  %v7659_v31 = vld [vmem:[%s8321_s4 + $0x420] sm:$0xff] }
  0x79   : > { %4651 = vmatpush.bf16.msra.mxu2 %v7609_v32  ;;  %v7667_v32 = vld [vmem:[%s8321_s4 + $0x460] sm:$0xff] }
  0x7a   : > { %4664 = vmatpush.bf16.msra.mxu3 %v7617_v33  ;;  %v7675_v33 = vld [vmem:[%s8321_s4 + $0x4a0] sm:$0xff] }
  0x7b   : > { %4626 = vmatpush.bf16.msra.mxu0 %v7592_v34  ;;  %v7683_v34 = vld [vmem:[%s8321_s4 + $0x4e0] sm:$0xff] }
  0x7c   : > { %4639 = vmatpush.bf16.msra.mxu1 %v7600_v35  ;;  %v7658_v35 = vld [vmem:[%s8321_s4 + $0x418] sm:$0xff] }
  0x7d   : > { %4652 = vmatpush.bf16.msra.mxu2 %v7608_v36  ;;  %v7666_v36 = vld [vmem:[%s8321_s4 + $0x458] sm:$0xff] }
  0x7e   : > { %4665 = vmatpush.bf16.msra.mxu3 %v7616_v37  ;;  %v7674_v37 = vld [vmem:[%s8321_s4 + $0x498] sm:$0xff] }
  0x7f   : > { %4627 = vmatpush.bf16.msra.mxu0 %v7591_v38  ;;  %v7682_v38 = vld [vmem:[%s8321_s4 + $0x4d8] sm:$0xff] }
  0x80   : > { %4640 = vmatpush.bf16.msra.mxu1 %v7599_v39  ;;  %v7657_v39 = vld [vmem:[%s8321_s4 + $0x410] sm:$0xff] }
  0x81   : > { %4653 = vmatpush.bf16.msra.mxu2 %v7607_v40  ;;  %v7665_v40 = vld [vmem:[%s8321_s4 + $0x450] sm:$0xff] }
  0x82   : > { %4666 = vmatpush.bf16.msra.mxu3 %v7615_v41  ;;  %4628 = vmatmul.bf16.vlgmr.msra.gmra.mxu0 %v1312_v46  ;;  %v7673_v41 = vld [vmem:[%s8321_s4 + $0x490] sm:$0xff]  ;;  %v7680_v46 = vld [vmem:[%s8321_s4 + $0x4c8] sm:$0xff] }
  0x83   : > { %4672 = vmatpush.bf16.msrb.mxu0 %v7630_v42  ;;  %4641 = vmatmul.bf16.vlgmr.msra.gmra.mxu1 %v1313_v48  ;;  %v7681_v42 = vld [vmem:[%s8321_s4 + $0x4d0] sm:$0xff]  ;;  %v7663_v48 = vld [vmem:[%s8321_s4 + $0x440] sm:$0xff] }
  0x84   : > { %4685 = vmatpush.bf16.msrb.mxu1 %v7638_v43  ;;  %4654 = vmatmul.bf16.vlgmr.msra.gmra.mxu2 %v1314_v47  ;;  %v7656_v43 = vld [vmem:[%s8321_s4 + $0x408] sm:$0xff]  ;;  %v7655_v47 = vld [vmem:[%s8321_s4 + $0x400] sm:$0xff] }
  0x85   : > { %4698 = vmatpush.bf16.msrb.mxu2 %v7646_v44  ;;  %4667 = vmatmul.bf16.vlgmr.msra.gmra.mxu3 %v1315_v49  ;;  %v7664_v44 = vld [vmem:[%s8321_s4 + $0x448] sm:$0xff]  ;;  %v7671_v49 = vld [vmem:[%s8321_s4 + $0x480] sm:$0xff] }
  0x86   : > { %4711 = vmatpush.bf16.msrb.mxu3 %v7654_v45  ;;  %v7672_v45 = vld [vmem:[%s8321_s4 + $0x488] sm:$0xff] }
  0x87   : > { %4673 = vmatpush.bf16.msrb.mxu0 %v7629_v50  ;;  %v7679_v50 = vld [vmem:[%s8321_s4 + $0x4c0] sm:$0xff] }
  0x88   : > { %4686 = vmatpush.bf16.msrb.mxu1 %v7637_v51  ;;  %v7694_v51 = vld [vmem:[%s8321_s4 + $0x538] sm:$0xff] }
  0x89   : > { %4699 = vmatpush.bf16.msrb.mxu2 %v7645_v52  ;;  %v7702_v52 = vld [vmem:[%s8321_s4 + $0x578] sm:$0xff] }
  0x8a   : > { %4712 = vmatpush.bf16.msrb.mxu3 %v7653_v53  ;;  %v7710_v53 = vld [vmem:[%s8321_s4 + $0x5b8] sm:$0xff] }
  0x8b   : > { %4674 = vmatpush.bf16.msrb.mxu0 %v7628_v54  ;;  %v7718_v54 = vld [vmem:[%s8321_s4 + $0x5f8] sm:$0xff] }
  0x8c   : > { %4687 = vmatpush.bf16.msrb.mxu1 %v7636_v55  ;;  %v1322_v55 = vld [vmem:[#allocation1] sm:$0xff] }
  0x8d   : > { %4700 = vmatpush.bf16.msrb.mxu2 %v7644_v56  ;;  %v1324_v56 = vld [vmem:[#allocation1 + $0x12] sm:$0xff] }
  0x8e   : > { %4713 = vmatpush.bf16.msrb.mxu3 %v7652_v57  ;;  %v1323_v57 = vld [vmem:[#allocation1 + $0x9] sm:$0xff] }
  0x8f   : > { %4675 = vmatpush.bf16.msrb.mxu0 %v7627_v58  ;;  %v1325_v58 = vld [vmem:[#allocation1 + $0x1b] sm:$0xff] }
  0x90   : > { %4688 = vmatpush.bf16.msrb.mxu1 %v7635_v59  ;;  %v7693_v59 = vld [vmem:[%s8321_s4 + $0x530] sm:$0xff] }
  0x91   : > { %4701 = vmatpush.bf16.msrb.mxu2 %v7643_v60  ;;  %v7701_v60 = vld [vmem:[%s8321_s4 + $0x570] sm:$0xff] }
  0x92   : > { %4714 = vmatpush.bf16.msrb.mxu3 %v7651_v61  ;;  %v7709_v61 = vld [vmem:[%s8321_s4 + $0x5b0] sm:$0xff] }
  0x93   : > { %4676 = vmatpush.bf16.msrb.mxu0 %v7626_v62  ;;  %v7717_v62 = vld [vmem:[%s8321_s4 + $0x5f0] sm:$0xff] }
  0x94   : > { %4689 = vmatpush.bf16.msrb.mxu1 %v7634_v63  ;;  %v7692_v63 = vld [vmem:[%s8321_s4 + $0x528] sm:$0xff] }
  0x95   : > { %4702 = vmatpush.bf16.msrb.mxu2 %v7642_v0  ;;  %v7700_v0 = vld [vmem:[%s8321_s4 + $0x568] sm:$0xff] }
  0x96   : > { %4715 = vmatpush.bf16.msrb.mxu3 %v7650_v1  ;;  %v7708_v1 = vld [vmem:[%s8321_s4 + $0x5a8] sm:$0xff] }
  0x97   : > { %4677 = vmatpush.bf16.msrb.mxu0 %v7625_v2  ;;  %v7716_v2 = vld [vmem:[%s8321_s4 + $0x5e8] sm:$0xff] }
  0x98   : > { %4690 = vmatpush.bf16.msrb.mxu1 %v7633_v3 }
  0x99   : > { %4703 = vmatpush.bf16.msrb.mxu2 %v7641_v4  ;;  %v7691_v4 = vld [vmem:[%s8321_s4 + $0x520] sm:$0xff] }
  0x9a   : > { %4716 = vmatpush.bf16.msrb.mxu3 %v7649_v5  ;;  %v7699_v5 = vld [vmem:[%s8321_s4 + $0x560] sm:$0xff] }
  0x9b   : > { %4678 = vmatpush.bf16.msrb.mxu0 %v7624_v6 }
  0x9c   : > { %4691 = vmatpush.bf16.msrb.mxu1 %v7632_v7  ;;  %v7707_v7 = vld [vmem:[%s8321_s4 + $0x5a0] sm:$0xff] }
  0x9d   : > { %4704 = vmatpush.bf16.msrb.mxu2 %v7640_v8  ;;  %v7715_v8 = vld [vmem:[%s8321_s4 + $0x5e0] sm:$0xff] }
  0x9e   : > { %4717 = vmatpush.bf16.msrb.mxu3 %v7648_v9 }
  0x9f   : > { %4679 = vmatpush.bf16.msrb.mxu0 %v7623_v15 }
  0xa0   : > { %4692 = vmatpush.bf16.msrb.mxu1 %v7631_v16 }
  0xa1   : > { %4705 = vmatpush.bf16.msrb.mxu2 %v7639_v17 }
  0xa2   : > { %4718 = vmatpush.bf16.msrb.mxu3 %v7647_v18  ;;  %4680 = vmatmul.bf16.vlgmr.msrb.gmra.mxu0 %v1316_v10  ;;  %v7690_v10 = vld [vmem:[%s8321_s4 + $0x518] sm:$0xff]  ;;  %v7689_v18 = vld [vmem:[%s8321_s4 + $0x510] sm:$0xff] }
  0xa3   : > { %4724 = vmatpush.bf16.msra.mxu0 %v7662_v19  ;;  %4693 = vmatmul.bf16.vlgmr.msrb.gmra.mxu1 %v1317_v12  ;;  %v7706_v12 = vld [vmem:[%s8321_s4 + $0x598] sm:$0xff]  ;;  %v7697_v19 = vld [vmem:[%s8321_s4 + $0x550] sm:$0xff] }
  0xa4   : > { %4737 = vmatpush.bf16.msra.mxu1 %v7670_v20  ;;  %4706 = vmatmul.bf16.vlgmr.msrb.gmra.mxu2 %v1318_v11  ;;  %v7698_v11 = vld [vmem:[%s8321_s4 + $0x558] sm:$0xff] }
  0xa5   : > { %4750 = vmatpush.bf16.msra.mxu2 %v7678_v21  ;;  %4719 = vmatmul.bf16.vlgmr.msrb.gmra.mxu3 %v1319_v13  ;;  %v7714_v13 = vld [vmem:[%s8321_s4 + $0x5d8] sm:$0xff] }
  0xa6   : > { %4763 = vmatpush.bf16.msra.mxu3 %v7686_v22  ;;  %v7705_v22 = vld [vmem:[%s8321_s4 + $0x590] sm:$0xff] }
  0xa7   : > { %4725 = vmatpush.bf16.msra.mxu0 %v7661_v23  ;;  %v7713_v23 = vld [vmem:[%s8321_s4 + $0x5d0] sm:$0xff] }
  0xa8   : > { %4738 = vmatpush.bf16.msra.mxu1 %v7669_v24  ;;  %v7688_v24 = vld [vmem:[%s8321_s4 + $0x508] sm:$0xff] }
  0xa9   : > { %4751 = vmatpush.bf16.msra.mxu2 %v7677_v25  ;;  %v7696_v25 = vld [vmem:[%s8321_s4 + $0x548] sm:$0xff] }
  0xaa   : > { %4764 = vmatpush.bf16.msra.mxu3 %v7685_v26  ;;  %v7704_v26 = vld [vmem:[%s8321_s4 + $0x588] sm:$0xff] }
  0xab   : > { %4726 = vmatpush.bf16.msra.mxu0 %v7660_v27  ;;  %v7712_v27 = vld [vmem:[%s8321_s4 + $0x5c8] sm:$0xff] }
  0xac   : > { %4739 = vmatpush.bf16.msra.mxu1 %v7668_v28  ;;  %v1326_v28 = vld [vmem:[#allocation1 + $0x24] sm:$0xff] }
  0xad   : > { %4752 = vmatpush.bf16.msra.mxu2 %v7676_v29  ;;  %v1328_v29 = vld [vmem:[#allocation1 + $0x36] sm:$0xff] }
  0xae   : > { %4765 = vmatpush.bf16.msra.mxu3 %v7684_v30 }
  0xaf   : > { %4727 = vmatpush.bf16.msra.mxu0 %v7659_v31  ;;  %v1327_v31 = vld [vmem:[#allocation1 + $0x2d] sm:$0xff] }
  0xb0   : > { %4740 = vmatpush.bf16.msra.mxu1 %v7667_v32  ;;  %v1329_v32 = vld [vmem:[#allocation1 + $0x3f] sm:$0xff] }
  0xb1   : > { %4753 = vmatpush.bf16.msra.mxu2 %v7675_v33 }
  0xb2   : > { %4766 = vmatpush.bf16.msra.mxu3 %v7683_v34  ;;  %v271_v34 = vld [vmem:[%s8909_s0 + $0x18] sm:$0xff] }
  0xb3   : > { %4728 = vmatpush.bf16.msra.mxu0 %v7658_v35  ;;  %1331 = vst [vmem:[#allocation1] ss:$9 sm:$0xff] %v271_v34  ;;  %v7687_v35 = vld [vmem:[%s8321_s4 + $0x500] sm:$0xff]  ;;  %v7780_v34 = vld [vmem:[%s8321_s4 + $0x7e8] sm:$0xff] }
  0xb4   : > { %4741 = vmatpush.bf16.msra.mxu1 %v7666_v36  ;;  %v7695_v36 = vld [vmem:[%s8321_s4 + $0x540] sm:$0xff] }
  0xb5   : > { %4754 = vmatpush.bf16.msra.mxu2 %v7674_v37  ;;  %v7703_v37 = vld [vmem:[%s8321_s4 + $0x580] sm:$0xff] }
  0xb6   : > { %4767 = vmatpush.bf16.msra.mxu3 %v7682_v38  ;;  %v7711_v38 = vld [vmem:[%s8321_s4 + $0x5c0] sm:$0xff] }
  0xb7   : > { %4729 = vmatpush.bf16.msra.mxu0 %v7657_v39  ;;  %v7726_v39 = vld [vmem:[%s8321_s4 + $0x638] sm:$0xff] }
  0xb8   : > { %4742 = vmatpush.bf16.msra.mxu1 %v7665_v40  ;;  %v7734_v40 = vld [vmem:[%s8321_s4 + $0x678] sm:$0xff] }
  0xb9   : > { %4755 = vmatpush.bf16.msra.mxu2 %v7673_v41  ;;  %v7742_v41 = vld [vmem:[%s8321_s4 + $0x6b8] sm:$0xff] }
  0xba   : > { %4768 = vmatpush.bf16.msra.mxu3 %v7681_v42  ;;  %v7750_v42 = vld [vmem:[%s8321_s4 + $0x6f8] sm:$0xff] }
  0xbb   : > { %4730 = vmatpush.bf16.msra.mxu0 %v7656_v43  ;;  %v7725_v43 = vld [vmem:[%s8321_s4 + $0x630] sm:$0xff] }
  0xbc   : > { %4743 = vmatpush.bf16.msra.mxu1 %v7664_v44  ;;  %v7733_v44 = vld [vmem:[%s8321_s4 + $0x670] sm:$0xff] }
  0xbd   : > { %4756 = vmatpush.bf16.msra.mxu2 %v7672_v45  ;;  %v7741_v45 = vld [vmem:[%s8321_s4 + $0x6b0] sm:$0xff] }
  0xbe   : > { %4769 = vmatpush.bf16.msra.mxu3 %v7680_v46  ;;  %v7749_v46 = vld [vmem:[%s8321_s4 + $0x6f0] sm:$0xff] }
  0xbf   : > { %4731 = vmatpush.bf16.msra.mxu0 %v7655_v47  ;;  %v4525_v3 = vpop.f32.mrf.mxu0  ;;  %v7724_v47 = vld [vmem:[%s8321_s4 + $0x628] sm:$0xff] }
  0xc0   : > { %4744 = vmatpush.bf16.msra.mxu1 %v7663_v48  ;;  %v4538_v6 = vpop.f32.mrf.mxu1  ;;  %v7732_v48 = vld [vmem:[%s8321_s4 + $0x668] sm:$0xff] }
  0xc1   : > { %4757 = vmatpush.bf16.msra.mxu2 %v7671_v49  ;;  %v4539_v9 = vadd.f32 %v4538_v6, %v4525_v3  ;;  %v7740_v49 = vld [vmem:[%s8321_s4 + $0x6a8] sm:$0xff]  ;;  %v7721_v3 = vld [vmem:[%s8321_s4 + $0x610] sm:$0xff] }
  0xc2   : > { %4770 = vmatpush.bf16.msra.mxu3 %v7679_v50  ;;  %4732 = vmatmul.bf16.vlgmr.msra.gmra.mxu0 %v1322_v55  ;;  %v7748_v50 = vld [vmem:[%s8321_s4 + $0x6e8] sm:$0xff] }
  0xc3   : > { %4776 = vmatpush.bf16.msrb.mxu0 %v7694_v51  ;;  %4745 = vmatmul.bf16.vlgmr.msra.gmra.mxu1 %v1323_v57  ;;  %v7747_v57 = vld [vmem:[%s8321_s4 + $0x6e0] sm:$0xff] }
  0xc4   : > { %4789 = vmatpush.bf16.msrb.mxu1 %v7702_v52  ;;  %4758 = vmatmul.bf16.vlgmr.msra.gmra.mxu2 %v1324_v56  ;;  %v7723_v52 = vld [vmem:[%s8321_s4 + $0x620] sm:$0xff] }
  0xc5   : > { %4802 = vmatpush.bf16.msrb.mxu2 %v7710_v53  ;;  %4771 = vmatmul.bf16.vlgmr.msra.gmra.mxu3 %v1325_v58  ;;  %v7731_v53 = vld [vmem:[%s8321_s4 + $0x660] sm:$0xff] }
  0xc6   : > { %4815 = vmatpush.bf16.msrb.mxu3 %v7718_v54  ;;  %v7739_v56 = vld [vmem:[%s8321_s4 + $0x6a0] sm:$0xff] }
  0xc7   : > { %4777 = vmatpush.bf16.msrb.mxu0 %v7693_v59  ;;  %v4551_v14 = vpop.f32.mrf.mxu2  ;;  %v4527_v17 = vpop.f32.mrf.mxu0  ;;  %v7722_v59 = vld [vmem:[%s8321_s4 + $0x618] sm:$0xff] }
  0xc8   : > { %4790 = vmatpush.bf16.msrb.mxu1 %v7701_v60  ;;  %v4552_v15 = vadd.f32 %v4551_v14, %v4539_v9  ;;  %v4564_v16 = vpop.f32.mrf.mxu3  ;;  %v4540_v21 = vpop.f32.mrf.mxu1  ;;  %v7730_v60 = vld [vmem:[%s8321_s4 + $0x658] sm:$0xff]  ;;  %v7720_v9 = vld [vmem:[%s8321_s4 + $0x608] sm:$0xff]  ;;  %v7735_v17 = vld [vmem:[%s8321_s4 + $0x680] sm:$0xff] }
  0xc9   : > { %4803 = vmatpush.bf16.msrb.mxu2 %v7709_v61  ;;  %v7738_v61 = vld [vmem:[%s8321_s4 + $0x698] sm:$0xff] }
  0xca   : > { %4816 = vmatpush.bf16.msrb.mxu3 %v7717_v62  ;;  %v8524_v20 = vadd.f32 %v4564_v16, %v4552_v15  ;;  %v7746_v62 = vld [vmem:[%s8321_s4 + $0x6d8] sm:$0xff]  ;;  %v7719_v15 = vld [vmem:[%s8321_s4 + $0x600] sm:$0xff] }
  0xcb   : > { %4778 = vmatpush.bf16.msrb.mxu0 %v7692_v63  ;;  %v7727_v16 = vld [vmem:[%s8321_s4 + $0x640] sm:$0xff]  ;;  %v7774_v21 = vld [vmem:[%s8321_s4 + $0x7b8] sm:$0xff] }
  0xcc   : > { %4791 = vmatpush.bf16.msrb.mxu1 %v7700_v0 }
  0xcd   : > { %4804 = vmatpush.bf16.msrb.mxu2 %v7708_v1 }
  0xce   : > { %4817 = vmatpush.bf16.msrb.mxu3 %v7716_v2 }
  0xcf   : > { %4779 = vmatpush.bf16.msrb.mxu0 %v7691_v4  ;;  %v4553_v30 = vpop.f32.mrf.mxu2  ;;  %v7729_v4 = vld [vmem:[%s8321_s4 + $0x650] sm:$0xff] }
  0xd0   : > { %4792 = vmatpush.bf16.msrb.mxu1 %v7699_v5  ;;  %v4566_v33 = vpop.f32.mrf.mxu3  ;;  %v7781_v30 = vld [vmem:[%s8321_s4 + $0x7f0] sm:$0xff] }
  0xd1   : > { %4805 = vmatpush.bf16.msrb.mxu2 %v7707_v7  ;;  %v7737_v7 = vld [vmem:[%s8321_s4 + $0x690] sm:$0xff]  ;;  %v7772_v33 = vld [vmem:[%s8321_s4 + $0x7a8] sm:$0xff] }
  0xd2   : > { %4818 = vmatpush.bf16.msrb.mxu3 %v7715_v8  ;;  %v7745_v8 = vld [vmem:[%s8321_s4 + $0x6d0] sm:$0xff] }
  0xd3   : > { %4780 = vmatpush.bf16.msrb.mxu0 %v7690_v10  ;;  %v7728_v10 = vld [vmem:[%s8321_s4 + $0x648] sm:$0xff] }
  0xd4   : > { %4793 = vmatpush.bf16.msrb.mxu1 %v7698_v11  ;;  %v7736_v11 = vld [vmem:[%s8321_s4 + $0x688] sm:$0xff] }
  0xd5   : > { %4806 = vmatpush.bf16.msrb.mxu2 %v7706_v12  ;;  %v7744_v12 = vld [vmem:[%s8321_s4 + $0x6c8] sm:$0xff] }
  0xd6   : > { %4819 = vmatpush.bf16.msrb.mxu3 %v7714_v13 }
  0xd7   : > { %4781 = vmatpush.bf16.msrb.mxu0 %v7689_v18  ;;  %v7743_v18 = vld [vmem:[%s8321_s4 + $0x6c0] sm:$0xff] }
  0xd8   : > { %4794 = vmatpush.bf16.msrb.mxu1 %v7697_v19  ;;  %v7758_v19 = vld [vmem:[%s8321_s4 + $0x738] sm:$0xff] }
  0xd9   : > { %4807 = vmatpush.bf16.msrb.mxu2 %v7705_v22  ;;  %v7782_v22 = vld [vmem:[%s8321_s4 + $0x7f8] sm:$0xff] }
  0xda   : > { %4820 = vmatpush.bf16.msrb.mxu3 %v7713_v23  ;;  %v1332_v23 = vld [vmem:[#allocation1] sm:$0xff] }
  0xdb   : > { %4782 = vmatpush.bf16.msrb.mxu0 %v7688_v24  ;;  %v1334_v24 = vld [vmem:[#allocation1 + $0x12] sm:$0xff] }
  0xdc   : > { %4795 = vmatpush.bf16.msrb.mxu1 %v7696_v25  ;;  %v1333_v25 = vld [vmem:[#allocation1 + $0x9] sm:$0xff] }
  0xdd   : > { %4808 = vmatpush.bf16.msrb.mxu2 %v7704_v26  ;;  %v1335_v26 = vld [vmem:[#allocation1 + $0x1b] sm:$0xff] }
  0xde   : > { %4821 = vmatpush.bf16.msrb.mxu3 %v7712_v27  ;;  %v7757_v27 = vld [vmem:[%s8321_s4 + $0x730] sm:$0xff] }
  0xdf   : > { %4783 = vmatpush.bf16.msrb.mxu0 %v7687_v35  ;;  %v4577_v51 = vpop.f32.mrf.mxu0 }
  0xe0   : > { %4796 = vmatpush.bf16.msrb.mxu1 %v7695_v36  ;;  %v4578_v54 = vadd.f32 %v4577_v51, %v8524_v20  ;;  %v4590_v55 = vpop.f32.mrf.mxu1  ;;  %v7766_v20 = vld [vmem:[%s8321_s4 + $0x778] sm:$0xff] }
  0xe1   : > { %4809 = vmatpush.bf16.msrb.mxu2 %v7703_v37  ;;  %v7755_v37 = vld [vmem:[%s8321_s4 + $0x720] sm:$0xff] }
  0xe2   : > { %4822 = vmatpush.bf16.msrb.mxu3 %v7711_v38  ;;  %4784 = vmatmul.bf16.vlgmr.msrb.gmra.mxu0 %v1326_v28  ;;  %v4591_v58 = vadd.f32 %v4590_v55, %v4578_v54  ;;  %v7765_v28 = vld [vmem:[%s8321_s4 + $0x770] sm:$0xff]  ;;  %v7763_v38 = vld [vmem:[%s8321_s4 + $0x760] sm:$0xff] }
  0xe3   : > { %4828 = vmatpush.bf16.msra.mxu0 %v7726_v39  ;;  %4797 = vmatmul.bf16.vlgmr.msrb.gmra.mxu1 %v1327_v31  ;;  %v7756_v31 = vld [vmem:[%s8321_s4 + $0x728] sm:$0xff]  ;;  %v7769_v55 = vld [vmem:[%s8321_s4 + $0x790] sm:$0xff] }
  0xe4   : > { %4841 = vmatpush.bf16.msra.mxu1 %v7734_v40  ;;  %4810 = vmatmul.bf16.vlgmr.msrb.gmra.mxu2 %v1328_v29  ;;  %v7773_v29 = vld [vmem:[%s8321_s4 + $0x7b0] sm:$0xff]  ;;  %v7771_v40 = vld [vmem:[%s8321_s4 + $0x7a0] sm:$0xff] }
  0xe5   : > { %4854 = vmatpush.bf16.msra.mxu2 %v7742_v41  ;;  %4823 = vmatmul.bf16.vlgmr.msrb.gmra.mxu3 %v1329_v32  ;;  %v7764_v32 = vld [vmem:[%s8321_s4 + $0x768] sm:$0xff]  ;;  %v7779_v41 = vld [vmem:[%s8321_s4 + $0x7e0] sm:$0xff] }
  0xe6   : > { %4867 = vmatpush.bf16.msra.mxu3 %v7750_v42 }
  0xe7   : > { %4829 = vmatpush.bf16.msra.mxu0 %v7725_v43  ;;  %v4603_v63 = vpop.f32.mrf.mxu2  ;;  %v4579_v2 = vpop.f32.mrf.mxu0  ;;  %v7754_v43 = vld [vmem:[%s8321_s4 + $0x718] sm:$0xff] }
  0xe8   : > { %4842 = vmatpush.bf16.msra.mxu1 %v7733_v44  ;;  %v4604_v0 = vadd.f32 %v4603_v63, %v4591_v58  ;;  %v4616_v1 = vpop.f32.mrf.mxu3  ;;  %v4592_v6 = vpop.f32.mrf.mxu1  ;;  %v7762_v44 = vld [vmem:[%s8321_s4 + $0x758] sm:$0xff]  ;;  %v7760_v58 = vld [vmem:[%s8321_s4 + $0x748] sm:$0xff] }
  0xe9   : > { %4855 = vmatpush.bf16.msra.mxu2 %v7741_v45  ;;  %v7770_v45 = vld [vmem:[%s8321_s4 + $0x798] sm:$0xff]  ;;  %v7767_v6 = vld [vmem:[%s8321_s4 + $0x780] sm:$0xff] }
  0xea   : > { %4868 = vmatpush.bf16.msra.mxu3 %v7749_v46  ;;  %v4617_v5 = vadd.f32 %v4616_v1, %v4604_v0  ;;  %v7778_v46 = vld [vmem:[%s8321_s4 + $0x7d8] sm:$0xff]  ;;  %v1337_v0 = vld [vmem:[#allocation1 + $0x2d] sm:$0xff] }
  0xeb   : > { %4830 = vmatpush.bf16.msra.mxu0 %v7724_v47  ;;  %v1339_v1 = vld [vmem:[#allocation1 + $0x3f] sm:$0xff] }
  0xec   : > { %4843 = vmatpush.bf16.msra.mxu1 %v7732_v48 }
  0xed   : > { %4856 = vmatpush.bf16.msra.mxu2 %v7740_v49 }
  0xee   : > { %4869 = vmatpush.bf16.msra.mxu3 %v7748_v50 }
  0xef   : > { %4831 = vmatpush.bf16.msra.mxu0 %v7723_v52  ;;  %v4605_v13 = vpop.f32.mrf.mxu2  ;;  %v7753_v52 = vld [vmem:[%s8321_s4 + $0x710] sm:$0xff] }
  0xf0   : > { %4844 = vmatpush.bf16.msra.mxu1 %v7731_v53  ;;  %v4618_v14 = vpop.f32.mrf.mxu3  ;;  %v7761_v53 = vld [vmem:[%s8321_s4 + $0x750] sm:$0xff] }
  0xf1   : > { %4857 = vmatpush.bf16.msra.mxu2 %v7739_v56  ;;  %v7777_v56 = vld [vmem:[%s8321_s4 + $0x7d0] sm:$0xff] }
  0xf2   : > { %4870 = vmatpush.bf16.msra.mxu3 %v7747_v57  ;;  %v7752_v57 = vld [vmem:[%s8321_s4 + $0x708] sm:$0xff]  ;;  %v7797_v13 = vld [vmem:[%s8321_s4 + $0x870] sm:$0xff] }
  0xf3   : > { %4832 = vmatpush.bf16.msra.mxu0 %v7722_v59  ;;  %v7768_v59 = vld [vmem:[%s8321_s4 + $0x788] sm:$0xff]  ;;  %v7805_v14 = vld [vmem:[%s8321_s4 + $0x8b0] sm:$0xff] }
  0xf4   : > { %4845 = vmatpush.bf16.msra.mxu1 %v7730_v60  ;;  %v7776_v60 = vld [vmem:[%s8321_s4 + $0x7c8] sm:$0xff] }
  0xf5   : > { %4858 = vmatpush.bf16.msra.mxu2 %v7738_v61  ;;  %v1336_v61 = vld [vmem:[#allocation1 + $0x24] sm:$0xff] }
  0xf6   : > { %4871 = vmatpush.bf16.msra.mxu3 %v7746_v62  ;;  %v1338_v62 = vld [vmem:[#allocation1 + $0x36] sm:$0xff] }
  0xf7   : > { %4833 = vmatpush.bf16.msra.mxu0 %v7721_v3  ;;  %v272_v3 = vld [vmem:[%s8909_s0 + $0x20] sm:$0xff] }
  0xf8   : > { %4846 = vmatpush.bf16.msra.mxu1 %v7729_v4  ;;  %1341 = vst [vmem:[#allocation1] ss:$9 sm:$0xff] %v272_v3  ;;  %v7751_v4 = vld [vmem:[%s8321_s4 + $0x700] sm:$0xff]  ;;  %v7844_v3 = vld [vmem:[%s8321_s4 + $0x9e8] sm:$0xff] }
  0xf9   : > { %4859 = vmatpush.bf16.msra.mxu2 %v7737_v7  ;;  %v7775_v7 = vld [vmem:[%s8321_s4 + $0x7c0] sm:$0xff] }
  0xfa   : > { %4872 = vmatpush.bf16.msra.mxu3 %v7745_v8  ;;  %v7790_v8 = vld [vmem:[%s8321_s4 + $0x838] sm:$0xff] }
  0xfb   : > { %4834 = vmatpush.bf16.msra.mxu0 %v7720_v9  ;;  %v7798_v9 = vld [vmem:[%s8321_s4 + $0x878] sm:$0xff] }
  0xfc   : > { %4847 = vmatpush.bf16.msra.mxu1 %v7728_v10  ;;  %v7806_v10 = vld [vmem:[%s8321_s4 + $0x8b8] sm:$0xff] }
  0xfd   : > { %4860 = vmatpush.bf16.msra.mxu2 %v7736_v11  ;;  %v7814_v11 = vld [vmem:[%s8321_s4 + $0x8f8] sm:$0xff] }
  0xfe   : > { %4873 = vmatpush.bf16.msra.mxu3 %v7744_v12  ;;  %v7789_v12 = vld [vmem:[%s8321_s4 + $0x830] sm:$0xff] }
  0xff   : > { %4835 = vmatpush.bf16.msra.mxu0 %v7719_v15  ;;  %v4629_v35 = vpop.f32.mrf.mxu0  ;;  %v7813_v15 = vld [vmem:[%s8321_s4 + $0x8f0] sm:$0xff] }
 0x100   : > { %4848 = vmatpush.bf16.msra.mxu1 %v7727_v16  ;;  %v4630_v36 = vadd.f32 %v4629_v35, %v4617_v5  ;;  %v4642_v39 = vpop.f32.mrf.mxu1  ;;  %v7759_v5 = vld [vmem:[%s8321_s4 + $0x740] sm:$0xff]  ;;  %v7788_v16 = vld [vmem:[%s8321_s4 + $0x828] sm:$0xff] }
 0x101   : > { %4861 = vmatpush.bf16.msra.mxu2 %v7735_v17  ;;  %v7796_v17 = vld [vmem:[%s8321_s4 + $0x868] sm:$0xff] }
 0x102   : > { %4874 = vmatpush.bf16.msra.mxu3 %v7743_v18  ;;  %4836 = vmatmul.bf16.vlgmr.msra.gmra.mxu0 %v1332_v23  ;;  %v4643_v42 = vadd.f32 %v4642_v39, %v4630_v36  ;;  %v7804_v18 = vld [vmem:[%s8321_s4 + $0x8a8] sm:$0xff]  ;;  %v7795_v23 = vld [vmem:[%s8321_s4 + $0x860] sm:$0xff] }
 0x103   : > { %4880 = vmatpush.bf16.msrb.mxu0 %v7758_v19  ;;  %4849 = vmatmul.bf16.vlgmr.msra.gmra.mxu1 %v1333_v25  ;;  %v7812_v19 = vld [vmem:[%s8321_s4 + $0x8e8] sm:$0xff]  ;;  %v7803_v25 = vld [vmem:[%s8321_s4 + $0x8a0] sm:$0xff] }
 0x104   : > { %4893 = vmatpush.bf16.msrb.mxu1 %v7766_v20  ;;  %4862 = vmatmul.bf16.vlgmr.msra.gmra.mxu2 %v1334_v24 }
 0x105   : > { %4906 = vmatpush.bf16.msrb.mxu2 %v7774_v21  ;;  %4875 = vmatmul.bf16.vlgmr.msra.gmra.mxu3 %v1335_v26  ;;  %v7811_v26 = vld [vmem:[%s8321_s4 + $0x8e0] sm:$0xff] }
 0x106   : > { %4919 = vmatpush.bf16.msrb.mxu3 %v7782_v22  ;;  %v7787_v22 = vld [vmem:[%s8321_s4 + $0x820] sm:$0xff] }
 0x107   : > { %4881 = vmatpush.bf16.msrb.mxu0 %v7757_v27  ;;  %v4655_v47 = vpop.f32.mrf.mxu2  ;;  %v4631_v50 = vpop.f32.mrf.mxu0 }
 0x108   : > { %4894 = vmatpush.bf16.msrb.mxu1 %v7765_v28  ;;  %v4656_v48 = vadd.f32 %v4655_v47, %v4643_v42  ;;  %v4668_v49 = vpop.f32.mrf.mxu3  ;;  %v4644_v54 = vpop.f32.mrf.mxu1  ;;  %v7786_v28 = vld [vmem:[%s8321_s4 + $0x818] sm:$0xff]  ;;  %v7784_v42 = vld [vmem:[%s8321_s4 + $0x808] sm:$0xff]  ;;  %v7799_v50 = vld [vmem:[%s8321_s4 + $0x880] sm:$0xff] }
 0x109   : > { %4907 = vmatpush.bf16.msrb.mxu2 %v7773_v29  ;;  %v7794_v29 = vld [vmem:[%s8321_s4 + $0x858] sm:$0xff] }
 0x10a   : > { %4920 = vmatpush.bf16.msrb.mxu3 %v7781_v30  ;;  %v8592_v51 = vadd.f32 %v4668_v49, %v4656_v48  ;;  %v7802_v30 = vld [vmem:[%s8321_s4 + $0x898] sm:$0xff]  ;;  %v7783_v48 = vld [vmem:[%s8321_s4 + $0x800] sm:$0xff] }
 0x10b   : > { %4882 = vmatpush.bf16.msrb.mxu0 %v7756_v31  ;;  %v7810_v31 = vld [vmem:[%s8321_s4 + $0x8d8] sm:$0xff]  ;;  %v7791_v49 = vld [vmem:[%s8321_s4 + $0x840] sm:$0xff] }
 0x10c   : > { %4895 = vmatpush.bf16.msrb.mxu1 %v7764_v32  ;;  %v7838_v54 = vld [vmem:[%s8321_s4 + $0x9b8] sm:$0xff] }
 0x10d   : > { %4908 = vmatpush.bf16.msrb.mxu2 %v7772_v33 }
 0x10e   : > { %4921 = vmatpush.bf16.msrb.mxu3 %v7780_v34 }
 0x10f   : > { %4883 = vmatpush.bf16.msrb.mxu0 %v7755_v37  ;;  %v4657_v63 = vpop.f32.mrf.mxu2  ;;  %v7785_v37 = vld [vmem:[%s8321_s4 + $0x810] sm:$0xff] }
 0x110   : > { %4896 = vmatpush.bf16.msrb.mxu1 %v7763_v38  ;;  %v4670_v2 = vpop.f32.mrf.mxu3  ;;  %v7793_v38 = vld [vmem:[%s8321_s4 + $0x850] sm:$0xff] }
 0x111   : > { %4909 = vmatpush.bf16.msrb.mxu2 %v7771_v40  ;;  %v7801_v40 = vld [vmem:[%s8321_s4 + $0x890] sm:$0xff]  ;;  %v7836_v2 = vld [vmem:[%s8321_s4 + $0x9a8] sm:$0xff] }
 0x112   : > { %4922 = vmatpush.bf16.msrb.mxu3 %v7779_v41  ;;  %v7809_v41 = vld [vmem:[%s8321_s4 + $0x8d0] sm:$0xff] }
 0x113   : > { %4884 = vmatpush.bf16.msrb.mxu0 %v7754_v43  ;;  %v7792_v43 = vld [vmem:[%s8321_s4 + $0x848] sm:$0xff]  ;;  %v7845_v63 = vld [vmem:[%s8321_s4 + $0x9f0] sm:$0xff] }
 0x114   : > { %4897 = vmatpush.bf16.msrb.mxu1 %v7762_v44  ;;  %v7800_v44 = vld [vmem:[%s8321_s4 + $0x888] sm:$0xff] }
 0x115   : > { %4910 = vmatpush.bf16.msrb.mxu2 %v7770_v45  ;;  %v7808_v45 = vld [vmem:[%s8321_s4 + $0x8c8] sm:$0xff] }
 0x116   : > { %4923 = vmatpush.bf16.msrb.mxu3 %v7778_v46 }
 0x117   : > { %4885 = vmatpush.bf16.msrb.mxu0 %v7753_v52  ;;  %v7822_v52 = vld [vmem:[%s8321_s4 + $0x938] sm:$0xff] }
 0x118   : > { %4898 = vmatpush.bf16.msrb.mxu1 %v7761_v53  ;;  %v7830_v53 = vld [vmem:[%s8321_s4 + $0x978] sm:$0xff] }
 0x119   : > { %4911 = vmatpush.bf16.msrb.mxu2 %v7769_v55  ;;  %v7846_v55 = vld [vmem:[%s8321_s4 + $0x9f8] sm:$0xff] }
 0x11a   : > { %4924 = vmatpush.bf16.msrb.mxu3 %v7777_v56  ;;  %v1342_v56 = vld [vmem:[#allocation1] sm:$0xff] }
 0x11b   : > { %4886 = vmatpush.bf16.msrb.mxu0 %v7752_v57  ;;  %v1344_v57 = vld [vmem:[#allocation1 + $0x12] sm:$0xff] }
 0x11c   : > { %4899 = vmatpush.bf16.msrb.mxu1 %v7760_v58  ;;  %v1343_v58 = vld [vmem:[#allocation1 + $0x9] sm:$0xff] }
 0x11d   : > { %4912 = vmatpush.bf16.msrb.mxu2 %v7768_v59  ;;  %v1345_v59 = vld [vmem:[#allocation1 + $0x1b] sm:$0xff] }
 0x11e   : > { %4925 = vmatpush.bf16.msrb.mxu3 %v7776_v60  ;;  %v7821_v60 = vld [vmem:[%s8321_s4 + $0x930] sm:$0xff] }
 0x11f   : > { %4887 = vmatpush.bf16.msrb.mxu0 %v7751_v4  ;;  %v4681_v20 = vpop.f32.mrf.mxu0 }
 0x120   : > { %4900 = vmatpush.bf16.msrb.mxu1 %v7759_v5  ;;  %v4682_v21 = vadd.f32 %v4681_v20, %v8592_v51  ;;  %v4694_v24 = vpop.f32.mrf.mxu1  ;;  %v7807_v51 = vld [vmem:[%s8321_s4 + $0x8c0] sm:$0xff] }
 0x121   : > { %4913 = vmatpush.bf16.msrb.mxu2 %v7767_v6  ;;  %v7819_v6 = vld [vmem:[%s8321_s4 + $0x920] sm:$0xff] }
 0x122   : > { %4926 = vmatpush.bf16.msrb.mxu3 %v7775_v7  ;;  %4888 = vmatmul.bf16.vlgmr.msrb.gmra.mxu0 %v1336_v61  ;;  %v4695_v27 = vadd.f32 %v4694_v24, %v4682_v21  ;;  %v7829_v61 = vld [vmem:[%s8321_s4 + $0x970] sm:$0xff]  ;;  %v7827_v7 = vld [vmem:[%s8321_s4 + $0x960] sm:$0xff] }
 0x123   : > { %4932 = vmatpush.bf16.msra.mxu0 %v7790_v8  ;;  %4901 = vmatmul.bf16.vlgmr.msrb.gmra.mxu1 %v1337_v0  ;;  %v7820_v0 = vld [vmem:[%s8321_s4 + $0x928] sm:$0xff]  ;;  %v7817_v21 = vld [vmem:[%s8321_s4 + $0x910] sm:$0xff] }
 0x124   : > { %4945 = vmatpush.bf16.msra.mxu1 %v7798_v9  ;;  %4914 = vmatmul.bf16.vlgmr.msrb.gmra.mxu2 %v1338_v62  ;;  %v7837_v62 = vld [vmem:[%s8321_s4 + $0x9b0] sm:$0xff]  ;;  %v7835_v9 = vld [vmem:[%s8321_s4 + $0x9a0] sm:$0xff] }
 0x125   : > { %4958 = vmatpush.bf16.msra.mxu2 %v7806_v10  ;;  %4927 = vmatmul.bf16.vlgmr.msrb.gmra.mxu3 %v1339_v1  ;;  %v7828_v1 = vld [vmem:[%s8321_s4 + $0x968] sm:$0xff]  ;;  %v7843_v10 = vld [vmem:[%s8321_s4 + $0x9e0] sm:$0xff]  ;;  %v7833_v24 = vld [vmem:[%s8321_s4 + $0x990] sm:$0xff] }
 0x126   : > { %4971 = vmatpush.bf16.msra.mxu3 %v7814_v11 }
 0x127   : > { %4933 = vmatpush.bf16.msra.mxu0 %v7789_v12  ;;  %v4707_v32 = vpop.f32.mrf.mxu2  ;;  %v4683_v35 = vpop.f32.mrf.mxu0  ;;  %v7818_v12 = vld [vmem:[%s8321_s4 + $0x918] sm:$0xff] }
 0x128   : > { %4946 = vmatpush.bf16.msra.mxu1 %v7797_v13  ;;  %v4708_v33 = vadd.f32 %v4707_v32, %v4695_v27  ;;  %v4720_v34 = vpop.f32.mrf.mxu3  ;;  %v4696_v39 = vpop.f32.mrf.mxu1  ;;  %v7826_v13 = vld [vmem:[%s8321_s4 + $0x958] sm:$0xff]  ;;  %v7824_v27 = vld [vmem:[%s8321_s4 + $0x948] sm:$0xff] }
 0x129   : > { %4959 = vmatpush.bf16.msra.mxu2 %v7805_v14  ;;  %v7834_v14 = vld [vmem:[%s8321_s4 + $0x998] sm:$0xff]  ;;  %v7831_v39 = vld [vmem:[%s8321_s4 + $0x980] sm:$0xff] }
 0x12a   : > { %4972 = vmatpush.bf16.msra.mxu3 %v7813_v15  ;;  %v4721_v36 = vadd.f32 %v4720_v34, %v4708_v33  ;;  %v7842_v15 = vld [vmem:[%s8321_s4 + $0x9d8] sm:$0xff]  ;;  %v1347_v33 = vld [vmem:[#allocation1 + $0x2d] sm:$0xff] }
 0x12b   : > { %4934 = vmatpush.bf16.msra.mxu0 %v7788_v16  ;;  %v1349_v34 = vld [vmem:[#allocation1 + $0x3f] sm:$0xff] }
 0x12c   : > { %4947 = vmatpush.bf16.msra.mxu1 %v7796_v17 }
 0x12d   : > { %4960 = vmatpush.bf16.msra.mxu2 %v7804_v18 }
 0x12e   : > { %4973 = vmatpush.bf16.msra.mxu3 %v7812_v19 }
 0x12f   : > { %4935 = vmatpush.bf16.msra.mxu0 %v7787_v22  ;;  %v4709_v46 = vpop.f32.mrf.mxu2  ;;  %v7825_v22 = vld [vmem:[%s8321_s4 + $0x950] sm:$0xff] }
 0x130   : > { %4948 = vmatpush.bf16.msra.mxu1 %v7795_v23  ;;  %v4722_v47 = vpop.f32.mrf.mxu3  ;;  %v7861_v46 = vld [vmem:[%s8321_s4 + $0xa70] sm:$0xff] }
 0x131   : > { %4961 = vmatpush.bf16.msra.mxu2 %v7803_v25  ;;  %v7841_v25 = vld [vmem:[%s8321_s4 + $0x9d0] sm:$0xff] }
 0x132   : > { %4974 = vmatpush.bf16.msra.mxu3 %v7811_v26  ;;  %v7816_v26 = vld [vmem:[%s8321_s4 + $0x908] sm:$0xff]  ;;  %v7869_v47 = vld [vmem:[%s8321_s4 + $0xab0] sm:$0xff] }
 0x133   : > { %4936 = vmatpush.bf16.msra.mxu0 %v7786_v28  ;;  %v7832_v28 = vld [vmem:[%s8321_s4 + $0x988] sm:$0xff] }
 0x134   : > { %4949 = vmatpush.bf16.msra.mxu1 %v7794_v29  ;;  %v7840_v29 = vld [vmem:[%s8321_s4 + $0x9c8] sm:$0xff] }
 0x135   : > { %4962 = vmatpush.bf16.msra.mxu2 %v7802_v30  ;;  %v1346_v30 = vld [vmem:[#allocation1 + $0x24] sm:$0xff] }
 0x136   : > { %4975 = vmatpush.bf16.msra.mxu3 %v7810_v31  ;;  %v1348_v31 = vld [vmem:[#allocation1 + $0x36] sm:$0xff] }
 0x137   : > { %4937 = vmatpush.bf16.msra.mxu0 %v7785_v37  ;;  %v7815_v37 = vld [vmem:[%s8321_s4 + $0x900] sm:$0xff] }
 0x138   : > { %4950 = vmatpush.bf16.msra.mxu1 %v7793_v38  ;;  %v7823_v38 = vld [vmem:[%s8321_s4 + $0x940] sm:$0xff] }
 0x139   : > { %4963 = vmatpush.bf16.msra.mxu2 %v7801_v40  ;;  %v7839_v40 = vld [vmem:[%s8321_s4 + $0x9c0] sm:$0xff] }
 0x13a   : > { %4976 = vmatpush.bf16.msra.mxu3 %v7809_v41  ;;  %v7854_v41 = vld [vmem:[%s8321_s4 + $0xa38] sm:$0xff] }
 0x13b   : > { %4938 = vmatpush.bf16.msra.mxu0 %v7784_v42  ;;  %v7862_v42 = vld [vmem:[%s8321_s4 + $0xa78] sm:$0xff] }
 0x13c   : > { %4951 = vmatpush.bf16.msra.mxu1 %v7792_v43  ;;  %v7870_v43 = vld [vmem:[%s8321_s4 + $0xab8] sm:$0xff] }
 0x13d   : > { %4964 = vmatpush.bf16.msra.mxu2 %v7800_v44  ;;  %v7878_v44 = vld [vmem:[%s8321_s4 + $0xaf8] sm:$0xff] }
 0x13e   : > { %4977 = vmatpush.bf16.msra.mxu3 %v7808_v45  ;;  %v7853_v45 = vld [vmem:[%s8321_s4 + $0xa30] sm:$0xff] }
 0x13f   : > { %4939 = vmatpush.bf16.msra.mxu0 %v7783_v48  ;;  %v4733_v4 = vpop.f32.mrf.mxu0  ;;  %v7877_v48 = vld [vmem:[%s8321_s4 + $0xaf0] sm:$0xff] }
 0x140   : > { %4952 = vmatpush.bf16.msra.mxu1 %v7791_v49  ;;  %v4734_v5 = vadd.f32 %v4733_v4, %v4721_v36  ;;  %v4746_v8 = vpop.f32.mrf.mxu1  ;;  %v273_v36 = vld [vmem:[%s8909_s0 + $0x28] sm:$0xff]  ;;  %v7852_v49 = vld [vmem:[%s8321_s4 + $0xa28] sm:$0xff] }
 0x141   : > { %4965 = vmatpush.bf16.msra.mxu2 %v7799_v50  ;;  %1351 = vst [vmem:[#allocation1] ss:$9 sm:$0xff] %v273_v36  ;;  %v7860_v50 = vld [vmem:[%s8321_s4 + $0xa68] sm:$0xff] }
 0x142   : > { %4978 = vmatpush.bf16.msra.mxu3 %v7807_v51  ;;  %4940 = vmatmul.bf16.vlgmr.msra.gmra.mxu0 %v1342_v56  ;;  %v4747_v11 = vadd.f32 %v4746_v8, %v4734_v5  ;;  %v7868_v51 = vld [vmem:[%s8321_s4 + $0xaa8] sm:$0xff]  ;;  %v7859_v56 = vld [vmem:[%s8321_s4 + $0xa60] sm:$0xff] }
 0x143   : > { %4984 = vmatpush.bf16.msrb.mxu0 %v7822_v52  ;;  %4953 = vmatmul.bf16.vlgmr.msra.gmra.mxu1 %v1343_v58  ;;  %v7876_v52 = vld [vmem:[%s8321_s4 + $0xae8] sm:$0xff]  ;;  %v7867_v58 = vld [vmem:[%s8321_s4 + $0xaa0] sm:$0xff] }
 0x144   : > { %4997 = vmatpush.bf16.msrb.mxu1 %v7830_v53  ;;  %4966 = vmatmul.bf16.vlgmr.msra.gmra.mxu2 %v1344_v57  ;;  %v7908_v36 = vld [vmem:[%s8321_s4 + $0xbe8] sm:$0xff] }
 0x145   : > { %5010 = vmatpush.bf16.msrb.mxu2 %v7838_v54  ;;  %4979 = vmatmul.bf16.vlgmr.msra.gmra.mxu3 %v1345_v59  ;;  %v7875_v59 = vld [vmem:[%s8321_s4 + $0xae0] sm:$0xff] }
 0x146   : > { %5023 = vmatpush.bf16.msrb.mxu3 %v7846_v55  ;;  %v7851_v55 = vld [vmem:[%s8321_s4 + $0xa20] sm:$0xff] }
 0x147   : > { %4985 = vmatpush.bf16.msrb.mxu0 %v7821_v60  ;;  %v4759_v16 = vpop.f32.mrf.mxu2  ;;  %v4735_v19 = vpop.f32.mrf.mxu0 }
 0x148   : > { %4998 = vmatpush.bf16.msrb.mxu1 %v7829_v61  ;;  %v4760_v17 = vadd.f32 %v4759_v16, %v4747_v11  ;;  %v4772_v18 = vpop.f32.mrf.mxu3  ;;  %v4748_v23 = vpop.f32.mrf.mxu1  ;;  %v7850_v61 = vld [vmem:[%s8321_s4 + $0xa18] sm:$0xff]  ;;  %v7848_v11 = vld [vmem:[%s8321_s4 + $0xa08] sm:$0xff]  ;;  %v7863_v19 = vld [vmem:[%s8321_s4 + $0xa80] sm:$0xff] }
 0x149   : > { %5011 = vmatpush.bf16.msrb.mxu2 %v7837_v62  ;;  %v7858_v62 = vld [vmem:[%s8321_s4 + $0xa58] sm:$0xff] }
 0x14a   : > { %5024 = vmatpush.bf16.msrb.mxu3 %v7845_v63  ;;  %v8662_v20 = vadd.f32 %v4772_v18, %v4760_v17  ;;  %v7866_v63 = vld [vmem:[%s8321_s4 + $0xa98] sm:$0xff]  ;;  %v7847_v17 = vld [vmem:[%s8321_s4 + $0xa00] sm:$0xff] }
 0x14b   : > { %4986 = vmatpush.bf16.msrb.mxu0 %v7820_v0  ;;  %v7874_v0 = vld [vmem:[%s8321_s4 + $0xad8] sm:$0xff]  ;;  %v7855_v18 = vld [vmem:[%s8321_s4 + $0xa40] sm:$0xff] }
 0x14c   : > { %4999 = vmatpush.bf16.msrb.mxu1 %v7828_v1  ;;  %v7902_v23 = vld [vmem:[%s8321_s4 + $0xbb8] sm:$0xff] }
 0x14d   : > { %5012 = vmatpush.bf16.msrb.mxu2 %v7836_v2 }
 0x14e   : > { %5025 = vmatpush.bf16.msrb.mxu3 %v7844_v3 }
 0x14f   : > { %4987 = vmatpush.bf16.msrb.mxu0 %v7819_v6  ;;  %v4761_v32 = vpop.f32.mrf.mxu2  ;;  %v7849_v6 = vld [vmem:[%s8321_s4 + $0xa10] sm:$0xff] }
 0x150   : > { %5000 = vmatpush.bf16.msrb.mxu1 %v7827_v7  ;;  %v4774_v35 = vpop.f32.mrf.mxu3  ;;  %v7857_v7 = vld [vmem:[%s8321_s4 + $0xa50] sm:$0xff] }
 0x151   : > { %5013 = vmatpush.bf16.msrb.mxu2 %v7835_v9  ;;  %v7865_v9 = vld [vmem:[%s8321_s4 + $0xa90] sm:$0xff]  ;;  %v7900_v35 = vld [vmem:[%s8321_s4 + $0xba8] sm:$0xff] }
 0x152   : > { %5026 = vmatpush.bf16.msrb.mxu3 %v7843_v10  ;;  %v7873_v10 = vld [vmem:[%s8321_s4 + $0xad0] sm:$0xff] }
 0x153   : > { %4988 = vmatpush.bf16.msrb.mxu0 %v7818_v12  ;;  %v7856_v12 = vld [vmem:[%s8321_s4 + $0xa48] sm:$0xff]  ;;  %v7909_v32 = vld [vmem:[%s8321_s4 + $0xbf0] sm:$0xff] }
 0x154   : > { %5001 = vmatpush.bf16.msrb.mxu1 %v7826_v13  ;;  %v7864_v13 = vld [vmem:[%s8321_s4 + $0xa88] sm:$0xff] }
 0x155   : > { %5014 = vmatpush.bf16.msrb.mxu2 %v7834_v14  ;;  %v7872_v14 = vld [vmem:[%s8321_s4 + $0xac8] sm:$0xff] }
 0x156   : > { %5027 = vmatpush.bf16.msrb.mxu3 %v7842_v15 }
 0x157   : > { %4989 = vmatpush.bf16.msrb.mxu0 %v7817_v21  ;;  %v7886_v21 = vld [vmem:[%s8321_s4 + $0xb38] sm:$0xff] }
 0x158   : > { %5002 = vmatpush.bf16.msrb.mxu1 %v7825_v22  ;;  %v7894_v22 = vld [vmem:[%s8321_s4 + $0xb78] sm:$0xff] }
 0x159   : > { %5015 = vmatpush.bf16.msrb.mxu2 %v7833_v24  ;;  %v7910_v24 = vld [vmem:[%s8321_s4 + $0xbf8] sm:$0xff] }
 0x15a   : > { %5028 = vmatpush.bf16.msrb.mxu3 %v7841_v25  ;;  %v1352_v25 = vld [vmem:[#allocation1] sm:$0xff] }
 0x15b   : > { %4990 = vmatpush.bf16.msrb.mxu0 %v7816_v26  ;;  %v1354_v26 = vld [vmem:[#allocation1 + $0x12] sm:$0xff] }
 0x15c   : > { %5003 = vmatpush.bf16.msrb.mxu1 %v7824_v27  ;;  %v1353_v27 = vld [vmem:[#allocation1 + $0x9] sm:$0xff] }
 0x15d   : > { %5016 = vmatpush.bf16.msrb.mxu2 %v7832_v28  ;;  %v1355_v28 = vld [vmem:[#allocation1 + $0x1b] sm:$0xff] }
 0x15e   : > { %5029 = vmatpush.bf16.msrb.mxu3 %v7840_v29  ;;  %v7885_v29 = vld [vmem:[%s8321_s4 + $0xb30] sm:$0xff] }
 0x15f   : > { %4991 = vmatpush.bf16.msrb.mxu0 %v7815_v37  ;;  %v4785_v53 = vpop.f32.mrf.mxu0 }
 0x160   : > { %5004 = vmatpush.bf16.msrb.mxu1 %v7823_v38  ;;  %v4786_v54 = vadd.f32 %v4785_v53, %v8662_v20  ;;  %v4798_v57 = vpop.f32.mrf.mxu1  ;;  %v7871_v20 = vld [vmem:[%s8321_s4 + $0xac0] sm:$0xff] }
 0x161   : > { %5017 = vmatpush.bf16.msrb.mxu2 %v7831_v39  ;;  %v7883_v39 = vld [vmem:[%s8321_s4 + $0xb20] sm:$0xff] }
 0x162   : > { %5030 = vmatpush.bf16.msrb.mxu3 %v7839_v40  ;;  %4992 = vmatmul.bf16.vlgmr.msrb.gmra.mxu0 %v1346_v30  ;;  %v4799_v60 = vadd.f32 %v4798_v57, %v4786_v54  ;;  %v7893_v30 = vld [vmem:[%s8321_s4 + $0xb70] sm:$0xff]  ;;  %v7891_v40 = vld [vmem:[%s8321_s4 + $0xb60] sm:$0xff] }
 0x163   : > { %5036 = vmatpush.bf16.msra.mxu0 %v7854_v41  ;;  %5005 = vmatmul.bf16.vlgmr.msrb.gmra.mxu1 %v1347_v33  ;;  %v7884_v33 = vld [vmem:[%s8321_s4 + $0xb28] sm:$0xff]  ;;  %v7881_v54 = vld [vmem:[%s8321_s4 + $0xb10] sm:$0xff] }
 0x164   : > { %5049 = vmatpush.bf16.msra.mxu1 %v7862_v42  ;;  %5018 = vmatmul.bf16.vlgmr.msrb.gmra.mxu2 %v1348_v31  ;;  %v7901_v31 = vld [vmem:[%s8321_s4 + $0xbb0] sm:$0xff]  ;;  %v7899_v42 = vld [vmem:[%s8321_s4 + $0xba0] sm:$0xff] }
 0x165   : > { %5062 = vmatpush.bf16.msra.mxu2 %v7870_v43  ;;  %5031 = vmatmul.bf16.vlgmr.msrb.gmra.mxu3 %v1349_v34  ;;  %v7892_v34 = vld [vmem:[%s8321_s4 + $0xb68] sm:$0xff]  ;;  %v7907_v43 = vld [vmem:[%s8321_s4 + $0xbe0] sm:$0xff]  ;;  %v7897_v57 = vld [vmem:[%s8321_s4 + $0xb90] sm:$0xff] }
 0x166   : > { %5075 = vmatpush.bf16.msra.mxu3 %v7878_v44 }
 0x167   : > { %5037 = vmatpush.bf16.msra.mxu0 %v7853_v45  ;;  %v4811_v1 = vpop.f32.mrf.mxu2  ;;  %v4787_v4 = vpop.f32.mrf.mxu0  ;;  %v7882_v45 = vld [vmem:[%s8321_s4 + $0xb18] sm:$0xff] }
 0x168   : > { %5050 = vmatpush.bf16.msra.mxu1 %v7861_v46  ;;  %v4812_v2 = vadd.f32 %v4811_v1, %v4799_v60  ;;  %v4824_v3 = vpop.f32.mrf.mxu3  ;;  %v4800_v8 = vpop.f32.mrf.mxu1  ;;  %v7890_v46 = vld [vmem:[%s8321_s4 + $0xb58] sm:$0xff]  ;;  %v7888_v60 = vld [vmem:[%s8321_s4 + $0xb48] sm:$0xff] }
 0x169   : > { %5063 = vmatpush.bf16.msra.mxu2 %v7869_v47  ;;  %v7898_v47 = vld [vmem:[%s8321_s4 + $0xb98] sm:$0xff]  ;;  %v7895_v8 = vld [vmem:[%s8321_s4 + $0xb80] sm:$0xff] }
 0x16a   : > { %5076 = vmatpush.bf16.msra.mxu3 %v7877_v48  ;;  %v4825_v5 = vadd.f32 %v4824_v3, %v4812_v2  ;;  %v7906_v48 = vld [vmem:[%s8321_s4 + $0xbd8] sm:$0xff]  ;;  %v1357_v2 = vld [vmem:[#allocation1 + $0x2d] sm:$0xff] }
 0x16b   : > { %5038 = vmatpush.bf16.msra.mxu0 %v7852_v49  ;;  %v1359_v3 = vld [vmem:[#allocation1 + $0x3f] sm:$0xff] }
 0x16c   : > { %5051 = vmatpush.bf16.msra.mxu1 %v7860_v50 }
 0x16d   : > { %5064 = vmatpush.bf16.msra.mxu2 %v7868_v51 }
 0x16e   : > { %5077 = vmatpush.bf16.msra.mxu3 %v7876_v52 }
 0x16f   : > { %5039 = vmatpush.bf16.msra.mxu0 %v7851_v55  ;;  %v4813_v15 = vpop.f32.mrf.mxu2  ;;  %v7889_v55 = vld [vmem:[%s8321_s4 + $0xb50] sm:$0xff] }
 0x170   : > { %5052 = vmatpush.bf16.msra.mxu1 %v7859_v56  ;;  %v4826_v16 = vpop.f32.mrf.mxu3  ;;  %v7925_v15 = vld [vmem:[%s8321_s4 + $0xc70] sm:$0xff] }
 0x171   : > { %5065 = vmatpush.bf16.msra.mxu2 %v7867_v58  ;;  %v7905_v58 = vld [vmem:[%s8321_s4 + $0xbd0] sm:$0xff] }
 0x172   : > { %5078 = vmatpush.bf16.msra.mxu3 %v7875_v59  ;;  %v7880_v59 = vld [vmem:[%s8321_s4 + $0xb08] sm:$0xff]  ;;  %v7933_v16 = vld [vmem:[%s8321_s4 + $0xcb0] sm:$0xff] }
 0x173   : > { %5040 = vmatpush.bf16.msra.mxu0 %v7850_v61  ;;  %v7896_v61 = vld [vmem:[%s8321_s4 + $0xb88] sm:$0xff] }
 0x174   : > { %5053 = vmatpush.bf16.msra.mxu1 %v7858_v62  ;;  %v7904_v62 = vld [vmem:[%s8321_s4 + $0xbc8] sm:$0xff] }
 0x175   : > { %5066 = vmatpush.bf16.msra.mxu2 %v7866_v63  ;;  %v1356_v63 = vld [vmem:[#allocation1 + $0x24] sm:$0xff] }
 0x176   : > { %5079 = vmatpush.bf16.msra.mxu3 %v7874_v0  ;;  %v1358_v0 = vld [vmem:[#allocation1 + $0x36] sm:$0xff] }
 0x177   : > { %5041 = vmatpush.bf16.msra.mxu0 %v7849_v6  ;;  %v7879_v6 = vld [vmem:[%s8321_s4 + $0xb00] sm:$0xff] }
 0x178   : > { %5054 = vmatpush.bf16.msra.mxu1 %v7857_v7  ;;  %v7887_v7 = vld [vmem:[%s8321_s4 + $0xb40] sm:$0xff] }
 0x179   : > { %5067 = vmatpush.bf16.msra.mxu2 %v7865_v9  ;;  %v7903_v9 = vld [vmem:[%s8321_s4 + $0xbc0] sm:$0xff] }
 0x17a   : > { %5080 = vmatpush.bf16.msra.mxu3 %v7873_v10  ;;  %v7918_v10 = vld [vmem:[%s8321_s4 + $0xc38] sm:$0xff] }
 0x17b   : > { %5042 = vmatpush.bf16.msra.mxu0 %v7848_v11  ;;  %v7926_v11 = vld [vmem:[%s8321_s4 + $0xc78] sm:$0xff] }
 0x17c   : > { %5055 = vmatpush.bf16.msra.mxu1 %v7856_v12  ;;  %v7934_v12 = vld [vmem:[%s8321_s4 + $0xcb8] sm:$0xff] }
 0x17d   : > { %5068 = vmatpush.bf16.msra.mxu2 %v7864_v13  ;;  %v7942_v13 = vld [vmem:[%s8321_s4 + $0xcf8] sm:$0xff] }
 0x17e   : > { %5081 = vmatpush.bf16.msra.mxu3 %v7872_v14  ;;  %v7917_v14 = vld [vmem:[%s8321_s4 + $0xc30] sm:$0xff] }
 0x17f   : > { %5043 = vmatpush.bf16.msra.mxu0 %v7847_v17  ;;  %v4837_v37 = vpop.f32.mrf.mxu0  ;;  %v7941_v17 = vld [vmem:[%s8321_s4 + $0xcf0] sm:$0xff] }
 0x180   : > { %5056 = vmatpush.bf16.msra.mxu1 %v7855_v18  ;;  %v4838_v38 = vadd.f32 %v4837_v37, %v4825_v5  ;;  %v4850_v41 = vpop.f32.mrf.mxu1  ;;  %v274_v5 = vld [vmem:[%s8909_s0 + $0x30] sm:$0xff] }
 0x181   : > { %5069 = vmatpush.bf16.msra.mxu2 %v7863_v19  ;;  %1361 = vst [vmem:[#allocation1] ss:$9 sm:$0xff] %v274_v5  ;;  %v7916_v18 = vld [vmem:[%s8321_s4 + $0xc28] sm:$0xff] }
 0x182   : > { %5082 = vmatpush.bf16.msra.mxu3 %v7871_v20  ;;  %5044 = vmatmul.bf16.vlgmr.msra.gmra.mxu0 %v1352_v25  ;;  %v4851_v44 = vadd.f32 %v4850_v41, %v4838_v38  ;;  %v7924_v19 = vld [vmem:[%s8321_s4 + $0xc68] sm:$0xff]  ;;  %v7923_v25 = vld [vmem:[%s8321_s4 + $0xc60] sm:$0xff] }
 0x183   : > { %5088 = vmatpush.bf16.msrb.mxu0 %v7886_v21  ;;  %5057 = vmatmul.bf16.vlgmr.msra.gmra.mxu1 %v1353_v27  ;;  %v7932_v20 = vld [vmem:[%s8321_s4 + $0xca8] sm:$0xff]  ;;  %v7931_v27 = vld [vmem:[%s8321_s4 + $0xca0] sm:$0xff] }
 0x184   : > { %5101 = vmatpush.bf16.msrb.mxu1 %v7894_v22  ;;  %5070 = vmatmul.bf16.vlgmr.msra.gmra.mxu2 %v1354_v26  ;;  %v7940_v21 = vld [vmem:[%s8321_s4 + $0xce8] sm:$0xff] }
 0x185   : > { %5114 = vmatpush.bf16.msrb.mxu2 %v7902_v23  ;;  %5083 = vmatmul.bf16.vlgmr.msra.gmra.mxu3 %v1355_v28  ;;  %v7939_v28 = vld [vmem:[%s8321_s4 + $0xce0] sm:$0xff]  ;;  %v7972_v5 = vld [vmem:[%s8321_s4 + $0xde8] sm:$0xff] }
 0x186   : > { %5127 = vmatpush.bf16.msrb.mxu3 %v7910_v24  ;;  %v7915_v24 = vld [vmem:[%s8321_s4 + $0xc20] sm:$0xff] }
 0x187   : > { %5089 = vmatpush.bf16.msrb.mxu0 %v7885_v29  ;;  %v4863_v49 = vpop.f32.mrf.mxu2  ;;  %v4839_v52 = vpop.f32.mrf.mxu0 }
 0x188   : > { %5102 = vmatpush.bf16.msrb.mxu1 %v7893_v30  ;;  %v4864_v50 = vadd.f32 %v4863_v49, %v4851_v44  ;;  %v4876_v51 = vpop.f32.mrf.mxu3  ;;  %v4852_v56 = vpop.f32.mrf.mxu1  ;;  %v7914_v30 = vld [vmem:[%s8321_s4 + $0xc18] sm:$0xff]  ;;  %v7912_v44 = vld [vmem:[%s8321_s4 + $0xc08] sm:$0xff]  ;;  %v7927_v52 = vld [vmem:[%s8321_s4 + $0xc80] sm:$0xff] }
 0x189   : > { %5115 = vmatpush.bf16.msrb.mxu2 %v7901_v31  ;;  %v7922_v31 = vld [vmem:[%s8321_s4 + $0xc58] sm:$0xff] }
 0x18a   : > { %5128 = vmatpush.bf16.msrb.mxu3 %v7909_v32  ;;  %v8732_v53 = vadd.f32 %v4876_v51, %v4864_v50  ;;  %v7930_v32 = vld [vmem:[%s8321_s4 + $0xc98] sm:$0xff]  ;;  %v7911_v50 = vld [vmem:[%s8321_s4 + $0xc00] sm:$0xff] }
 0x18b   : > { %5090 = vmatpush.bf16.msrb.mxu0 %v7884_v33  ;;  %v7938_v33 = vld [vmem:[%s8321_s4 + $0xcd8] sm:$0xff]  ;;  %v7919_v51 = vld [vmem:[%s8321_s4 + $0xc40] sm:$0xff] }
 0x18c   : > { %5103 = vmatpush.bf16.msrb.mxu1 %v7892_v34  ;;  %v7966_v56 = vld [vmem:[%s8321_s4 + $0xdb8] sm:$0xff] }
 0x18d   : > { %5116 = vmatpush.bf16.msrb.mxu2 %v7900_v35 }
 0x18e   : > { %5129 = vmatpush.bf16.msrb.mxu3 %v7908_v36 }
 0x18f   : > { %5091 = vmatpush.bf16.msrb.mxu0 %v7883_v39  ;;  %v4865_v1 = vpop.f32.mrf.mxu2  ;;  %v7913_v39 = vld [vmem:[%s8321_s4 + $0xc10] sm:$0xff] }
 0x190   : > { %5104 = vmatpush.bf16.msrb.mxu1 %v7891_v40  ;;  %v4878_v4 = vpop.f32.mrf.mxu3  ;;  %v7921_v40 = vld [vmem:[%s8321_s4 + $0xc50] sm:$0xff] }
 0x191   : > { %5117 = vmatpush.bf16.msrb.mxu2 %v7899_v42  ;;  %v7929_v42 = vld [vmem:[%s8321_s4 + $0xc90] sm:$0xff]  ;;  %v7964_v4 = vld [vmem:[%s8321_s4 + $0xda8] sm:$0xff] }
 0x192   : > { %5130 = vmatpush.bf16.msrb.mxu3 %v7907_v43  ;;  %v7937_v43 = vld [vmem:[%s8321_s4 + $0xcd0] sm:$0xff] }
 0x193   : > { %5092 = vmatpush.bf16.msrb.mxu0 %v7882_v45  ;;  %v7920_v45 = vld [vmem:[%s8321_s4 + $0xc48] sm:$0xff]  ;;  %v7973_v1 = vld [vmem:[%s8321_s4 + $0xdf0] sm:$0xff] }
 0x194   : > { %5105 = vmatpush.bf16.msrb.mxu1 %v7890_v46  ;;  %v7928_v46 = vld [vmem:[%s8321_s4 + $0xc88] sm:$0xff] }
 0x195   : > { %5118 = vmatpush.bf16.msrb.mxu2 %v7898_v47  ;;  %v7936_v47 = vld [vmem:[%s8321_s4 + $0xcc8] sm:$0xff] }
 0x196   : > { %5131 = vmatpush.bf16.msrb.mxu3 %v7906_v48 }
 0x197   : > { %5093 = vmatpush.bf16.msrb.mxu0 %v7881_v54  ;;  %v7950_v54 = vld [vmem:[%s8321_s4 + $0xd38] sm:$0xff] }
 0x198   : > { %5106 = vmatpush.bf16.msrb.mxu1 %v7889_v55  ;;  %v7958_v55 = vld [vmem:[%s8321_s4 + $0xd78] sm:$0xff] }
 0x199   : > { %5119 = vmatpush.bf16.msrb.mxu2 %v7897_v57  ;;  %v7974_v57 = vld [vmem:[%s8321_s4 + $0xdf8] sm:$0xff] }
 0x19a   : > { %5132 = vmatpush.bf16.msrb.mxu3 %v7905_v58  ;;  %v1362_v58 = vld [vmem:[#allocation1] sm:$0xff] }
 0x19b   : > { %5094 = vmatpush.bf16.msrb.mxu0 %v7880_v59  ;;  %v1364_v59 = vld [vmem:[#allocation1 + $0x12] sm:$0xff] }
 0x19c   : > { %5107 = vmatpush.bf16.msrb.mxu1 %v7888_v60  ;;  %v1363_v60 = vld [vmem:[#allocation1 + $0x9] sm:$0xff] }
 0x19d   : > { %5120 = vmatpush.bf16.msrb.mxu2 %v7896_v61  ;;  %v1365_v61 = vld [vmem:[#allocation1 + $0x1b] sm:$0xff] }
 0x19e   : > { %5133 = vmatpush.bf16.msrb.mxu3 %v7904_v62  ;;  %v7949_v62 = vld [vmem:[%s8321_s4 + $0xd30] sm:$0xff] }
 0x19f   : > { %5095 = vmatpush.bf16.msrb.mxu0 %v7879_v6  ;;  %v4889_v22 = vpop.f32.mrf.mxu0 }
 0x1a0   : > { %5108 = vmatpush.bf16.msrb.mxu1 %v7887_v7  ;;  %v4890_v23 = vadd.f32 %v4889_v22, %v8732_v53  ;;  %v4902_v26 = vpop.f32.mrf.mxu1  ;;  %v7935_v53 = vld [vmem:[%s8321_s4 + $0xcc0] sm:$0xff] }
 0x1a1   : > { %5121 = vmatpush.bf16.msrb.mxu2 %v7895_v8  ;;  %v7947_v8 = vld [vmem:[%s8321_s4 + $0xd20] sm:$0xff] }
 0x1a2   : > { %5134 = vmatpush.bf16.msrb.mxu3 %v7903_v9  ;;  %5096 = vmatmul.bf16.vlgmr.msrb.gmra.mxu0 %v1356_v63  ;;  %v4903_v29 = vadd.f32 %v4902_v26, %v4890_v23  ;;  %v7957_v63 = vld [vmem:[%s8321_s4 + $0xd70] sm:$0xff]  ;;  %v7955_v9 = vld [vmem:[%s8321_s4 + $0xd60] sm:$0xff] }
 0x1a3   : > { %5140 = vmatpush.bf16.msra.mxu0 %v7918_v10  ;;  %5109 = vmatmul.bf16.vlgmr.msrb.gmra.mxu1 %v1357_v2  ;;  %v7948_v2 = vld [vmem:[%s8321_s4 + $0xd28] sm:$0xff]  ;;  %v7945_v23 = vld [vmem:[%s8321_s4 + $0xd10] sm:$0xff] }
 0x1a4   : > { %5153 = vmatpush.bf16.msra.mxu1 %v7926_v11  ;;  %5122 = vmatmul.bf16.vlgmr.msrb.gmra.mxu2 %v1358_v0  ;;  %v7965_v0 = vld [vmem:[%s8321_s4 + $0xdb0] sm:$0xff]  ;;  %v7963_v11 = vld [vmem:[%s8321_s4 + $0xda0] sm:$0xff] }
 0x1a5   : > { %5166 = vmatpush.bf16.msra.mxu2 %v7934_v12  ;;  %5135 = vmatmul.bf16.vlgmr.msrb.gmra.mxu3 %v1359_v3  ;;  %v7956_v3 = vld [vmem:[%s8321_s4 + $0xd68] sm:$0xff]  ;;  %v7971_v12 = vld [vmem:[%s8321_s4 + $0xde0] sm:$0xff]  ;;  %v7961_v26 = vld [vmem:[%s8321_s4 + $0xd90] sm:$0xff] }
 0x1a6   : > { %5179 = vmatpush.bf16.msra.mxu3 %v7942_v13 }
 0x1a7   : > { %5141 = vmatpush.bf16.msra.mxu0 %v7917_v14  ;;  %v4915_v34 = vpop.f32.mrf.mxu2  ;;  %v4891_v37 = vpop.f32.mrf.mxu0  ;;  %v7946_v14 = vld [vmem:[%s8321_s4 + $0xd18] sm:$0xff] }
 0x1a8   : > { %5154 = vmatpush.bf16.msra.mxu1 %v7925_v15  ;;  %v4916_v35 = vadd.f32 %v4915_v34, %v4903_v29  ;;  %v4928_v36 = vpop.f32.mrf.mxu3  ;;  %v4904_v41 = vpop.f32.mrf.mxu1  ;;  %v7954_v15 = vld [vmem:[%s8321_s4 + $0xd58] sm:$0xff]  ;;  %v7952_v29 = vld [vmem:[%s8321_s4 + $0xd48] sm:$0xff] }
 0x1a9   : > { %5167 = vmatpush.bf16.msra.mxu2 %v7933_v16  ;;  %v7962_v16 = vld [vmem:[%s8321_s4 + $0xd98] sm:$0xff]  ;;  %v7959_v41 = vld [vmem:[%s8321_s4 + $0xd80] sm:$0xff] }
 0x1aa   : > { %5180 = vmatpush.bf16.msra.mxu3 %v7941_v17  ;;  %v4929_v38 = vadd.f32 %v4928_v36, %v4916_v35  ;;  %v7970_v17 = vld [vmem:[%s8321_s4 + $0xdd8] sm:$0xff]  ;;  %v1367_v35 = vld [vmem:[#allocation1 + $0x2d] sm:$0xff] }
 0x1ab   : > { %5142 = vmatpush.bf16.msra.mxu0 %v7916_v18  ;;  %v1369_v36 = vld [vmem:[#allocation1 + $0x3f] sm:$0xff] }
 0x1ac   : > { %5155 = vmatpush.bf16.msra.mxu1 %v7924_v19 }
 0x1ad   : > { %5168 = vmatpush.bf16.msra.mxu2 %v7932_v20 }
 0x1ae   : > { %5181 = vmatpush.bf16.msra.mxu3 %v7940_v21 }
 0x1af   : > { %5143 = vmatpush.bf16.msra.mxu0 %v7915_v24  ;;  %v4917_v48 = vpop.f32.mrf.mxu2  ;;  %v7953_v24 = vld [vmem:[%s8321_s4 + $0xd50] sm:$0xff] }
 0x1b0   : > { %5156 = vmatpush.bf16.msra.mxu1 %v7923_v25  ;;  %v4930_v49 = vpop.f32.mrf.mxu3  ;;  %v7989_v48 = vld [vmem:[%s8321_s4 + $0xe70] sm:$0xff] }
 0x1b1   : > { %5169 = vmatpush.bf16.msra.mxu2 %v7931_v27  ;;  %v7969_v27 = vld [vmem:[%s8321_s4 + $0xdd0] sm:$0xff] }
 0x1b2   : > { %5182 = vmatpush.bf16.msra.mxu3 %v7939_v28  ;;  %v7944_v28 = vld [vmem:[%s8321_s4 + $0xd08] sm:$0xff]  ;;  %v7997_v49 = vld [vmem:[%s8321_s4 + $0xeb0] sm:$0xff] }
 0x1b3   : > { %5144 = vmatpush.bf16.msra.mxu0 %v7914_v30  ;;  %v7960_v30 = vld [vmem:[%s8321_s4 + $0xd88] sm:$0xff] }
 0x1b4   : > { %5157 = vmatpush.bf16.msra.mxu1 %v7922_v31  ;;  %v7968_v31 = vld [vmem:[%s8321_s4 + $0xdc8] sm:$0xff] }
 0x1b5   : > { %5170 = vmatpush.bf16.msra.mxu2 %v7930_v32  ;;  %v1366_v32 = vld [vmem:[#allocation1 + $0x24] sm:$0xff] }
 0x1b6   : > { %5183 = vmatpush.bf16.msra.mxu3 %v7938_v33  ;;  %v1368_v33 = vld [vmem:[#allocation1 + $0x36] sm:$0xff] }
 0x1b7   : > { %5145 = vmatpush.bf16.msra.mxu0 %v7913_v39  ;;  %v7943_v39 = vld [vmem:[%s8321_s4 + $0xd00] sm:$0xff] }
 0x1b8   : > { %5158 = vmatpush.bf16.msra.mxu1 %v7921_v40  ;;  %v7951_v40 = vld [vmem:[%s8321_s4 + $0xd40] sm:$0xff] }
 0x1b9   : > { %5171 = vmatpush.bf16.msra.mxu2 %v7929_v42  ;;  %v7967_v42 = vld [vmem:[%s8321_s4 + $0xdc0] sm:$0xff] }
 0x1ba   : > { %5184 = vmatpush.bf16.msra.mxu3 %v7937_v43  ;;  %v7982_v43 = vld [vmem:[%s8321_s4 + $0xe38] sm:$0xff] }
 0x1bb   : > { %5146 = vmatpush.bf16.msra.mxu0 %v7912_v44  ;;  %v7990_v44 = vld [vmem:[%s8321_s4 + $0xe78] sm:$0xff] }
 0x1bc   : > { %5159 = vmatpush.bf16.msra.mxu1 %v7920_v45  ;;  %v7998_v45 = vld [vmem:[%s8321_s4 + $0xeb8] sm:$0xff] }
 0x1bd   : > { %5172 = vmatpush.bf16.msra.mxu2 %v7928_v46  ;;  %v8006_v46 = vld [vmem:[%s8321_s4 + $0xef8] sm:$0xff] }
 0x1be   : > { %5185 = vmatpush.bf16.msra.mxu3 %v7936_v47  ;;  %v7981_v47 = vld [vmem:[%s8321_s4 + $0xe30] sm:$0xff] }
 0x1bf   : > { %5147 = vmatpush.bf16.msra.mxu0 %v7911_v50  ;;  %v4941_v6 = vpop.f32.mrf.mxu0  ;;  %v8005_v50 = vld [vmem:[%s8321_s4 + $0xef0] sm:$0xff] }
 0x1c0   : > { %5160 = vmatpush.bf16.msra.mxu1 %v7919_v51  ;;  %v4942_v7 = vadd.f32 %v4941_v6, %v4929_v38  ;;  %v4954_v10 = vpop.f32.mrf.mxu1  ;;  %v275_v38 = vld [vmem:[%s8909_s0 + $0x38] sm:$0xff] }
 0x1c1   : > { %5173 = vmatpush.bf16.msra.mxu2 %v7927_v52  ;;  %1371 = vst [vmem:[#allocation1] ss:$9 sm:$0xff] %v275_v38  ;;  %v7980_v51 = vld [vmem:[%s8321_s4 + $0xe28] sm:$0xff] }
 0x1c2   : > { %5186 = vmatpush.bf16.msra.mxu3 %v7935_v53  ;;  %5148 = vmatmul.bf16.vlgmr.msra.gmra.mxu0 %v1362_v58  ;;  %v4955_v13 = vadd.f32 %v4954_v10, %v4942_v7  ;;  %v7988_v52 = vld [vmem:[%s8321_s4 + $0xe68] sm:$0xff]  ;;  %v7987_v58 = vld [vmem:[%s8321_s4 + $0xe60] sm:$0xff] }
 0x1c3   : > { %5192 = vmatpush.bf16.msrb.mxu0 %v7950_v54  ;;  %5161 = vmatmul.bf16.vlgmr.msra.gmra.mxu1 %v1363_v60  ;;  %v7996_v53 = vld [vmem:[%s8321_s4 + $0xea8] sm:$0xff]  ;;  %v7995_v60 = vld [vmem:[%s8321_s4 + $0xea0] sm:$0xff] }
 0x1c4   : > { %5205 = vmatpush.bf16.msrb.mxu1 %v7958_v55  ;;  %5174 = vmatmul.bf16.vlgmr.msra.gmra.mxu2 %v1364_v59  ;;  %v8004_v54 = vld [vmem:[%s8321_s4 + $0xee8] sm:$0xff] }
 0x1c5   : > { %5218 = vmatpush.bf16.msrb.mxu2 %v7966_v56  ;;  %5187 = vmatmul.bf16.vlgmr.msra.gmra.mxu3 %v1365_v61  ;;  %v8003_v61 = vld [vmem:[%s8321_s4 + $0xee0] sm:$0xff]  ;;  %v8036_v38 = vld [vmem:[%s8321_s4 + $0xfe8] sm:$0xff] }
 0x1c6   : > { %5231 = vmatpush.bf16.msrb.mxu3 %v7974_v57  ;;  %v7979_v57 = vld [vmem:[%s8321_s4 + $0xe20] sm:$0xff] }
 0x1c7   : > { %5193 = vmatpush.bf16.msrb.mxu0 %v7949_v62  ;;  %v4967_v18 = vpop.f32.mrf.mxu2  ;;  %v4943_v21 = vpop.f32.mrf.mxu0 }
 0x1c8   : > { %5206 = vmatpush.bf16.msrb.mxu1 %v7957_v63  ;;  %v4968_v19 = vadd.f32 %v4967_v18, %v4955_v13  ;;  %v4980_v20 = vpop.f32.mrf.mxu3  ;;  %v4956_v25 = vpop.f32.mrf.mxu1  ;;  %v7978_v63 = vld [vmem:[%s8321_s4 + $0xe18] sm:$0xff]  ;;  %v7976_v13 = vld [vmem:[%s8321_s4 + $0xe08] sm:$0xff]  ;;  %v7991_v21 = vld [vmem:[%s8321_s4 + $0xe80] sm:$0xff] }
 0x1c9   : > { %5219 = vmatpush.bf16.msrb.mxu2 %v7965_v0  ;;  %v7986_v0 = vld [vmem:[%s8321_s4 + $0xe58] sm:$0xff] }
 0x1ca   : > { %5232 = vmatpush.bf16.msrb.mxu3 %v7973_v1  ;;  %v8802_v22 = vadd.f32 %v4980_v20, %v4968_v19  ;;  %v7994_v1 = vld [vmem:[%s8321_s4 + $0xe98] sm:$0xff]  ;;  %v7975_v19 = vld [vmem:[%s8321_s4 + $0xe00] sm:$0xff] }
 0x1cb   : > { %5194 = vmatpush.bf16.msrb.mxu0 %v7948_v2  ;;  %v8002_v2 = vld [vmem:[%s8321_s4 + $0xed8] sm:$0xff]  ;;  %v7983_v20 = vld [vmem:[%s8321_s4 + $0xe40] sm:$0xff] }
 0x1cc   : > { %5207 = vmatpush.bf16.msrb.mxu1 %v7956_v3  ;;  %v8030_v25 = vld [vmem:[%s8321_s4 + $0xfb8] sm:$0xff] }
 0x1cd   : > { %5220 = vmatpush.bf16.msrb.mxu2 %v7964_v4 }
 0x1ce   : > { %5233 = vmatpush.bf16.msrb.mxu3 %v7972_v5 }
 0x1cf   : > { %5195 = vmatpush.bf16.msrb.mxu0 %v7947_v8  ;;  %v4969_v34 = vpop.f32.mrf.mxu2  ;;  %v7977_v8 = vld [vmem:[%s8321_s4 + $0xe10] sm:$0xff] }
 0x1d0   : > { %5208 = vmatpush.bf16.msrb.mxu1 %v7955_v9  ;;  %v4982_v37 = vpop.f32.mrf.mxu3  ;;  %v7985_v9 = vld [vmem:[%s8321_s4 + $0xe50] sm:$0xff] }
 0x1d1   : > { %5221 = vmatpush.bf16.msrb.mxu2 %v7963_v11  ;;  %v7993_v11 = vld [vmem:[%s8321_s4 + $0xe90] sm:$0xff]  ;;  %v8028_v37 = vld [vmem:[%s8321_s4 + $0xfa8] sm:$0xff] }
 0x1d2   : > { %5234 = vmatpush.bf16.msrb.mxu3 %v7971_v12  ;;  %v8001_v12 = vld [vmem:[%s8321_s4 + $0xed0] sm:$0xff] }
 0x1d3   : > { %5196 = vmatpush.bf16.msrb.mxu0 %v7946_v14  ;;  %v7984_v14 = vld [vmem:[%s8321_s4 + $0xe48] sm:$0xff]  ;;  %v8037_v34 = vld [vmem:[%s8321_s4 + $0xff0] sm:$0xff] }
 0x1d4   : > { %5209 = vmatpush.bf16.msrb.mxu1 %v7954_v15  ;;  %v7992_v15 = vld [vmem:[%s8321_s4 + $0xe88] sm:$0xff] }
 0x1d5   : > { %5222 = vmatpush.bf16.msrb.mxu2 %v7962_v16  ;;  %v8000_v16 = vld [vmem:[%s8321_s4 + $0xec8] sm:$0xff] }
 0x1d6   : > { %5235 = vmatpush.bf16.msrb.mxu3 %v7970_v17 }
 0x1d7   : > { %5197 = vmatpush.bf16.msrb.mxu0 %v7945_v23  ;;  %v8014_v23 = vld [vmem:[%s8321_s4 + $0xf38] sm:$0xff] }
 0x1d8   : > { %5210 = vmatpush.bf16.msrb.mxu1 %v7953_v24  ;;  %v8022_v24 = vld [vmem:[%s8321_s4 + $0xf78] sm:$0xff] }
 0x1d9   : > { %5223 = vmatpush.bf16.msrb.mxu2 %v7961_v26  ;;  %v8038_v26 = vld [vmem:[%s8321_s4 + $0xff8] sm:$0xff] }
 0x1da   : > { %5236 = vmatpush.bf16.msrb.mxu3 %v7969_v27  ;;  %v1372_v27 = vld [vmem:[#allocation1] sm:$0xff] }
 0x1db   : > { %5198 = vmatpush.bf16.msrb.mxu0 %v7944_v28  ;;  %v1374_v28 = vld [vmem:[#allocation1 + $0x12] sm:$0xff] }
 0x1dc   : > { %5211 = vmatpush.bf16.msrb.mxu1 %v7952_v29  ;;  %v1373_v29 = vld [vmem:[#allocation1 + $0x9] sm:$0xff] }
 0x1dd   : > { %5224 = vmatpush.bf16.msrb.mxu2 %v7960_v30  ;;  %v1375_v30 = vld [vmem:[#allocation1 + $0x1b] sm:$0xff] }
 0x1de   : > { %5237 = vmatpush.bf16.msrb.mxu3 %v7968_v31  ;;  %v8013_v31 = vld [vmem:[%s8321_s4 + $0xf30] sm:$0xff] }
 0x1df   : > { %5199 = vmatpush.bf16.msrb.mxu0 %v7943_v39  ;;  %v4993_v55 = vpop.f32.mrf.mxu0 }
 0x1e0   : > { %5212 = vmatpush.bf16.msrb.mxu1 %v7951_v40  ;;  %v4994_v56 = vadd.f32 %v4993_v55, %v8802_v22  ;;  %v5006_v59 = vpop.f32.mrf.mxu1  ;;  %v7999_v22 = vld [vmem:[%s8321_s4 + $0xec0] sm:$0xff] }
 0x1e1   : > { %5225 = vmatpush.bf16.msrb.mxu2 %v7959_v41  ;;  %v8011_v41 = vld [vmem:[%s8321_s4 + $0xf20] sm:$0xff] }
 0x1e2   : > { %5238 = vmatpush.bf16.msrb.mxu3 %v7967_v42  ;;  %5200 = vmatmul.bf16.vlgmr.msrb.gmra.mxu0 %v1366_v32  ;;  %v5007_v62 = vadd.f32 %v5006_v59, %v4994_v56  ;;  %v8021_v32 = vld [vmem:[%s8321_s4 + $0xf70] sm:$0xff]  ;;  %v8019_v42 = vld [vmem:[%s8321_s4 + $0xf60] sm:$0xff] }
 0x1e3   : > { %5244 = vmatpush.bf16.msra.mxu0 %v7982_v43  ;;  %5213 = vmatmul.bf16.vlgmr.msrb.gmra.mxu1 %v1367_v35  ;;  %v8012_v35 = vld [vmem:[%s8321_s4 + $0xf28] sm:$0xff]  ;;  %v8009_v56 = vld [vmem:[%s8321_s4 + $0xf10] sm:$0xff] }
 0x1e4   : > { %5257 = vmatpush.bf16.msra.mxu1 %v7990_v44  ;;  %5226 = vmatmul.bf16.vlgmr.msrb.gmra.mxu2 %v1368_v33  ;;  %v8029_v33 = vld [vmem:[%s8321_s4 + $0xfb0] sm:$0xff]  ;;  %v8027_v44 = vld [vmem:[%s8321_s4 + $0xfa0] sm:$0xff] }
 0x1e5   : > { %5270 = vmatpush.bf16.msra.mxu2 %v7998_v45  ;;  %5239 = vmatmul.bf16.vlgmr.msrb.gmra.mxu3 %v1369_v36  ;;  %v8020_v36 = vld [vmem:[%s8321_s4 + $0xf68] sm:$0xff]  ;;  %v8035_v45 = vld [vmem:[%s8321_s4 + $0xfe0] sm:$0xff]  ;;  %v8025_v59 = vld [vmem:[%s8321_s4 + $0xf90] sm:$0xff] }
 0x1e6   : > { %5283 = vmatpush.bf16.msra.mxu3 %v8006_v46 }
 0x1e7   : > { %5245 = vmatpush.bf16.msra.mxu0 %v7981_v47  ;;  %v5019_v3 = vpop.f32.mrf.mxu2  ;;  %v4995_v6 = vpop.f32.mrf.mxu0  ;;  %v8010_v47 = vld [vmem:[%s8321_s4 + $0xf18] sm:$0xff] }
 0x1e8   : > { %5258 = vmatpush.bf16.msra.mxu1 %v7989_v48  ;;  %v5020_v4 = vadd.f32 %v5019_v3, %v5007_v62  ;;  %v5032_v5 = vpop.f32.mrf.mxu3  ;;  %v5008_v10 = vpop.f32.mrf.mxu1  ;;  %v8018_v48 = vld [vmem:[%s8321_s4 + $0xf58] sm:$0xff]  ;;  %v8016_v62 = vld [vmem:[%s8321_s4 + $0xf48] sm:$0xff]  ;;  %v8007_v3 = vld [vmem:[%s8321_s4 + $0xf00] sm:$0xff] }
 0x1e9   : > { %5271 = vmatpush.bf16.msra.mxu2 %v7997_v49  ;;  %v8026_v49 = vld [vmem:[%s8321_s4 + $0xf98] sm:$0xff]  ;;  %v8031_v6 = vld [vmem:[%s8321_s4 + $0xfc0] sm:$0xff] }
 0x1ea   : > { %5284 = vmatpush.bf16.msra.mxu3 %v8005_v50  ;;  %v5033_v7 = vadd.f32 %v5032_v5, %v5020_v4  ;;  %v8034_v50 = vld [vmem:[%s8321_s4 + $0xfd8] sm:$0xff]  ;;  %v8015_v4 = vld [vmem:[%s8321_s4 + $0xf40] sm:$0xff] }
 0x1eb   : > { %5246 = vmatpush.bf16.msra.mxu0 %v7980_v51  ;;  %v8023_v5 = vld [vmem:[%s8321_s4 + $0xf80] sm:$0xff]  ;;  %v1379_v10 = vld [vmem:[#allocation1 + $0x3f] sm:$0xff] }
 0x1ec   : > { %5259 = vmatpush.bf16.msra.mxu1 %v7988_v52 }
 0x1ed   : > { %5272 = vmatpush.bf16.msra.mxu2 %v7996_v53 }
 0x1ee   : > { %5285 = vmatpush.bf16.msra.mxu3 %v8004_v54 }
 0x1ef   : > { %5247 = vmatpush.bf16.msra.mxu0 %v7979_v57  ;;  %v5021_v17 = vpop.f32.mrf.mxu2  ;;  %v8017_v57 = vld [vmem:[%s8321_s4 + $0xf50] sm:$0xff] }
 0x1f0   : > { %5260 = vmatpush.bf16.msra.mxu1 %v7987_v58  ;;  %v5034_v18 = vpop.f32.mrf.mxu3 }
 0x1f1   : > { %5273 = vmatpush.bf16.msra.mxu2 %v7995_v60  ;;  %v8033_v60 = vld [vmem:[%s8321_s4 + $0xfd0] sm:$0xff] }
 0x1f2   : > { %5286 = vmatpush.bf16.msra.mxu3 %v8003_v61  ;;  %v8008_v61 = vld [vmem:[%s8321_s4 + $0xf08] sm:$0xff] }
 0x1f3   : > { %5248 = vmatpush.bf16.msra.mxu0 %v7978_v63  ;;  %v8024_v63 = vld [vmem:[%s8321_s4 + $0xf88] sm:$0xff] }
 0x1f4   : > { %5261 = vmatpush.bf16.msra.mxu1 %v7986_v0  ;;  %v8032_v0 = vld [vmem:[%s8321_s4 + $0xfc8] sm:$0xff]  ;;  %s5476_s4 = sshll.u32 %s8924_s15, 1 }
 0x1f5   : > { %5274 = vmatpush.bf16.msra.mxu2 %v7994_v1  ;;  %s261_s6 = scalar_lea.vmem %s8912_s3, %s5476_s4 }
 0x1f6   : > { %5287 = vmatpush.bf16.msra.mxu3 %v8002_v2 }
 0x1f7   : > { %5249 = vmatpush.bf16.msra.mxu0 %v7977_v8  ;;  %v1377_v8 = vld [vmem:[#allocation1 + $0x2d] sm:$0xff] }
 0x1f8   : > { %5262 = vmatpush.bf16.msra.mxu1 %v7985_v9  ;;  %v1378_v9 = vld [vmem:[#allocation1 + $0x36] sm:$0xff] }
 0x1f9   : > { %5275 = vmatpush.bf16.msra.mxu2 %v7993_v11 }
 0x1fa   : > { %5288 = vmatpush.bf16.msra.mxu3 %v8001_v12 }
 0x1fb   : > { %5250 = vmatpush.bf16.msra.mxu0 %v7976_v13 }
 0x1fc   : > { %5263 = vmatpush.bf16.msra.mxu1 %v7984_v14 }
 0x1fd   : > { %5276 = vmatpush.bf16.msra.mxu2 %v7992_v15 }
 0x1fe   : > { %5289 = vmatpush.bf16.msra.mxu3 %v8000_v16 }
 0x1ff   : > { %5251 = vmatpush.bf16.msra.mxu0 %v7975_v19  ;;  %v5045_v39 = vpop.f32.mrf.mxu0 }
 0x200   : > { %5264 = vmatpush.bf16.msra.mxu1 %v7983_v20  ;;  %v5046_v40 = vadd.f32 %v5045_v39, %v5033_v7  ;;  %v5058_v43 = vpop.f32.mrf.mxu1  ;;  %v1376_v7 = vld [vmem:[#allocation1 + $0x24] sm:$0xff] }
 0x201   : > { %5277 = vmatpush.bf16.msra.mxu2 %v7991_v21 }
 0x202   : > { %5290 = vmatpush.bf16.msra.mxu3 %v7999_v22  ;;  %5252 = vmatmul.bf16.vlgmr.msra.gmra.mxu0 %v1372_v27  ;;  %v5059_v46 = vadd.f32 %v5058_v43, %v5046_v40 }
 0x203   : > { %5296 = vmatpush.bf16.msrb.mxu0 %v8014_v23  ;;  %5265 = vmatmul.bf16.vlgmr.msra.gmra.mxu1 %v1373_v29 }
 0x204   : > { %5309 = vmatpush.bf16.msrb.mxu1 %v8022_v24  ;;  %5278 = vmatmul.bf16.vlgmr.msra.gmra.mxu2 %v1374_v28 }
 0x205   : > { %5322 = vmatpush.bf16.msrb.mxu2 %v8030_v25  ;;  %5291 = vmatmul.bf16.vlgmr.msra.gmra.mxu3 %v1375_v30 }
 0x206   : > { %5335 = vmatpush.bf16.msrb.mxu3 %v8038_v26 }
 0x207   : > { %5297 = vmatpush.bf16.msrb.mxu0 %v8013_v31  ;;  %v5071_v51 = vpop.f32.mrf.mxu2  ;;  %v5047_v54 = vpop.f32.mrf.mxu0 }
 0x208   : > { %5310 = vmatpush.bf16.msrb.mxu1 %v8021_v32  ;;  %v5072_v52 = vadd.f32 %v5071_v51, %v5059_v46  ;;  %v5084_v53 = vpop.f32.mrf.mxu3  ;;  %v5060_v58 = vpop.f32.mrf.mxu1 }
 0x209   : > { %5323 = vmatpush.bf16.msrb.mxu2 %v8029_v33 }
 0x20a   : > { %5336 = vmatpush.bf16.msrb.mxu3 %v8037_v34  ;;  %v5085_v55 = vadd.f32 %v5084_v53, %v5072_v52 }
 0x20b   : > { %5298 = vmatpush.bf16.msrb.mxu0 %v8012_v35 }
 0x20c   : > { %5311 = vmatpush.bf16.msrb.mxu1 %v8020_v36 }
 0x20d   : > { %5324 = vmatpush.bf16.msrb.mxu2 %v8028_v37 }
 0x20e   : > { %5337 = vmatpush.bf16.msrb.mxu3 %v8036_v38 }
 0x20f   : > { %5299 = vmatpush.bf16.msrb.mxu0 %v8011_v41  ;;  %v5073_v1 = vpop.f32.mrf.mxu2 }
 0x210   : > { %5312 = vmatpush.bf16.msrb.mxu1 %v8019_v42  ;;  %v5086_v2 = vpop.f32.mrf.mxu3 }
 0x211   : > { %5325 = vmatpush.bf16.msrb.mxu2 %v8027_v44 }
 0x212   : > { %5338 = vmatpush.bf16.msrb.mxu3 %v8035_v45  ;;  %v8223_v45 = vmov 0.0  }
 0x213   : > { %5300 = vmatpush.bf16.msrb.mxu0 %v8010_v47  ;;  %266 = vst [vmem:[#allocation2] sm:$0x3] %v8223_v45 }
 0x214   : > { %5313 = vmatpush.bf16.msrb.mxu1 %v8018_v48 }
 0x215   : > { %5326 = vmatpush.bf16.msrb.mxu2 %v8026_v49 }
 0x216   : > { %5339 = vmatpush.bf16.msrb.mxu3 %v8034_v50 }
 0x217   : > { %5301 = vmatpush.bf16.msrb.mxu0 %v8009_v56 }
 0x218   : > { %5314 = vmatpush.bf16.msrb.mxu1 %v8017_v57 }
 0x219   : > { %5327 = vmatpush.bf16.msrb.mxu2 %v8025_v59 }
 0x21a   : > { %5340 = vmatpush.bf16.msrb.mxu3 %v8033_v60 }
 0x21b   : > { %5302 = vmatpush.bf16.msrb.mxu0 %v8008_v61 }
 0x21c   : > { %5315 = vmatpush.bf16.msrb.mxu1 %v8016_v62 }
 0x21d   : > { %5328 = vmatpush.bf16.msrb.mxu2 %v8024_v63 }
 0x21e   : > { %5341 = vmatpush.bf16.msrb.mxu3 %v8032_v0 }
 0x21f   : > { %5303 = vmatpush.bf16.msrb.mxu0 %v8007_v3  ;;  %v5097_v11 = vpop.f32.mrf.mxu0 }
 0x220   : > { %5316 = vmatpush.bf16.msrb.mxu1 %v8015_v4  ;;  %v5098_v12 = vadd.f32 %v5097_v11, %v5085_v55  ;;  %v5110_v13 = vpop.f32.mrf.mxu1 }
 0x221   : > { %5329 = vmatpush.bf16.msrb.mxu2 %v8023_v5  ;;  %v267_v5 = vld [vmem:[#allocation2] sm:$0x3] }
 0x222   : > { %5342 = vmatpush.bf16.msrb.mxu3 %v8031_v6  ;;  %5304 = vmatmul.bf16.vlgmr.msrb.gmra.mxu0 %v1376_v7  ;;  %v5111_v14 = vadd.f32 %v5110_v13, %v5098_v12 }
 0x223   : > { %5317 = vmatmul.bf16.vlgmr.msrb.gmra.mxu1 %v1377_v8 }
 0x224   : > { %5330 = vmatmul.bf16.vlgmr.msrb.gmra.mxu2 %v1378_v9 }
 0x225   : > { %5343 = vmatmul.bf16.vlgmr.msrb.gmra.mxu3 %v1379_v10  ;;  %v8103_v10 = vld [vmem:[%s221_s5] ss:$0 sm:$0xff] }
 0x227   : > { %v5123_v15 = vpop.f32.mrf.mxu2  ;;  %v5099_v18 = vpop.f32.mrf.mxu0 }
 0x228   : > { %v5124_v16 = vadd.f32 %v5123_v15, %v5111_v14  ;;  %v5136_v17 = vpop.f32.mrf.mxu3  ;;  %v5112_v20 = vpop.f32.mrf.mxu1 }
 0x22a   : > { %v5137_v19 = vadd.f32 %v5136_v17, %v5124_v16 }
 0x22f   : > { %v5125_v21 = vpop.f32.mrf.mxu2 }
 0x230   : > { %v5138_v22 = vpop.f32.mrf.mxu3 }
 0x23f   : > { %v5149_v23 = vpop.f32.mrf.mxu0 }
 0x240   : > { %v5150_v24 = vadd.f32 %v5149_v23, %v5137_v19  ;;  %v5162_v25 = vpop.f32.mrf.mxu1 }
 0x242   : > { %v5163_v26 = vadd.f32 %v5162_v25, %v5150_v24 }
 0x247   : > { %v5175_v27 = vpop.f32.mrf.mxu2  ;;  %v5151_v30 = vpop.f32.mrf.mxu0 }
 0x248   : > { %v5176_v28 = vadd.f32 %v5175_v27, %v5163_v26  ;;  %v5188_v29 = vpop.f32.mrf.mxu3  ;;  %v5164_v32 = vpop.f32.mrf.mxu1 }
 0x24a   : > { %v5189_v31 = vadd.f32 %v5188_v29, %v5176_v28 }
 0x24f   : > { %v5177_v33 = vpop.f32.mrf.mxu2 }
 0x250   : > { %v5190_v34 = vpop.f32.mrf.mxu3 }
 0x25f   : > { %v5201_v35 = vpop.f32.mrf.mxu0 }
 0x260   : > { %v5214_v36 = vpop.f32.mrf.mxu1  ;;  %v5202_v47 = vadd.f32 %v5201_v35, %v5189_v31 }
 0x262   : > { %v5215_v51 = vadd.f32 %v5214_v36, %v5202_v47 }
 0x267   : > { %v5227_v37 = vpop.f32.mrf.mxu2  ;;  %v5203_v39 = vpop.f32.mrf.mxu0 }
 0x268   : > { %v5240_v38 = vpop.f32.mrf.mxu3  ;;  %v5216_v40 = vpop.f32.mrf.mxu1  ;;  %v5228_v52 = vadd.f32 %v5227_v37, %v5215_v51 }
 0x26a   : > { %v5241_v55 = vadd.f32 %v5240_v38, %v5228_v52 }
 0x26f   : > { %v5229_v41 = vpop.f32.mrf.mxu2 }
 0x270   : > { %v5242_v42 = vpop.f32.mrf.mxu3 }
 0x27f   : > { %v5253_v43 = vpop.f32.mrf.mxu0 }
 0x280   : > { %v5266_v44 = vpop.f32.mrf.mxu1  ;;  %v5254_v56 = vadd.f32 %v5253_v43, %v5241_v55 }
 0x282   : > { %v5267_v57 = vadd.f32 %v5266_v44, %v5254_v56 }
 0x287   : > { %v5279_v46 = vpop.f32.mrf.mxu2  ;;  %v5255_v49 = vpop.f32.mrf.mxu0 }
 0x288   : > { %v5292_v48 = vpop.f32.mrf.mxu3  ;;  %v5268_v50 = vpop.f32.mrf.mxu1  ;;  %v5280_v58 = vadd.f32 %v5279_v46, %v5267_v57 }
 0x28a   : > { %v5293_v59 = vadd.f32 %v5292_v48, %v5280_v58 }
 0x28f   : > { %v5281_v53 = vpop.f32.mrf.mxu2 }
 0x290   : > { %v5294_v54 = vpop.f32.mrf.mxu3 }
 0x29f   : > { %v5305_v60 = vpop.f32.mrf.mxu0 }
 0x2a0   : > { %v5318_v61 = vpop.f32.mrf.mxu1  ;;  %v5306_v62 = vadd.f32 %v5305_v60, %v5293_v59 }
 0x2a2   : > { %v5319_v63 = vadd.f32 %v5318_v61, %v5306_v62 }
 0x2a7   : > { %v5331_v0 = vpop.f32.mrf.mxu2  ;;  %v5307_v3 = vpop.f32.mrf.mxu0 }
 0x2a8   : > { %v5344_v1 = vpop.f32.mrf.mxu3  ;;  %v5332_v2 = vadd.f32 %v5331_v0, %v5319_v63  ;;  %v5320_v4 = vpop.f32.mrf.mxu1 }
 0x2aa   : > { %v5345_v6 = vadd.f32 %v5344_v1, %v5332_v2 }
 0x2ac   : > { %v5348_v7 = vadd.f32 %v5345_v6, %v267_v5 }
 0x2ae   : > { %5349 = vst [vmem:[#allocation2] sm:$0x3] %v5348_v7 }
 0x2af   : > { %v5333_v8 = vpop.f32.mrf.mxu2 }
 0x2b0   : > { %v5346_v9 = vpop.f32.mrf.mxu3 }
 0x2b5   : > { %v5353_v11 = vld [vmem:[#allocation2] sm:$0x3] }
 0x2b6   : > { %v5358_v12 = vadd.f32 %v8103_v10, %v5353_v11 }
 0x2b8   : > { %v5359_v13 = vmax.f32 %v5358_v12, 0.0 }
 0x2ba   : > { %5360 = vst [vmem:[%s261_s6] sm:$0x3] %v5359_v13 }
 0x2bb PF: > { %s19_s17 = sadd.s32 1, %s8218_s17   ;;  %s8916_s12 = smov %s8202_s13 }
 0x2bc   : > { %p16_p0 = scmp.ge.s32.totalorder %s19_s17, 4   ;;  %s8917_s13 = smov %s8206_s14 }
 0x2bd   : > { %s8918_s14 = smov %s8293_s24  ;;  %s8919_s15 = smov %s8214_s16 }
 0x2be   : > { %s8920_s16 = smov %s8922_s19  ;;  %18 = sbr.rel (!%p16_p0) target bundleno = 6 (0x6), region = 96 }
 0x2c3   :  { %5380 = vsyncpa [#allocation4], 1 }
 0x2c4   :  { %5382 = vsyncpa [#allocation4 + $0x1], 1 }
 0x2c5   :  { %5383 = vsyncpa [#allocation6], 1 }
 0x2c6   :  { %5385 = vsyncpa [#allocation6 + $0x1], 1 }

// kernel: pitch_detection_forward.5
= control target key start
LH: loop header
LB: loop body
LE: loop exit
PB: predicated region body
PF: predicated region fallthrough
CT: control target
= control target key end

     0   :  { %8 = vsyncpa [#allocation3], 0  ;;  %s11837_s15 = smov [#allocation2]   ;;  %s11838_s17 = smov 3520   ;;  %s12282_s0 = inlined_call_operand.vmem [shape: f32[2,256], index: 0, kind: input, shape index: {}]   ;;  %s12283_s1 = inlined_call_operand.hbm [shape: bf16[256,7040], index: 1, kind: input, shape index: {}]   ;;  %s12284_s2 = inlined_call_operand.vmem [shape: f32[1,7040], index: 2, kind: input, shape index: {}]   ;;  %s12285_s3 = inlined_call_operand.vmem [shape: f32[2,7040], index: 3, kind: output, shape index: {}]  }
   0x1   :  { %s15_s14 = sshll.u32 %s12283_s1, 4  ;;  %s17_s16 = sshll.u32 %s11837_s15, 4  ;;  %s16_s14 = int_to_ptr.hbm [resolvable:$true] %s15_s14  ;;  %s18_s16 = int_to_ptr.vmem [resolvable:$true] %s17_s16 }
   0x2   :  { %s11839_s18 = smov 220  }
   0x3   :  { %23 = dma.hbm_to_vmem [thread:$0]  %s16_s14, 112640, %s18_s16, [#allocation3], %s11838_s17, %s11838_s17, %s11839_s18  }
   0x4   :  { %11835 = dma.done.wait [#allocation3], 112640  }
   0x5   :  { %11836 = vsyncadd [#allocation3], 4294854656  ;;  %v8840_v0 = vld [vmem:[#allocation2 + $0xc08] sm:$0xf]  ;;  %v11230_v1 = vld [vmem:[#allocation2 + $0xce0] sm:$0xf0] }
   0x6   :  { %v10600_v2 = vld [vmem:[#allocation2 + $0x19c8] sm:$0xf]  ;;  %v8841_v3 = vor.u32 %v11230_v1, %v8840_v0  ;;  %v11670_v4 = vld [vmem:[#allocation2 + $0x1aa0] sm:$0xf0]  ;;  %v11203_v5 = vld [vmem:[#allocation2 + $0xc0c] sm:$0xf] }
   0x7   :  { %v8842_v6 = vld [vmem:[#allocation2 + $0xce4] sm:$0xf0]  ;;  %v10601_v7 = vor.u32 %v11670_v4, %v10600_v2  ;;  %v11643_v9 = vld [vmem:[#allocation2 + $0x19cc] sm:$0xf]  ;;  %v8620_v11 = vld [vmem:[#allocation2 + $0xa50] sm:$0xf] }
   0x8   :  { %v8845_v8 = vor.u32 %v11203_v5, %v8842_v6  ;;  %v10602_v10 = vld [vmem:[#allocation2 + $0x1aa4] sm:$0xf0]  ;;  %5475 = vmatpush.bf16.msra.mxu0 %v8841_v3  ;;  %v11175_v13 = vld [vmem:[#allocation2 + $0xb28] sm:$0xf0]  ;;  %v10380_v14 = vld [vmem:[#allocation2 + $0x1810] sm:$0xf] }
   0x9   :  { %v10605_v12 = vor.u32 %v11643_v9, %v10602_v10  ;;  %v11615_v15 = vld [vmem:[#allocation2 + $0x18e8] sm:$0xf0]  ;;  %5488 = vmatpush.bf16.msra.mxu1 %v10601_v7  ;;  %v8621_v16 = vor.u32 %v11175_v13, %v8620_v11  ;;  %v11148_v18 = vld [vmem:[#allocation2 + $0xa54] sm:$0xf]  ;;  %v8622_v19 = vld [vmem:[#allocation2 + $0xb2c] sm:$0xf0] }
   0xa   :  { %5501 = vmatpush.bf16.msra.mxu2 %v8845_v8  ;;  %v10381_v17 = vor.u32 %v11615_v15, %v10380_v14  ;;  %v11588_v20 = vld [vmem:[#allocation2 + $0x1814] sm:$0xf]  ;;  %v8625_v21 = vor.u32 %v11148_v18, %v8622_v19  ;;  %v10382_v22 = vld [vmem:[#allocation2 + $0x18ec] sm:$0xf0]  ;;  %v8400_v23 = vld [vmem:[#allocation2 + $0x898] sm:$0xf] }
   0xb   :  { %5514 = vmatpush.bf16.msra.mxu3 %v10605_v12  ;;  %v11120_v24 = vld [vmem:[#allocation2 + $0x970] sm:$0xf0]  ;;  %v10385_v25 = vor.u32 %v11588_v20, %v10382_v22  ;;  %v10160_v26 = vld [vmem:[#allocation2 + $0x1658] sm:$0xf]  ;;  %v11093_v28 = vld [vmem:[#allocation2 + $0x89c] sm:$0xf] }
   0xc   :  { %v11560_v27 = vld [vmem:[#allocation2 + $0x1730] sm:$0xf0]  ;;  %5476 = vmatpush.bf16.msra.mxu0 %v8621_v16  ;;  %v8401_v29 = vor.u32 %v11120_v24, %v8400_v23  ;;  %v8402_v30 = vld [vmem:[#allocation2 + $0x974] sm:$0xf0]  ;;  %v11533_v31 = vld [vmem:[#allocation2 + $0x165c] sm:$0xf] }
   0xd   :  { %v10162_v32 = vld [vmem:[#allocation2 + $0x1734] sm:$0xf0]  ;;  %5489 = vmatpush.bf16.msra.mxu1 %v10381_v17  ;;  %v10161_v33 = vor.u32 %v11560_v27, %v10160_v26  ;;  %v8405_v34 = vor.u32 %v11093_v28, %v8402_v30  ;;  %v8180_v35 = vld [vmem:[#allocation2 + $0x6e0] sm:$0xf]  ;;  %v11065_v36 = vld [vmem:[#allocation2 + $0x7b8] sm:$0xf0] }
   0xe   :  { %5502 = vmatpush.bf16.msra.mxu2 %v8625_v21  ;;  %v9940_v37 = vld [vmem:[#allocation2 + $0x14a0] sm:$0xf]  ;;  %v10165_v38 = vor.u32 %v11533_v31, %v10162_v32  ;;  %v11505_v39 = vld [vmem:[#allocation2 + $0x1578] sm:$0xf0]  ;;  %v11038_v40 = vld [vmem:[#allocation2 + $0x6e4] sm:$0xf]  ;;  %v8181_v44 = vor.u32 %v11065_v36, %v8180_v35 }
   0xf   :  { %5515 = vmatpush.bf16.msra.mxu3 %v10385_v25  ;;  %v8182_v41 = vld [vmem:[#allocation2 + $0x7bc] sm:$0xf0]  ;;  %v11478_v42 = vld [vmem:[#allocation2 + $0x14a4] sm:$0xf]  ;;  %v9941_v45 = vor.u32 %v11505_v39, %v9940_v37  ;;  %v7960_v47 = vld [vmem:[#allocation2 + $0x528] sm:$0xf] }
  0x10   :  { %v9942_v43 = vld [vmem:[#allocation2 + $0x157c] sm:$0xf0]  ;;  %5477 = vmatpush.bf16.msra.mxu0 %v8401_v29  ;;  %v8185_v46 = vor.u32 %v11038_v40, %v8182_v41  ;;  %v11010_v48 = vld [vmem:[#allocation2 + $0x600] sm:$0xf0]  ;;  %v9720_v49 = vld [vmem:[#allocation2 + $0x12e8] sm:$0xf] }
  0x11   :  { %5490 = vmatpush.bf16.msra.mxu1 %v10161_v33  ;;  %v9945_v50 = vor.u32 %v11478_v42, %v9942_v43  ;;  %v11450_v51 = vld [vmem:[#allocation2 + $0x13c0] sm:$0xf0]  ;;  %v10983_v52 = vld [vmem:[#allocation2 + $0x52c] sm:$0xf]  ;;  %v7962_v53 = vld [vmem:[#allocation2 + $0x604] sm:$0xf0]  ;;  %v7961_v56 = vor.u32 %v11010_v48, %v7960_v47 }
  0x12   :  { %5503 = vmatpush.bf16.msra.mxu2 %v8405_v34  ;;  %v11423_v54 = vld [vmem:[#allocation2 + $0x12ec] sm:$0xf]  ;;  %v9722_v55 = vld [vmem:[#allocation2 + $0x13c4] sm:$0xf0]  ;;  %v9721_v57 = vor.u32 %v11450_v51, %v9720_v49  ;;  %v7965_v58 = vor.u32 %v10983_v52, %v7962_v53  ;;  %v7740_v59 = vld [vmem:[#allocation2 + $0x370] sm:$0xf] }
  0x13   :  { %5516 = vmatpush.bf16.msra.mxu3 %v10165_v38  ;;  %v10955_v60 = vld [vmem:[#allocation2 + $0x448] sm:$0xf0]  ;;  %v9500_v61 = vld [vmem:[#allocation2 + $0x1130] sm:$0xf]  ;;  %v9725_v62 = vor.u32 %v11423_v54, %v9722_v55  ;;  %v10928_v0 = vld [vmem:[#allocation2 + $0x374] sm:$0xf] }
  0x14   :  { %5478 = vmatpush.bf16.msra.mxu0 %v8181_v44  ;;  %v11395_v63 = vld [vmem:[#allocation2 + $0x1208] sm:$0xf0]  ;;  %v7742_v1 = vld [vmem:[#allocation2 + $0x44c] sm:$0xf0]  ;;  %v11368_v2 = vld [vmem:[#allocation2 + $0x1134] sm:$0xf]  ;;  %v7741_v4 = vor.u32 %v10955_v60, %v7740_v59 }
  0x15   :  { %5491 = vmatpush.bf16.msra.mxu1 %v9941_v45  ;;  %v9502_v3 = vld [vmem:[#allocation2 + $0x120c] sm:$0xf0]  ;;  %v9501_v5 = vor.u32 %v11395_v63, %v9500_v61  ;;  %v7745_v6 = vor.u32 %v10928_v0, %v7742_v1  ;;  %v7520_v7 = vld [vmem:[#allocation2 + $0x1b8] sm:$0xf]  ;;  %v10900_v8 = vld [vmem:[#allocation2 + $0x290] sm:$0xf0] }
  0x16   :  { %5504 = vmatpush.bf16.msra.mxu2 %v8185_v46  ;;  %v9280_v9 = vld [vmem:[#allocation2 + $0xf78] sm:$0xf]  ;;  %v9505_v10 = vor.u32 %v11368_v2, %v9502_v3  ;;  %v11340_v11 = vld [vmem:[#allocation2 + $0x1050] sm:$0xf0]  ;;  %v10873_v12 = vld [vmem:[#allocation2 + $0x1bc] sm:$0xf]  ;;  %v7521_v16 = vor.u32 %v10900_v8, %v7520_v7 }
  0x17   :  { %5517 = vmatpush.bf16.msra.mxu3 %v9945_v50  ;;  %v7522_v13 = vld [vmem:[#allocation2 + $0x294] sm:$0xf0]  ;;  %v11313_v14 = vld [vmem:[#allocation2 + $0xf7c] sm:$0xf]  ;;  %v7300_v17 = vld [vmem:[#allocation2] sm:$0xf]  ;;  %v9281_v19 = vor.u32 %v11340_v11, %v9280_v9 }
  0x18   :  { %5479 = vmatpush.bf16.msra.mxu0 %v7961_v56  ;;  %v9282_v15 = vld [vmem:[#allocation2 + $0x1054] sm:$0xf0]  ;;  %v10845_v18 = vld [vmem:[#allocation2 + $0xd8] sm:$0xf0]  ;;  %v7525_v20 = vor.u32 %v10873_v12, %v7522_v13  ;;  %v9060_v21 = vld [vmem:[#allocation2 + $0xdc0] sm:$0xf] }
  0x19   :  { %5492 = vmatpush.bf16.msra.mxu1 %v9721_v57  ;;  %v11285_v22 = vld [vmem:[#allocation2 + $0xe98] sm:$0xf0]  ;;  %v10818_v23 = vld [vmem:[#allocation2 + $0x4] sm:$0xf]  ;;  %v9285_v24 = vor.u32 %v11313_v14, %v9282_v15  ;;  %v7302_v25 = vld [vmem:[#allocation2 + $0xdc] sm:$0xf0]  ;;  %v7301_v31 = vor.u32 %v10845_v18, %v7300_v17 }
  0x1a   :  { %5505 = vmatpush.bf16.msra.mxu2 %v7965_v58  ;;  %v8848_v26 = vld [vmem:[#allocation2 + $0xc10] sm:$0xf]  ;;  %v11231_v27 = vld [vmem:[#allocation2 + $0xce8] sm:$0xf0]  ;;  %v11204_v30 = vld [vmem:[#allocation2 + $0xc14] sm:$0xf]  ;;  %v9061_v35 = vor.u32 %v11285_v22, %v9060_v21  ;;  %v7305_v36 = vor.u32 %v10818_v23, %v7302_v25 }
  0x1b   :  { %5518 = vmatpush.bf16.msra.mxu3 %v9725_v62  ;;  %v10608_v28 = vld [vmem:[#allocation2 + $0x19d0] sm:$0xf]  ;;  %v11671_v29 = vld [vmem:[#allocation2 + $0x1aa8] sm:$0xf0]  ;;  %v11258_v33 = vld [vmem:[#allocation2 + $0xdc4] sm:$0xf]  ;;  %v8849_v39 = vor.u32 %v11231_v27, %v8848_v26 }
  0x1c   :  { %5480 = vmatpush.bf16.msra.mxu0 %v7741_v4  ;;  %v8850_v32 = vld [vmem:[#allocation2 + $0xcec] sm:$0xf0]  ;;  %v9062_v34 = vld [vmem:[#allocation2 + $0xe9c] sm:$0xf0]  ;;  %v11644_v37 = vld [vmem:[#allocation2 + $0x19d4] sm:$0xf]  ;;  %v10609_v40 = vor.u32 %v11671_v29, %v10608_v28 }
  0x1d   :  { %5493 = vmatpush.bf16.msra.mxu1 %v9501_v5  ;;  %v10610_v38 = vld [vmem:[#allocation2 + $0x1aac] sm:$0xf0]  ;;  %v8628_v41 = vld [vmem:[#allocation2 + $0xa58] sm:$0xf]  ;;  %v8853_v42 = vor.u32 %v11204_v30, %v8850_v32  ;;  %v9065_v43 = vor.u32 %v11258_v33, %v9062_v34  ;;  %v11176_v44 = vld [vmem:[#allocation2 + $0xb30] sm:$0xf0] }
  0x1e   :  { %5506 = vmatpush.bf16.msra.mxu2 %v7745_v6  ;;  %v10388_v45 = vld [vmem:[#allocation2 + $0x1818] sm:$0xf]  ;;  %v11616_v46 = vld [vmem:[#allocation2 + $0x18f0] sm:$0xf0]  ;;  %v10613_v47 = vor.u32 %v11644_v37, %v10610_v38  ;;  %v11149_v48 = vld [vmem:[#allocation2 + $0xa5c] sm:$0xf]  ;;  %v8629_v53 = vor.u32 %v11176_v44, %v8628_v41 }
  0x1f   :  { %5519 = vmatpush.bf16.msra.mxu3 %v9505_v10  ;;  %v8630_v49 = vld [vmem:[#allocation2 + $0xb34] sm:$0xf0]  ;;  %v11589_v50 = vld [vmem:[#allocation2 + $0x181c] sm:$0xf]  ;;  %v10389_v54 = vor.u32 %v11616_v46, %v10388_v45  ;;  %v8408_v55 = vld [vmem:[#allocation2 + $0x8a0] sm:$0xf] }
  0x20   :  { %5481 = vmatpush.bf16.msra.mxu0 %v7521_v16  ;;  %v10390_v51 = vld [vmem:[#allocation2 + $0x18f4] sm:$0xf0]  ;;  %v8633_v56 = vor.u32 %v11149_v48, %v8630_v49  ;;  %v11121_v57 = vld [vmem:[#allocation2 + $0x978] sm:$0xf0]  ;;  %v10168_v58 = vld [vmem:[#allocation2 + $0x1660] sm:$0xf] }
  0x21   :  { %5494 = vmatpush.bf16.msra.mxu1 %v9281_v19  ;;  %v30_v52 = vld [vmem:[%s12282_s0] sm:$0xf]  ;;  %v11561_v59 = vld [vmem:[#allocation2 + $0x1738] sm:$0xf0]  ;;  %v10393_v60 = vor.u32 %v11589_v50, %v10390_v51  ;;  %v11094_v61 = vld [vmem:[#allocation2 + $0x8a4] sm:$0xf]  ;;  %v8409_v1 = vor.u32 %v11121_v57, %v8408_v55 }
  0x22   :  { %5507 = vmatpush.bf16.msra.mxu2 %v7525_v20  ;;  %32 = vst [vmem:[#allocation1] ss:$4 sm:$0xff] %v30_v52  ;;  %v8410_v62 = vld [vmem:[#allocation2 + $0x97c] sm:$0xf0]  ;;  %v11534_v63 = vld [vmem:[#allocation2 + $0x1664] sm:$0xf]  ;;  %v10169_v2 = vor.u32 %v11561_v59, %v10168_v58 }
  0x23   :  { %5520 = vmatpush.bf16.msra.mxu3 %v9285_v24  ;;  %v10170_v0 = vld [vmem:[#allocation2 + $0x173c] sm:$0xf0]  ;;  %v8188_v3 = vld [vmem:[#allocation2 + $0x6e8] sm:$0xf]  ;;  %v11066_v4 = vld [vmem:[#allocation2 + $0x7c0] sm:$0xf0]  ;;  %v8413_v5 = vor.u32 %v11094_v61, %v8410_v62 }
  0x24   :  { %5482 = vmatpush.bf16.msra.mxu0 %v7301_v31  ;;  %v9948_v6 = vld [vmem:[#allocation2 + $0x14a8] sm:$0xf]  ;;  %v11506_v7 = vld [vmem:[#allocation2 + $0x1580] sm:$0xf0]  ;;  %v11039_v8 = vld [vmem:[#allocation2 + $0x6ec] sm:$0xf]  ;;  %v10173_v9 = vor.u32 %v11534_v63, %v10170_v0  ;;  %v8189_v13 = vor.u32 %v11066_v4, %v8188_v3 }
  0x25   :  { %5495 = vmatpush.bf16.msra.mxu1 %v9061_v35  ;;  %v8190_v10 = vld [vmem:[#allocation2 + $0x7c4] sm:$0xf0]  ;;  %v11479_v11 = vld [vmem:[#allocation2 + $0x14ac] sm:$0xf]  ;;  %v9949_v16 = vor.u32 %v11506_v7, %v9948_v6  ;;  %v7968_v18 = vld [vmem:[#allocation2 + $0x530] sm:$0xf] }
  0x26   :  { %5508 = vmatpush.bf16.msra.mxu2 %v7305_v36  ;;  %v9950_v12 = vld [vmem:[#allocation2 + $0x1584] sm:$0xf0]  ;;  %v8193_v20 = vor.u32 %v11039_v8, %v8190_v10  ;;  %v11011_v21 = vld [vmem:[#allocation2 + $0x608] sm:$0xf0]  ;;  %v9728_v22 = vld [vmem:[#allocation2 + $0x12f0] sm:$0xf] }
  0x27   :  { %5521 = vmatpush.bf16.msra.mxu3 %v9065_v43  ;;  %v11451_v23 = vld [vmem:[#allocation2 + $0x13c8] sm:$0xf0]  ;;  %v9953_v24 = vor.u32 %v11479_v11, %v9950_v12  ;;  %v10984_v25 = vld [vmem:[#allocation2 + $0x534] sm:$0xf]  ;;  %v7970_v26 = vld [vmem:[#allocation2 + $0x60c] sm:$0xf0]  ;;  %v7969_v29 = vor.u32 %v11011_v21, %v7968_v18 }
  0x28   :  { %5527 = vmatpush.bf16.msrb.mxu0 %v8849_v39  ;;  %v11424_v27 = vld [vmem:[#allocation2 + $0x12f4] sm:$0xf]  ;;  %v9730_v28 = vld [vmem:[#allocation2 + $0x13cc] sm:$0xf0]  ;;  %v9729_v30 = vor.u32 %v11451_v23, %v9728_v22  ;;  %v7748_v31 = vld [vmem:[#allocation2 + $0x378] sm:$0xf]  ;;  %v7973_v32 = vor.u32 %v10984_v25, %v7970_v26 }
  0x29   :  { %5540 = vmatpush.bf16.msrb.mxu1 %v10609_v40  ;;  %v33_v14 = vld.sshfl [vmem:[#allocation1] sm:$0xff pattern:$0x73625140]  ;;  %v34_v15 = vld.sshfl [vmem:[#allocation1 + $0x8] sm:$0xff pattern:$0x73625140]  ;;  %v9733_v36 = vor.u32 %v11424_v27, %v9730_v28 }
  0x2a   :  { %5553 = vmatpush.bf16.msrb.mxu2 %v8853_v42  ;;  %v11866_v17 = vpack.c.bf16 %v33_v14, %v33_v14  ;;  %v11868_v19 = vpack.c.bf16 %v34_v15, %v34_v15  ;;  %v10956_v33 = vld [vmem:[#allocation2 + $0x450] sm:$0xf0]  ;;  %v9508_v34 = vld [vmem:[#allocation2 + $0x1138] sm:$0xf]  ;;  %v10929_v37 = vld [vmem:[#allocation2 + $0x37c] sm:$0xf] }
  0x2b   :  { %5566 = vmatpush.bf16.msrb.mxu3 %v10613_v47  ;;  %v11396_v35 = vld [vmem:[#allocation2 + $0x1210] sm:$0xf0]  ;;  %v7750_v38 = vld [vmem:[#allocation2 + $0x454] sm:$0xf0]  ;;  %v11369_v39 = vld [vmem:[#allocation2 + $0x113c] sm:$0xf]  ;;  %v7749_v41 = vor.u32 %v10956_v33, %v7748_v31 }
  0x2c   :  { %5528 = vmatpush.bf16.msrb.mxu0 %v8629_v53  ;;  %5509 = vmatmul.bf16.vlgmr.msra.gmra.mxu2 %v11866_v17  ;;  %v9510_v40 = vld [vmem:[#allocation2 + $0x1214] sm:$0xf0]  ;;  %v9509_v42 = vor.u32 %v11396_v35, %v9508_v34  ;;  %v7528_v43 = vld [vmem:[#allocation2 + $0x1c0] sm:$0xf]  ;;  %v7753_v44 = vor.u32 %v10929_v37, %v7750_v38  ;;  %v10901_v45 = vld [vmem:[#allocation2 + $0x298] sm:$0xf0] }
  0x2d   :  { %5541 = vmatpush.bf16.msrb.mxu1 %v10389_v54  ;;  %5522 = vmatmul.bf16.vlgmr.msra.gmra.mxu3 %v11868_v19  ;;  %v9288_v46 = vld [vmem:[#allocation2 + $0xf80] sm:$0xf]  ;;  %v11341_v47 = vld [vmem:[#allocation2 + $0x1058] sm:$0xf0]  ;;  %v9513_v48 = vor.u32 %v11369_v39, %v9510_v40  ;;  %v10874_v49 = vld [vmem:[#allocation2 + $0x1c4] sm:$0xf]  ;;  %v7529_v53 = vor.u32 %v10901_v45, %v7528_v43 }
  0x2e   :  { %5554 = vmatpush.bf16.msrb.mxu2 %v8633_v56  ;;  %5483 = vmatmul.bf16.vlgmr.msra.gmra.mxu0 %v11866_v17  ;;  %v7530_v50 = vld [vmem:[#allocation2 + $0x29c] sm:$0xf0]  ;;  %v11314_v51 = vld [vmem:[#allocation2 + $0xf84] sm:$0xf]  ;;  %v9289_v54 = vor.u32 %v11341_v47, %v9288_v46  ;;  %v7308_v55 = vld [vmem:[#allocation2 + $0x8] sm:$0xf] }
  0x2f   :  { %5567 = vmatpush.bf16.msrb.mxu3 %v10393_v60  ;;  %5496 = vmatmul.bf16.vlgmr.msra.gmra.mxu1 %v11868_v19  ;;  %v9290_v52 = vld [vmem:[#allocation2 + $0x105c] sm:$0xf0]  ;;  %v10846_v56 = vld [vmem:[#allocation2 + $0xe0] sm:$0xf0]  ;;  %v9068_v57 = vld [vmem:[#allocation2 + $0xdc8] sm:$0xf]  ;;  %v7533_v58 = vor.u32 %v10874_v49, %v7530_v50 }
  0x30   :  { %5529 = vmatpush.bf16.msrb.mxu0 %v8409_v1  ;;  %v11286_v59 = vld [vmem:[#allocation2 + $0xea0] sm:$0xf0]  ;;  %v10819_v60 = vld [vmem:[#allocation2 + $0xc] sm:$0xf]  ;;  %v7310_v61 = vld [vmem:[#allocation2 + $0xe4] sm:$0xf0]  ;;  %v9293_v62 = vor.u32 %v11314_v51, %v9290_v52 }
  0x31   :  { %5542 = vmatpush.bf16.msrb.mxu1 %v10169_v2  ;;  %v8856_v63 = vld [vmem:[#allocation2 + $0xc18] sm:$0xf]  ;;  %v11232_v0 = vld [vmem:[#allocation2 + $0xcf0] sm:$0xf0]  ;;  %v11205_v3 = vld [vmem:[#allocation2 + $0xc1c] sm:$0xf]  ;;  %v9069_v6 = vor.u32 %v11286_v59, %v9068_v57 }
  0x32   :  { %5555 = vmatpush.bf16.msrb.mxu2 %v8413_v5  ;;  %v10616_v1 = vld [vmem:[#allocation2 + $0x19d8] sm:$0xf]  ;;  %v11672_v2 = vld [vmem:[#allocation2 + $0x1ab0] sm:$0xf0]  ;;  %v7309_v5 = vor.u32 %v10846_v56, %v7308_v55  ;;  %v11259_v7 = vld [vmem:[#allocation2 + $0xdcc] sm:$0xf]  ;;  %v8857_v10 = vor.u32 %v11232_v0, %v8856_v63 }
  0x33   :  { %5568 = vmatpush.bf16.msrb.mxu3 %v10173_v9  ;;  %v8858_v4 = vld [vmem:[#allocation2 + $0xcf4] sm:$0xf0]  ;;  %v9070_v8 = vld [vmem:[#allocation2 + $0xea4] sm:$0xf0]  ;;  %v7313_v9 = vor.u32 %v10819_v60, %v7310_v61  ;;  %v11645_v11 = vld [vmem:[#allocation2 + $0x19dc] sm:$0xf] }
  0x34   :  { %5530 = vmatpush.bf16.msrb.mxu0 %v8189_v13  ;;  %v10618_v12 = vld [vmem:[#allocation2 + $0x1ab4] sm:$0xf0]  ;;  %v10617_v13 = vor.u32 %v11672_v2, %v10616_v1  ;;  %v8861_v14 = vor.u32 %v11205_v3, %v8858_v4  ;;  %v8636_v15 = vld [vmem:[#allocation2 + $0xa60] sm:$0xf]  ;;  %v9073_v18 = vor.u32 %v11259_v7, %v9070_v8  ;;  %v11617_v21 = vld [vmem:[#allocation2 + $0x18f8] sm:$0xf0] }
  0x35   :  { %5543 = vmatpush.bf16.msrb.mxu1 %v9949_v16  ;;  %v11177_v16 = vld [vmem:[#allocation2 + $0xb38] sm:$0xf0]  ;;  %v10621_v22 = vor.u32 %v11645_v11, %v10618_v12  ;;  %v11150_v23 = vld [vmem:[#allocation2 + $0xa64] sm:$0xf]  ;;  %v10398_v27 = vld [vmem:[#allocation2 + $0x18fc] sm:$0xf0] }
  0x36   :  { %5556 = vmatpush.bf16.msrb.mxu2 %v8193_v20  ;;  %v10396_v20 = vld [vmem:[#allocation2 + $0x1820] sm:$0xf]  ;;  %v8637_v25 = vor.u32 %v11177_v16, %v8636_v15  ;;  %v11590_v26 = vld [vmem:[#allocation2 + $0x1824] sm:$0xf]  ;;  %v11095_v35 = vld [vmem:[#allocation2 + $0x8ac] sm:$0xf] }
  0x37   :  { %5569 = vmatpush.bf16.msrb.mxu3 %v9953_v24  ;;  %v8638_v24 = vld [vmem:[#allocation2 + $0xb3c] sm:$0xf0]  ;;  %v10397_v28 = vor.u32 %v11617_v21, %v10396_v20  ;;  %v11562_v33 = vld [vmem:[#allocation2 + $0x1740] sm:$0xf0]  ;;  %v10401_v34 = vor.u32 %v11590_v26, %v10398_v27  ;;  %v11535_v38 = vld [vmem:[#allocation2 + $0x166c] sm:$0xf] }
  0x38   :  { %5531 = vmatpush.bf16.msrb.mxu0 %v7969_v29  ;;  %v8416_v29 = vld [vmem:[#allocation2 + $0x8a8] sm:$0xf]  ;;  %v8641_v31 = vor.u32 %v11150_v23, %v8638_v24  ;;  %v11507_v45 = vld [vmem:[#allocation2 + $0x1588] sm:$0xf0]  ;;  %v11040_v47 = vld [vmem:[#allocation2 + $0x6f4] sm:$0xf] }
  0x39   :  { %5544 = vmatpush.bf16.msrb.mxu1 %v9729_v30  ;;  %v11122_v30 = vld [vmem:[#allocation2 + $0x980] sm:$0xf0]  ;;  %v10178_v39 = vld [vmem:[#allocation2 + $0x1744] sm:$0xf0]  ;;  %v11480_v50 = vld [vmem:[#allocation2 + $0x14b4] sm:$0xf] }
  0x3a   :  { %5557 = vmatpush.bf16.msrb.mxu2 %v7973_v32  ;;  %v10176_v32 = vld [vmem:[#allocation2 + $0x1668] sm:$0xf]  ;;  %v8417_v37 = vor.u32 %v11122_v30, %v8416_v29  ;;  %v10181_v46 = vor.u32 %v11535_v38, %v10178_v39  ;;  %v9958_v51 = vld [vmem:[#allocation2 + $0x158c] sm:$0xf0]  ;;  %v9736_v56 = vld [vmem:[#allocation2 + $0x12f8] sm:$0xf] }
  0x3b   :  { %5570 = vmatpush.bf16.msrb.mxu3 %v9733_v36  ;;  %v8418_v36 = vld [vmem:[#allocation2 + $0x984] sm:$0xf0]  ;;  %v10177_v40 = vor.u32 %v11562_v33, %v10176_v32  ;;  %v11452_v57 = vld [vmem:[#allocation2 + $0x13d0] sm:$0xf0]  ;;  %v10985_v59 = vld [vmem:[#allocation2 + $0x53c] sm:$0xf] }
  0x3c   :  { %5532 = vmatpush.bf16.msrb.mxu0 %v7749_v41  ;;  %v8196_v41 = vld [vmem:[#allocation2 + $0x6f0] sm:$0xf]  ;;  %v8421_v43 = vor.u32 %v11095_v35, %v8418_v36  ;;  %v7978_v60 = vld [vmem:[#allocation2 + $0x614] sm:$0xf0]  ;;  %v9737_v0 = vor.u32 %v11452_v57, %v9736_v56  ;;  %v7756_v1 = vld [vmem:[#allocation2 + $0x380] sm:$0xf] }
  0x3d   :  { %5545 = vmatpush.bf16.msrb.mxu1 %v9509_v42  ;;  %v11067_v42 = vld [vmem:[#allocation2 + $0x7c8] sm:$0xf0]  ;;  %v9738_v63 = vld [vmem:[#allocation2 + $0x13d4] sm:$0xf0]  ;;  %v10957_v2 = vld [vmem:[#allocation2 + $0x458] sm:$0xf0]  ;;  %v7981_v3 = vor.u32 %v10985_v59, %v7978_v60 }
  0x3e   :  { %5558 = vmatpush.bf16.msrb.mxu2 %v7753_v44  ;;  %v9956_v44 = vld [vmem:[#allocation2 + $0x14b0] sm:$0xf]  ;;  %v8197_v49 = vor.u32 %v11067_v42, %v8196_v41  ;;  %v9516_v4 = vld [vmem:[#allocation2 + $0x1140] sm:$0xf]  ;;  %v10930_v7 = vld [vmem:[#allocation2 + $0x384] sm:$0xf] }
  0x3f   :  { %5571 = vmatpush.bf16.msrb.mxu3 %v9513_v48  ;;  %v8198_v48 = vld [vmem:[#allocation2 + $0x7cc] sm:$0xf0]  ;;  %v9957_v52 = vor.u32 %v11507_v45, %v9956_v44  ;;  %v7758_v8 = vld [vmem:[#allocation2 + $0x45c] sm:$0xf0]  ;;  %v9296_v16 = vld [vmem:[#allocation2 + $0xf88] sm:$0xf] }
  0x40   :  { %5533 = vmatpush.bf16.msrb.mxu0 %v7529_v53  ;;  %v7976_v53 = vld [vmem:[#allocation2 + $0x538] sm:$0xf]  ;;  %v8201_v55 = vor.u32 %v11040_v47, %v8198_v48  ;;  %v9518_v11 = vld [vmem:[#allocation2 + $0x121c] sm:$0xf0]  ;;  %v7761_v15 = vor.u32 %v10930_v7, %v7758_v8  ;;  %v10875_v21 = vld [vmem:[#allocation2 + $0x1cc] sm:$0xf] }
  0x41   :  { %5546 = vmatpush.bf16.msrb.mxu1 %v9289_v54  ;;  %v11012_v54 = vld [vmem:[#allocation2 + $0x610] sm:$0xf0]  ;;  %v11315_v23 = vld [vmem:[#allocation2 + $0xf8c] sm:$0xf]  ;;  %v7316_v26 = vld [vmem:[#allocation2 + $0x10] sm:$0xf] }
  0x42   :  { %5559 = vmatpush.bf16.msrb.mxu2 %v7533_v58  ;;  %v9961_v58 = vor.u32 %v11480_v50, %v9958_v51  ;;  %v7977_v61 = vor.u32 %v11012_v54, %v7976_v53  ;;  %v10847_v27 = vld [vmem:[#allocation2 + $0xe8] sm:$0xf0]  ;;  %v9076_v29 = vld [vmem:[#allocation2 + $0xdd0] sm:$0xf]  ;;  %v11233_v35 = vld [vmem:[#allocation2 + $0xcf8] sm:$0xf0] }
  0x43   :  { %5572 = vmatpush.bf16.msrb.mxu3 %v9293_v62  ;;  %v11425_v62 = vld [vmem:[#allocation2 + $0x12fc] sm:$0xf]  ;;  %v11287_v30 = vld [vmem:[#allocation2 + $0xea8] sm:$0xf0]  ;;  %v7318_v33 = vld [vmem:[#allocation2 + $0xec] sm:$0xf0] }
  0x44   :  { %5534 = vmatpush.bf16.msrb.mxu0 %v7309_v5  ;;  %v11397_v5 = vld [vmem:[#allocation2 + $0x1218] sm:$0xf0]  ;;  %v11206_v39 = vld [vmem:[#allocation2 + $0xc24] sm:$0xf]  ;;  %v8866_v41 = vld [vmem:[#allocation2 + $0xcfc] sm:$0xf0]  ;;  %v9077_v44 = vor.u32 %v11287_v30, %v9076_v29 }
  0x45   :  { %5547 = vmatpush.bf16.msrb.mxu1 %v9069_v6  ;;  %v9741_v6 = vor.u32 %v11425_v62, %v9738_v63  ;;  %v9517_v12 = vor.u32 %v11397_v5, %v9516_v4  ;;  %v11673_v38 = vld [vmem:[#allocation2 + $0x1ab8] sm:$0xf0]  ;;  %v11260_v42 = vld [vmem:[#allocation2 + $0xdd4] sm:$0xf]  ;;  %v10626_v47 = vld [vmem:[#allocation2 + $0x1abc] sm:$0xf0] }
  0x46   :  { %5560 = vmatpush.bf16.msrb.mxu2 %v7313_v9  ;;  %v7757_v9 = vor.u32 %v10957_v2, %v7756_v1  ;;  %v8644_v50 = vld [vmem:[#allocation2 + $0xa68] sm:$0xf]  ;;  %v11178_v51 = vld [vmem:[#allocation2 + $0xb40] sm:$0xf0]  ;;  %v11151_v57 = vld [vmem:[#allocation2 + $0xa6c] sm:$0xf] }
  0x47   :  { %5573 = vmatpush.bf16.msrb.mxu3 %v9073_v18  ;;  %5535 = vmatmul.bf16.vlgmr.msrb.gmra.mxu0 %v11866_v17  ;;  %v11342_v18 = vld [vmem:[#allocation2 + $0x1060] sm:$0xf0]  ;;  %v10404_v54 = vld [vmem:[#allocation2 + $0x1828] sm:$0xf]  ;;  %v8645_v59 = vor.u32 %v11178_v51, %v8644_v50  ;;  %v11591_v60 = vld [vmem:[#allocation2 + $0x182c] sm:$0xf] }
  0x48   :  { %5579 = vmatpush.bf16.msra.mxu0 %v8857_v10  ;;  %5548 = vmatmul.bf16.vlgmr.msrb.gmra.mxu1 %v11868_v19  ;;  %v11370_v10 = vld [vmem:[#allocation2 + $0x1144] sm:$0xf]  ;;  %v8424_v63 = vld [vmem:[#allocation2 + $0x8b0] sm:$0xf]  ;;  %v11096_v5 = vld [vmem:[#allocation2 + $0x8b4] sm:$0xf] }
  0x49   :  { %5592 = vmatpush.bf16.msra.mxu1 %v10617_v13  ;;  %5561 = vmatmul.bf16.vlgmr.msrb.gmra.mxu2 %v11866_v17  ;;  %v7536_v13 = vld [vmem:[#allocation2 + $0x1c8] sm:$0xf]  ;;  %v9521_v20 = vor.u32 %v11370_v10, %v9518_v11  ;;  %v10184_v2 = vld [vmem:[#allocation2 + $0x1670] sm:$0xf]  ;;  %v11536_v8 = vld [vmem:[#allocation2 + $0x1674] sm:$0xf] }
  0x4a   :  { %5605 = vmatpush.bf16.msra.mxu2 %v8861_v14  ;;  %5574 = vmatmul.bf16.vlgmr.msrb.gmra.mxu3 %v11868_v19  ;;  %v10902_v14 = vld [vmem:[#allocation2 + $0x2a0] sm:$0xf0]  ;;  %v8204_v11 = vld [vmem:[#allocation2 + $0x6f8] sm:$0xf]  ;;  %v11453_v29 = vld [vmem:[#allocation2 + $0x13d8] sm:$0xf0] }
  0x4b   :  { %5618 = vmatpush.bf16.msra.mxu3 %v10621_v22  ;;  %v7538_v22 = vld [vmem:[#allocation2 + $0x2a4] sm:$0xf0]  ;;  %v7537_v24 = vor.u32 %v10902_v14, %v7536_v13  ;;  %v9964_v14 = vld [vmem:[#allocation2 + $0x14b8] sm:$0xf]  ;;  %v10903_v50 = vld [vmem:[#allocation2 + $0x2a8] sm:$0xf0] }
  0x4c   :  { %5580 = vmatpush.bf16.msra.mxu0 %v8637_v25  ;;  %v9298_v25 = vld [vmem:[#allocation2 + $0x1064] sm:$0xf0]  ;;  %v7541_v32 = vor.u32 %v10875_v21, %v7538_v22  ;;  %v11481_v22 = vld [vmem:[#allocation2 + $0x14bc] sm:$0xf]  ;;  %vm7221_vm0 = vcmask 1041408   ;;  %vm7223_vm1 = vcmask 1045508  }
  0x4d   :  { %5593 = vmatpush.bf16.msra.mxu1 %v10397_v28  ;;  %v9297_v28 = vor.u32 %v11342_v18, %v9296_v16  ;;  %v9301_v36 = vor.u32 %v11315_v23, %v9298_v25  ;;  %v11041_v18 = vld [vmem:[#allocation2 + $0x6fc] sm:$0xf]  ;;  %v9966_v23 = vld [vmem:[#allocation2 + $0x1594] sm:$0xf0]  ;;  %v7984_v25 = vld [vmem:[#allocation2 + $0x540] sm:$0xf] }
  0x4e   :  { %5606 = vmatpush.bf16.msra.mxu2 %v8641_v31  ;;  %v10820_v31 = vld [vmem:[#allocation2 + $0x14] sm:$0xf]  ;;  %v9969_v30 = vor.u32 %v11481_v22, %v9966_v23  ;;  %v8652_v22 = vld [vmem:[#allocation2 + $0xa70] sm:$0xf]  ;;  %v11179_v23 = vld [vmem:[#allocation2 + $0xb48] sm:$0xf0] }
  0x4f   :  { %5619 = vmatpush.bf16.msra.mxu3 %v10401_v34  ;;  %v8864_v34 = vld [vmem:[#allocation2 + $0xc20] sm:$0xf]  ;;  %v7321_v48 = vor.u32 %v10820_v31, %v7318_v33  ;;  %v10986_v31 = vld [vmem:[#allocation2 + $0x544] sm:$0xf]  ;;  %vm7225_vm2 = vcmask 1043456  }
  0x50   :  { %5581 = vmatpush.bf16.msra.mxu0 %v8417_v37  ;;  %v10624_v37 = vld [vmem:[#allocation2 + $0x19e0] sm:$0xf]  ;;  %v8865_v45 = vor.u32 %v11233_v35, %v8864_v34  ;;  %v11426_v34 = vld [vmem:[#allocation2 + $0x1304] sm:$0xf] }
  0x51   :  { %5594 = vmatpush.bf16.msra.mxu1 %v10177_v40  ;;  %v7317_v40 = vor.u32 %v10847_v27, %v7316_v26  ;;  %v11013_v26 = vld [vmem:[#allocation2 + $0x618] sm:$0xf0]  ;;  %v9746_v35 = vld [vmem:[#allocation2 + $0x13dc] sm:$0xf0] }
  0x52   :  { %5607 = vmatpush.bf16.msra.mxu2 %v8421_v43  ;;  %v9078_v43 = vld [vmem:[#allocation2 + $0xeac] sm:$0xf0]  ;;  %v7985_v33 = vor.u32 %v11013_v26, %v7984_v25 }
  0x53   :  { %5620 = vmatpush.bf16.msra.mxu3 %v10181_v46  ;;  %v11646_v46 = vld [vmem:[#allocation2 + $0x19e4] sm:$0xf]  ;;  %v9081_v53 = vor.u32 %v11260_v42, %v9078_v43  ;;  %v9749_v42 = vor.u32 %v11426_v34, %v9746_v35  ;;  %v10931_v43 = vld [vmem:[#allocation2 + $0x38c] sm:$0xf]  ;;  %v10412_v26 = vld [vmem:[#allocation2 + $0x1830] sm:$0xf] }
  0x54   :  { %5582 = vmatpush.bf16.msra.mxu0 %v8197_v49  ;;  %v10625_v49 = vor.u32 %v11673_v38, %v10624_v37  ;;  %v10629_v56 = vor.u32 %v11646_v46, %v10626_v47  ;;  %v7764_v37 = vld [vmem:[#allocation2 + $0x388] sm:$0xf]  ;;  %v10958_v38 = vld [vmem:[#allocation2 + $0x460] sm:$0xf0]  ;;  %v11371_v46 = vld [vmem:[#allocation2 + $0x114c] sm:$0xf] }
  0x55   :  { %5595 = vmatpush.bf16.msra.mxu1 %v9957_v52  ;;  %v8869_v52 = vor.u32 %v11206_v39, %v8866_v41  ;;  %v11398_v41 = vld [vmem:[#allocation2 + $0x1220] sm:$0xf0]  ;;  %v9526_v47 = vld [vmem:[#allocation2 + $0x1224] sm:$0xf0]  ;;  %v8432_v35 = vld [vmem:[#allocation2 + $0x8b8] sm:$0xf] }
  0x56   :  { %5608 = vmatpush.bf16.msra.mxu2 %v8201_v55  ;;  %v11618_v55 = vld [vmem:[#allocation2 + $0x1900] sm:$0xf0] }
  0x57   :  { %5621 = vmatpush.bf16.msra.mxu3 %v9961_v58  ;;  %v8646_v58 = vld [vmem:[#allocation2 + $0xb44] sm:$0xf0]  ;;  %v10405_v62 = vor.u32 %v11618_v55, %v10404_v54  ;;  %v9529_v54 = vor.u32 %v11371_v46, %v9526_v47  ;;  %v10876_v55 = vld [vmem:[#allocation2 + $0x1d4] sm:$0xf]  ;;  %v8212_v47 = vld [vmem:[#allocation2 + $0x700] sm:$0xf] }
  0x58   :  { %5583 = vmatpush.bf16.msra.mxu0 %v7977_v61  ;;  %v10406_v61 = vld [vmem:[#allocation2 + $0x1904] sm:$0xf0]  ;;  %v8649_v1 = vor.u32 %v11151_v57, %v8646_v58  ;;  %v11316_v57 = vld [vmem:[#allocation2 + $0xf94] sm:$0xf] }
  0x59   :  { %5596 = vmatpush.bf16.msra.mxu1 %v9737_v0  ;;  %v11123_v0 = vld [vmem:[#allocation2 + $0x988] sm:$0xf0]  ;;  %v10409_v4 = vor.u32 %v11591_v60, %v10406_v61  ;;  %v7324_v60 = vld [vmem:[#allocation2 + $0x18] sm:$0xf]  ;;  %v10848_v61 = vld [vmem:[#allocation2 + $0xf0] sm:$0xf0] }
  0x5a   :  { %5609 = vmatpush.bf16.msra.mxu2 %v7981_v3  ;;  %v11563_v3 = vld [vmem:[#allocation2 + $0x1748] sm:$0xf0]  ;;  %v8425_v7 = vor.u32 %v11123_v0, %v8424_v63  ;;  %v9084_v63 = vld [vmem:[#allocation2 + $0xdd8] sm:$0xf]  ;;  %v11288_v0 = vld [vmem:[#allocation2 + $0xeb0] sm:$0xf0] }
  0x5b   :  { %5622 = vmatpush.bf16.msra.mxu3 %v9741_v6  ;;  %v8426_v6 = vld [vmem:[#allocation2 + $0x98c] sm:$0xf0]  ;;  %v10185_v10 = vor.u32 %v11563_v3, %v10184_v2  ;;  %v7326_v3 = vld [vmem:[#allocation2 + $0xf4] sm:$0xf0] }
  0x5c   :  { %5584 = vmatpush.bf16.msra.mxu0 %v7757_v9  ;;  %v10186_v9 = vld [vmem:[#allocation2 + $0x174c] sm:$0xf0]  ;;  %v8429_v13 = vor.u32 %v11096_v5, %v8426_v6  ;;  %v11234_v5 = vld [vmem:[#allocation2 + $0xd00] sm:$0xf0] }
  0x5d   :  { %5597 = vmatpush.bf16.msra.mxu1 %v9517_v12  ;;  %v11068_v12 = vld [vmem:[#allocation2 + $0x7d0] sm:$0xf0]  ;;  %v10189_v16 = vor.u32 %v11536_v8, %v10186_v9  ;;  %v11674_v8 = vld [vmem:[#allocation2 + $0x1ac0] sm:$0xf0]  ;;  %v11207_v9 = vld [vmem:[#allocation2 + $0xc2c] sm:$0xf] }
  0x5e   :  { %5610 = vmatpush.bf16.msra.mxu2 %v7761_v15  ;;  %v11508_v15 = vld [vmem:[#allocation2 + $0x1590] sm:$0xf0]  ;;  %v8205_v21 = vor.u32 %v11068_v12, %v8204_v11  ;;  %v8874_v11 = vld [vmem:[#allocation2 + $0xd04] sm:$0xf0]  ;;  %v11261_v12 = vld [vmem:[#allocation2 + $0xddc] sm:$0xf] }
  0x5f   :  { %5623 = vmatpush.bf16.msra.mxu3 %v9521_v20  ;;  %v8206_v20 = vld [vmem:[#allocation2 + $0x7d4] sm:$0xf0] }
  0x60   :  { %5585 = vmatpush.bf16.msra.mxu0 %v7537_v24  ;;  %v9965_v24 = vor.u32 %v11508_v15, %v9964_v14  ;;  %v8209_v27 = vor.u32 %v11041_v18, %v8206_v20  ;;  %v9085_v14 = vor.u32 %v11288_v0, %v9084_v63  ;;  %v10634_v18 = vld [vmem:[#allocation2 + $0x1ac4] sm:$0xf0]  ;;  %v11454_v63 = vld [vmem:[#allocation2 + $0x13e0] sm:$0xf0] }
  0x61   :  { %5598 = vmatpush.bf16.msra.mxu1 %v9297_v28  ;;  %v9744_v28 = vld [vmem:[#allocation2 + $0x1300] sm:$0xf] }
  0x62   :  { %5611 = vmatpush.bf16.msra.mxu2 %v7541_v32  ;;  %v7986_v32 = vld [vmem:[#allocation2 + $0x61c] sm:$0xf0] }
  0x63   :  { %5624 = vmatpush.bf16.msra.mxu3 %v9301_v36  ;;  %v9745_v36 = vor.u32 %v11453_v29, %v9744_v28  ;;  %v7989_v39 = vor.u32 %v10986_v31, %v7986_v32  ;;  %v11152_v29 = vld [vmem:[#allocation2 + $0xa74] sm:$0xf]  ;;  %v8653_v31 = vor.u32 %v11179_v23, %v8652_v22 }
  0x64   :  { %5586 = vmatpush.bf16.msra.mxu0 %v7317_v40  ;;  %v9524_v40 = vld [vmem:[#allocation2 + $0x1148] sm:$0xf]  ;;  %v11592_v32 = vld [vmem:[#allocation2 + $0x1834] sm:$0xf] }
  0x65   :  { %5599 = vmatpush.bf16.msra.mxu1 %v9077_v44  ;;  %v7766_v44 = vld [vmem:[#allocation2 + $0x464] sm:$0xf0]  ;;  %v10904_v22 = vld [vmem:[#allocation2 + $0x2b0] sm:$0xf0] }
  0x66   :  { %5612 = vmatpush.bf16.msra.mxu2 %v7321_v48  ;;  %v9525_v48 = vor.u32 %v11398_v41, %v9524_v40  ;;  %v7769_v51 = vor.u32 %v10931_v43, %v7766_v44  ;;  %v11097_v41 = vld [vmem:[#allocation2 + $0x8bc] sm:$0xf] }
  0x67   :  { %5625 = vmatpush.bf16.msra.mxu3 %v9081_v53  ;;  %5587 = vmatmul.bf16.vlgmr.msra.gmra.mxu0 %v11866_v17  ;;  %v11343_v53 = vld [vmem:[#allocation2 + $0x1068] sm:$0xf0]  ;;  %v11537_v44 = vld [vmem:[#allocation2 + $0x167c] sm:$0xf] }
  0x68   :  { %5631 = vmatpush.bf16.msrb.mxu0 %v8865_v45  ;;  %5600 = vmatmul.bf16.vlgmr.msra.gmra.mxu1 %v11868_v19  ;;  %v7765_v45 = vor.u32 %v10958_v38, %v7764_v37  ;;  %v10192_v38 = vld [vmem:[#allocation2 + $0x1678] sm:$0xf] }
  0x69   :  { %5644 = vmatpush.bf16.msrb.mxu1 %v10625_v49  ;;  %5613 = vmatmul.bf16.vlgmr.msra.gmra.mxu2 %v11866_v17  ;;  %v7544_v49 = vld [vmem:[#allocation2 + $0x1d0] sm:$0xf] }
  0x6a   :  { %5657 = vmatpush.bf16.msrb.mxu2 %v8869_v52  ;;  %5626 = vmatmul.bf16.vlgmr.msra.gmra.mxu3 %v11868_v19  ;;  %v9304_v52 = vld [vmem:[#allocation2 + $0xf90] sm:$0xf]  ;;  %v7545_v58 = vor.u32 %v10903_v50, %v7544_v49  ;;  %v9972_v50 = vld [vmem:[#allocation2 + $0x14c0] sm:$0xf] }
  0x6b   :  { %5670 = vmatpush.bf16.msrb.mxu3 %v10629_v56  ;;  %v7546_v56 = vld [vmem:[#allocation2 + $0x2ac] sm:$0xf0] }
  0x6c   :  { %5632 = vmatpush.bf16.msrb.mxu0 %v8645_v59  ;;  %v9306_v59 = vld [vmem:[#allocation2 + $0x106c] sm:$0xf0]  ;;  %v7549_v2 = vor.u32 %v10876_v55, %v7546_v56  ;;  %v11482_v56 = vld [vmem:[#allocation2 + $0x14c4] sm:$0xf] }
  0x6d   :  { %5645 = vmatpush.bf16.msrb.mxu1 %v10405_v62  ;;  %v9305_v62 = vor.u32 %v11343_v53, %v9304_v52  ;;  %v9309_v6 = vor.u32 %v11316_v57, %v9306_v59  ;;  %v11042_v53 = vld [vmem:[#allocation2 + $0x704] sm:$0xf]  ;;  %v9974_v57 = vld [vmem:[#allocation2 + $0x159c] sm:$0xf0]  ;;  %v7992_v59 = vld [vmem:[#allocation2 + $0x548] sm:$0xf] }
  0x6e   :  { %5658 = vmatpush.bf16.msrb.mxu2 %v8649_v1  ;;  %v10821_v1 = vld [vmem:[#allocation2 + $0x1c] sm:$0xf]  ;;  %v9977_v0 = vor.u32 %v11482_v56, %v9974_v57  ;;  %v8660_v56 = vld [vmem:[#allocation2 + $0xa78] sm:$0xf]  ;;  %v11180_v57 = vld [vmem:[#allocation2 + $0xb50] sm:$0xf0] }
  0x6f   :  { %5671 = vmatpush.bf16.msrb.mxu3 %v10409_v4  ;;  %v8872_v4 = vld [vmem:[#allocation2 + $0xc28] sm:$0xf]  ;;  %v7329_v20 = vor.u32 %v10821_v1, %v7326_v3  ;;  %v10987_v1 = vld [vmem:[#allocation2 + $0x54c] sm:$0xf] }
  0x70   :  { %5633 = vmatpush.bf16.msrb.mxu0 %v8425_v7  ;;  %v10632_v7 = vld [vmem:[#allocation2 + $0x19e8] sm:$0xf]  ;;  %v8873_v15 = vor.u32 %v11234_v5, %v8872_v4  ;;  %v11427_v4 = vld [vmem:[#allocation2 + $0x130c] sm:$0xf] }
  0x71   :  { %5646 = vmatpush.bf16.msrb.mxu1 %v10185_v10  ;;  %v7325_v10 = vor.u32 %v10848_v61, %v7324_v60  ;;  %v11014_v60 = vld [vmem:[#allocation2 + $0x620] sm:$0xf0]  ;;  %v9754_v5 = vld [vmem:[#allocation2 + $0x13e4] sm:$0xf0] }
  0x72   :  { %5659 = vmatpush.bf16.msrb.mxu2 %v8429_v13  ;;  %v9086_v13 = vld [vmem:[#allocation2 + $0xeb4] sm:$0xf0]  ;;  %v7993_v3 = vor.u32 %v11014_v60, %v7992_v59 }
  0x73   :  { %5672 = vmatpush.bf16.msrb.mxu3 %v10189_v16  ;;  %v11647_v16 = vld [vmem:[#allocation2 + $0x19ec] sm:$0xf]  ;;  %v9089_v25 = vor.u32 %v11261_v12, %v9086_v13  ;;  %v9757_v12 = vor.u32 %v11427_v4, %v9754_v5  ;;  %v10932_v13 = vld [vmem:[#allocation2 + $0x394] sm:$0xf]  ;;  %v10420_v60 = vld [vmem:[#allocation2 + $0x1838] sm:$0xf] }
  0x74   :  { %5634 = vmatpush.bf16.msrb.mxu0 %v8205_v21  ;;  %v10633_v21 = vor.u32 %v11674_v8, %v10632_v7  ;;  %v10637_v28 = vor.u32 %v11647_v16, %v10634_v18  ;;  %v7772_v7 = vld [vmem:[#allocation2 + $0x390] sm:$0xf]  ;;  %v10959_v8 = vld [vmem:[#allocation2 + $0x468] sm:$0xf0]  ;;  %v11372_v16 = vld [vmem:[#allocation2 + $0x1154] sm:$0xf] }
  0x75   :  { %5647 = vmatpush.bf16.msrb.mxu1 %v9965_v24  ;;  %v8877_v24 = vor.u32 %v11207_v9, %v8874_v11  ;;  %v11399_v11 = vld [vmem:[#allocation2 + $0x1228] sm:$0xf0]  ;;  %v9534_v18 = vld [vmem:[#allocation2 + $0x122c] sm:$0xf0]  ;;  %v8440_v5 = vld [vmem:[#allocation2 + $0x8c0] sm:$0xf] }
  0x76   :  { %5660 = vmatpush.bf16.msrb.mxu2 %v8209_v27  ;;  %v11619_v27 = vld [vmem:[#allocation2 + $0x1908] sm:$0xf0] }
  0x77   :  { %5673 = vmatpush.bf16.msrb.mxu3 %v9969_v30  ;;  %v8654_v30 = vld [vmem:[#allocation2 + $0xb4c] sm:$0xf0]  ;;  %v10413_v34 = vor.u32 %v11619_v27, %v10412_v26  ;;  %v9537_v26 = vor.u32 %v11372_v16, %v9534_v18  ;;  %v10877_v27 = vld [vmem:[#allocation2 + $0x1dc] sm:$0xf]  ;;  %v8220_v18 = vld [vmem:[#allocation2 + $0x708] sm:$0xf] }
  0x78   :  { %5635 = vmatpush.bf16.msrb.mxu0 %v7985_v33  ;;  %v10414_v33 = vld [vmem:[#allocation2 + $0x190c] sm:$0xf0]  ;;  %v8657_v37 = vor.u32 %v11152_v29, %v8654_v30  ;;  %v11317_v29 = vld [vmem:[#allocation2 + $0xf9c] sm:$0xf] }
  0x79   :  { %5648 = vmatpush.bf16.msrb.mxu1 %v9745_v36  ;;  %v11124_v36 = vld [vmem:[#allocation2 + $0x990] sm:$0xf0]  ;;  %v10417_v40 = vor.u32 %v11592_v32, %v10414_v33  ;;  %v7332_v32 = vld [vmem:[#allocation2 + $0x20] sm:$0xf]  ;;  %v10849_v33 = vld [vmem:[#allocation2 + $0xf8] sm:$0xf0] }
  0x7a   :  { %5661 = vmatpush.bf16.msrb.mxu2 %v7989_v39  ;;  %v11564_v39 = vld [vmem:[#allocation2 + $0x1750] sm:$0xf0]  ;;  %v8433_v43 = vor.u32 %v11124_v36, %v8432_v35  ;;  %v9092_v35 = vld [vmem:[#allocation2 + $0xde0] sm:$0xf]  ;;  %v11289_v36 = vld [vmem:[#allocation2 + $0xeb8] sm:$0xf0] }
  0x7b   :  { %5674 = vmatpush.bf16.msrb.mxu3 %v9749_v42  ;;  %v8434_v42 = vld [vmem:[#allocation2 + $0x994] sm:$0xf0]  ;;  %v10193_v46 = vor.u32 %v11564_v39, %v10192_v38  ;;  %v7334_v39 = vld [vmem:[#allocation2 + $0xfc] sm:$0xf0] }
  0x7c   :  { %5636 = vmatpush.bf16.msrb.mxu0 %v7765_v45  ;;  %v10194_v45 = vld [vmem:[#allocation2 + $0x1754] sm:$0xf0]  ;;  %v8437_v49 = vor.u32 %v11097_v41, %v8434_v42  ;;  %v11235_v41 = vld [vmem:[#allocation2 + $0xd08] sm:$0xf0] }
  0x7d   :  { %5649 = vmatpush.bf16.msrb.mxu1 %v9525_v48  ;;  %v11069_v48 = vld [vmem:[#allocation2 + $0x7d8] sm:$0xf0]  ;;  %v10197_v52 = vor.u32 %v11537_v44, %v10194_v45  ;;  %v11675_v44 = vld [vmem:[#allocation2 + $0x1ac8] sm:$0xf0]  ;;  %v11208_v45 = vld [vmem:[#allocation2 + $0xc34] sm:$0xf] }
  0x7e   :  { %5662 = vmatpush.bf16.msrb.mxu2 %v7769_v51  ;;  %v11509_v51 = vld [vmem:[#allocation2 + $0x1598] sm:$0xf0]  ;;  %v8213_v55 = vor.u32 %v11069_v48, %v8212_v47  ;;  %v8882_v47 = vld [vmem:[#allocation2 + $0xd0c] sm:$0xf0]  ;;  %v11262_v48 = vld [vmem:[#allocation2 + $0xde4] sm:$0xf] }
  0x7f   :  { %5675 = vmatpush.bf16.msrb.mxu3 %v9529_v54  ;;  %v8214_v54 = vld [vmem:[#allocation2 + $0x7dc] sm:$0xf0] }
  0x80   :  { %5637 = vmatpush.bf16.msrb.mxu0 %v7545_v58  ;;  %v9973_v58 = vor.u32 %v11509_v51, %v9972_v50  ;;  %v8217_v61 = vor.u32 %v11042_v53, %v8214_v54  ;;  %v9093_v50 = vor.u32 %v11289_v36, %v9092_v35  ;;  %v10642_v53 = vld [vmem:[#allocation2 + $0x1acc] sm:$0xf0]  ;;  %v11455_v35 = vld [vmem:[#allocation2 + $0x13e8] sm:$0xf0] }
  0x81   :  { %5650 = vmatpush.bf16.msrb.mxu1 %v9305_v62  ;;  %v9752_v62 = vld [vmem:[#allocation2 + $0x1308] sm:$0xf] }
  0x82   :  { %5663 = vmatpush.bf16.msrb.mxu2 %v7549_v2  ;;  %v7994_v2 = vld [vmem:[#allocation2 + $0x624] sm:$0xf0] }
  0x83   :  { %5676 = vmatpush.bf16.msrb.mxu3 %v9309_v6  ;;  %v9753_v6 = vor.u32 %v11454_v63, %v9752_v62  ;;  %v7997_v9 = vor.u32 %v10987_v1, %v7994_v2  ;;  %v11153_v63 = vld [vmem:[#allocation2 + $0xa7c] sm:$0xf]  ;;  %v8661_v1 = vor.u32 %v11180_v57, %v8660_v56 }
  0x84   :  { %5638 = vmatpush.bf16.msrb.mxu0 %v7325_v10  ;;  %v9532_v10 = vld [vmem:[#allocation2 + $0x1150] sm:$0xf]  ;;  %v11593_v2 = vld [vmem:[#allocation2 + $0x183c] sm:$0xf] }
  0x85   :  { %5651 = vmatpush.bf16.msrb.mxu1 %v9085_v14  ;;  %v7774_v14 = vld [vmem:[#allocation2 + $0x46c] sm:$0xf0]  ;;  %v10905_v56 = vld [vmem:[#allocation2 + $0x2b8] sm:$0xf0] }
  0x86   :  { %5664 = vmatpush.bf16.msrb.mxu2 %v7329_v20  ;;  %v9533_v20 = vor.u32 %v11399_v11, %v9532_v10  ;;  %v7777_v23 = vor.u32 %v10932_v13, %v7774_v14  ;;  %v11098_v11 = vld [vmem:[#allocation2 + $0x8c4] sm:$0xf] }
  0x87   :  { %5677 = vmatpush.bf16.msrb.mxu3 %v9089_v25  ;;  %5639 = vmatmul.bf16.vlgmr.msrb.gmra.mxu0 %v11866_v17  ;;  %v11344_v25 = vld [vmem:[#allocation2 + $0x1070] sm:$0xf0]  ;;  %v11538_v14 = vld [vmem:[#allocation2 + $0x1684] sm:$0xf] }
  0x88   :  { %5683 = vmatpush.bf16.msra.mxu0 %v8873_v15  ;;  %5652 = vmatmul.bf16.vlgmr.msrb.gmra.mxu1 %v11868_v19  ;;  %v7773_v15 = vor.u32 %v10959_v8, %v7772_v7  ;;  %v10200_v8 = vld [vmem:[#allocation2 + $0x1680] sm:$0xf] }
  0x89   :  { %5696 = vmatpush.bf16.msra.mxu1 %v10633_v21  ;;  %5665 = vmatmul.bf16.vlgmr.msrb.gmra.mxu2 %v11866_v17  ;;  %v7552_v21 = vld [vmem:[#allocation2 + $0x1d8] sm:$0xf] }
  0x8a   :  { %5709 = vmatpush.bf16.msra.mxu2 %v8877_v24  ;;  %5678 = vmatmul.bf16.vlgmr.msrb.gmra.mxu3 %v11868_v19  ;;  %v9312_v24 = vld [vmem:[#allocation2 + $0xf98] sm:$0xf]  ;;  %v7553_v30 = vor.u32 %v10904_v22, %v7552_v21  ;;  %v9980_v22 = vld [vmem:[#allocation2 + $0x14c8] sm:$0xf] }
  0x8b   :  { %5722 = vmatpush.bf16.msra.mxu3 %v10637_v28  ;;  %v7554_v28 = vld [vmem:[#allocation2 + $0x2b4] sm:$0xf0] }
  0x8c   :  { %5684 = vmatpush.bf16.msra.mxu0 %v8653_v31  ;;  %v9314_v31 = vld [vmem:[#allocation2 + $0x1074] sm:$0xf0]  ;;  %v7557_v38 = vor.u32 %v10877_v27, %v7554_v28  ;;  %v11483_v28 = vld [vmem:[#allocation2 + $0x14cc] sm:$0xf] }
  0x8d   :  { %5697 = vmatpush.bf16.msra.mxu1 %v10413_v34  ;;  %v9313_v34 = vor.u32 %v11344_v25, %v9312_v24  ;;  %v9317_v42 = vor.u32 %v11317_v29, %v9314_v31  ;;  %v11043_v25 = vld [vmem:[#allocation2 + $0x70c] sm:$0xf]  ;;  %v9982_v29 = vld [vmem:[#allocation2 + $0x15a4] sm:$0xf0]  ;;  %v8000_v31 = vld [vmem:[#allocation2 + $0x550] sm:$0xf] }
  0x8e   :  { %5710 = vmatpush.bf16.msra.mxu2 %v8657_v37  ;;  %v10822_v37 = vld [vmem:[#allocation2 + $0x24] sm:$0xf]  ;;  %v9985_v36 = vor.u32 %v11483_v28, %v9982_v29  ;;  %v10650_v28 = vld [vmem:[#allocation2 + $0x1ad4] sm:$0xf0] }
  0x8f   :  { %5723 = vmatpush.bf16.msra.mxu3 %v10417_v40  ;;  %v8880_v40 = vld [vmem:[#allocation2 + $0xc30] sm:$0xf]  ;;  %v7337_v54 = vor.u32 %v10822_v37, %v7334_v39  ;;  %v10988_v37 = vld [vmem:[#allocation2 + $0x554] sm:$0xf] }
  0x90   :  { %5685 = vmatpush.bf16.msra.mxu0 %v8433_v43  ;;  %v10640_v43 = vld [vmem:[#allocation2 + $0x19f0] sm:$0xf]  ;;  %v8881_v51 = vor.u32 %v11235_v41, %v8880_v40  ;;  %v11428_v40 = vld [vmem:[#allocation2 + $0x1314] sm:$0xf] }
  0x91   :  { %5698 = vmatpush.bf16.msra.mxu1 %v10193_v46  ;;  %v7333_v46 = vor.u32 %v10849_v33, %v7332_v32  ;;  %v11015_v32 = vld [vmem:[#allocation2 + $0x628] sm:$0xf0]  ;;  %v9762_v41 = vld [vmem:[#allocation2 + $0x13ec] sm:$0xf0] }
  0x92   :  { %5711 = vmatpush.bf16.msra.mxu2 %v8437_v49  ;;  %v9094_v49 = vld [vmem:[#allocation2 + $0xebc] sm:$0xf0]  ;;  %v8001_v39 = vor.u32 %v11015_v32, %v8000_v31 }
  0x93   :  { %5724 = vmatpush.bf16.msra.mxu3 %v10197_v52  ;;  %v11648_v52 = vld [vmem:[#allocation2 + $0x19f4] sm:$0xf]  ;;  %v9097_v59 = vor.u32 %v11262_v48, %v9094_v49  ;;  %v9765_v48 = vor.u32 %v11428_v40, %v9762_v41  ;;  %v10933_v49 = vld [vmem:[#allocation2 + $0x39c] sm:$0xf]  ;;  %v8668_v32 = vld [vmem:[#allocation2 + $0xa80] sm:$0xf] }
  0x94   :  { %5686 = vmatpush.bf16.msra.mxu0 %v8213_v55  ;;  %v10641_v55 = vor.u32 %v11675_v44, %v10640_v43  ;;  %v10645_v62 = vor.u32 %v11648_v52, %v10642_v53  ;;  %v7780_v43 = vld [vmem:[#allocation2 + $0x398] sm:$0xf]  ;;  %v10960_v44 = vld [vmem:[#allocation2 + $0x470] sm:$0xf0]  ;;  %v11373_v52 = vld [vmem:[#allocation2 + $0x115c] sm:$0xf] }
  0x95   :  { %5699 = vmatpush.bf16.msra.mxu1 %v9973_v58  ;;  %v8885_v58 = vor.u32 %v11208_v45, %v8882_v47  ;;  %v11400_v47 = vld [vmem:[#allocation2 + $0x1230] sm:$0xf0]  ;;  %v9542_v53 = vld [vmem:[#allocation2 + $0x1234] sm:$0xf0]  ;;  %v11154_v40 = vld [vmem:[#allocation2 + $0xa84] sm:$0xf] }
  0x96   :  { %5712 = vmatpush.bf16.msra.mxu2 %v8217_v61  ;;  %v11620_v61 = vld [vmem:[#allocation2 + $0x1910] sm:$0xf0]  ;;  %v8670_v41 = vld [vmem:[#allocation2 + $0xb5c] sm:$0xf0] }
  0x97   :  { %5725 = vmatpush.bf16.msra.mxu3 %v9977_v0  ;;  %v8662_v0 = vld [vmem:[#allocation2 + $0xb54] sm:$0xf0]  ;;  %v10421_v4 = vor.u32 %v11620_v61, %v10420_v60  ;;  %v9545_v60 = vor.u32 %v11373_v52, %v9542_v53  ;;  %v10878_v61 = vld [vmem:[#allocation2 + $0x1e4] sm:$0xf]  ;;  %v10208_v52 = vld [vmem:[#allocation2 + $0x1688] sm:$0xf] }
  0x98   :  { %5687 = vmatpush.bf16.msra.mxu0 %v7993_v3  ;;  %v10422_v3 = vld [vmem:[#allocation2 + $0x1914] sm:$0xf0]  ;;  %v8665_v7 = vor.u32 %v11153_v63, %v8662_v0  ;;  %v11318_v63 = vld [vmem:[#allocation2 + $0xfa4] sm:$0xf] }
  0x99   :  { %5700 = vmatpush.bf16.msra.mxu1 %v9753_v6  ;;  %v11125_v6 = vld [vmem:[#allocation2 + $0x998] sm:$0xf0]  ;;  %v10425_v10 = vor.u32 %v11593_v2, %v10422_v3  ;;  %v7340_v2 = vld [vmem:[#allocation2 + $0x28] sm:$0xf]  ;;  %v10850_v3 = vld [vmem:[#allocation2 + $0x100] sm:$0xf0] }
  0x9a   :  { %5713 = vmatpush.bf16.msra.mxu2 %v7997_v9  ;;  %v11565_v9 = vld [vmem:[#allocation2 + $0x1758] sm:$0xf0]  ;;  %v8441_v13 = vor.u32 %v11125_v6, %v8440_v5  ;;  %v9100_v6 = vld [vmem:[#allocation2 + $0xde8] sm:$0xf]  ;;  %v11566_v53 = vld [vmem:[#allocation2 + $0x1760] sm:$0xf0] }
  0x9b   :  { %5726 = vmatpush.bf16.msra.mxu3 %v9757_v12  ;;  %v8442_v12 = vld [vmem:[#allocation2 + $0x99c] sm:$0xf0]  ;;  %v10201_v16 = vor.u32 %v11565_v9, %v10200_v8  ;;  %v10823_v8 = vld [vmem:[#allocation2 + $0x2c] sm:$0xf] }
  0x9c   :  { %5688 = vmatpush.bf16.msra.mxu0 %v7773_v15  ;;  %v10202_v15 = vld [vmem:[#allocation2 + $0x175c] sm:$0xf0]  ;;  %v8445_v21 = vor.u32 %v11098_v11, %v8442_v12  ;;  %v8888_v11 = vld [vmem:[#allocation2 + $0xc38] sm:$0xf]  ;;  %v11236_v12 = vld [vmem:[#allocation2 + $0xd10] sm:$0xf0] }
  0x9d   :  { %5701 = vmatpush.bf16.msra.mxu1 %v9533_v20  ;;  %v11070_v20 = vld [vmem:[#allocation2 + $0x7e0] sm:$0xf0]  ;;  %v10205_v24 = vor.u32 %v11538_v14, %v10202_v15  ;;  %v10648_v15 = vld [vmem:[#allocation2 + $0x19f8] sm:$0xf] }
  0x9e   :  { %5714 = vmatpush.bf16.msra.mxu2 %v7777_v23  ;;  %v11510_v23 = vld [vmem:[#allocation2 + $0x15a0] sm:$0xf0]  ;;  %v8221_v27 = vor.u32 %v11070_v20, %v8220_v18  ;;  %v11209_v18 = vld [vmem:[#allocation2 + $0xc3c] sm:$0xf]  ;;  %v7341_v20 = vor.u32 %v10850_v3, %v7340_v2  ;;  %v11071_v2 = vld [vmem:[#allocation2 + $0x7e8] sm:$0xf0] }
  0x9f   :  { %5727 = vmatpush.bf16.msra.mxu3 %v9537_v26  ;;  %v8222_v26 = vld [vmem:[#allocation2 + $0x7e4] sm:$0xf0] }
  0xa0   :  { %5689 = vmatpush.bf16.msra.mxu0 %v7553_v30  ;;  %v9981_v30 = vor.u32 %v11510_v23, %v9980_v22  ;;  %v8225_v33 = vor.u32 %v11043_v25, %v8222_v26  ;;  %v11263_v22 = vld [vmem:[#allocation2 + $0xdec] sm:$0xf]  ;;  %v9102_v23 = vld [vmem:[#allocation2 + $0xec4] sm:$0xf0]  ;;  %v8889_v25 = vor.u32 %v11236_v12, %v8888_v11  ;;  %v11484_v12 = vld [vmem:[#allocation2 + $0x14d4] sm:$0xf] }
  0xa1   :  { %5702 = vmatpush.bf16.msra.mxu1 %v9313_v34  ;;  %v9760_v34 = vld [vmem:[#allocation2 + $0x1310] sm:$0xf] }
  0xa2   :  { %5715 = vmatpush.bf16.msra.mxu2 %v7557_v38  ;;  %v8002_v38 = vld [vmem:[#allocation2 + $0x62c] sm:$0xf0] }
  0xa3   :  { %5728 = vmatpush.bf16.msra.mxu3 %v9317_v42  ;;  %v9761_v42 = vor.u32 %v11455_v35, %v9760_v34  ;;  %v8005_v45 = vor.u32 %v10988_v37, %v8002_v38  ;;  %v11899_v35 = vld [vmem:[%s12284_s2] sm:$0xff]  ;;  %v10428_v37 = vld [vmem:[#allocation2 + $0x1840] sm:$0xf] }
  0xa4   :  { %5690 = vmatpush.bf16.msra.mxu0 %v7333_v46  ;;  %v9540_v46 = vld [vmem:[#allocation2 + $0x1158] sm:$0xf]  ;;  %v11621_v38 = vld [vmem:[#allocation2 + $0x1918] sm:$0xf0] }
  0xa5   :  { %5703 = vmatpush.bf16.msra.mxu1 %v9093_v50  ;;  %v7782_v50 = vld [vmem:[#allocation2 + $0x474] sm:$0xf0] }
  0xa6   :  { %5716 = vmatpush.bf16.msra.mxu2 %v7337_v54  ;;  %v9541_v54 = vor.u32 %v11400_v47, %v9540_v46  ;;  %v7785_v57 = vor.u32 %v10933_v49, %v7782_v50  ;;  %v950_v46 = vperm.slane %v11899_v35, 1  ;;  %v10429_v47 = vor.u32 %v11621_v38, %v10428_v37  ;;  %v11126_v49 = vld [vmem:[#allocation2 + $0x9a0] sm:$0xf0]  ;;  %v7788_v37 = vld [vmem:[#allocation2 + $0x3a0] sm:$0xf] }
  0xa7   :  { %5729 = vmatpush.bf16.msra.mxu3 %v9097_v59  ;;  %5691 = vmatmul.bf16.vlgmr.msra.gmra.mxu0 %v11866_v17  ;;  %v11345_v59 = vld [vmem:[#allocation2 + $0x1078] sm:$0xf0] }
  0xa8   :  { %5735 = vmatpush.bf16.msrb.mxu0 %v8881_v51  ;;  %5704 = vmatmul.bf16.vlgmr.msra.gmra.mxu1 %v11868_v19  ;;  %v7781_v51 = vor.u32 %v10960_v44, %v7780_v43  ;;  %v11594_v44 = vld [vmem:[#allocation2 + $0x1844] sm:$0xf]  ;;  %v10961_v38 = vld [vmem:[#allocation2 + $0x478] sm:$0xf0] }
  0xa9   :  { %5748 = vmatpush.bf16.msrb.mxu1 %v10641_v55  ;;  %5717 = vmatmul.bf16.vlgmr.msra.gmra.mxu2 %v11866_v17  ;;  %v7560_v55 = vld [vmem:[#allocation2 + $0x1e0] sm:$0xf] }
  0xaa   :  { %5761 = vmatpush.bf16.msrb.mxu2 %v8885_v58  ;;  %5730 = vmatmul.bf16.vlgmr.msra.gmra.mxu3 %v11868_v19  ;;  %v9320_v58 = vld [vmem:[#allocation2 + $0xfa0] sm:$0xf]  ;;  %v7561_v0 = vor.u32 %v10905_v56, %v7560_v55  ;;  %v11099_v55 = vld [vmem:[#allocation2 + $0x8cc] sm:$0xf]  ;;  %v8450_v56 = vld [vmem:[#allocation2 + $0x9a4] sm:$0xf0] }
  0xab   :  { %5774 = vmatpush.bf16.msrb.mxu3 %v10645_v62  ;;  %v7562_v62 = vld [vmem:[#allocation2 + $0x2bc] sm:$0xf0]  ;;  %v9321_v5 = vor.u32 %v11345_v59, %v9320_v58  ;;  %v8453_v3 = vor.u32 %v11099_v55, %v8450_v56  ;;  %v9328_v56 = vld [vmem:[#allocation2 + $0xfa8] sm:$0xf] }
  0xac   :  { %5736 = vmatpush.bf16.msrb.mxu0 %v8661_v1  ;;  %v9322_v1 = vld [vmem:[#allocation2 + $0x107c] sm:$0xf0]  ;;  %v7565_v9 = vor.u32 %v10878_v61, %v7562_v62  ;;  %v10210_v61 = vld [vmem:[#allocation2 + $0x1764] sm:$0xf0] }
  0xad   :  { %5749 = vmatpush.bf16.msrb.mxu1 %v10421_v4  ;;  %v11890_v4 = vpop.f32.mrf.mxu0  ;;  %v9325_v14 = vor.u32 %v11318_v63, %v9322_v1  ;;  %v10209_v63 = vor.u32 %v11566_v53, %v10208_v52  ;;  %v8228_v1 = vld [vmem:[#allocation2 + $0x710] sm:$0xf]  ;;  %v7568_v52 = vld [vmem:[#allocation2 + $0x1e8] sm:$0xf]  ;;  %v10906_v53 = vld [vmem:[#allocation2 + $0x2c0] sm:$0xf0] }
  0xae   :  { %5762 = vmatpush.bf16.msrb.mxu2 %v8665_v7  ;;  %v11290_v7 = vld [vmem:[#allocation2 + $0xec0] sm:$0xf0]  ;;  %v8229_v11 = vor.u32 %v11071_v2, %v8228_v1  ;;  %v7569_v2 = vor.u32 %v10906_v53, %v7568_v52  ;;  %v8456_v53 = vld [vmem:[#allocation2 + $0x8d0] sm:$0xf] }
  0xaf   :  { %5775 = vmatpush.bf16.msrb.mxu3 %v10425_v10  ;;  %v7342_v10 = vld [vmem:[#allocation2 + $0x104] sm:$0xf0]  ;;  %v5510_v26 = vpop.f32.mrf.mxu2 }
  0xb0   :  { %5737 = vmatpush.bf16.msrb.mxu0 %v8441_v13  ;;  %v11892_v13 = vpop.f32.mrf.mxu1  ;;  %v7345_v29 = vor.u32 %v10823_v8, %v7342_v10  ;;  %v11894_v31 = vpop.f32.mrf.mxu3  ;;  %v5511_v62 = vadd.f32 %v5510_v26, %v950_v46  ;;  %v11044_v8 = vld [vmem:[#allocation2 + $0x714] sm:$0xf]  ;;  %v10989_v26 = vld [vmem:[#allocation2 + $0x55c] sm:$0xf] }
  0xb1   :  { %5750 = vmatpush.bf16.msrb.mxu1 %v10201_v16  ;;  %v11676_v16 = vld [vmem:[#allocation2 + $0x1ad0] sm:$0xf0] }
  0xb2   :  { %5763 = vmatpush.bf16.msrb.mxu2 %v8445_v21  ;;  %v8890_v21 = vld [vmem:[#allocation2 + $0xd14] sm:$0xf0] }
  0xb3   :  { %5776 = vmatpush.bf16.msrb.mxu3 %v10205_v24  ;;  %v9101_v24 = vor.u32 %v11290_v7, %v9100_v6  ;;  %v8893_v34 = vor.u32 %v11209_v18, %v8890_v21  ;;  %v11511_v6 = vld [vmem:[#allocation2 + $0x15a8] sm:$0xf0]  ;;  %v11016_v21 = vld [vmem:[#allocation2 + $0x630] sm:$0xf0] }
  0xb4   :  { %5738 = vmatpush.bf16.msrb.mxu0 %v8221_v27  ;;  %v11649_v27 = vld [vmem:[#allocation2 + $0x19fc] sm:$0xf] }
  0xb5   :  { %5751 = vmatpush.bf16.msrb.mxu1 %v9981_v30  ;;  %v10649_v30 = vor.u32 %v11676_v16, %v10648_v15  ;;  %v951_v15 = vperm.slane %v11899_v35, 2  ;;  %v5524_v16 = vadd.f32 %v11894_v31, %v5511_v62  ;;  %v9770_v31 = vld [vmem:[#allocation2 + $0x13f4] sm:$0xf0]  ;;  %v11319_v62 = vld [vmem:[#allocation2 + $0xfac] sm:$0xf] }
  0xb6   :  { %5764 = vmatpush.bf16.msrb.mxu2 %v8225_v33  ;;  %v11181_v33 = vld [vmem:[#allocation2 + $0xb58] sm:$0xf0] }
  0xb7   :  { %5777 = vmatpush.bf16.msrb.mxu3 %v9985_v36  ;;  %v9105_v36 = vor.u32 %v11263_v22, %v9102_v23  ;;  %v8669_v43 = vor.u32 %v11181_v33, %v8668_v32  ;;  %v5512_v59 = vpop.f32.mrf.mxu2  ;;  %v9768_v23 = vld [vmem:[#allocation2 + $0x1318] sm:$0xf]  ;;  %v11429_v32 = vld [vmem:[#allocation2 + $0x131c] sm:$0xf]  ;;  %v6906_v33 = vmul.f32 0.5, %v5524_v16 }
  0xb8   :  { %5739 = vmatpush.bf16.msrb.mxu0 %v8001_v39  ;;  %v10653_v39 = vor.u32 %v11649_v27, %v10650_v28  ;;  %v5499_v50 = vpop.f32.mrf.mxu1  ;;  %v11237_v16 = vld [vmem:[#allocation2 + $0xd18] sm:$0xf0] }
  0xb9   :  { %5752 = vmatpush.bf16.msrb.mxu1 %v9761_v42  ;;  %v5486_v42 = vpop.f32.mrf.mxu0  ;;  %v9550_v50 = vld [vmem:[#allocation2 + $0x123c] sm:$0xf0]  ;;  %11701 = vtanh.f32 %v6906_v33 }
  0xba   :  { %5765 = vmatpush.bf16.msrb.mxu2 %v8005_v45  ;;  %v10430_v45 = vld [vmem:[#allocation2 + $0x191c] sm:$0xf0]  ;;  %v11401_v42 = vld [vmem:[#allocation2 + $0x1238] sm:$0xf0] }
  0xbb   :  { %5778 = vmatpush.bf16.msrb.mxu3 %v9765_v48  ;;  %v8448_v48 = vld [vmem:[#allocation2 + $0x8c8] sm:$0xf] }
  0xbc   :  { %5740 = vmatpush.bf16.msrb.mxu0 %v7781_v51  ;;  %v8673_v51 = vor.u32 %v11154_v40, %v8670_v41  ;;  %v8449_v58 = vor.u32 %v11126_v49, %v8448_v48  ;;  %v9548_v41 = vld [vmem:[#allocation2 + $0x1160] sm:$0xf]  ;;  %v7789_v48 = vor.u32 %v10961_v38, %v7788_v37  ;;  %v11374_v49 = vld [vmem:[#allocation2 + $0x1164] sm:$0xf] }
  0xbd   :  { %5753 = vmatpush.bf16.msrb.mxu1 %v9541_v54  ;;  %v10433_v54 = vor.u32 %v11594_v44, %v10430_v45  ;;  %v10934_v44 = vld [vmem:[#allocation2 + $0x3a4] sm:$0xf]  ;;  %v7790_v45 = vld [vmem:[#allocation2 + $0x47c] sm:$0xf0] }
  0xbe   :  { %5766 = vmatpush.bf16.msrb.mxu2 %v7785_v57  ;;  %v949_v57 = vperm.slane %v11899_v35, 0  ;;  %v7793_v55 = vor.u32 %v10934_v44, %v7790_v45  ;;  %v11622_v44 = vld [vmem:[#allocation2 + $0x1920] sm:$0xf0]  ;;  %v11155_v45 = vld [vmem:[#allocation2 + $0xa8c] sm:$0xf] }
  0xbf   :  { %5779 = vmatpush.bf16.msrb.mxu3 %v9545_v60  ;;  %v11539_v60 = vld [vmem:[#allocation2 + $0x168c] sm:$0xf] }
  0xc0   :  { %5741 = vmatpush.bf16.msrb.mxu0 %v7561_v0  ;;  %v5525_v0 = vpop.f32.mrf.mxu3  ;;  %v10213_v7 = vor.u32 %v11539_v60, %v10210_v61  ;;  %v5485_v10 = vadd.f32 %v11890_v4, %v949_v57  ;;  %v8010_v4 = vld [vmem:[#allocation2 + $0x634] sm:$0xf0]  ;;  %v11346_v57 = vld [vmem:[#allocation2 + $0x1080] sm:$0xf0]  ;;  %v9553_v60 = vor.u32 %v11374_v49, %v9550_v50  ;;  %v7570_v61 = vld [vmem:[#allocation2 + $0x2c4] sm:$0xf0] }
  0xc1   :  { %5754 = vmatpush.bf16.msrb.mxu1 %v9321_v5  ;;  %v9988_v5 = vld [vmem:[#allocation2 + $0x14d0] sm:$0xf]  ;;  %v10438_v49 = vld [vmem:[#allocation2 + $0x1924] sm:$0xf0] }
  0xc2   :  { %5767 = vmatpush.bf16.msrb.mxu2 %v7565_v9  ;;  %v8230_v9 = vld [vmem:[#allocation2 + $0x7ec] sm:$0xf0]  ;;  %v9989_v18 = vor.u32 %v11511_v6, %v9988_v5  ;;  %v5498_v28 = vadd.f32 %v11892_v13, %v5485_v10  ;;  %v9773_v13 = vor.u32 %v11429_v32, %v9770_v31  ;;  %v10851_v5 = vld [vmem:[#allocation2 + $0x108] sm:$0xf0]  ;;  %v10824_v10 = vld [vmem:[#allocation2 + $0x34] sm:$0xf] }
  0xc3   :  { %5780 = vmatpush.bf16.msrb.mxu3 %v9325_v14  ;;  %v9990_v14 = vld [vmem:[#allocation2 + $0x15ac] sm:$0xf0]  ;;  %v8233_v22 = vor.u32 %v11044_v8, %v8230_v9  ;;  %v9329_v8 = vor.u32 %v11346_v57, %v9328_v56  ;;  %v11291_v9 = vld [vmem:[#allocation2 + $0xec8] sm:$0xf0]  ;;  %v11650_v32 = vld [vmem:[#allocation2 + $0x1a04] sm:$0xf] }
  0xc4   :  { %5742 = vmatpush.bf16.msrb.mxu0 %v7341_v20  ;;  %v8008_v20 = vld [vmem:[#allocation2 + $0x558] sm:$0xf]  ;;  %v5536_v27 = vpop.f32.mrf.mxu0  ;;  %v6905_v46 = vmul.f32 0.5, %v5498_v28  ;;  %v9108_v6 = vld [vmem:[#allocation2 + $0xdf0] sm:$0xf] }
  0xc5   :  { %5755 = vmatpush.bf16.msrb.mxu1 %v9101_v24  ;;  %v11456_v24 = vld [vmem:[#allocation2 + $0x13f0] sm:$0xf0]  ;;  %v9110_v28 = vld [vmem:[#allocation2 + $0xecc] sm:$0xf0]  ;;  %v10658_v31 = vld [vmem:[#allocation2 + $0x1adc] sm:$0xf0] }
  0xc6   :  { %5768 = vmatpush.bf16.msrb.mxu2 %v7345_v29  ;;  %v8009_v29 = vor.u32 %v11016_v21, %v8008_v20  ;;  %v11702_v20 = vpop.eup %11701 }
  0xc7   :  { %5781 = vmatpush.bf16.msrb.mxu3 %v9105_v36  ;;  %5743 = vmatmul.bf16.vlgmr.msrb.gmra.mxu0 %v11866_v17  ;;  %v5549_v36 = vpop.f32.mrf.mxu1 }
  0xc8   :  { %5787 = vmatpush.bf16.msra.mxu0 %v8889_v25  ;;  %5756 = vmatmul.bf16.vlgmr.msrb.gmra.mxu1 %v11868_v19  ;;  %v9993_v25 = vor.u32 %v11484_v12, %v9990_v14 }
  0xc9   :  { %5800 = vmatpush.bf16.msra.mxu1 %v10649_v30  ;;  %5769 = vmatmul.bf16.vlgmr.msrb.gmra.mxu2 %v11866_v17  ;;  %v5537_v30 = vadd.f32 %v5536_v27, %v951_v15  ;;  %v8896_v15 = vld [vmem:[#allocation2 + $0xc40] sm:$0xf]  ;;  %v11264_v27 = vld [vmem:[#allocation2 + $0xdf4] sm:$0xf] }
  0xca   :  { %5813 = vmatpush.bf16.msra.mxu2 %v8893_v34  ;;  %5782 = vmatmul.bf16.vlgmr.msrb.gmra.mxu3 %v11868_v19  ;;  %v9769_v34 = vor.u32 %v11456_v24, %v9768_v23  ;;  %v11677_v23 = vld [vmem:[#allocation2 + $0x1ad8] sm:$0xf0]  ;;  %v11210_v24 = vld [vmem:[#allocation2 + $0xc44] sm:$0xf] }
  0xcb   :  { %5826 = vmatpush.bf16.msra.mxu3 %v10653_v39  ;;  %v8013_v39 = vor.u32 %v10989_v26, %v8010_v4  ;;  %v5550_v40 = vadd.f32 %v5549_v36, %v5537_v30  ;;  %v8898_v4 = vld [vmem:[#allocation2 + $0xd1c] sm:$0xf0]  ;;  %v8897_v30 = vor.u32 %v11237_v16, %v8896_v15  ;;  %v9996_v15 = vld [vmem:[#allocation2 + $0x14d8] sm:$0xf]  ;;  %v11512_v16 = vld [vmem:[#allocation2 + $0x15b0] sm:$0xf0] }
  0xcc   :  { %5788 = vmatpush.bf16.msra.mxu0 %v8669_v43  ;;  %v952_v43 = vperm.slane %v11899_v35, 3  ;;  %v5538_v0 = vpop.f32.mrf.mxu0 }
  0xcd   :  { %5801 = vmatpush.bf16.msra.mxu1 %v10429_v47  ;;  %v6907_v47 = vmul.f32 0.5, %v5550_v40  ;;  %v5575_v1 = vpop.f32.mrf.mxu3  ;;  %v11182_v40 = vld [vmem:[#allocation2 + $0xb60] sm:$0xf0]  ;;  %v11100_v0 = vld [vmem:[#allocation2 + $0x8d4] sm:$0xf] }
  0xce   :  { %5814 = vmatpush.bf16.msra.mxu2 %v8673_v51  ;;  %v9549_v51 = vor.u32 %v11401_v42, %v9548_v41  ;;  %v8901_v42 = vor.u32 %v11210_v24, %v8898_v4  ;;  %v11485_v24 = vld [vmem:[#allocation2 + $0x14dc] sm:$0xf] }
  0xcf   :  { %5827 = vmatpush.bf16.msra.mxu3 %v10433_v54  ;;  %v5562_v54 = vpop.f32.mrf.mxu2  ;;  %11703 = vtanh.f32 %v6907_v47  ;;  %v5551_v12 = vpop.f32.mrf.mxu1  ;;  %v8678_v47 = vld [vmem:[#allocation2 + $0xb64] sm:$0xf0] }
  0xd0   :  { %5789 = vmatpush.bf16.msra.mxu0 %v8449_v58  ;;  %v10879_v58 = vld [vmem:[#allocation2 + $0x1ec] sm:$0xf]  ;;  %v5563_v59 = vadd.f32 %v5562_v54, %v952_v43  ;;  %11705 = vtanh.f32 %v6905_v46  ;;  %v9113_v43 = vor.u32 %v11264_v27, %v9110_v28  ;;  %v10661_v46 = vor.u32 %v11650_v32, %v10658_v31  ;;  %v11072_v12 = vld [vmem:[#allocation2 + $0x7f0] sm:$0xf0]  ;;  %v8016_v28 = vld [vmem:[#allocation2 + $0x560] sm:$0xf] }
  0xd1   :  { %5802 = vmatpush.bf16.msra.mxu1 %v10209_v63  ;;  %v9330_v63 = vld [vmem:[#allocation2 + $0x1084] sm:$0xf0]  ;;  %v7573_v14 = vor.u32 %v10879_v58, %v7570_v61  ;;  %v11127_v54 = vld [vmem:[#allocation2 + $0x9a8] sm:$0xf0]  ;;  %v10216_v58 = vld [vmem:[#allocation2 + $0x1690] sm:$0xf]  ;;  %v8681_v61 = vor.u32 %v11155_v45, %v8678_v47  ;;  %v9997_v27 = vor.u32 %v11512_v16, %v9996_v15 }
  0xd2   :  { %5815 = vmatpush.bf16.msra.mxu2 %v8453_v3  ;;  %v7348_v3 = vld [vmem:[#allocation2 + $0x30] sm:$0xf]  ;;  %v9776_v31 = vld [vmem:[#allocation2 + $0x1320] sm:$0xf]  ;;  %v9556_v45 = vld [vmem:[#allocation2 + $0x1168] sm:$0xf] }
  0xd3   :  { %5828 = vmatpush.bf16.msra.mxu3 %v10213_v7  ;;  %v5576_v7 = vadd.f32 %v5575_v1, %v5563_v59  ;;  %v7349_v26 = vor.u32 %v10851_v5, %v7348_v3  ;;  %v11567_v59 = vld [vmem:[#allocation2 + $0x1768] sm:$0xf0]  ;;  %v8458_v1 = vld [vmem:[#allocation2 + $0x9ac] sm:$0xf0]  ;;  %v11540_v5 = vld [vmem:[#allocation2 + $0x1694] sm:$0xf] }
  0xd4   :  { %5790 = vmatpush.bf16.msra.mxu0 %v8229_v11  ;;  %v7350_v11 = vld [vmem:[#allocation2 + $0x10c] sm:$0xf0]  ;;  %v10217_v3 = vor.u32 %v11567_v59, %v10216_v58  ;;  %v11347_v59 = vld [vmem:[#allocation2 + $0x1088] sm:$0xf0]  ;;  %v8904_v15 = vld [vmem:[#allocation2 + $0xc48] sm:$0xf] }
  0xd5   :  { %5803 = vmatpush.bf16.msra.mxu1 %v9989_v18  ;;  %v10656_v18 = vld [vmem:[#allocation2 + $0x1a00] sm:$0xf]  ;;  %v6908_v21 = vmul.f32 0.5, %v5576_v7  ;;  %v7353_v37 = vor.u32 %v10824_v10, %v7350_v11  ;;  %v5577_v50 = vpop.f32.mrf.mxu3  ;;  %v8236_v7 = vld [vmem:[#allocation2 + $0x718] sm:$0xf] }
  0xd6   :  { %5816 = vmatpush.bf16.msra.mxu2 %v8233_v22  ;;  %v9333_v22 = vor.u32 %v11319_v62, %v9330_v63  ;;  %v10657_v38 = vor.u32 %v11677_v23, %v10656_v18  ;;  %v8237_v23 = vor.u32 %v11072_v12, %v8236_v7  ;;  %v9336_v58 = vld [vmem:[#allocation2 + $0xfb0] sm:$0xf]  ;;  %v11238_v16 = vld [vmem:[#allocation2 + $0xd20] sm:$0xf0] }
  0xd7   :  { %5829 = vmatpush.bf16.msra.mxu3 %v9993_v25  ;;  %v11704_v25 = vpop.eup %11703  ;;  %11707 = vtanh.f32 %v6908_v21  ;;  %v5564_v41 = vpop.f32.mrf.mxu2  ;;  %v11045_v21 = vld [vmem:[#allocation2 + $0x71c] sm:$0xf] }
  0xd8   :  { %5791 = vmatpush.bf16.msra.mxu0 %v8009_v29  ;;  %v9109_v29 = vor.u32 %v11291_v9, %v9108_v6  ;;  %v11706_v33 = vpop.eup %11705  ;;  %v7017_v36 = vadd.f32 1.0, %v11704_v25  ;;  %v10218_v6 = vld [vmem:[#allocation2 + $0x176c] sm:$0xf0]  ;;  %v9998_v25 = vld [vmem:[#allocation2 + $0x15b4] sm:$0xf0] }
  0xd9   :  { %5804 = vmatpush.bf16.msra.mxu1 %v9769_v34  ;;  %v7016_v34 = vadd.f32 1.0, %v11702_v20  ;;  %v10221_v20 = vor.u32 %v11540_v5, %v10218_v6  ;;  %v10852_v5 = vld [vmem:[#allocation2 + $0x110] sm:$0xf0] }
  0xda   :  { %5817 = vmatpush.bf16.msra.mxu2 %v8013_v39  ;;  %v8676_v39 = vld [vmem:[#allocation2 + $0xa88] sm:$0xf]  ;;  %v7072_v56 = vmul.f32 0.5, %v7017_v36  ;;  %v10990_v36 = vld [vmem:[#allocation2 + $0x564] sm:$0xf] }
  0xdb   :  { %5830 = vmatpush.bf16.msra.mxu3 %v9773_v13  ;;  %v10436_v13 = vld [vmem:[#allocation2 + $0x1848] sm:$0xf]  ;;  %v8677_v52 = vor.u32 %v11182_v40, %v8676_v39  ;;  %v11430_v39 = vld [vmem:[#allocation2 + $0x1324] sm:$0xf]  ;;  %v9778_v40 = vld [vmem:[#allocation2 + $0x13fc] sm:$0xf0] }
  0xdc   :  { %5792 = vmatpush.bf16.msra.mxu0 %v7789_v48  ;;  %v11595_v48 = vld [vmem:[#allocation2 + $0x184c] sm:$0xf]  ;;  %v10437_v57 = vor.u32 %v11622_v44, %v10436_v13  ;;  %v7181_v10 = vrot.slane %v7072_v56, 4  ;;  %v10962_v13 = vld [vmem:[#allocation2 + $0x480] sm:$0xf0]  ;;  %v9781_v47 = vor.u32 %v11430_v39, %v9778_v40 }
  0xdd   :  { %5805 = vmatpush.bf16.msra.mxu1 %v9549_v51  ;;  %v7015_v51 = vadd.f32 1.0, %v11706_v33  ;;  %v10441_v63 = vor.u32 %v11595_v48, %v10438_v49  ;;  %v11457_v33 = vld [vmem:[#allocation2 + $0x13f8] sm:$0xf0]  ;;  %v10935_v48 = vld [vmem:[#allocation2 + $0x3ac] sm:$0xf] }
  0xde   :  { %5818 = vmatpush.bf16.msra.mxu2 %v7793_v55  ;;  %v7071_v55 = vmul.f32 0.5, %v7016_v34  ;;  %v10001_v34 = vor.u32 %v11485_v24, %v9998_v25  ;;  %v7798_v49 = vld [vmem:[#allocation2 + $0x484] sm:$0xf0]  ;;  %v10907_v56 = vld [vmem:[#allocation2 + $0x2c8] sm:$0xf0] }
  0xdf   :  { %5831 = vmatpush.bf16.msra.mxu3 %v9553_v60  ;;  %v11708_v60 = vpop.eup %11707  ;;  %v8906_v25 = vld [vmem:[#allocation2 + $0xd24] sm:$0xf0]  ;;  %v11623_v39 = vld [vmem:[#allocation2 + $0x1928] sm:$0xf0] }
  0xe0   :  { %5793 = vmatpush.bf16.msra.mxu0 %v7569_v2  ;;  %v7018_v62 = vadd.f32 1.0, %v11708_v60  ;;  %v8457_v2 = vor.u32 %v11127_v54, %v8456_v53  ;;  %v7180_v9 = vrot.slane %v7071_v55, 6  ;;  %v9558_v53 = vld [vmem:[#allocation2 + $0x1244] sm:$0xf0]  ;;  %v7576_v55 = vld [vmem:[#allocation2 + $0x1f0] sm:$0xf] }
  0xe1   :  { %5806 = vmatpush.bf16.msra.mxu1 %v9329_v8  ;;  %v7070_v8 = vmul.f32 0.5, %v7015_v51 }
  0xe2   :  { %5819 = vmatpush.bf16.msra.mxu2 %v7573_v14  ;;  %v7073_v11 = vmul.f32 0.5, %v7018_v62  ;;  %v8461_v14 = vor.u32 %v11100_v0, %v8458_v1  ;;  %v7578_v62 = vld [vmem:[#allocation2 + $0x2cc] sm:$0xf0]  ;;  %v7577_v1 = vor.u32 %v10907_v56, %v7576_v55  ;;  %v11568_v55 = vld [vmem:[#allocation2 + $0x1770] sm:$0xf0] }
  0xe3   :  { %5832 = vmatpush.bf16.msra.mxu3 %v9333_v22  ;;  %v8238_v22 = vld [vmem:[#allocation2 + $0x7f4] sm:$0xf0] }
  0xe4   :  { %5794 = vmatpush.bf16.msra.mxu0 %v7349_v26  ;;  %v7182_v18 = vrot.slane %v7073_v11, 2  ;;  %v7222_v26 = vsel %vm7221_vm0, %v7070_v8, %v7180_v9  ;;  %v8241_v32 = vor.u32 %v11045_v21, %v8238_v22  ;;  %v11922_v41 = vpop.f32.mrf.mxu0  ;;  %v9337_v8 = vor.u32 %v11347_v59, %v9336_v58  ;;  %v9116_v9 = vld [vmem:[#allocation2 + $0xdf8] sm:$0xf]  ;;  %v10825_v11 = vld [vmem:[#allocation2 + $0x3c] sm:$0xf] }
  0xe5   :  { %5807 = vmatpush.bf16.msra.mxu1 %v9109_v29  ;;  %v11017_v29 = vld [vmem:[#allocation2 + $0x638] sm:$0xf0]  ;;  %v11924_v50 = vpop.f32.mrf.mxu1  ;;  %v11678_v21 = vld [vmem:[#allocation2 + $0x1ae0] sm:$0xf0]  ;;  %v11211_v22 = vld [vmem:[#allocation2 + $0xc4c] sm:$0xf] }
  0xe6   :  { %5820 = vmatpush.bf16.msra.mxu2 %v7353_v37  ;;  %v7224_v4 = vsel %vm7223_vm1, %v7181_v10, %v7182_v18  ;;  %v8018_v37 = vld [vmem:[#allocation2 + $0x63c] sm:$0xf0]  ;;  %v11292_v10 = vld [vmem:[#allocation2 + $0xed0] sm:$0xf0]  ;;  %v8466_v58 = vld [vmem:[#allocation2 + $0x9b4] sm:$0xf0] }
  0xe7   :  { %5833 = vmatpush.bf16.msra.mxu3 %v9113_v43  ;;  %5795 = vmatmul.bf16.vlgmr.msra.gmra.mxu0 %v11866_v17  ;;  %v7796_v43 = vld [vmem:[#allocation2 + $0x3a8] sm:$0xf]  ;;  %v8021_v44 = vor.u32 %v10990_v36, %v8018_v37  ;;  %v8909_v36 = vor.u32 %v11211_v22, %v8906_v25  ;;  %v953_v59 = vperm.slane %v11899_v35, 4  ;;  %v955_v22 = vperm.slane %v11899_v35, 6  ;;  %v11458_v25 = vld [vmem:[#allocation2 + $0x1400] sm:$0xf0] }
  0xe8   :  { %5839 = vmatpush.bf16.msrb.mxu0 %v8897_v30  ;;  %5808 = vmatmul.bf16.vlgmr.msra.gmra.mxu1 %v11868_v19  ;;  %v7226_v30 = vsel %vm7225_vm2, %v7222_v26, %v7224_v4  ;;  %v7797_v51 = vor.u32 %v10962_v13, %v7796_v43  ;;  %v11265_v26 = vld [vmem:[#allocation2 + $0xdfc] sm:$0xf]  ;;  %v9118_v4 = vld [vmem:[#allocation2 + $0xed4] sm:$0xf0]  ;;  %v11156_v43 = vld [vmem:[#allocation2 + $0xa94] sm:$0xf] }
  0xe9   :  { %5852 = vmatpush.bf16.msrb.mxu1 %v10657_v38  ;;  %5821 = vmatmul.bf16.vlgmr.msra.gmra.mxu2 %v11866_v17  ;;  %7279 = vst [vmem:[%s12285_s3] sm:$0xff] %v7226_v30  ;;  %v8017_v38 = vor.u32 %v11017_v29, %v8016_v28  ;;  %v8905_v28 = vor.u32 %v11238_v16, %v8904_v15  ;;  %v11651_v29 = vld [vmem:[#allocation2 + $0x1a0c] sm:$0xf]  ;;  %v10666_v30 = vld [vmem:[#allocation2 + $0x1ae4] sm:$0xf0]  ;;  %v8686_v13 = vld [vmem:[#allocation2 + $0xb6c] sm:$0xf0] }
  0xea   :  { %5865 = vmatpush.bf16.msrb.mxu2 %v8901_v42  ;;  %5834 = vmatmul.bf16.vlgmr.msra.gmra.mxu3 %v11868_v19  ;;  %v9777_v42 = vor.u32 %v11457_v33, %v9776_v31  ;;  %v8684_v33 = vld [vmem:[#allocation2 + $0xa90] sm:$0xf]  ;;  %v9121_v37 = vor.u32 %v11265_v26, %v9118_v4  ;;  %v10006_v15 = vld [vmem:[#allocation2 + $0x15bc] sm:$0xf0]  ;;  %v10991_v4 = vld [vmem:[#allocation2 + $0x56c] sm:$0xf] }
  0xeb   :  { %5878 = vmatpush.bf16.msrb.mxu3 %v10661_v46  ;;  %v11402_v46 = vld [vmem:[#allocation2 + $0x1240] sm:$0xf0] }
  0xec   :  { %5840 = vmatpush.bf16.msrb.mxu0 %v8677_v52  ;;  %v11375_v52 = vld [vmem:[#allocation2 + $0x116c] sm:$0xf]  ;;  %v9557_v54 = vor.u32 %v11402_v46, %v9556_v45  ;;  %v11926_v0 = vpop.f32.mrf.mxu2  ;;  %v5590_v7 = vpop.f32.mrf.mxu0  ;;  %v11596_v46 = vld [vmem:[#allocation2 + $0x1854] sm:$0xf] }
  0xed   :  { %5853 = vmatpush.bf16.msrb.mxu1 %v10437_v57  ;;  %v7801_v57 = vor.u32 %v10935_v48, %v7798_v49  ;;  %v9561_v60 = vor.u32 %v11375_v52, %v9558_v53  ;;  %v11928_v6 = vpop.f32.mrf.mxu3  ;;  %v954_v48 = vperm.slane %v11899_v35, 5  ;;  %v11128_v52 = vld [vmem:[#allocation2 + $0x9b0] sm:$0xf0]  ;;  %v8689_v53 = vor.u32 %v11156_v43, %v8686_v13  ;;  %v10004_v7 = vld [vmem:[#allocation2 + $0x14e0] sm:$0xf] }
  0xee   :  { %5866 = vmatpush.bf16.msrb.mxu2 %v8681_v61  ;;  %v10880_v61 = vld [vmem:[#allocation2 + $0x1f4] sm:$0xf] }
  0xef   :  { %5879 = vmatpush.bf16.msrb.mxu3 %v10441_v63  ;;  %v11320_v63 = vld [vmem:[#allocation2 + $0xfb4] sm:$0xf]  ;;  %v7581_v12 = vor.u32 %v10880_v61, %v7578_v62  ;;  %v11541_v61 = vld [vmem:[#allocation2 + $0x169c] sm:$0xf]  ;;  %v10226_v62 = vld [vmem:[#allocation2 + $0x1774] sm:$0xf0] }
  0xf0   :  { %5841 = vmatpush.bf16.msrb.mxu0 %v8457_v2  ;;  %v9338_v2 = vld [vmem:[#allocation2 + $0x108c] sm:$0xf0]  ;;  %v10936_v43 = vld [vmem:[#allocation2 + $0x3b4] sm:$0xf] }
  0xf1   :  { %5854 = vmatpush.bf16.msrb.mxu1 %v10217_v3  ;;  %v7356_v3 = vld [vmem:[#allocation2 + $0x38] sm:$0xf]  ;;  %v9341_v18 = vor.u32 %v11320_v63, %v9338_v2  ;;  %v5615_v63 = vadd.f32 %v11926_v0, %v954_v48  ;;  %v8244_v2 = vld [vmem:[#allocation2 + $0x720] sm:$0xf]  ;;  %v9566_v48 = vld [vmem:[#allocation2 + $0x124c] sm:$0xf0] }
  0xf2   :  { %5867 = vmatpush.bf16.msrb.mxu2 %v8461_v14  ;;  %v7358_v14 = vld [vmem:[#allocation2 + $0x114] sm:$0xf0]  ;;  %v7357_v24 = vor.u32 %v10852_v5, %v7356_v3  ;;  %v11073_v3 = vld [vmem:[#allocation2 + $0x7f8] sm:$0xf0] }
  0xf3   :  { %5880 = vmatpush.bf16.msrb.mxu3 %v10221_v20  ;;  %v10664_v20 = vld [vmem:[#allocation2 + $0x1a08] sm:$0xf]  ;;  %v8245_v0 = vor.u32 %v11073_v3, %v8244_v2  ;;  %v5628_v16 = vadd.f32 %v11928_v6, %v5615_v63  ;;  %v11431_v6 = vld [vmem:[#allocation2 + $0x132c] sm:$0xf]  ;;  %v7364_v2 = vld [vmem:[#allocation2 + $0x40] sm:$0xf] }
  0xf4   :  { %5842 = vmatpush.bf16.msrb.mxu0 %v8237_v23  ;;  %v5603_v23 = vpop.f32.mrf.mxu1  ;;  %v10665_v31 = vor.u32 %v11678_v21, %v10664_v20  ;;  %v5616_v40 = vpop.f32.mrf.mxu2  ;;  %v8024_v20 = vld [vmem:[#allocation2 + $0x568] sm:$0xf]  ;;  %v11018_v21 = vld [vmem:[#allocation2 + $0x640] sm:$0xf0]  ;;  %v10853_v3 = vld [vmem:[#allocation2 + $0x118] sm:$0xf0] }
  0xf5   :  { %5855 = vmatpush.bf16.msrb.mxu1 %v9997_v27  ;;  %v9117_v27 = vor.u32 %v11292_v10, %v9116_v9  ;;  %v10229_v9 = vor.u32 %v11541_v61, %v10226_v62  ;;  %v11046_v10 = vld [vmem:[#allocation2 + $0x724] sm:$0xf]  ;;  %v9346_v61 = vld [vmem:[#allocation2 + $0x1094] sm:$0xf0] }
  0xf6   :  { %5868 = vmatpush.bf16.msrb.mxu2 %v8241_v32  ;;  %v7361_v32 = vor.u32 %v10825_v11, %v7358_v14  ;;  %v8246_v11 = vld [vmem:[#allocation2 + $0x7fc] sm:$0xf0]  ;;  %v11486_v14 = vld [vmem:[#allocation2 + $0x14e4] sm:$0xf] }
  0xf7   :  { %5881 = vmatpush.bf16.msrb.mxu3 %v10001_v34  ;;  %v11183_v34 = vld [vmem:[#allocation2 + $0xb68] sm:$0xf0]  ;;  %v8249_v23 = vor.u32 %v11046_v10, %v8246_v11  ;;  %v10009_v26 = vor.u32 %v11486_v14, %v10006_v15  ;;  %v10826_v10 = vld [vmem:[#allocation2 + $0x44] sm:$0xf]  ;;  %v7366_v11 = vld [vmem:[#allocation2 + $0x11c] sm:$0xf0] }
  0xf8   :  { %5843 = vmatpush.bf16.msrb.mxu0 %v8017_v38  ;;  %v10444_v38 = vld [vmem:[#allocation2 + $0x1850] sm:$0xf]  ;;  %v8685_v45 = vor.u32 %v11183_v34, %v8684_v33  ;;  %v11239_v15 = vld [vmem:[#allocation2 + $0xd28] sm:$0xf0] }
  0xf9   :  { %5856 = vmatpush.bf16.msrb.mxu1 %v9777_v42  ;;  %v10669_v42 = vor.u32 %v11651_v29, %v10666_v30  ;;  %v10445_v49 = vor.u32 %v11623_v39, %v10444_v38  ;;  %v9786_v30 = vld [vmem:[#allocation2 + $0x1404] sm:$0xf0]  ;;  %v7804_v34 = vld [vmem:[#allocation2 + $0x3b0] sm:$0xf]  ;;  %v11403_v39 = vld [vmem:[#allocation2 + $0x1248] sm:$0xf0] }
  0xfa   :  { %5869 = vmatpush.bf16.msrb.mxu2 %v8021_v44  ;;  %v5629_v44 = vpop.f32.mrf.mxu3  ;;  %v9564_v38 = vld [vmem:[#allocation2 + $0x1170] sm:$0xf]  ;;  %v9789_v40 = vor.u32 %v11431_v6, %v9786_v30 }
  0xfb   :  { %5882 = vmatpush.bf16.msrb.mxu3 %v9781_v47  ;;  %v10446_v47 = vld [vmem:[#allocation2 + $0x192c] sm:$0xf0]  ;;  %v956_v44 = vperm.slane %v11899_v35, 7  ;;  %v11321_v35 = vld [vmem:[#allocation2 + $0xfbc] sm:$0xf] }
  0xfc   :  { %5844 = vmatpush.bf16.msrb.mxu0 %v7797_v51  ;;  %v8464_v51 = vld [vmem:[#allocation2 + $0x8d8] sm:$0xf]  ;;  %v10449_v56 = vor.u32 %v11596_v46, %v10446_v47  ;;  %v11376_v47 = vld [vmem:[#allocation2 + $0x1174] sm:$0xf]  ;;  %v8912_v14 = vld [vmem:[#allocation2 + $0xc50] sm:$0xf] }
  0xfd   :  { %5857 = vmatpush.bf16.msrb.mxu1 %v9557_v54  ;;  %v10224_v54 = vld [vmem:[#allocation2 + $0x1698] sm:$0xf]  ;;  %v10674_v6 = vld [vmem:[#allocation2 + $0x1aec] sm:$0xf0] }
  0xfe   :  { %5870 = vmatpush.bf16.msrb.mxu2 %v7801_v57  ;;  %v11101_v57 = vld [vmem:[#allocation2 + $0x8dc] sm:$0xf] }
  0xff   :  { %5883 = vmatpush.bf16.msrb.mxu3 %v9561_v60  ;;  %v8465_v60 = vor.u32 %v11128_v52, %v8464_v51  ;;  %v8469_v5 = vor.u32 %v11101_v57, %v8466_v58  ;;  %v7584_v51 = vld [vmem:[#allocation2 + $0x1f8] sm:$0xf]  ;;  %v10908_v52 = vld [vmem:[#allocation2 + $0x2d0] sm:$0xf0]  ;;  %v10881_v57 = vld [vmem:[#allocation2 + $0x1fc] sm:$0xf] }
 0x100   :  { %5845 = vmatpush.bf16.msrb.mxu0 %v7577_v1  ;;  %v10225_v1 = vor.u32 %v11568_v55, %v10224_v54 }
 0x101   :  { %5858 = vmatpush.bf16.msrb.mxu1 %v9337_v8  ;;  %v11513_v8 = vld [vmem:[#allocation2 + $0x15b8] sm:$0xf0] }
 0x102   :  { %5871 = vmatpush.bf16.msrb.mxu2 %v7581_v12  ;;  %v5589_v12 = vadd.f32 %v11922_v41, %v953_v59  ;;  %v8026_v41 = vld [vmem:[#allocation2 + $0x644] sm:$0xf0]  ;;  %v9569_v59 = vor.u32 %v11376_v47, %v9566_v48  ;;  %v11597_v48 = vld [vmem:[#allocation2 + $0x185c] sm:$0xf] }
 0x103   :  { %5884 = vmatpush.bf16.msrb.mxu3 %v9341_v18  ;;  %v10005_v18 = vor.u32 %v11513_v8, %v10004_v7 }
 0x104   :  { %5846 = vmatpush.bf16.msrb.mxu0 %v7357_v24  ;;  %v9784_v24 = vld [vmem:[#allocation2 + $0x1328] sm:$0xf]  ;;  %v5640_v29 = vpop.f32.mrf.mxu0 }
 0x105   :  { %5859 = vmatpush.bf16.msrb.mxu1 %v9117_v27  ;;  %v5602_v27 = vadd.f32 %v11924_v50, %v5589_v12  ;;  %v5641_v33 = vadd.f32 %v5640_v29, %v955_v22  ;;  %v7806_v50 = vld [vmem:[#allocation2 + $0x48c] sm:$0xf0]  ;;  %v11212_v22 = vld [vmem:[#allocation2 + $0xc54] sm:$0xf] }
 0x106   :  { %5872 = vmatpush.bf16.msrb.mxu2 %v7361_v32  ;;  %v6910_v32 = vmul.f32 0.5, %v5628_v16  ;;  %v7809_v55 = vor.u32 %v10936_v43, %v7806_v50  ;;  %v10672_v16 = vld [vmem:[#allocation2 + $0x1a10] sm:$0xf]  ;;  %v11652_v29 = vld [vmem:[#allocation2 + $0x1a14] sm:$0xf] }
 0x107   :  { %5885 = vmatpush.bf16.msrb.mxu3 %v9121_v37  ;;  %5847 = vmatmul.bf16.vlgmr.msrb.gmra.mxu0 %v11866_v17  ;;  %v8029_v37 = vor.u32 %v10991_v4, %v8026_v41  ;;  %v6909_v13 = vmul.f32 0.5, %v5602_v27  ;;  %v11266_v4 = vld [vmem:[#allocation2 + $0xe04] sm:$0xf]  ;;  %v9126_v41 = vld [vmem:[#allocation2 + $0xedc] sm:$0xf0] }
 0x108   :  { %5891 = vmatpush.bf16.msra.mxu0 %v8905_v28  ;;  %5860 = vmatmul.bf16.vlgmr.msrb.gmra.mxu1 %v11868_v19  ;;  %v8025_v28 = vor.u32 %v11018_v21, %v8024_v20  ;;  %11709 = vtanh.f32 %v6910_v32  ;;  %v9349_v20 = vor.u32 %v11321_v35, %v9346_v61  ;;  %v11679_v21 = vld [vmem:[#allocation2 + $0x1ae8] sm:$0xf0]  ;;  %v11624_v43 = vld [vmem:[#allocation2 + $0x1930] sm:$0xf0]  ;;  %v11102_v61 = vld [vmem:[#allocation2 + $0x8e4] sm:$0xf] }
 0x109   :  { %5904 = vmatpush.bf16.msra.mxu1 %v10665_v31  ;;  %5873 = vmatmul.bf16.vlgmr.msrb.gmra.mxu2 %v11866_v17  ;;  %v9785_v31 = vor.u32 %v11458_v25, %v9784_v24 }
 0x10a   :  { %5917 = vmatpush.bf16.msra.mxu2 %v8909_v36  ;;  %5886 = vmatmul.bf16.vlgmr.msrb.gmra.mxu3 %v11868_v19  ;;  %v10963_v36 = vld [vmem:[#allocation2 + $0x488] sm:$0xf0] }
 0x10b   :  { %5930 = vmatpush.bf16.msra.mxu3 %v10669_v42  ;;  %v5653_v42 = vpop.f32.mrf.mxu1  ;;  %v7805_v46 = vor.u32 %v10963_v36, %v7804_v34  ;;  %v8692_v34 = vld [vmem:[#allocation2 + $0xa98] sm:$0xf]  ;;  %v11184_v36 = vld [vmem:[#allocation2 + $0xb70] sm:$0xf0] }
 0x10c   :  { %5892 = vmatpush.bf16.msra.mxu0 %v8685_v45  ;;  %v5654_v45 = vadd.f32 %v5653_v42, %v5641_v33  ;;  %v5666_v58 = vpop.f32.mrf.mxu2  ;;  %v5642_v7 = vpop.f32.mrf.mxu0  ;;  %v10673_v33 = vor.u32 %v11679_v21, %v10672_v16  ;;  %v10452_v42 = vld [vmem:[#allocation2 + $0x1858] sm:$0xf]  ;;  %v8693_v47 = vor.u32 %v11184_v36, %v8692_v34  ;;  %v11432_v36 = vld [vmem:[#allocation2 + $0x1334] sm:$0xf] }
 0x10d   :  { %5905 = vmatpush.bf16.msra.mxu1 %v10445_v49  ;;  %v9565_v49 = vor.u32 %v11403_v39, %v9564_v38  ;;  %v5667_v62 = vadd.f32 %v5666_v58, %v956_v44  ;;  %v5679_v63 = vpop.f32.mrf.mxu3  ;;  %v11157_v44 = vld [vmem:[#allocation2 + $0xa9c] sm:$0xf]  ;;  %v10232_v58 = vld [vmem:[#allocation2 + $0x16a0] sm:$0xf] }
 0x10e   :  { %5918 = vmatpush.bf16.msra.mxu2 %v8689_v53  ;;  %v9344_v53 = vld [vmem:[#allocation2 + $0xfb8] sm:$0xf]  ;;  %v6911_v54 = vmul.f32 0.5, %v5654_v45 }
 0x10f   :  { %5931 = vmatpush.bf16.msra.mxu3 %v10449_v56  ;;  %v11348_v56 = vld [vmem:[#allocation2 + $0x1090] sm:$0xf0]  ;;  %v5680_v12 = vadd.f32 %v5679_v63, %v5667_v62  ;;  %v8694_v45 = vld [vmem:[#allocation2 + $0xb74] sm:$0xf0]  ;;  %v8474_v62 = vld [vmem:[#allocation2 + $0x9bc] sm:$0xf0] }
 0x110   :  { %5893 = vmatpush.bf16.msra.mxu0 %v8465_v60  ;;  %v7586_v60 = vld [vmem:[#allocation2 + $0x2d4] sm:$0xf0]  ;;  %11711 = vtanh.f32 %v6911_v54  ;;  %v9345_v8 = vor.u32 %v11348_v56, %v9344_v53  ;;  %v10453_v53 = vor.u32 %v11624_v43, %v10452_v42  ;;  %v8472_v54 = vld [vmem:[#allocation2 + $0x8e0] sm:$0xf]  ;;  %v10964_v42 = vld [vmem:[#allocation2 + $0x490] sm:$0xf0] }
 0x111   :  { %5906 = vmatpush.bf16.msra.mxu1 %v10225_v1  ;;  %v7585_v1 = vor.u32 %v10908_v52, %v7584_v51  ;;  %11713 = vtanh.f32 %v6909_v13  ;;  %v6912_v25 = vmul.f32 0.5, %v5680_v12  ;;  %v10677_v13 = vor.u32 %v11652_v29, %v10674_v6  ;;  %v9792_v29 = vld [vmem:[#allocation2 + $0x1330] sm:$0xf]  ;;  %v11459_v6 = vld [vmem:[#allocation2 + $0x1408] sm:$0xf0] }
 0x112   :  { %5919 = vmatpush.bf16.msra.mxu2 %v8469_v5  ;;  %v9124_v5 = vld [vmem:[#allocation2 + $0xe00] sm:$0xf] }
 0x113   :  { %5932 = vmatpush.bf16.msra.mxu3 %v10229_v9  ;;  %v11293_v9 = vld [vmem:[#allocation2 + $0xed8] sm:$0xf0]  ;;  %v5655_v24 = vpop.f32.mrf.mxu1  ;;  %11715 = vtanh.f32 %v6912_v25 }
 0x114   :  { %5894 = vmatpush.bf16.msra.mxu0 %v8245_v0  ;;  %v7589_v0 = vor.u32 %v10881_v57, %v7586_v60  ;;  %v9125_v27 = vor.u32 %v11293_v9, %v9124_v5  ;;  %v5668_v50 = vpop.f32.mrf.mxu2  ;;  %v8697_v57 = vor.u32 %v11157_v44, %v8694_v45  ;;  %v8252_v9 = vld [vmem:[#allocation2 + $0x728] sm:$0xf]  ;;  %v10937_v45 = vld [vmem:[#allocation2 + $0x3bc] sm:$0xf] }
 0x115   :  { %5907 = vmatpush.bf16.msra.mxu1 %v10005_v18  ;;  %v11710_v18 = vpop.eup %11709  ;;  %v10014_v24 = vld [vmem:[#allocation2 + $0x15c4] sm:$0xf0]  ;;  %v9572_v50 = vld [vmem:[#allocation2 + $0x1178] sm:$0xf] }
 0x116   :  { %5920 = vmatpush.bf16.msra.mxu2 %v8249_v23  ;;  %v8914_v23 = vld [vmem:[#allocation2 + $0xd2c] sm:$0xf0]  ;;  %v11712_v30 = vpop.eup %11711  ;;  %v7020_v32 = vadd.f32 1.0, %v11710_v18  ;;  %v11047_v18 = vld [vmem:[#allocation2 + $0x72c] sm:$0xf] }
 0x117   :  { %5933 = vmatpush.bf16.msra.mxu3 %v10009_v26  ;;  %v7365_v26 = vor.u32 %v10853_v3, %v7364_v2  ;;  %v7021_v38 = vadd.f32 1.0, %v11712_v30  ;;  %v8917_v39 = vor.u32 %v11212_v22, %v8914_v23  ;;  %v11542_v2 = vld [vmem:[#allocation2 + $0x16a4] sm:$0xf]  ;;  %v10234_v3 = vld [vmem:[#allocation2 + $0x177c] sm:$0xf0] }
 0x118   :  { %5895 = vmatpush.bf16.msra.mxu0 %v8025_v28  ;;  %v8913_v28 = vor.u32 %v11239_v15, %v8912_v14  ;;  %v7075_v52 = vmul.f32 0.5, %v7020_v32  ;;  %v10012_v14 = vld [vmem:[#allocation2 + $0x14e8] sm:$0xf]  ;;  %v11514_v15 = vld [vmem:[#allocation2 + $0x15c0] sm:$0xf0]  ;;  %v10237_v16 = vor.u32 %v11542_v2, %v10234_v3 }
 0x119   :  { %5908 = vmatpush.bf16.msra.mxu1 %v9785_v31  ;;  %v7369_v31 = vor.u32 %v10826_v10, %v7366_v11  ;;  %v7076_v56 = vmul.f32 0.5, %v7021_v38  ;;  %v11074_v10 = vld [vmem:[#allocation2 + $0x800] sm:$0xf0]  ;;  %v11487_v23 = vld [vmem:[#allocation2 + $0x14ec] sm:$0xf]  ;;  %v10013_v25 = vor.u32 %v11514_v15, %v10012_v14 }
 0x11a   :  { %5921 = vmatpush.bf16.msra.mxu2 %v8029_v37  ;;  %v11714_v37 = vpop.eup %11713  ;;  %v7183_v7 = vrot.slane %v7075_v52, 6  ;;  %v8253_v22 = vor.u32 %v11074_v10, %v8252_v9  ;;  %v10017_v32 = vor.u32 %v11487_v23, %v10014_v24  ;;  %v10854_v2 = vld [vmem:[#allocation2 + $0x120] sm:$0xf0]  ;;  %v10827_v10 = vld [vmem:[#allocation2 + $0x4c] sm:$0xf] }
 0x11b   :  { %5934 = vmatpush.bf16.msra.mxu3 %v9789_v40  ;;  %v9129_v40 = vor.u32 %v11266_v4, %v9126_v41  ;;  %v7019_v51 = vadd.f32 1.0, %v11714_v37  ;;  %v11716_v60 = vpop.eup %11715  ;;  %v7184_v11 = vrot.slane %v7076_v56, 4  ;;  %v11019_v4 = vld [vmem:[#allocation2 + $0x648] sm:$0xf0]  ;;  %v9794_v37 = vld [vmem:[#allocation2 + $0x140c] sm:$0xf0] }
 0x11c   :  { %5896 = vmatpush.bf16.msra.mxu0 %v7805_v46  ;;  %v5681_v46 = vpop.f32.mrf.mxu3  ;;  %v7022_v63 = vadd.f32 1.0, %v11716_v60  ;;  %v9797_v44 = vor.u32 %v11432_v36, %v9794_v37  ;;  %v9352_v56 = vld [vmem:[#allocation2 + $0xfc0] sm:$0xf]  ;;  %v11294_v9 = vld [vmem:[#allocation2 + $0xee0] sm:$0xf0] }
 0x11d   :  { %5909 = vmatpush.bf16.msra.mxu1 %v9565_v49  ;;  %v10454_v49 = vld [vmem:[#allocation2 + $0x1934] sm:$0xf0]  ;;  %v7074_v5 = vmul.f32 0.5, %v7019_v51  ;;  %v7594_v60 = vld [vmem:[#allocation2 + $0x2dc] sm:$0xf0] }
 0x11e   :  { %5922 = vmatpush.bf16.msra.mxu2 %v7809_v55  ;;  %v11129_v55 = vld [vmem:[#allocation2 + $0x9b8] sm:$0xf0]  ;;  %v10457_v35 = vor.u32 %v11597_v48, %v10454_v49  ;;  %v7077_v12 = vmul.f32 0.5, %v7022_v63  ;;  %v7814_v46 = vld [vmem:[#allocation2 + $0x494] sm:$0xf0] }
 0x11f   :  { %5935 = vmatpush.bf16.msra.mxu3 %v9569_v59  ;;  %v11569_v59 = vld [vmem:[#allocation2 + $0x1778] sm:$0xf0]  ;;  %v7227_v41 = vsel %vm7221_vm0, %v7074_v5, %v7183_v7  ;;  %v9574_v51 = vld [vmem:[#allocation2 + $0x1254] sm:$0xf0]  ;;  %v9354_v63 = vld [vmem:[#allocation2 + $0x109c] sm:$0xf0] }
 0x120   :  { %5897 = vmatpush.bf16.msra.mxu0 %v7585_v1  ;;  %v8473_v1 = vor.u32 %v11129_v55, %v8472_v54  ;;  %v7185_v21 = vrot.slane %v7077_v12, 2  ;;  %v11377_v49 = vld [vmem:[#allocation2 + $0x117c] sm:$0xf]  ;;  %v7817_v55 = vor.u32 %v10937_v45, %v7814_v46  ;;  %v7374_v12 = vld [vmem:[#allocation2 + $0x124] sm:$0xf0] }
 0x121   :  { %5910 = vmatpush.bf16.msra.mxu1 %v9345_v8  ;;  %v10233_v8 = vor.u32 %v11569_v59, %v10232_v58  ;;  %v10909_v54 = vld [vmem:[#allocation2 + $0x2d8] sm:$0xf0]  ;;  %v9577_v58 = vor.u32 %v11377_v49, %v9574_v51  ;;  %v10882_v59 = vld [vmem:[#allocation2 + $0x204] sm:$0xf]  ;;  %v11240_v14 = vld [vmem:[#allocation2 + $0xd30] sm:$0xf0] }
 0x122   :  { %5923 = vmatpush.bf16.msra.mxu2 %v7589_v0  ;;  %v8477_v0 = vor.u32 %v11102_v61, %v8474_v62  ;;  %v8922_v23 = vld [vmem:[#allocation2 + $0xd34] sm:$0xf0]  ;;  %v11267_v24 = vld [vmem:[#allocation2 + $0xe0c] sm:$0xf]  ;;  %v11625_v36 = vld [vmem:[#allocation2 + $0x1938] sm:$0xf0] }
 0x123   :  { %5936 = vmatpush.bf16.msra.mxu3 %v9349_v20  ;;  %v8254_v20 = vld [vmem:[#allocation2 + $0x804] sm:$0xf0]  ;;  %v11130_v49 = vld [vmem:[#allocation2 + $0x9c0] sm:$0xf0] }
 0x124   :  { %5898 = vmatpush.bf16.msra.mxu0 %v7365_v26  ;;  %v8032_v26 = vld [vmem:[#allocation2 + $0x570] sm:$0xf]  ;;  %v11952_v38 = vpop.f32.mrf.mxu0 }
 0x125   :  { %5911 = vmatpush.bf16.msra.mxu1 %v9125_v27  ;;  %v7228_v27 = vsel %vm7223_vm1, %v7184_v11, %v7185_v21  ;;  %v8033_v34 = vor.u32 %v11019_v4, %v8032_v26  ;;  %v7597_v11 = vor.u32 %v10882_v59, %v7594_v60  ;;  %v11543_v59 = vld [vmem:[#allocation2 + $0x16ac] sm:$0xf]  ;;  %v10242_v60 = vld [vmem:[#allocation2 + $0x1784] sm:$0xf0] }
 0x126   :  { %5924 = vmatpush.bf16.msra.mxu2 %v7369_v31  ;;  %v7229_v30 = vsel %vm7225_vm2, %v7227_v41, %v7228_v27  ;;  %v10992_v31 = vld [vmem:[#allocation2 + $0x574] sm:$0xf]  ;;  %v11653_v41 = vld [vmem:[#allocation2 + $0x1a1c] sm:$0xf]  ;;  %v10682_v27 = vld [vmem:[#allocation2 + $0x1af4] sm:$0xf0] }
 0x127   :  { %5937 = vmatpush.bf16.msra.mxu3 %v9129_v40  ;;  %5899 = vmatmul.bf16.vlgmr.msra.gmra.mxu0 %v11866_v17  ;;  %7280 = vst [vmem:[%s12285_s3 + $0x8] sm:$0xff] %v7229_v30  ;;  %v7812_v40 = vld [vmem:[#allocation2 + $0x3b8] sm:$0xf]  ;;  %v11185_v30 = vld [vmem:[#allocation2 + $0xb78] sm:$0xf0] }
 0x128   :  { %5943 = vmatpush.bf16.msrb.mxu0 %v8913_v28  ;;  %5912 = vmatmul.bf16.vlgmr.msra.gmra.mxu1 %v11868_v19  ;;  %v8257_v28 = vor.u32 %v11047_v18, %v8254_v20  ;;  %v7813_v48 = vor.u32 %v10964_v42, %v7812_v40  ;;  %v11680_v18 = vld [vmem:[#allocation2 + $0x1af0] sm:$0xf0]  ;;  %v11213_v20 = vld [vmem:[#allocation2 + $0xc5c] sm:$0xf]  ;;  %v11158_v40 = vld [vmem:[#allocation2 + $0xaa4] sm:$0xf] }
 0x129   :  { %5956 = vmatpush.bf16.msrb.mxu1 %v10673_v33  ;;  %5925 = vmatmul.bf16.vlgmr.msra.gmra.mxu2 %v11866_v17  ;;  %v8034_v33 = vld [vmem:[#allocation2 + $0x64c] sm:$0xf0]  ;;  %v8702_v42 = vld [vmem:[#allocation2 + $0xb7c] sm:$0xf0] }
 0x12a   :  { %5969 = vmatpush.bf16.msrb.mxu2 %v8917_v39  ;;  %5938 = vmatmul.bf16.vlgmr.msra.gmra.mxu3 %v11868_v19  ;;  %v9793_v39 = vor.u32 %v11459_v6, %v9792_v29  ;;  %v8037_v43 = vor.u32 %v10992_v31, %v8034_v33  ;;  %v8700_v6 = vld [vmem:[#allocation2 + $0xaa0] sm:$0xf]  ;;  %v8705_v51 = vor.u32 %v11158_v40, %v8702_v42  ;;  %v10938_v40 = vld [vmem:[#allocation2 + $0x3c4] sm:$0xf] }
 0x12b   :  { %5982 = vmatpush.bf16.msrb.mxu3 %v10677_v13  ;;  %v11404_v13 = vld [vmem:[#allocation2 + $0x1250] sm:$0xf0]  ;;  %v11963_v31 = vld [vmem:[%s12284_s2 + $0x8] sm:$0xff] }
 0x12c   :  { %5944 = vmatpush.bf16.msrb.mxu0 %v8693_v47  ;;  %v11954_v47 = vpop.f32.mrf.mxu1  ;;  %v9573_v52 = vor.u32 %v11404_v13, %v9572_v50  ;;  %v11956_v61 = vpop.f32.mrf.mxu2  ;;  %v8701_v50 = vor.u32 %v11185_v30, %v8700_v6  ;;  %v11598_v13 = vld [vmem:[#allocation2 + $0x1864] sm:$0xf]  ;;  %v958_v45 = vperm.slane %v11963_v31, 1  ;;  %v7820_v30 = vld [vmem:[#allocation2 + $0x3c0] sm:$0xf] }
 0x12d   :  { %5957 = vmatpush.bf16.msrb.mxu1 %v10453_v53  ;;  %v7592_v53 = vld [vmem:[#allocation2 + $0x200] sm:$0xf]  ;;  %v11958_v3 = vpop.f32.mrf.mxu3  ;;  %v5694_v5 = vpop.f32.mrf.mxu0 }
 0x12e   :  { %5970 = vmatpush.bf16.msrb.mxu2 %v8697_v57  ;;  %v11349_v57 = vld [vmem:[#allocation2 + $0x1098] sm:$0xf0]  ;;  %v7593_v62 = vor.u32 %v10909_v54, %v7592_v53  ;;  %v11570_v53 = vld [vmem:[#allocation2 + $0x1780] sm:$0xf0]  ;;  %v10020_v5 = vld [vmem:[#allocation2 + $0x14f0] sm:$0xf] }
 0x12f   :  { %5983 = vmatpush.bf16.msrb.mxu3 %v10457_v35  ;;  %v11322_v35 = vld [vmem:[#allocation2 + $0xfc4] sm:$0xf]  ;;  %v9353_v7 = vor.u32 %v11349_v57, %v9352_v56  ;;  %v8482_v56 = vld [vmem:[#allocation2 + $0x9c4] sm:$0xf0]  ;;  %v957_v57 = vperm.slane %v11963_v31, 0 }
 0x130   :  { %5945 = vmatpush.bf16.msrb.mxu0 %v8473_v1  ;;  %v7372_v1 = vld [vmem:[#allocation2 + $0x48] sm:$0xf]  ;;  %v9357_v15 = vor.u32 %v11322_v35, %v9354_v63  ;;  %v5719_v35 = vadd.f32 %v11956_v61, %v958_v45  ;;  %v8260_v63 = vld [vmem:[#allocation2 + $0x730] sm:$0xf]  ;;  %v9582_v45 = vld [vmem:[#allocation2 + $0x125c] sm:$0xf0] }
 0x131   :  { %5958 = vmatpush.bf16.msrb.mxu1 %v10233_v8  ;;  %v9132_v8 = vld [vmem:[#allocation2 + $0xe08] sm:$0xf] }
 0x132   :  { %5971 = vmatpush.bf16.msrb.mxu2 %v8477_v0  ;;  %v8920_v0 = vld [vmem:[#allocation2 + $0xc58] sm:$0xf]  ;;  %v9133_v26 = vor.u32 %v11294_v9, %v9132_v8  ;;  %v10245_v8 = vor.u32 %v11543_v59, %v10242_v60  ;;  %v11048_v9 = vld [vmem:[#allocation2 + $0x734] sm:$0xf]  ;;  %v11323_v59 = vld [vmem:[#allocation2 + $0xfcc] sm:$0xf] }
 0x133   :  { %5984 = vmatpush.bf16.msrb.mxu3 %v10237_v16  ;;  %v10680_v16 = vld [vmem:[#allocation2 + $0x1a18] sm:$0xf]  ;;  %v8921_v4 = vor.u32 %v11240_v14, %v8920_v0  ;;  %v10022_v0 = vld [vmem:[#allocation2 + $0x15cc] sm:$0xf0]  ;;  %v5732_v14 = vadd.f32 %v11958_v3, %v5719_v35  ;;  %v11433_v3 = vld [vmem:[#allocation2 + $0x133c] sm:$0xf] }
 0x134   :  { %5946 = vmatpush.bf16.msrb.mxu0 %v8253_v22  ;;  %v5707_v21 = vpop.f32.mrf.mxu1  ;;  %v7373_v22 = vor.u32 %v10854_v2, %v7372_v1  ;;  %v10681_v29 = vor.u32 %v11680_v18, %v10680_v16  ;;  %v5720_v37 = vpop.f32.mrf.mxu2  ;;  %v11075_v1 = vld [vmem:[#allocation2 + $0x808] sm:$0xf0]  ;;  %v8040_v16 = vld [vmem:[#allocation2 + $0x578] sm:$0xf]  ;;  %v11020_v18 = vld [vmem:[#allocation2 + $0x650] sm:$0xf0] }
 0x135   :  { %5959 = vmatpush.bf16.msrb.mxu1 %v10013_v25  ;;  %v9134_v25 = vld [vmem:[#allocation2 + $0xee4] sm:$0xf0]  ;;  %v8261_v61 = vor.u32 %v11075_v1, %v8260_v63  ;;  %v7380_v1 = vld [vmem:[#allocation2 + $0x50] sm:$0xf] }
 0x136   :  { %5972 = vmatpush.bf16.msrb.mxu2 %v8257_v28  ;;  %v7377_v28 = vor.u32 %v10827_v10, %v7374_v12  ;;  %v9137_v33 = vor.u32 %v11267_v24, %v9134_v25  ;;  %v8262_v10 = vld [vmem:[#allocation2 + $0x80c] sm:$0xf0]  ;;  %v11488_v12 = vld [vmem:[#allocation2 + $0x14f4] sm:$0xf]  ;;  %v10993_v25 = vld [vmem:[#allocation2 + $0x57c] sm:$0xf] }
 0x137   :  { %5985 = vmatpush.bf16.msrb.mxu3 %v10017_v32  ;;  %v8925_v32 = vor.u32 %v11213_v20, %v8922_v23  ;;  %v959_v20 = vperm.slane %v11963_v31, 2  ;;  %v8265_v21 = vor.u32 %v11048_v9, %v8262_v10  ;;  %v11460_v23 = vld [vmem:[#allocation2 + $0x1410] sm:$0xf0]  ;;  %v10025_v24 = vor.u32 %v11488_v12, %v10022_v0  ;;  %v9362_v60 = vld [vmem:[#allocation2 + $0x10a4] sm:$0xf0] }
 0x138   :  { %5947 = vmatpush.bf16.msrb.mxu0 %v8033_v34  ;;  %v10460_v34 = vld [vmem:[#allocation2 + $0x1860] sm:$0xf]  ;;  %v11295_v9 = vld [vmem:[#allocation2 + $0xee8] sm:$0xf0]  ;;  %v10828_v10 = vld [vmem:[#allocation2 + $0x54] sm:$0xf] }
 0x139   :  { %5960 = vmatpush.bf16.msrb.mxu1 %v9793_v39  ;;  %v10685_v39 = vor.u32 %v11653_v41, %v10682_v27  ;;  %v10461_v46 = vor.u32 %v11625_v36, %v10460_v34  ;;  %v9802_v27 = vld [vmem:[#allocation2 + $0x1414] sm:$0xf0]  ;;  %v9580_v34 = vld [vmem:[#allocation2 + $0x1180] sm:$0xf]  ;;  %v11405_v36 = vld [vmem:[#allocation2 + $0x1258] sm:$0xf0] }
 0x13a   :  { %5973 = vmatpush.bf16.msrb.mxu2 %v8037_v43  ;;  %v5733_v43 = vpop.f32.mrf.mxu3  ;;  %v9805_v37 = vor.u32 %v11433_v3, %v9802_v27  ;;  %v8928_v0 = vld [vmem:[#allocation2 + $0xc60] sm:$0xf]  ;;  %v11654_v3 = vld [vmem:[#allocation2 + $0x1a24] sm:$0xf] }
 0x13b   :  { %5986 = vmatpush.bf16.msrb.mxu3 %v9797_v44  ;;  %v10462_v44 = vld [vmem:[#allocation2 + $0x193c] sm:$0xf0]  ;;  %v960_v43 = vperm.slane %v11963_v31, 3 }
 0x13c   :  { %5948 = vmatpush.bf16.msrb.mxu0 %v7813_v48  ;;  %v8480_v48 = vld [vmem:[#allocation2 + $0x8e8] sm:$0xf]  ;;  %v10465_v54 = vor.u32 %v11598_v13, %v10462_v44  ;;  %v11378_v44 = vld [vmem:[#allocation2 + $0x1184] sm:$0xf]  ;;  %v10690_v27 = vld [vmem:[#allocation2 + $0x1afc] sm:$0xf0] }
 0x13d   :  { %5961 = vmatpush.bf16.msrb.mxu1 %v9573_v52  ;;  %v10240_v52 = vld [vmem:[#allocation2 + $0x16a8] sm:$0xf] }
 0x13e   :  { %5974 = vmatpush.bf16.msrb.mxu2 %v7817_v55  ;;  %v11103_v55 = vld [vmem:[#allocation2 + $0x8ec] sm:$0xf] }
 0x13f   :  { %5987 = vmatpush.bf16.msrb.mxu3 %v9577_v58  ;;  %v8481_v58 = vor.u32 %v11130_v49, %v8480_v48  ;;  %v8485_v2 = vor.u32 %v11103_v55, %v8482_v56  ;;  %v7600_v48 = vld [vmem:[#allocation2 + $0x208] sm:$0xf]  ;;  %v10910_v49 = vld [vmem:[#allocation2 + $0x2e0] sm:$0xf0]  ;;  %v10883_v55 = vld [vmem:[#allocation2 + $0x20c] sm:$0xf] }
 0x140   :  { %5949 = vmatpush.bf16.msrb.mxu0 %v7593_v62  ;;  %v10241_v62 = vor.u32 %v11570_v53, %v10240_v52  ;;  %v7601_v63 = vor.u32 %v10910_v49, %v7600_v48  ;;  %v10470_v48 = vld [vmem:[#allocation2 + $0x1944] sm:$0xf0] }
 0x141   :  { %5962 = vmatpush.bf16.msrb.mxu1 %v9353_v7  ;;  %v11515_v7 = vld [vmem:[#allocation2 + $0x15c8] sm:$0xf0] }
 0x142   :  { %5975 = vmatpush.bf16.msrb.mxu2 %v7597_v11  ;;  %v5693_v11 = vadd.f32 %v11952_v38, %v957_v57  ;;  %v8042_v38 = vld [vmem:[#allocation2 + $0x654] sm:$0xf0]  ;;  %v9585_v57 = vor.u32 %v11378_v44, %v9582_v45 }
 0x143   :  { %5988 = vmatpush.bf16.msrb.mxu3 %v9357_v15  ;;  %v10021_v15 = vor.u32 %v11515_v7, %v10020_v5  ;;  %v9140_v5 = vld [vmem:[#allocation2 + $0xe10] sm:$0xf] }
 0x144   :  { %5950 = vmatpush.bf16.msrb.mxu0 %v7373_v22  ;;  %v9800_v22 = vld [vmem:[#allocation2 + $0x1338] sm:$0xf]  ;;  %v5744_v41 = vpop.f32.mrf.mxu0 }
 0x145   :  { %5963 = vmatpush.bf16.msrb.mxu1 %v9133_v26  ;;  %v5706_v26 = vadd.f32 %v11954_v47, %v5693_v11  ;;  %v5745_v6 = vadd.f32 %v5744_v41, %v959_v20  ;;  %v7822_v47 = vld [vmem:[#allocation2 + $0x49c] sm:$0xf0]  ;;  %v7382_v11 = vld [vmem:[#allocation2 + $0x12c] sm:$0xf0]  ;;  %v11681_v20 = vld [vmem:[#allocation2 + $0x1af8] sm:$0xf0] }
 0x146   :  { %5976 = vmatpush.bf16.msrb.mxu2 %v7377_v28  ;;  %v6914_v28 = vmul.f32 0.5, %v5732_v14  ;;  %v7825_v53 = vor.u32 %v10938_v40, %v7822_v47  ;;  %v11241_v14 = vld [vmem:[#allocation2 + $0xd38] sm:$0xf0]  ;;  %v10468_v40 = vld [vmem:[#allocation2 + $0x1868] sm:$0xf] }
 0x147   :  { %5989 = vmatpush.bf16.msrb.mxu3 %v9137_v33  ;;  %5951 = vmatmul.bf16.vlgmr.msrb.gmra.mxu0 %v11866_v17  ;;  %v8045_v33 = vor.u32 %v10993_v25, %v8042_v38  ;;  %v6913_v42 = vmul.f32 0.5, %v5706_v26  ;;  %v11268_v38 = vld [vmem:[#allocation2 + $0xe14] sm:$0xf]  ;;  %v9142_v26 = vld [vmem:[#allocation2 + $0xeec] sm:$0xf0]  ;;  %v8929_v41 = vor.u32 %v11241_v14, %v8928_v0 }
 0x148   :  { %5995 = vmatpush.bf16.msra.mxu0 %v8921_v4  ;;  %5964 = vmatmul.bf16.vlgmr.msrb.gmra.mxu1 %v11868_v19  ;;  %v8041_v4 = vor.u32 %v11020_v18, %v8040_v16  ;;  %11717 = vtanh.f32 %v6914_v28  ;;  %v9365_v18 = vor.u32 %v11323_v59, %v9362_v60  ;;  %v11626_v47 = vld [vmem:[#allocation2 + $0x1940] sm:$0xf0]  ;;  %v10028_v14 = vld [vmem:[#allocation2 + $0x14f8] sm:$0xf] }
 0x149   :  { %6008 = vmatpush.bf16.msra.mxu1 %v10681_v29  ;;  %5977 = vmatmul.bf16.vlgmr.msrb.gmra.mxu2 %v11866_v17  ;;  %v9801_v29 = vor.u32 %v11460_v23, %v9800_v22  ;;  %v8930_v22 = vld [vmem:[#allocation2 + $0xd3c] sm:$0xf0] }
 0x14a   :  { %6021 = vmatpush.bf16.msra.mxu2 %v8925_v32  ;;  %5990 = vmatmul.bf16.vlgmr.msrb.gmra.mxu3 %v11868_v19  ;;  %v10965_v32 = vld [vmem:[#allocation2 + $0x498] sm:$0xf0] }
 0x14b   :  { %6034 = vmatpush.bf16.msra.mxu3 %v10685_v39  ;;  %v5757_v39 = vpop.f32.mrf.mxu1  ;;  %v7821_v13 = vor.u32 %v10965_v32, %v7820_v30  ;;  %v8708_v32 = vld [vmem:[#allocation2 + $0xaa8] sm:$0xf] }
 0x14c   :  { %5996 = vmatpush.bf16.msra.mxu0 %v8701_v50  ;;  %v5758_v50 = vadd.f32 %v5757_v39, %v5745_v6  ;;  %v5770_v56 = vpop.f32.mrf.mxu2  ;;  %v5746_v7 = vpop.f32.mrf.mxu0  ;;  %v7385_v6 = vor.u32 %v10828_v10, %v7382_v11  ;;  %v9145_v39 = vor.u32 %v11268_v38, %v9142_v26  ;;  %v8268_v10 = vld [vmem:[#allocation2 + $0x738] sm:$0xf]  ;;  %v11076_v11 = vld [vmem:[#allocation2 + $0x810] sm:$0xf0]  ;;  %v8048_v38 = vld [vmem:[#allocation2 + $0x580] sm:$0xf] }
 0x14d   :  { %6009 = vmatpush.bf16.msra.mxu1 %v10461_v46  ;;  %v9581_v46 = vor.u32 %v11405_v36, %v9580_v34  ;;  %v5771_v35 = vadd.f32 %v5770_v56, %v960_v43  ;;  %v10693_v43 = vor.u32 %v11654_v3, %v10690_v27  ;;  %v11021_v26 = vld [vmem:[#allocation2 + $0x658] sm:$0xf0]  ;;  %v9808_v27 = vld [vmem:[#allocation2 + $0x1340] sm:$0xf] }
 0x14e   :  { %6022 = vmatpush.bf16.msra.mxu2 %v8705_v51  ;;  %v9360_v51 = vld [vmem:[#allocation2 + $0xfc8] sm:$0xf]  ;;  %v6915_v52 = vmul.f32 0.5, %v5758_v50  ;;  %v11718_v16 = vpop.eup %11717  ;;  %v11159_v50 = vld [vmem:[#allocation2 + $0xaac] sm:$0xf] }
 0x14f   :  { %6035 = vmatpush.bf16.msra.mxu3 %v10465_v54  ;;  %v11350_v54 = vld [vmem:[#allocation2 + $0x10a0] sm:$0xf0] }
 0x150   :  { %5997 = vmatpush.bf16.msra.mxu0 %v8481_v58  ;;  %v7602_v58 = vld [vmem:[#allocation2 + $0x2e4] sm:$0xf0]  ;;  %11719 = vtanh.f32 %v6915_v52  ;;  %v10469_v52 = vor.u32 %v11626_v47, %v10468_v40  ;;  %v10966_v47 = vld [vmem:[#allocation2 + $0x4a0] sm:$0xf0] }
 0x151   :  { %6010 = vmatpush.bf16.msra.mxu1 %v10241_v62  ;;  %v5783_v62 = vpop.f32.mrf.mxu3  ;;  %11721 = vtanh.f32 %v6913_v42  ;;  %v7605_v12 = vor.u32 %v10883_v55, %v7602_v58  ;;  %v11571_v58 = vld [vmem:[#allocation2 + $0x1788] sm:$0xf0]  ;;  %v7828_v40 = vld [vmem:[#allocation2 + $0x3c8] sm:$0xf] }
 0x152   :  { %6023 = vmatpush.bf16.msra.mxu2 %v8485_v2  ;;  %v10855_v2 = vld [vmem:[#allocation2 + $0x128] sm:$0xf0] }
 0x153   :  { %6036 = vmatpush.bf16.msra.mxu3 %v10245_v8  ;;  %v9361_v8 = vor.u32 %v11350_v54, %v9360_v51  ;;  %v5759_v23 = vpop.f32.mrf.mxu1  ;;  %v7381_v25 = vor.u32 %v10855_v2, %v7380_v1  ;;  %v11131_v54 = vld [vmem:[#allocation2 + $0x9c8] sm:$0xf0]  ;;  %v11544_v2 = vld [vmem:[#allocation2 + $0x16b4] sm:$0xf] }
 0x154   :  { %5998 = vmatpush.bf16.msra.mxu0 %v8261_v61  ;;  %v5784_v61 = vadd.f32 %v5783_v62, %v5771_v35  ;;  %v5772_v42 = vpop.f32.mrf.mxu2  ;;  %v11104_v35 = vld [vmem:[#allocation2 + $0x8f4] sm:$0xf]  ;;  %v8490_v62 = vld [vmem:[#allocation2 + $0x9cc] sm:$0xf0]  ;;  %v11489_v23 = vld [vmem:[#allocation2 + $0x14fc] sm:$0xf] }
 0x155   :  { %6011 = vmatpush.bf16.msra.mxu1 %v10021_v15  ;;  %v10688_v15 = vld [vmem:[#allocation2 + $0x1a20] sm:$0xf]  ;;  %v8493_v0 = vor.u32 %v11104_v35, %v8490_v62  ;;  %v11324_v35 = vld [vmem:[#allocation2 + $0xfd4] sm:$0xf] }
 0x156   :  { %6024 = vmatpush.bf16.msra.mxu2 %v8265_v21  ;;  %v11214_v21 = vld [vmem:[#allocation2 + $0xc64] sm:$0xf]  ;;  %v11720_v28 = vpop.eup %11719  ;;  %v10689_v30 = vor.u32 %v11681_v20, %v10688_v15  ;;  %v11516_v15 = vld [vmem:[#allocation2 + $0x15d0] sm:$0xf0]  ;;  %v8270_v20 = vld [vmem:[#allocation2 + $0x814] sm:$0xf0] }
 0x157   :  { %6037 = vmatpush.bf16.msra.mxu3 %v10025_v24  ;;  %v6916_v24 = vmul.f32 0.5, %v5784_v61  ;;  %v11722_v34 = vpop.eup %11721  ;;  %v7025_v36 = vadd.f32 1.0, %v11720_v28  ;;  %v11461_v28 = vld [vmem:[#allocation2 + $0x1418] sm:$0xf0] }
 0x158   :  { %5999 = vmatpush.bf16.msra.mxu0 %v8041_v4  ;;  %v9141_v4 = vor.u32 %v11295_v9, %v9140_v5  ;;  %v7023_v49 = vadd.f32 1.0, %v11722_v34  ;;  %v10250_v5 = vld [vmem:[#allocation2 + $0x178c] sm:$0xf0]  ;;  %v11434_v34 = vld [vmem:[#allocation2 + $0x1344] sm:$0xf] }
 0x159   :  { %6012 = vmatpush.bf16.msra.mxu1 %v9801_v29  ;;  %v7024_v29 = vadd.f32 1.0, %v11718_v16  ;;  %11723 = vtanh.f32 %v6916_v24  ;;  %v5785_v44 = vpop.f32.mrf.mxu3  ;;  %v7080_v55 = vmul.f32 0.5, %v7025_v36  ;;  %v10253_v16 = vor.u32 %v11544_v2, %v10250_v5  ;;  %v10030_v24 = vld [vmem:[#allocation2 + $0x15d4] sm:$0xf0]  ;;  %v9810_v36 = vld [vmem:[#allocation2 + $0x141c] sm:$0xf0] }
 0x15a   :  { %6025 = vmatpush.bf16.msra.mxu2 %v8045_v33  ;;  %v11186_v33 = vld [vmem:[#allocation2 + $0xb80] sm:$0xf0]  ;;  %v7078_v7 = vmul.f32 0.5, %v7023_v49  ;;  %v10939_v44 = vld [vmem:[#allocation2 + $0x3cc] sm:$0xf] }
 0x15b   :  { %6038 = vmatpush.bf16.msra.mxu3 %v9805_v37  ;;  %v8933_v37 = vor.u32 %v11214_v21, %v8930_v22  ;;  %v8709_v45 = vor.u32 %v11186_v33, %v8708_v32  ;;  %v7079_v51 = vmul.f32 0.5, %v7024_v29  ;;  %v7187_v61 = vrot.slane %v7080_v55, 4  ;;  %v8050_v32 = vld [vmem:[#allocation2 + $0x65c] sm:$0xf0]  ;;  %v11379_v49 = vld [vmem:[#allocation2 + $0x118c] sm:$0xf] }
 0x15c   :  { %6000 = vmatpush.bf16.msra.mxu0 %v7821_v13  ;;  %v8710_v13 = vld [vmem:[#allocation2 + $0xb84] sm:$0xf0]  ;;  %v8269_v22 = vor.u32 %v11076_v11, %v8268_v10  ;;  %v8049_v33 = vor.u32 %v11021_v26, %v8048_v38  ;;  %v7388_v2 = vld [vmem:[#allocation2 + $0x58] sm:$0xf]  ;;  %v10856_v5 = vld [vmem:[#allocation2 + $0x130] sm:$0xf0] }
 0x15d   :  { %6013 = vmatpush.bf16.msra.mxu1 %v9581_v46  ;;  %v11599_v46 = vld [vmem:[#allocation2 + $0x186c] sm:$0xf]  ;;  %v8713_v56 = vor.u32 %v11159_v50, %v8710_v13  ;;  %v11406_v50 = vld [vmem:[#allocation2 + $0x1260] sm:$0xf0]  ;;  %v9813_v13 = vor.u32 %v11434_v34, %v9810_v36  ;;  %v9148_v10 = vld [vmem:[#allocation2 + $0xe18] sm:$0xf] }
 0x15e   :  { %6026 = vmatpush.bf16.msra.mxu2 %v7825_v53  ;;  %v8488_v53 = vld [vmem:[#allocation2 + $0x8f0] sm:$0xf]  ;;  %v10473_v60 = vor.u32 %v11599_v46, %v10470_v48  ;;  %v7829_v48 = vor.u32 %v10966_v47, %v7828_v40  ;;  %v11296_v11 = vld [vmem:[#allocation2 + $0xef0] sm:$0xf0]  ;;  %v9150_v38 = vld [vmem:[#allocation2 + $0xef4] sm:$0xf0] }
 0x15f   :  { %6039 = vmatpush.bf16.msra.mxu3 %v9585_v57  ;;  %v10248_v57 = vld [vmem:[#allocation2 + $0x16b0] sm:$0xf]  ;;  %v11724_v59 = vpop.eup %11723  ;;  %v8489_v1 = vor.u32 %v11131_v54, %v8488_v53  ;;  %v10911_v54 = vld [vmem:[#allocation2 + $0x2e8] sm:$0xf0]  ;;  %v9149_v26 = vor.u32 %v11296_v11, %v9148_v10  ;;  %v11160_v40 = vld [vmem:[#allocation2 + $0xab4] sm:$0xf] }
 0x160   :  { %6001 = vmatpush.bf16.msra.mxu0 %v7601_v63  ;;  %v7026_v63 = vadd.f32 1.0, %v11724_v59  ;;  %v10249_v9 = vor.u32 %v11571_v58, %v10248_v57  ;;  %v7608_v53 = vld [vmem:[#allocation2 + $0x210] sm:$0xf]  ;;  %v11351_v57 = vld [vmem:[#allocation2 + $0x10a8] sm:$0xf0] }
 0x161   :  { %6014 = vmatpush.bf16.msra.mxu1 %v9361_v8  ;;  %v7186_v8 = vrot.slane %v7079_v51, 6  ;;  %v9590_v51 = vld [vmem:[#allocation2 + $0x1264] sm:$0xf0]  ;;  %v10884_v59 = vld [vmem:[#allocation2 + $0x214] sm:$0xf] }
 0x162   :  { %6027 = vmatpush.bf16.msra.mxu2 %v7605_v12  ;;  %v7081_v12 = vmul.f32 0.5, %v7026_v63  ;;  %v9593_v58 = vor.u32 %v11379_v49, %v9590_v51  ;;  %v7609_v63 = vor.u32 %v10911_v54, %v7608_v53  ;;  %v11627_v34 = vld [vmem:[#allocation2 + $0x1948] sm:$0xf0]  ;;  %v8718_v47 = vld [vmem:[#allocation2 + $0xb8c] sm:$0xf0] }
 0x163   :  { %6040 = vmatpush.bf16.msra.mxu3 %v9365_v18  ;;  %v11049_v18 = vld [vmem:[#allocation2 + $0x73c] sm:$0xf]  ;;  %v11132_v49 = vld [vmem:[#allocation2 + $0x9d0] sm:$0xf0]  ;;  %v8721_v51 = vor.u32 %v11160_v40, %v8718_v47  ;;  %v11050_v11 = vld [vmem:[#allocation2 + $0x744] sm:$0xf] }
 0x164   :  { %6002 = vmatpush.bf16.msra.mxu0 %v7381_v25  ;;  %v7188_v21 = vrot.slane %v7081_v12, 2  ;;  %v10029_v25 = vor.u32 %v11516_v15, %v10028_v14  ;;  %v8273_v3 = vor.u32 %v11049_v18, %v8270_v20  ;;  %v8936_v14 = vld [vmem:[#allocation2 + $0xc68] sm:$0xf]  ;;  %v11242_v15 = vld [vmem:[#allocation2 + $0xd40] sm:$0xf0] }
 0x165   :  { %6015 = vmatpush.bf16.msra.mxu1 %v9141_v4  ;;  %v7230_v4 = vsel %vm7221_vm0, %v7078_v7, %v7186_v8  ;;  %v11989_v46 = vpop.f32.mrf.mxu1  ;;  %v10696_v18 = vld [vmem:[#allocation2 + $0x1a28] sm:$0xf]  ;;  %v11682_v20 = vld [vmem:[#allocation2 + $0x1b00] sm:$0xf0]  ;;  %v11572_v53 = vld [vmem:[#allocation2 + $0x1790] sm:$0xf0] }
 0x166   :  { %6028 = vmatpush.bf16.msra.mxu2 %v7385_v6  ;;  %v10033_v6 = vor.u32 %v11489_v23, %v10030_v24  ;;  %v7389_v23 = vor.u32 %v10856_v5, %v7388_v2  ;;  %v8938_v24 = vld [vmem:[#allocation2 + $0xd44] sm:$0xf0]  ;;  %v11077_v2 = vld [vmem:[#allocation2 + $0x818] sm:$0xf0]  ;;  %v10940_v40 = vld [vmem:[#allocation2 + $0x3d4] sm:$0xf] }
 0x167   :  { %6041 = vmatpush.bf16.msra.mxu3 %v9145_v39  ;;  %6003 = vmatmul.bf16.vlgmr.msra.gmra.mxu0 %v11866_v17  ;;  %v9809_v39 = vor.u32 %v11461_v28, %v9808_v27  ;;  %v10697_v28 = vor.u32 %v11682_v20, %v10696_v18  ;;  %v8056_v18 = vld [vmem:[#allocation2 + $0x588] sm:$0xf]  ;;  %v11022_v20 = vld [vmem:[#allocation2 + $0x660] sm:$0xf0] }
 0x168   :  { %6047 = vmatpush.bf16.msrb.mxu0 %v8929_v41  ;;  %6016 = vmatmul.bf16.vlgmr.msra.gmra.mxu1 %v11868_v19  ;;  %v7231_v41 = vsel %vm7223_vm1, %v7187_v61, %v7188_v21  ;;  %v10829_v61 = vld [vmem:[#allocation2 + $0x5c] sm:$0xf]  ;;  %v11215_v21 = vld [vmem:[#allocation2 + $0xc6c] sm:$0xf] }
 0x169   :  { %6060 = vmatpush.bf16.msrb.mxu1 %v10689_v30  ;;  %6029 = vmatmul.bf16.vlgmr.msra.gmra.mxu2 %v11866_v17  ;;  %v7232_v29 = vsel %vm7225_vm2, %v7230_v4, %v7231_v41  ;;  %v10994_v30 = vld [vmem:[#allocation2 + $0x584] sm:$0xf]  ;;  %v8937_v4 = vor.u32 %v11242_v15, %v8936_v14  ;;  %v11655_v41 = vld [vmem:[#allocation2 + $0x1a2c] sm:$0xf]  ;;  %v10038_v14 = vld [vmem:[#allocation2 + $0x15dc] sm:$0xf0] }
 0x16a   :  { %6073 = vmatpush.bf16.msrb.mxu2 %v8933_v37  ;;  %6042 = vmatmul.bf16.vlgmr.msra.gmra.mxu3 %v11868_v19  ;;  %7281 = vst [vmem:[%s12285_s3 + $0x10] sm:$0xff] %v7232_v29  ;;  %v11987_v37 = vpop.f32.mrf.mxu0  ;;  %v8053_v42 = vor.u32 %v10994_v30, %v8050_v32  ;;  %v8716_v29 = vld [vmem:[#allocation2 + $0xab0] sm:$0xf]  ;;  %v8941_v30 = vor.u32 %v11215_v21, %v8938_v24  ;;  %v963_v21 = vperm.slane %v11963_v31, 6  ;;  %v11462_v24 = vld [vmem:[#allocation2 + $0x1420] sm:$0xf0] }
 0x16b   :  { %6086 = vmatpush.bf16.msrb.mxu3 %v10693_v43  ;;  %v9588_v43 = vld [vmem:[#allocation2 + $0x1188] sm:$0xf] }
 0x16c   :  { %6048 = vmatpush.bf16.msrb.mxu0 %v8709_v45  ;;  %v7830_v45 = vld [vmem:[#allocation2 + $0x4a4] sm:$0xf0]  ;;  %v11991_v62 = vpop.f32.mrf.mxu2 }
 0x16d   :  { %6061 = vmatpush.bf16.msrb.mxu1 %v10469_v52  ;;  %v9589_v52 = vor.u32 %v11406_v50, %v9588_v43  ;;  %v7833_v55 = vor.u32 %v10939_v44, %v7830_v45  ;;  %v11993_v7 = vpop.f32.mrf.mxu3  ;;  %v11600_v50 = vld [vmem:[#allocation2 + $0x1874] sm:$0xf]  ;;  %v962_v44 = vperm.slane %v11963_v31, 5 }
 0x16e   :  { %6074 = vmatpush.bf16.msrb.mxu2 %v8713_v56  ;;  %v9368_v56 = vld [vmem:[#allocation2 + $0xfd0] sm:$0xf] }
 0x16f   :  { %6087 = vmatpush.bf16.msrb.mxu3 %v10473_v60  ;;  %v7610_v60 = vld [vmem:[#allocation2 + $0x2ec] sm:$0xf0] }
 0x170   :  { %6049 = vmatpush.bf16.msrb.mxu0 %v8489_v1  ;;  %v9370_v1 = vld [vmem:[#allocation2 + $0x10ac] sm:$0xf0]  ;;  %v7613_v12 = vor.u32 %v10884_v59, %v7610_v60  ;;  %v11545_v59 = vld [vmem:[#allocation2 + $0x16bc] sm:$0xf]  ;;  %v10258_v60 = vld [vmem:[#allocation2 + $0x1794] sm:$0xf0] }
 0x171   :  { %6062 = vmatpush.bf16.msrb.mxu1 %v10249_v9  ;;  %v9369_v9 = vor.u32 %v11351_v57, %v9368_v56  ;;  %v8498_v56 = vld [vmem:[#allocation2 + $0x9d4] sm:$0xf0]  ;;  %v961_v57 = vperm.slane %v11963_v31, 4  ;;  %v10261_v10 = vor.u32 %v11545_v59, %v10258_v60 }
 0x172   :  { %6075 = vmatpush.bf16.msrb.mxu2 %v8493_v0  ;;  %v5798_v8 = vpop.f32.mrf.mxu0  ;;  %v7390_v0 = vld [vmem:[#allocation2 + $0x134] sm:$0xf0] }
 0x173   :  { %6088 = vmatpush.bf16.msrb.mxu3 %v10253_v16  ;;  %v9373_v16 = vor.u32 %v11324_v35, %v9370_v1  ;;  %v7393_v27 = vor.u32 %v10829_v61, %v7390_v0  ;;  %v5823_v35 = vadd.f32 %v11991_v62, %v962_v44  ;;  %v8276_v1 = vld [vmem:[#allocation2 + $0x740] sm:$0xf]  ;;  %v11490_v0 = vld [vmem:[#allocation2 + $0x1504] sm:$0xf]  ;;  %v9598_v44 = vld [vmem:[#allocation2 + $0x126c] sm:$0xf0] }
 0x174   :  { %6050 = vmatpush.bf16.msrb.mxu0 %v8269_v22  ;;  %v5811_v22 = vpop.f32.mrf.mxu1  ;;  %v5824_v36 = vpop.f32.mrf.mxu2  ;;  %v10036_v8 = vld [vmem:[#allocation2 + $0x1500] sm:$0xf]  ;;  %v8277_v62 = vor.u32 %v11077_v2, %v8276_v1  ;;  %v9378_v59 = vld [vmem:[#allocation2 + $0x10b4] sm:$0xf0]  ;;  %v10857_v2 = vld [vmem:[#allocation2 + $0x138] sm:$0xf0] }
 0x175   :  { %6063 = vmatpush.bf16.msrb.mxu1 %v10029_v25  ;;  %v11269_v25 = vld [vmem:[#allocation2 + $0xe1c] sm:$0xf]  ;;  %v8278_v61 = vld [vmem:[#allocation2 + $0x81c] sm:$0xf0]  ;;  %v5836_v15 = vadd.f32 %v11993_v7, %v5823_v35  ;;  %v11435_v7 = vld [vmem:[#allocation2 + $0x134c] sm:$0xf] }
 0x176   :  { %6076 = vmatpush.bf16.msrb.mxu2 %v8273_v3  ;;  %v10698_v3 = vld [vmem:[#allocation2 + $0x1b04] sm:$0xf0]  ;;  %v9153_v32 = vor.u32 %v11269_v25, %v9150_v38  ;;  %v8281_v22 = vor.u32 %v11050_v11, %v8278_v61  ;;  %v10041_v25 = vor.u32 %v11490_v0, %v10038_v14  ;;  %v10995_v38 = vld [vmem:[#allocation2 + $0x58c] sm:$0xf]  ;;  %v7396_v1 = vld [vmem:[#allocation2 + $0x60] sm:$0xf] }
 0x177   :  { %6089 = vmatpush.bf16.msrb.mxu3 %v10033_v6  ;;  %v11187_v6 = vld [vmem:[#allocation2 + $0xb88] sm:$0xf0]  ;;  %v10830_v11 = vld [vmem:[#allocation2 + $0x64] sm:$0xf]  ;;  %v7398_v61 = vld [vmem:[#allocation2 + $0x13c] sm:$0xf0] }
 0x178   :  { %6051 = vmatpush.bf16.msrb.mxu0 %v8049_v33  ;;  %v10476_v33 = vld [vmem:[#allocation2 + $0x1870] sm:$0xf]  ;;  %v8717_v43 = vor.u32 %v11187_v6, %v8716_v29  ;;  %v11243_v14 = vld [vmem:[#allocation2 + $0xd48] sm:$0xf0] }
 0x179   :  { %6064 = vmatpush.bf16.msrb.mxu1 %v9809_v39  ;;  %v10701_v39 = vor.u32 %v11655_v41, %v10698_v3  ;;  %v10477_v45 = vor.u32 %v11627_v34, %v10476_v33  ;;  %v9818_v3 = vld [vmem:[#allocation2 + $0x1424] sm:$0xf0]  ;;  %v7836_v6 = vld [vmem:[#allocation2 + $0x3d0] sm:$0xf]  ;;  %v11407_v34 = vld [vmem:[#allocation2 + $0x1268] sm:$0xf0] }
 0x17a   :  { %6077 = vmatpush.bf16.msrb.mxu2 %v8053_v42  ;;  %v5837_v42 = vpop.f32.mrf.mxu3  ;;  %v9596_v33 = vld [vmem:[#allocation2 + $0x1190] sm:$0xf]  ;;  %v9821_v36 = vor.u32 %v11435_v7, %v9818_v3 }
 0x17b   :  { %6090 = vmatpush.bf16.msrb.mxu3 %v9813_v13  ;;  %v10478_v13 = vld [vmem:[#allocation2 + $0x194c] sm:$0xf0]  ;;  %v964_v42 = vperm.slane %v11963_v31, 7  ;;  %v11325_v31 = vld [vmem:[#allocation2 + $0xfdc] sm:$0xf] }
 0x17c   :  { %6052 = vmatpush.bf16.msrb.mxu0 %v7829_v48  ;;  %v8496_v48 = vld [vmem:[#allocation2 + $0x8f8] sm:$0xf]  ;;  %v10481_v54 = vor.u32 %v11600_v50, %v10478_v13  ;;  %v11380_v13 = vld [vmem:[#allocation2 + $0x1194] sm:$0xf]  ;;  %v8944_v0 = vld [vmem:[#allocation2 + $0xc70] sm:$0xf] }
 0x17d   :  { %6065 = vmatpush.bf16.msrb.mxu1 %v9589_v52  ;;  %v10256_v52 = vld [vmem:[#allocation2 + $0x16b8] sm:$0xf]  ;;  %v10706_v7 = vld [vmem:[#allocation2 + $0x1b0c] sm:$0xf0] }
 0x17e   :  { %6078 = vmatpush.bf16.msrb.mxu2 %v7833_v55  ;;  %v11105_v55 = vld [vmem:[#allocation2 + $0x8fc] sm:$0xf] }
 0x17f   :  { %6091 = vmatpush.bf16.msrb.mxu3 %v9593_v58  ;;  %v8497_v58 = vor.u32 %v11132_v49, %v8496_v48  ;;  %v8501_v5 = vor.u32 %v11105_v55, %v8498_v56  ;;  %v7616_v48 = vld [vmem:[#allocation2 + $0x218] sm:$0xf]  ;;  %v10912_v49 = vld [vmem:[#allocation2 + $0x2f0] sm:$0xf0]  ;;  %v10885_v55 = vld [vmem:[#allocation2 + $0x21c] sm:$0xf] }
 0x180   :  { %6053 = vmatpush.bf16.msrb.mxu0 %v7609_v63  ;;  %v10257_v63 = vor.u32 %v11572_v53, %v10256_v52 }
 0x181   :  { %6066 = vmatpush.bf16.msrb.mxu1 %v9369_v9  ;;  %v11517_v9 = vld [vmem:[#allocation2 + $0x15d8] sm:$0xf0] }
 0x182   :  { %6079 = vmatpush.bf16.msrb.mxu2 %v7613_v12  ;;  %v5797_v12 = vadd.f32 %v11987_v37, %v961_v57  ;;  %v8058_v37 = vld [vmem:[#allocation2 + $0x664] sm:$0xf0]  ;;  %v9601_v57 = vor.u32 %v11380_v13, %v9598_v44  ;;  %v11601_v44 = vld [vmem:[#allocation2 + $0x187c] sm:$0xf] }
 0x183   :  { %6092 = vmatpush.bf16.msrb.mxu3 %v9373_v16  ;;  %v10037_v16 = vor.u32 %v11517_v9, %v10036_v8 }
 0x184   :  { %6054 = vmatpush.bf16.msrb.mxu0 %v7389_v23  ;;  %v9816_v23 = vld [vmem:[#allocation2 + $0x1348] sm:$0xf]  ;;  %v5848_v41 = vpop.f32.mrf.mxu0 }
 0x185   :  { %6067 = vmatpush.bf16.msrb.mxu1 %v9149_v26  ;;  %v5810_v26 = vadd.f32 %v11989_v46, %v5797_v12  ;;  %v5849_v29 = vadd.f32 %v5848_v41, %v963_v21  ;;  %v7838_v46 = vld [vmem:[#allocation2 + $0x4ac] sm:$0xf0]  ;;  %v11216_v21 = vld [vmem:[#allocation2 + $0xc74] sm:$0xf] }
 0x186   :  { %6080 = vmatpush.bf16.msrb.mxu2 %v7393_v27  ;;  %v6918_v27 = vmul.f32 0.5, %v5836_v15  ;;  %v7841_v53 = vor.u32 %v10940_v40, %v7838_v46  ;;  %v10704_v15 = vld [vmem:[#allocation2 + $0x1a30] sm:$0xf]  ;;  %v11656_v41 = vld [vmem:[#allocation2 + $0x1a34] sm:$0xf] }
 0x187   :  { %6093 = vmatpush.bf16.msrb.mxu3 %v9153_v32  ;;  %6055 = vmatmul.bf16.vlgmr.msrb.gmra.mxu0 %v11866_v17  ;;  %v8061_v32 = vor.u32 %v10995_v38, %v8058_v37  ;;  %v6917_v47 = vmul.f32 0.5, %v5810_v26  ;;  %v11270_v38 = vld [vmem:[#allocation2 + $0xe24] sm:$0xf]  ;;  %v9158_v37 = vld [vmem:[#allocation2 + $0xefc] sm:$0xf0] }
 0x188   :  { %6099 = vmatpush.bf16.msra.mxu0 %v8937_v4  ;;  %6068 = vmatmul.bf16.vlgmr.msrb.gmra.mxu1 %v11868_v19  ;;  %v8057_v4 = vor.u32 %v11022_v20, %v8056_v18  ;;  %11725 = vtanh.f32 %v6918_v27  ;;  %v9381_v18 = vor.u32 %v11325_v31, %v9378_v59  ;;  %v11683_v20 = vld [vmem:[#allocation2 + $0x1b08] sm:$0xf0]  ;;  %v11628_v40 = vld [vmem:[#allocation2 + $0x1950] sm:$0xf0]  ;;  %v11106_v59 = vld [vmem:[#allocation2 + $0x904] sm:$0xf] }
 0x189   :  { %6112 = vmatpush.bf16.msra.mxu1 %v10697_v28  ;;  %6081 = vmatmul.bf16.vlgmr.msrb.gmra.mxu2 %v11866_v17  ;;  %v9817_v28 = vor.u32 %v11462_v24, %v9816_v23 }
 0x18a   :  { %6125 = vmatpush.bf16.msra.mxu2 %v8941_v30  ;;  %6094 = vmatmul.bf16.vlgmr.msrb.gmra.mxu3 %v11868_v19  ;;  %v10967_v30 = vld [vmem:[#allocation2 + $0x4a8] sm:$0xf0] }
 0x18b   :  { %6138 = vmatpush.bf16.msra.mxu3 %v10701_v39  ;;  %v5861_v39 = vpop.f32.mrf.mxu1  ;;  %v7837_v50 = vor.u32 %v10967_v30, %v7836_v6  ;;  %v8724_v6 = vld [vmem:[#allocation2 + $0xab8] sm:$0xf]  ;;  %v11188_v30 = vld [vmem:[#allocation2 + $0xb90] sm:$0xf0] }
 0x18c   :  { %6100 = vmatpush.bf16.msra.mxu0 %v8717_v43  ;;  %v5862_v43 = vadd.f32 %v5861_v39, %v5849_v29  ;;  %v5874_v56 = vpop.f32.mrf.mxu2  ;;  %v5850_v8 = vpop.f32.mrf.mxu0  ;;  %v10705_v29 = vor.u32 %v11683_v20, %v10704_v15  ;;  %v10484_v39 = vld [vmem:[#allocation2 + $0x1878] sm:$0xf]  ;;  %v8725_v13 = vor.u32 %v11188_v30, %v8724_v6  ;;  %v11436_v30 = vld [vmem:[#allocation2 + $0x1354] sm:$0xf] }
 0x18d   :  { %6113 = vmatpush.bf16.msra.mxu1 %v10477_v45  ;;  %v9597_v45 = vor.u32 %v11407_v34, %v9596_v33  ;;  %v5875_v60 = vadd.f32 %v5874_v56, %v964_v42  ;;  %v5887_v35 = vpop.f32.mrf.mxu3  ;;  %v11161_v42 = vld [vmem:[#allocation2 + $0xabc] sm:$0xf]  ;;  %v10264_v56 = vld [vmem:[#allocation2 + $0x16c0] sm:$0xf] }
 0x18e   :  { %6126 = vmatpush.bf16.msra.mxu2 %v8721_v51  ;;  %v9376_v51 = vld [vmem:[#allocation2 + $0xfd8] sm:$0xf]  ;;  %v6919_v52 = vmul.f32 0.5, %v5862_v43 }
 0x18f   :  { %6139 = vmatpush.bf16.msra.mxu3 %v10481_v54  ;;  %v11352_v54 = vld [vmem:[#allocation2 + $0x10b0] sm:$0xf0]  ;;  %v5888_v12 = vadd.f32 %v5887_v35, %v5875_v60  ;;  %v8726_v43 = vld [vmem:[#allocation2 + $0xb94] sm:$0xf0]  ;;  %v8506_v60 = vld [vmem:[#allocation2 + $0x9dc] sm:$0xf0] }
 0x190   :  { %6101 = vmatpush.bf16.msra.mxu0 %v8497_v58  ;;  %v7618_v58 = vld [vmem:[#allocation2 + $0x2f4] sm:$0xf0]  ;;  %11727 = vtanh.f32 %v6919_v52  ;;  %v9377_v9 = vor.u32 %v11352_v54, %v9376_v51  ;;  %v10485_v51 = vor.u32 %v11628_v40, %v10484_v39  ;;  %v8504_v52 = vld [vmem:[#allocation2 + $0x900] sm:$0xf]  ;;  %v10968_v39 = vld [vmem:[#allocation2 + $0x4b0] sm:$0xf0] }
 0x191   :  { %6114 = vmatpush.bf16.msra.mxu1 %v10257_v63  ;;  %v7617_v63 = vor.u32 %v10912_v49, %v7616_v48  ;;  %11729 = vtanh.f32 %v6917_v47  ;;  %v6920_v24 = vmul.f32 0.5, %v5888_v12  ;;  %v10709_v47 = vor.u32 %v11656_v41, %v10706_v7  ;;  %v9824_v41 = vld [vmem:[#allocation2 + $0x1350] sm:$0xf]  ;;  %v11463_v7 = vld [vmem:[#allocation2 + $0x1428] sm:$0xf0] }
 0x192   :  { %6127 = vmatpush.bf16.msra.mxu2 %v8501_v5  ;;  %v9156_v5 = vld [vmem:[#allocation2 + $0xe20] sm:$0xf] }
 0x193   :  { %6140 = vmatpush.bf16.msra.mxu3 %v10261_v10  ;;  %v11297_v10 = vld [vmem:[#allocation2 + $0xef8] sm:$0xf0]  ;;  %v5863_v23 = vpop.f32.mrf.mxu1  ;;  %11731 = vtanh.f32 %v6920_v24 }
 0x194   :  { %6102 = vmatpush.bf16.msra.mxu0 %v8277_v62  ;;  %v7621_v62 = vor.u32 %v10885_v55, %v7618_v58  ;;  %v9157_v26 = vor.u32 %v11297_v10, %v9156_v5  ;;  %v5876_v46 = vpop.f32.mrf.mxu2  ;;  %v8729_v55 = vor.u32 %v11161_v42, %v8726_v43  ;;  %v8284_v10 = vld [vmem:[#allocation2 + $0x748] sm:$0xf]  ;;  %v10941_v43 = vld [vmem:[#allocation2 + $0x3dc] sm:$0xf] }
 0x195   :  { %6115 = vmatpush.bf16.msra.mxu1 %v10037_v16  ;;  %v11726_v16 = vpop.eup %11725  ;;  %v10046_v23 = vld [vmem:[#allocation2 + $0x15e4] sm:$0xf0]  ;;  %v9604_v46 = vld [vmem:[#allocation2 + $0x1198] sm:$0xf] }
 0x196   :  { %6128 = vmatpush.bf16.msra.mxu2 %v8281_v22  ;;  %v8946_v22 = vld [vmem:[#allocation2 + $0xd4c] sm:$0xf0]  ;;  %v11728_v3 = vpop.eup %11727  ;;  %v7028_v27 = vadd.f32 1.0, %v11726_v16  ;;  %v11051_v16 = vld [vmem:[#allocation2 + $0x74c] sm:$0xf] }
 0x197   :  { %6141 = vmatpush.bf16.msra.mxu3 %v10041_v25  ;;  %v7397_v25 = vor.u32 %v10857_v2, %v7396_v1  ;;  %v7029_v33 = vadd.f32 1.0, %v11728_v3  ;;  %v8949_v34 = vor.u32 %v11216_v21, %v8946_v22  ;;  %v11546_v1 = vld [vmem:[#allocation2 + $0x16c4] sm:$0xf]  ;;  %v10266_v2 = vld [vmem:[#allocation2 + $0x179c] sm:$0xf0] }
 0x198   :  { %6103 = vmatpush.bf16.msra.mxu0 %v8057_v4  ;;  %v8945_v4 = vor.u32 %v11243_v14, %v8944_v0  ;;  %v7083_v49 = vmul.f32 0.5, %v7028_v27  ;;  %v10044_v0 = vld [vmem:[#allocation2 + $0x1508] sm:$0xf]  ;;  %v11518_v14 = vld [vmem:[#allocation2 + $0x15e0] sm:$0xf0]  ;;  %v10269_v15 = vor.u32 %v11546_v1, %v10266_v2 }
 0x199   :  { %6116 = vmatpush.bf16.msra.mxu1 %v9817_v28  ;;  %v7401_v28 = vor.u32 %v10830_v11, %v7398_v61  ;;  %v7084_v54 = vmul.f32 0.5, %v7029_v33  ;;  %v11078_v11 = vld [vmem:[#allocation2 + $0x820] sm:$0xf0]  ;;  %v11491_v22 = vld [vmem:[#allocation2 + $0x150c] sm:$0xf]  ;;  %v10045_v24 = vor.u32 %v11518_v14, %v10044_v0 }
 0x19a   :  { %6129 = vmatpush.bf16.msra.mxu2 %v8061_v32  ;;  %v11730_v32 = vpop.eup %11729  ;;  %v7189_v8 = vrot.slane %v7083_v49, 6  ;;  %v8285_v21 = vor.u32 %v11078_v11, %v8284_v10  ;;  %v10049_v27 = vor.u32 %v11491_v22, %v10046_v23  ;;  %v10858_v1 = vld [vmem:[#allocation2 + $0x140] sm:$0xf0]  ;;  %v10831_v11 = vld [vmem:[#allocation2 + $0x6c] sm:$0xf] }
 0x19b   :  { %6142 = vmatpush.bf16.msra.mxu3 %v9821_v36  ;;  %v9161_v36 = vor.u32 %v11270_v38, %v9158_v37  ;;  %v7027_v48 = vadd.f32 1.0, %v11730_v32  ;;  %v11732_v58 = vpop.eup %11731  ;;  %v7190_v61 = vrot.slane %v7084_v54, 4  ;;  %v11023_v38 = vld [vmem:[#allocation2 + $0x668] sm:$0xf0]  ;;  %v9826_v32 = vld [vmem:[#allocation2 + $0x142c] sm:$0xf0] }
 0x19c   :  { %6104 = vmatpush.bf16.msra.mxu0 %v7837_v50  ;;  %v5889_v50 = vpop.f32.mrf.mxu3  ;;  %v7030_v35 = vadd.f32 1.0, %v11732_v58  ;;  %v9829_v42 = vor.u32 %v11436_v30, %v9826_v32  ;;  %v9384_v54 = vld [vmem:[#allocation2 + $0xfe0] sm:$0xf]  ;;  %v11298_v10 = vld [vmem:[#allocation2 + $0xf00] sm:$0xf0] }
 0x19d   :  { %6117 = vmatpush.bf16.msra.mxu1 %v9597_v45  ;;  %v10486_v45 = vld [vmem:[#allocation2 + $0x1954] sm:$0xf0]  ;;  %v7082_v5 = vmul.f32 0.5, %v7027_v48  ;;  %v7626_v58 = vld [vmem:[#allocation2 + $0x2fc] sm:$0xf0] }
 0x19e   :  { %6130 = vmatpush.bf16.msra.mxu2 %v7841_v53  ;;  %v11133_v53 = vld [vmem:[#allocation2 + $0x9d8] sm:$0xf0]  ;;  %v10489_v31 = vor.u32 %v11601_v44, %v10486_v45  ;;  %v7085_v12 = vmul.f32 0.5, %v7030_v35  ;;  %v7846_v50 = vld [vmem:[#allocation2 + $0x4b4] sm:$0xf0] }
 0x19f   :  { %6143 = vmatpush.bf16.msra.mxu3 %v9601_v57  ;;  %v11573_v57 = vld [vmem:[#allocation2 + $0x1798] sm:$0xf0]  ;;  %v7233_v37 = vsel %vm7221_vm0, %v7082_v5, %v7189_v8  ;;  %v9606_v48 = vld [vmem:[#allocation2 + $0x1274] sm:$0xf0]  ;;  %v9386_v35 = vld [vmem:[#allocation2 + $0x10bc] sm:$0xf0] }
 0x1a0   :  { %6105 = vmatpush.bf16.msra.mxu0 %v7617_v63  ;;  %v8505_v63 = vor.u32 %v11133_v53, %v8504_v52  ;;  %v7191_v20 = vrot.slane %v7085_v12, 2  ;;  %v11381_v45 = vld [vmem:[#allocation2 + $0x119c] sm:$0xf]  ;;  %v7849_v53 = vor.u32 %v10941_v43, %v7846_v50  ;;  %v7406_v12 = vld [vmem:[#allocation2 + $0x144] sm:$0xf0] }
 0x1a1   :  { %6118 = vmatpush.bf16.msra.mxu1 %v9377_v9  ;;  %v10265_v9 = vor.u32 %v11573_v57, %v10264_v56  ;;  %v10913_v52 = vld [vmem:[#allocation2 + $0x2f8] sm:$0xf0]  ;;  %v9609_v56 = vor.u32 %v11381_v45, %v9606_v48  ;;  %v10886_v57 = vld [vmem:[#allocation2 + $0x224] sm:$0xf]  ;;  %v11244_v0 = vld [vmem:[#allocation2 + $0xd50] sm:$0xf0] }
 0x1a2   :  { %6131 = vmatpush.bf16.msra.mxu2 %v7621_v62  ;;  %v8509_v62 = vor.u32 %v11106_v59, %v8506_v60  ;;  %v8954_v22 = vld [vmem:[#allocation2 + $0xd54] sm:$0xf0]  ;;  %v11271_v23 = vld [vmem:[#allocation2 + $0xe2c] sm:$0xf]  ;;  %v11629_v30 = vld [vmem:[#allocation2 + $0x1958] sm:$0xf0] }
 0x1a3   :  { %6144 = vmatpush.bf16.msra.mxu3 %v9381_v18  ;;  %v8286_v18 = vld [vmem:[#allocation2 + $0x824] sm:$0xf0]  ;;  %v11134_v45 = vld [vmem:[#allocation2 + $0x9e0] sm:$0xf0] }
 0x1a4   :  { %6106 = vmatpush.bf16.msra.mxu0 %v7397_v25  ;;  %v8064_v25 = vld [vmem:[#allocation2 + $0x590] sm:$0xf]  ;;  %v12017_v33 = vpop.f32.mrf.mxu0 }
 0x1a5   :  { %6119 = vmatpush.bf16.msra.mxu1 %v9157_v26  ;;  %v7234_v26 = vsel %vm7223_vm1, %v7190_v61, %v7191_v20  ;;  %v8065_v6 = vor.u32 %v11023_v38, %v8064_v25  ;;  %v7629_v61 = vor.u32 %v10886_v57, %v7626_v58  ;;  %v11547_v57 = vld [vmem:[#allocation2 + $0x16cc] sm:$0xf]  ;;  %v10274_v58 = vld [vmem:[#allocation2 + $0x17a4] sm:$0xf0] }
 0x1a6   :  { %6132 = vmatpush.bf16.msra.mxu2 %v7401_v28  ;;  %v7235_v3 = vsel %vm7225_vm2, %v7233_v37, %v7234_v26  ;;  %v10996_v28 = vld [vmem:[#allocation2 + $0x594] sm:$0xf]  ;;  %v11657_v37 = vld [vmem:[#allocation2 + $0x1a3c] sm:$0xf]  ;;  %v10714_v26 = vld [vmem:[#allocation2 + $0x1b14] sm:$0xf0] }
 0x1a7   :  { %6145 = vmatpush.bf16.msra.mxu3 %v9161_v36  ;;  %6107 = vmatmul.bf16.vlgmr.msra.gmra.mxu0 %v11866_v17  ;;  %7282 = vst [vmem:[%s12285_s3 + $0x18] sm:$0xff] %v7235_v3  ;;  %v7844_v36 = vld [vmem:[#allocation2 + $0x3d8] sm:$0xf]  ;;  %v11189_v3 = vld [vmem:[#allocation2 + $0xb98] sm:$0xf0] }
 0x1a8   :  { %6151 = vmatpush.bf16.msrb.mxu0 %v8945_v4  ;;  %6120 = vmatmul.bf16.vlgmr.msra.gmra.mxu1 %v11868_v19  ;;  %v8289_v4 = vor.u32 %v11051_v16, %v8286_v18  ;;  %v7845_v44 = vor.u32 %v10968_v39, %v7844_v36  ;;  %v11684_v16 = vld [vmem:[#allocation2 + $0x1b10] sm:$0xf0]  ;;  %v11217_v18 = vld [vmem:[#allocation2 + $0xc7c] sm:$0xf]  ;;  %v11162_v36 = vld [vmem:[#allocation2 + $0xac4] sm:$0xf] }
 0x1a9   :  { %6164 = vmatpush.bf16.msrb.mxu1 %v10705_v29  ;;  %6133 = vmatmul.bf16.vlgmr.msra.gmra.mxu2 %v11866_v17  ;;  %v8066_v29 = vld [vmem:[#allocation2 + $0x66c] sm:$0xf0]  ;;  %v8734_v39 = vld [vmem:[#allocation2 + $0xb9c] sm:$0xf0] }
 0x1aa   :  { %6177 = vmatpush.bf16.msrb.mxu2 %v8949_v34  ;;  %6146 = vmatmul.bf16.vlgmr.msra.gmra.mxu3 %v11868_v19  ;;  %v9825_v34 = vor.u32 %v11463_v7, %v9824_v41  ;;  %v8069_v40 = vor.u32 %v10996_v28, %v8066_v29  ;;  %v8732_v7 = vld [vmem:[#allocation2 + $0xac0] sm:$0xf]  ;;  %v12028_v28 = vld [vmem:[%s12284_s2 + $0x10] sm:$0xff]  ;;  %v8737_v48 = vor.u32 %v11162_v36, %v8734_v39  ;;  %v10942_v36 = vld [vmem:[#allocation2 + $0x3e4] sm:$0xf] }
 0x1ab   :  { %6190 = vmatpush.bf16.msrb.mxu3 %v10709_v47  ;;  %v11408_v47 = vld [vmem:[#allocation2 + $0x1270] sm:$0xf0]  ;;  %v966_v43 = vperm.slane %v12028_v28, 1 }
 0x1ac   :  { %6152 = vmatpush.bf16.msrb.mxu0 %v8725_v13  ;;  %v12019_v13 = vpop.f32.mrf.mxu1  ;;  %v9605_v49 = vor.u32 %v11408_v47, %v9604_v46  ;;  %v12021_v59 = vpop.f32.mrf.mxu2  ;;  %v8733_v46 = vor.u32 %v11189_v3, %v8732_v7  ;;  %v11602_v47 = vld [vmem:[#allocation2 + $0x1884] sm:$0xf]  ;;  %v7852_v3 = vld [vmem:[#allocation2 + $0x3e0] sm:$0xf] }
 0x1ad   :  { %6165 = vmatpush.bf16.msrb.mxu1 %v10485_v51  ;;  %v7624_v51 = vld [vmem:[#allocation2 + $0x220] sm:$0xf]  ;;  %v12023_v2 = vpop.f32.mrf.mxu3  ;;  %v5902_v5 = vpop.f32.mrf.mxu0 }
 0x1ae   :  { %6178 = vmatpush.bf16.msrb.mxu2 %v8729_v55  ;;  %v11353_v55 = vld [vmem:[#allocation2 + $0x10b8] sm:$0xf0]  ;;  %v7625_v60 = vor.u32 %v10913_v52, %v7624_v51  ;;  %v11574_v51 = vld [vmem:[#allocation2 + $0x17a0] sm:$0xf0]  ;;  %v10052_v5 = vld [vmem:[#allocation2 + $0x1510] sm:$0xf] }
 0x1af   :  { %6191 = vmatpush.bf16.msrb.mxu3 %v10489_v31  ;;  %v11326_v31 = vld [vmem:[#allocation2 + $0xfe4] sm:$0xf]  ;;  %v9385_v8 = vor.u32 %v11353_v55, %v9384_v54  ;;  %v8514_v54 = vld [vmem:[#allocation2 + $0x9e4] sm:$0xf0]  ;;  %v965_v55 = vperm.slane %v12028_v28, 0 }
 0x1b0   :  { %6153 = vmatpush.bf16.msrb.mxu0 %v8505_v63  ;;  %v7404_v63 = vld [vmem:[#allocation2 + $0x68] sm:$0xf]  ;;  %v9389_v14 = vor.u32 %v11326_v31, %v9386_v35  ;;  %v5927_v31 = vadd.f32 %v12021_v59, %v966_v43  ;;  %v8292_v35 = vld [vmem:[#allocation2 + $0x750] sm:$0xf]  ;;  %v9614_v43 = vld [vmem:[#allocation2 + $0x127c] sm:$0xf0] }
 0x1b1   :  { %6166 = vmatpush.bf16.msrb.mxu1 %v10265_v9  ;;  %v9164_v9 = vld [vmem:[#allocation2 + $0xe28] sm:$0xf] }
 0x1b2   :  { %6179 = vmatpush.bf16.msrb.mxu2 %v8509_v62  ;;  %v8952_v62 = vld [vmem:[#allocation2 + $0xc78] sm:$0xf]  ;;  %v9165_v25 = vor.u32 %v11298_v10, %v9164_v9  ;;  %v10277_v9 = vor.u32 %v11547_v57, %v10274_v58  ;;  %v11052_v10 = vld [vmem:[#allocation2 + $0x754] sm:$0xf]  ;;  %v11327_v57 = vld [vmem:[#allocation2 + $0xfec] sm:$0xf] }
 0x1b3   :  { %6192 = vmatpush.bf16.msrb.mxu3 %v10269_v15  ;;  %v10712_v15 = vld [vmem:[#allocation2 + $0x1a38] sm:$0xf]  ;;  %v8953_v38 = vor.u32 %v11244_v0, %v8952_v62  ;;  %v10054_v62 = vld [vmem:[#allocation2 + $0x15ec] sm:$0xf0]  ;;  %v5940_v0 = vadd.f32 %v12023_v2, %v5927_v31  ;;  %v11437_v2 = vld [vmem:[#allocation2 + $0x135c] sm:$0xf] }
 0x1b4   :  { %6154 = vmatpush.bf16.msrb.mxu0 %v8285_v21  ;;  %v5915_v20 = vpop.f32.mrf.mxu1  ;;  %v7405_v21 = vor.u32 %v10858_v1, %v7404_v63  ;;  %v10713_v41 = vor.u32 %v11684_v16, %v10712_v15  ;;  %v5928_v32 = vpop.f32.mrf.mxu2  ;;  %v11079_v63 = vld [vmem:[#allocation2 + $0x828] sm:$0xf0]  ;;  %v8072_v15 = vld [vmem:[#allocation2 + $0x598] sm:$0xf]  ;;  %v11024_v16 = vld [vmem:[#allocation2 + $0x670] sm:$0xf0] }
 0x1b5   :  { %6167 = vmatpush.bf16.msrb.mxu1 %v10045_v24  ;;  %v9166_v24 = vld [vmem:[#allocation2 + $0xf04] sm:$0xf0]  ;;  %v8293_v59 = vor.u32 %v11079_v63, %v8292_v35  ;;  %v7412_v63 = vld [vmem:[#allocation2 + $0x70] sm:$0xf] }
 0x1b6   :  { %6180 = vmatpush.bf16.msrb.mxu2 %v8289_v4  ;;  %v7409_v4 = vor.u32 %v10831_v11, %v7406_v12  ;;  %v9169_v29 = vor.u32 %v11271_v23, %v9166_v24  ;;  %v8294_v11 = vld [vmem:[#allocation2 + $0x82c] sm:$0xf0]  ;;  %v11492_v12 = vld [vmem:[#allocation2 + $0x1514] sm:$0xf]  ;;  %v10997_v24 = vld [vmem:[#allocation2 + $0x59c] sm:$0xf] }
 0x1b7   :  { %6193 = vmatpush.bf16.msrb.mxu3 %v10049_v27  ;;  %v8957_v27 = vor.u32 %v11217_v18, %v8954_v22  ;;  %v967_v18 = vperm.slane %v12028_v28, 2  ;;  %v8297_v20 = vor.u32 %v11052_v10, %v8294_v11  ;;  %v11464_v22 = vld [vmem:[#allocation2 + $0x1430] sm:$0xf0]  ;;  %v10057_v23 = vor.u32 %v11492_v12, %v10054_v62  ;;  %v9394_v58 = vld [vmem:[#allocation2 + $0x10c4] sm:$0xf0] }
 0x1b8   :  { %6155 = vmatpush.bf16.msrb.mxu0 %v8065_v6  ;;  %v10492_v6 = vld [vmem:[#allocation2 + $0x1880] sm:$0xf]  ;;  %v11299_v10 = vld [vmem:[#allocation2 + $0xf08] sm:$0xf0]  ;;  %v10832_v11 = vld [vmem:[#allocation2 + $0x74] sm:$0xf] }
 0x1b9   :  { %6168 = vmatpush.bf16.msrb.mxu1 %v9825_v34  ;;  %v10717_v34 = vor.u32 %v11657_v37, %v10714_v26  ;;  %v10493_v50 = vor.u32 %v11629_v30, %v10492_v6  ;;  %v9834_v26 = vld [vmem:[#allocation2 + $0x1434] sm:$0xf0]  ;;  %v9612_v6 = vld [vmem:[#allocation2 + $0x11a0] sm:$0xf]  ;;  %v11409_v30 = vld [vmem:[#allocation2 + $0x1278] sm:$0xf0] }
 0x1ba   :  { %6181 = vmatpush.bf16.msrb.mxu2 %v8069_v40  ;;  %v5941_v40 = vpop.f32.mrf.mxu3  ;;  %v9837_v32 = vor.u32 %v11437_v2, %v9834_v26  ;;  %v8960_v62 = vld [vmem:[#allocation2 + $0xc80] sm:$0xf]  ;;  %v11658_v2 = vld [vmem:[#allocation2 + $0x1a44] sm:$0xf] }
 0x1bb   :  { %6194 = vmatpush.bf16.msrb.mxu3 %v9829_v42  ;;  %v10494_v42 = vld [vmem:[#allocation2 + $0x195c] sm:$0xf0]  ;;  %v968_v40 = vperm.slane %v12028_v28, 3 }
 0x1bc   :  { %6156 = vmatpush.bf16.msrb.mxu0 %v7845_v44  ;;  %v8512_v44 = vld [vmem:[#allocation2 + $0x908] sm:$0xf]  ;;  %v10497_v52 = vor.u32 %v11602_v47, %v10494_v42  ;;  %v11382_v42 = vld [vmem:[#allocation2 + $0x11a4] sm:$0xf]  ;;  %v10722_v26 = vld [vmem:[#allocation2 + $0x1b1c] sm:$0xf0] }
 0x1bd   :  { %6169 = vmatpush.bf16.msrb.mxu1 %v9605_v49  ;;  %v10272_v49 = vld [vmem:[#allocation2 + $0x16c8] sm:$0xf] }
 0x1be   :  { %6182 = vmatpush.bf16.msrb.mxu2 %v7849_v53  ;;  %v11107_v53 = vld [vmem:[#allocation2 + $0x90c] sm:$0xf] }
 0x1bf   :  { %6195 = vmatpush.bf16.msrb.mxu3 %v9609_v56  ;;  %v8513_v56 = vor.u32 %v11134_v45, %v8512_v44  ;;  %v8517_v1 = vor.u32 %v11107_v53, %v8514_v54  ;;  %v7632_v44 = vld [vmem:[#allocation2 + $0x228] sm:$0xf]  ;;  %v10914_v45 = vld [vmem:[#allocation2 + $0x300] sm:$0xf0]  ;;  %v10887_v53 = vld [vmem:[#allocation2 + $0x22c] sm:$0xf] }
 0x1c0   :  { %6157 = vmatpush.bf16.msrb.mxu0 %v7625_v60  ;;  %v10273_v60 = vor.u32 %v11574_v51, %v10272_v49  ;;  %v7633_v35 = vor.u32 %v10914_v45, %v7632_v44  ;;  %v10502_v44 = vld [vmem:[#allocation2 + $0x1964] sm:$0xf0] }
 0x1c1   :  { %6170 = vmatpush.bf16.msrb.mxu1 %v9385_v8  ;;  %v11519_v8 = vld [vmem:[#allocation2 + $0x15e8] sm:$0xf0] }
 0x1c2   :  { %6183 = vmatpush.bf16.msrb.mxu2 %v7629_v61  ;;  %v5901_v61 = vadd.f32 %v12017_v33, %v965_v55  ;;  %v8074_v33 = vld [vmem:[#allocation2 + $0x674] sm:$0xf0]  ;;  %v9617_v55 = vor.u32 %v11382_v42, %v9614_v43 }
 0x1c3   :  { %6196 = vmatpush.bf16.msrb.mxu3 %v9389_v14  ;;  %v10053_v14 = vor.u32 %v11519_v8, %v10052_v5  ;;  %v9172_v5 = vld [vmem:[#allocation2 + $0xe30] sm:$0xf] }
 0x1c4   :  { %6158 = vmatpush.bf16.msrb.mxu0 %v7405_v21  ;;  %v9832_v21 = vld [vmem:[#allocation2 + $0x1358] sm:$0xf]  ;;  %v5952_v37 = vpop.f32.mrf.mxu0 }
 0x1c5   :  { %6171 = vmatpush.bf16.msrb.mxu1 %v9165_v25  ;;  %v5914_v25 = vadd.f32 %v12019_v13, %v5901_v61  ;;  %v5953_v7 = vadd.f32 %v5952_v37, %v967_v18  ;;  %v7854_v13 = vld [vmem:[#allocation2 + $0x4bc] sm:$0xf0]  ;;  %v7414_v61 = vld [vmem:[#allocation2 + $0x14c] sm:$0xf0]  ;;  %v11685_v18 = vld [vmem:[#allocation2 + $0x1b18] sm:$0xf0] }
 0x1c6   :  { %6184 = vmatpush.bf16.msrb.mxu2 %v7409_v4  ;;  %v6922_v4 = vmul.f32 0.5, %v5940_v0  ;;  %v7857_v51 = vor.u32 %v10942_v36, %v7854_v13  ;;  %v11245_v0 = vld [vmem:[#allocation2 + $0xd58] sm:$0xf0]  ;;  %v10500_v36 = vld [vmem:[#allocation2 + $0x1888] sm:$0xf] }
 0x1c7   :  { %6197 = vmatpush.bf16.msrb.mxu3 %v9169_v29  ;;  %6159 = vmatmul.bf16.vlgmr.msrb.gmra.mxu0 %v11866_v17  ;;  %v8077_v29 = vor.u32 %v10997_v24, %v8074_v33  ;;  %v6921_v39 = vmul.f32 0.5, %v5914_v25  ;;  %v11272_v33 = vld [vmem:[#allocation2 + $0xe34] sm:$0xf]  ;;  %v9174_v25 = vld [vmem:[#allocation2 + $0xf0c] sm:$0xf0]  ;;  %v8961_v37 = vor.u32 %v11245_v0, %v8960_v62 }
 0x1c8   :  { %6203 = vmatpush.bf16.msra.mxu0 %v8953_v38  ;;  %6172 = vmatmul.bf16.vlgmr.msrb.gmra.mxu1 %v11868_v19  ;;  %v8073_v38 = vor.u32 %v11024_v16, %v8072_v15  ;;  %11733 = vtanh.f32 %v6922_v4  ;;  %v9397_v16 = vor.u32 %v11327_v57, %v9394_v58  ;;  %v11630_v13 = vld [vmem:[#allocation2 + $0x1960] sm:$0xf0]  ;;  %v10060_v0 = vld [vmem:[#allocation2 + $0x1518] sm:$0xf] }
 0x1c9   :  { %6216 = vmatpush.bf16.msra.mxu1 %v10713_v41  ;;  %6185 = vmatmul.bf16.vlgmr.msrb.gmra.mxu2 %v11866_v17  ;;  %v9833_v41 = vor.u32 %v11464_v22, %v9832_v21  ;;  %v8962_v21 = vld [vmem:[#allocation2 + $0xd5c] sm:$0xf0] }
 0x1ca   :  { %6229 = vmatpush.bf16.msra.mxu2 %v8957_v27  ;;  %6198 = vmatmul.bf16.vlgmr.msrb.gmra.mxu3 %v11868_v19  ;;  %v10969_v27 = vld [vmem:[#allocation2 + $0x4b8] sm:$0xf0] }
 0x1cb   :  { %6242 = vmatpush.bf16.msra.mxu3 %v10717_v34  ;;  %v5965_v34 = vpop.f32.mrf.mxu1  ;;  %v7853_v47 = vor.u32 %v10969_v27, %v7852_v3  ;;  %v8740_v27 = vld [vmem:[#allocation2 + $0xac8] sm:$0xf] }
 0x1cc   :  { %6204 = vmatpush.bf16.msra.mxu0 %v8733_v46  ;;  %v5966_v46 = vadd.f32 %v5965_v34, %v5953_v7  ;;  %v5978_v54 = vpop.f32.mrf.mxu2  ;;  %v5954_v8 = vpop.f32.mrf.mxu0  ;;  %v7417_v7 = vor.u32 %v10832_v11, %v7414_v61  ;;  %v9177_v34 = vor.u32 %v11272_v33, %v9174_v25  ;;  %v8300_v11 = vld [vmem:[#allocation2 + $0x758] sm:$0xf]  ;;  %v11080_v61 = vld [vmem:[#allocation2 + $0x830] sm:$0xf0]  ;;  %v8080_v33 = vld [vmem:[#allocation2 + $0x5a0] sm:$0xf] }
 0x1cd   :  { %6217 = vmatpush.bf16.msra.mxu1 %v10493_v50  ;;  %v9613_v50 = vor.u32 %v11409_v30, %v9612_v6  ;;  %v5979_v31 = vadd.f32 %v5978_v54, %v968_v40  ;;  %v10725_v40 = vor.u32 %v11658_v2, %v10722_v26  ;;  %v11025_v25 = vld [vmem:[#allocation2 + $0x678] sm:$0xf0]  ;;  %v9840_v26 = vld [vmem:[#allocation2 + $0x1360] sm:$0xf] }
 0x1ce   :  { %6230 = vmatpush.bf16.msra.mxu2 %v8737_v48  ;;  %v9392_v48 = vld [vmem:[#allocation2 + $0xfe8] sm:$0xf]  ;;  %v6923_v49 = vmul.f32 0.5, %v5966_v46  ;;  %v11734_v15 = vpop.eup %11733  ;;  %v11163_v46 = vld [vmem:[#allocation2 + $0xacc] sm:$0xf] }
 0x1cf   :  { %6243 = vmatpush.bf16.msra.mxu3 %v10497_v52  ;;  %v11354_v52 = vld [vmem:[#allocation2 + $0x10c0] sm:$0xf0] }
 0x1d0   :  { %6205 = vmatpush.bf16.msra.mxu0 %v8513_v56  ;;  %v7634_v56 = vld [vmem:[#allocation2 + $0x304] sm:$0xf0]  ;;  %11735 = vtanh.f32 %v6923_v49  ;;  %v10501_v49 = vor.u32 %v11630_v13, %v10500_v36  ;;  %v10970_v13 = vld [vmem:[#allocation2 + $0x4c0] sm:$0xf0] }
 0x1d1   :  { %6218 = vmatpush.bf16.msra.mxu1 %v10273_v60  ;;  %v5991_v60 = vpop.f32.mrf.mxu3  ;;  %11737 = vtanh.f32 %v6921_v39  ;;  %v7637_v12 = vor.u32 %v10887_v53, %v7634_v56  ;;  %v11575_v56 = vld [vmem:[#allocation2 + $0x17a8] sm:$0xf0]  ;;  %v7860_v36 = vld [vmem:[#allocation2 + $0x3e8] sm:$0xf] }
 0x1d2   :  { %6231 = vmatpush.bf16.msra.mxu2 %v8517_v1  ;;  %v10859_v1 = vld [vmem:[#allocation2 + $0x148] sm:$0xf0] }
 0x1d3   :  { %6244 = vmatpush.bf16.msra.mxu3 %v10277_v9  ;;  %v9393_v9 = vor.u32 %v11354_v52, %v9392_v48  ;;  %v5967_v22 = vpop.f32.mrf.mxu1  ;;  %v7413_v24 = vor.u32 %v10859_v1, %v7412_v63  ;;  %v11135_v52 = vld [vmem:[#allocation2 + $0x9e8] sm:$0xf0]  ;;  %v11548_v1 = vld [vmem:[#allocation2 + $0x16d4] sm:$0xf] }
 0x1d4   :  { %6206 = vmatpush.bf16.msra.mxu0 %v8293_v59  ;;  %v5992_v59 = vadd.f32 %v5991_v60, %v5979_v31  ;;  %v5980_v39 = vpop.f32.mrf.mxu2  ;;  %v11108_v31 = vld [vmem:[#allocation2 + $0x914] sm:$0xf]  ;;  %v8522_v60 = vld [vmem:[#allocation2 + $0x9ec] sm:$0xf0]  ;;  %v11493_v22 = vld [vmem:[#allocation2 + $0x151c] sm:$0xf] }
 0x1d5   :  { %6219 = vmatpush.bf16.msra.mxu1 %v10053_v14  ;;  %v10720_v14 = vld [vmem:[#allocation2 + $0x1a40] sm:$0xf]  ;;  %v8525_v62 = vor.u32 %v11108_v31, %v8522_v60  ;;  %v11328_v31 = vld [vmem:[#allocation2 + $0xff4] sm:$0xf] }
 0x1d6   :  { %6232 = vmatpush.bf16.msra.mxu2 %v8297_v20  ;;  %v11218_v20 = vld [vmem:[#allocation2 + $0xc84] sm:$0xf]  ;;  %v11736_v4 = vpop.eup %11735  ;;  %v10721_v3 = vor.u32 %v11685_v18, %v10720_v14  ;;  %v11520_v14 = vld [vmem:[#allocation2 + $0x15f0] sm:$0xf0]  ;;  %v8302_v18 = vld [vmem:[#allocation2 + $0x834] sm:$0xf0] }
 0x1d7   :  { %6245 = vmatpush.bf16.msra.mxu3 %v10057_v23  ;;  %v6924_v23 = vmul.f32 0.5, %v5992_v59  ;;  %v11738_v6 = vpop.eup %11737  ;;  %v7033_v30 = vadd.f32 1.0, %v11736_v4  ;;  %v11465_v4 = vld [vmem:[#allocation2 + $0x1438] sm:$0xf0] }
 0x1d8   :  { %6207 = vmatpush.bf16.msra.mxu0 %v8073_v38  ;;  %v9173_v38 = vor.u32 %v11299_v10, %v9172_v5  ;;  %v7031_v45 = vadd.f32 1.0, %v11738_v6  ;;  %v10282_v5 = vld [vmem:[#allocation2 + $0x17ac] sm:$0xf0]  ;;  %v11438_v6 = vld [vmem:[#allocation2 + $0x1364] sm:$0xf] }
 0x1d9   :  { %6220 = vmatpush.bf16.msra.mxu1 %v9833_v41  ;;  %v7032_v41 = vadd.f32 1.0, %v11734_v15  ;;  %11739 = vtanh.f32 %v6924_v23  ;;  %v5993_v42 = vpop.f32.mrf.mxu3  ;;  %v7088_v53 = vmul.f32 0.5, %v7033_v30  ;;  %v10285_v15 = vor.u32 %v11548_v1, %v10282_v5  ;;  %v10062_v23 = vld [vmem:[#allocation2 + $0x15f4] sm:$0xf0]  ;;  %v9842_v30 = vld [vmem:[#allocation2 + $0x143c] sm:$0xf0] }
 0x1da   :  { %6233 = vmatpush.bf16.msra.mxu2 %v8077_v29  ;;  %v11190_v29 = vld [vmem:[#allocation2 + $0xba0] sm:$0xf0]  ;;  %v7086_v8 = vmul.f32 0.5, %v7031_v45  ;;  %v10943_v42 = vld [vmem:[#allocation2 + $0x3ec] sm:$0xf] }
 0x1db   :  { %6246 = vmatpush.bf16.msra.mxu3 %v9837_v32  ;;  %v8965_v32 = vor.u32 %v11218_v20, %v8962_v21  ;;  %v8741_v43 = vor.u32 %v11190_v29, %v8740_v27  ;;  %v7087_v48 = vmul.f32 0.5, %v7032_v41  ;;  %v7193_v59 = vrot.slane %v7088_v53, 4  ;;  %v8082_v27 = vld [vmem:[#allocation2 + $0x67c] sm:$0xf0]  ;;  %v11383_v45 = vld [vmem:[#allocation2 + $0x11ac] sm:$0xf] }
 0x1dc   :  { %6208 = vmatpush.bf16.msra.mxu0 %v7853_v47  ;;  %v8742_v47 = vld [vmem:[#allocation2 + $0xba4] sm:$0xf0]  ;;  %v8301_v21 = vor.u32 %v11080_v61, %v8300_v11  ;;  %v8081_v29 = vor.u32 %v11025_v25, %v8080_v33  ;;  %v7420_v1 = vld [vmem:[#allocation2 + $0x78] sm:$0xf]  ;;  %v10860_v5 = vld [vmem:[#allocation2 + $0x150] sm:$0xf0] }
 0x1dd   :  { %6221 = vmatpush.bf16.msra.mxu1 %v9613_v50  ;;  %v11603_v50 = vld [vmem:[#allocation2 + $0x188c] sm:$0xf]  ;;  %v8745_v54 = vor.u32 %v11163_v46, %v8742_v47  ;;  %v11410_v46 = vld [vmem:[#allocation2 + $0x1280] sm:$0xf0]  ;;  %v9845_v47 = vor.u32 %v11438_v6, %v9842_v30  ;;  %v9180_v11 = vld [vmem:[#allocation2 + $0xe38] sm:$0xf] }
 0x1de   :  { %6234 = vmatpush.bf16.msra.mxu2 %v7857_v51  ;;  %v8520_v51 = vld [vmem:[#allocation2 + $0x910] sm:$0xf]  ;;  %v10505_v58 = vor.u32 %v11603_v50, %v10502_v44  ;;  %v7861_v44 = vor.u32 %v10970_v13, %v7860_v36  ;;  %v11300_v61 = vld [vmem:[#allocation2 + $0xf10] sm:$0xf0]  ;;  %v9182_v33 = vld [vmem:[#allocation2 + $0xf14] sm:$0xf0] }
 0x1df   :  { %6247 = vmatpush.bf16.msra.mxu3 %v9617_v55  ;;  %v10280_v55 = vld [vmem:[#allocation2 + $0x16d0] sm:$0xf]  ;;  %v11740_v57 = vpop.eup %11739  ;;  %v8521_v63 = vor.u32 %v11135_v52, %v8520_v51  ;;  %v10915_v52 = vld [vmem:[#allocation2 + $0x308] sm:$0xf0]  ;;  %v9181_v25 = vor.u32 %v11300_v61, %v9180_v11  ;;  %v11164_v36 = vld [vmem:[#allocation2 + $0xad4] sm:$0xf] }
 0x1e0   :  { %6209 = vmatpush.bf16.msra.mxu0 %v7633_v35  ;;  %v7034_v35 = vadd.f32 1.0, %v11740_v57  ;;  %v10281_v10 = vor.u32 %v11575_v56, %v10280_v55  ;;  %v7640_v51 = vld [vmem:[#allocation2 + $0x230] sm:$0xf]  ;;  %v11355_v55 = vld [vmem:[#allocation2 + $0x10c8] sm:$0xf0] }
 0x1e1   :  { %6222 = vmatpush.bf16.msra.mxu1 %v9393_v9  ;;  %v7192_v9 = vrot.slane %v7087_v48, 6  ;;  %v9622_v48 = vld [vmem:[#allocation2 + $0x1284] sm:$0xf0]  ;;  %v10888_v57 = vld [vmem:[#allocation2 + $0x234] sm:$0xf] }
 0x1e2   :  { %6235 = vmatpush.bf16.msra.mxu2 %v7637_v12  ;;  %v7089_v12 = vmul.f32 0.5, %v7034_v35  ;;  %v9625_v56 = vor.u32 %v11383_v45, %v9622_v48  ;;  %v7641_v35 = vor.u32 %v10915_v52, %v7640_v51  ;;  %v11631_v6 = vld [vmem:[#allocation2 + $0x1968] sm:$0xf0]  ;;  %v8750_v13 = vld [vmem:[#allocation2 + $0xbac] sm:$0xf0] }
 0x1e3   :  { %6248 = vmatpush.bf16.msra.mxu3 %v9397_v16  ;;  %v11053_v16 = vld [vmem:[#allocation2 + $0x75c] sm:$0xf]  ;;  %v11136_v45 = vld [vmem:[#allocation2 + $0x9f0] sm:$0xf0]  ;;  %v8753_v48 = vor.u32 %v11164_v36, %v8750_v13  ;;  %v11054_v61 = vld [vmem:[#allocation2 + $0x764] sm:$0xf] }
 0x1e4   :  { %6210 = vmatpush.bf16.msra.mxu0 %v7413_v24  ;;  %v7194_v20 = vrot.slane %v7089_v12, 2  ;;  %v10061_v24 = vor.u32 %v11520_v14, %v10060_v0  ;;  %v8305_v2 = vor.u32 %v11053_v16, %v8302_v18  ;;  %v8968_v0 = vld [vmem:[#allocation2 + $0xc88] sm:$0xf]  ;;  %v11246_v14 = vld [vmem:[#allocation2 + $0xd60] sm:$0xf0] }
 0x1e5   :  { %6223 = vmatpush.bf16.msra.mxu1 %v9173_v38  ;;  %v7236_v38 = vsel %vm7221_vm0, %v7086_v8, %v7192_v9  ;;  %v12054_v50 = vpop.f32.mrf.mxu1  ;;  %v10728_v16 = vld [vmem:[#allocation2 + $0x1a48] sm:$0xf]  ;;  %v11686_v18 = vld [vmem:[#allocation2 + $0x1b20] sm:$0xf0]  ;;  %v11576_v51 = vld [vmem:[#allocation2 + $0x17b0] sm:$0xf0] }
 0x1e6   :  { %6236 = vmatpush.bf16.msra.mxu2 %v7417_v7  ;;  %v10065_v7 = vor.u32 %v11493_v22, %v10062_v23  ;;  %v7421_v22 = vor.u32 %v10860_v5, %v7420_v1  ;;  %v8970_v23 = vld [vmem:[#allocation2 + $0xd64] sm:$0xf0]  ;;  %v11081_v1 = vld [vmem:[#allocation2 + $0x838] sm:$0xf0]  ;;  %v10944_v36 = vld [vmem:[#allocation2 + $0x3f4] sm:$0xf] }
 0x1e7   :  { %6249 = vmatpush.bf16.msra.mxu3 %v9177_v34  ;;  %6211 = vmatmul.bf16.vlgmr.msra.gmra.mxu0 %v11866_v17  ;;  %v9841_v34 = vor.u32 %v11465_v4, %v9840_v26  ;;  %v10729_v4 = vor.u32 %v11686_v18, %v10728_v16  ;;  %v8088_v16 = vld [vmem:[#allocation2 + $0x5a8] sm:$0xf]  ;;  %v11026_v18 = vld [vmem:[#allocation2 + $0x680] sm:$0xf0] }
 0x1e8   :  { %6255 = vmatpush.bf16.msrb.mxu0 %v8961_v37  ;;  %6224 = vmatmul.bf16.vlgmr.msra.gmra.mxu1 %v11868_v19  ;;  %v7237_v37 = vsel %vm7223_vm1, %v7193_v59, %v7194_v20  ;;  %v10833_v59 = vld [vmem:[#allocation2 + $0x7c] sm:$0xf]  ;;  %v11219_v20 = vld [vmem:[#allocation2 + $0xc8c] sm:$0xf] }
 0x1e9   :  { %6268 = vmatpush.bf16.msrb.mxu1 %v10721_v3  ;;  %6237 = vmatmul.bf16.vlgmr.msra.gmra.mxu2 %v11866_v17  ;;  %v7238_v41 = vsel %vm7225_vm2, %v7236_v38, %v7237_v37  ;;  %v10998_v3 = vld [vmem:[#allocation2 + $0x5a4] sm:$0xf]  ;;  %v8969_v38 = vor.u32 %v11246_v14, %v8968_v0  ;;  %v11659_v37 = vld [vmem:[#allocation2 + $0x1a4c] sm:$0xf]  ;;  %v10070_v0 = vld [vmem:[#allocation2 + $0x15fc] sm:$0xf0] }
 0x1ea   :  { %6281 = vmatpush.bf16.msrb.mxu2 %v8965_v32  ;;  %6250 = vmatmul.bf16.vlgmr.msra.gmra.mxu3 %v11868_v19  ;;  %7283 = vst [vmem:[%s12285_s3 + $0x20] sm:$0xff] %v7238_v41  ;;  %v12052_v32 = vpop.f32.mrf.mxu0  ;;  %v8085_v39 = vor.u32 %v10998_v3, %v8082_v27  ;;  %v8748_v41 = vld [vmem:[#allocation2 + $0xad0] sm:$0xf]  ;;  %v8973_v3 = vor.u32 %v11219_v20, %v8970_v23  ;;  %v971_v20 = vperm.slane %v12028_v28, 6  ;;  %v11466_v23 = vld [vmem:[#allocation2 + $0x1440] sm:$0xf0] }
 0x1eb   :  { %6294 = vmatpush.bf16.msrb.mxu3 %v10725_v40  ;;  %v9620_v40 = vld [vmem:[#allocation2 + $0x11a8] sm:$0xf] }
 0x1ec   :  { %6256 = vmatpush.bf16.msrb.mxu0 %v8741_v43  ;;  %v7862_v43 = vld [vmem:[#allocation2 + $0x4c4] sm:$0xf0]  ;;  %v12056_v60 = vpop.f32.mrf.mxu2 }
 0x1ed   :  { %6269 = vmatpush.bf16.msrb.mxu1 %v10501_v49  ;;  %v9621_v49 = vor.u32 %v11410_v46, %v9620_v40  ;;  %v7865_v53 = vor.u32 %v10943_v42, %v7862_v43  ;;  %v12058_v8 = vpop.f32.mrf.mxu3  ;;  %v11604_v46 = vld [vmem:[#allocation2 + $0x1894] sm:$0xf]  ;;  %v970_v42 = vperm.slane %v12028_v28, 5 }
 0x1ee   :  { %6282 = vmatpush.bf16.msrb.mxu2 %v8745_v54  ;;  %v9400_v54 = vld [vmem:[#allocation2 + $0xff0] sm:$0xf] }
 0x1ef   :  { %6295 = vmatpush.bf16.msrb.mxu3 %v10505_v58  ;;  %v7642_v58 = vld [vmem:[#allocation2 + $0x30c] sm:$0xf0] }
 0x1f0   :  { %6257 = vmatpush.bf16.msrb.mxu0 %v8521_v63  ;;  %v9402_v63 = vld [vmem:[#allocation2 + $0x10cc] sm:$0xf0]  ;;  %v7645_v12 = vor.u32 %v10888_v57, %v7642_v58  ;;  %v11549_v57 = vld [vmem:[#allocation2 + $0x16dc] sm:$0xf]  ;;  %v10290_v58 = vld [vmem:[#allocation2 + $0x17b4] sm:$0xf0] }
 0x1f1   :  { %6270 = vmatpush.bf16.msrb.mxu1 %v10281_v10  ;;  %v9401_v10 = vor.u32 %v11355_v55, %v9400_v54  ;;  %v8530_v54 = vld [vmem:[#allocation2 + $0x9f4] sm:$0xf0]  ;;  %v969_v55 = vperm.slane %v12028_v28, 4  ;;  %v10293_v11 = vor.u32 %v11549_v57, %v10290_v58 }
 0x1f2   :  { %6283 = vmatpush.bf16.msrb.mxu2 %v8525_v62  ;;  %v6006_v9 = vpop.f32.mrf.mxu0  ;;  %v7422_v62 = vld [vmem:[#allocation2 + $0x154] sm:$0xf0] }
 0x1f3   :  { %6296 = vmatpush.bf16.msrb.mxu3 %v10285_v15  ;;  %v9405_v15 = vor.u32 %v11328_v31, %v9402_v63  ;;  %v7425_v26 = vor.u32 %v10833_v59, %v7422_v62  ;;  %v6031_v31 = vadd.f32 %v12056_v60, %v970_v42  ;;  %v8308_v63 = vld [vmem:[#allocation2 + $0x760] sm:$0xf]  ;;  %v11494_v62 = vld [vmem:[#allocation2 + $0x1524] sm:$0xf]  ;;  %v9630_v42 = vld [vmem:[#allocation2 + $0x128c] sm:$0xf0] }
 0x1f4   :  { %6258 = vmatpush.bf16.msrb.mxu0 %v8301_v21  ;;  %v6019_v21 = vpop.f32.mrf.mxu1  ;;  %v6032_v30 = vpop.f32.mrf.mxu2  ;;  %v10068_v9 = vld [vmem:[#allocation2 + $0x1520] sm:$0xf]  ;;  %v8309_v60 = vor.u32 %v11081_v1, %v8308_v63  ;;  %v9410_v57 = vld [vmem:[#allocation2 + $0x10d4] sm:$0xf0]  ;;  %v10861_v1 = vld [vmem:[#allocation2 + $0x158] sm:$0xf0] }
 0x1f5   :  { %6271 = vmatpush.bf16.msrb.mxu1 %v10061_v24  ;;  %v11273_v24 = vld [vmem:[#allocation2 + $0xe3c] sm:$0xf]  ;;  %v8310_v59 = vld [vmem:[#allocation2 + $0x83c] sm:$0xf0]  ;;  %v6044_v14 = vadd.f32 %v12058_v8, %v6031_v31  ;;  %v11439_v8 = vld [vmem:[#allocation2 + $0x136c] sm:$0xf] }
 0x1f6   :  { %6284 = vmatpush.bf16.msrb.mxu2 %v8305_v2  ;;  %v10730_v2 = vld [vmem:[#allocation2 + $0x1b24] sm:$0xf0]  ;;  %v9185_v27 = vor.u32 %v11273_v24, %v9182_v33  ;;  %v8313_v21 = vor.u32 %v11054_v61, %v8310_v59  ;;  %v10073_v24 = vor.u32 %v11494_v62, %v10070_v0  ;;  %v10999_v33 = vld [vmem:[#allocation2 + $0x5ac] sm:$0xf]  ;;  %v7428_v63 = vld [vmem:[#allocation2 + $0x80] sm:$0xf] }
 0x1f7   :  { %6297 = vmatpush.bf16.msrb.mxu3 %v10065_v7  ;;  %v11191_v7 = vld [vmem:[#allocation2 + $0xba8] sm:$0xf0]  ;;  %v10834_v61 = vld [vmem:[#allocation2 + $0x84] sm:$0xf]  ;;  %v7430_v59 = vld [vmem:[#allocation2 + $0x15c] sm:$0xf0] }
 0x1f8   :  { %6259 = vmatpush.bf16.msrb.mxu0 %v8081_v29  ;;  %v10508_v29 = vld [vmem:[#allocation2 + $0x1890] sm:$0xf]  ;;  %v8749_v40 = vor.u32 %v11191_v7, %v8748_v41  ;;  %v11247_v0 = vld [vmem:[#allocation2 + $0xd68] sm:$0xf0] }
 0x1f9   :  { %6272 = vmatpush.bf16.msrb.mxu1 %v9841_v34  ;;  %v10733_v34 = vor.u32 %v11659_v37, %v10730_v2  ;;  %v10509_v43 = vor.u32 %v11631_v6, %v10508_v29  ;;  %v9850_v2 = vld [vmem:[#allocation2 + $0x1444] sm:$0xf0]  ;;  %v7868_v7 = vld [vmem:[#allocation2 + $0x3f0] sm:$0xf]  ;;  %v11411_v6 = vld [vmem:[#allocation2 + $0x1288] sm:$0xf0] }
 0x1fa   :  { %6285 = vmatpush.bf16.msrb.mxu2 %v8085_v39  ;;  %v6045_v39 = vpop.f32.mrf.mxu3  ;;  %v9628_v29 = vld [vmem:[#allocation2 + $0x11b0] sm:$0xf]  ;;  %v9853_v30 = vor.u32 %v11439_v8, %v9850_v2 }
 0x1fb   :  { %6298 = vmatpush.bf16.msrb.mxu3 %v9845_v47  ;;  %v10510_v47 = vld [vmem:[#allocation2 + $0x196c] sm:$0xf0]  ;;  %v972_v39 = vperm.slane %v12028_v28, 7  ;;  %v11329_v28 = vld [vmem:[#allocation2 + $0xffc] sm:$0xf] }
 0x1fc   :  { %6260 = vmatpush.bf16.msrb.mxu0 %v7861_v44  ;;  %v8528_v44 = vld [vmem:[#allocation2 + $0x918] sm:$0xf]  ;;  %v10513_v52 = vor.u32 %v11604_v46, %v10510_v47  ;;  %v11384_v47 = vld [vmem:[#allocation2 + $0x11b4] sm:$0xf]  ;;  %v8976_v62 = vld [vmem:[#allocation2 + $0xc90] sm:$0xf] }
 0x1fd   :  { %6273 = vmatpush.bf16.msrb.mxu1 %v9621_v49  ;;  %v10288_v49 = vld [vmem:[#allocation2 + $0x16d8] sm:$0xf]  ;;  %v10738_v8 = vld [vmem:[#allocation2 + $0x1b2c] sm:$0xf0] }
 0x1fe   :  { %6286 = vmatpush.bf16.msrb.mxu2 %v7865_v53  ;;  %v11109_v53 = vld [vmem:[#allocation2 + $0x91c] sm:$0xf] }
 0x1ff   :  { %6299 = vmatpush.bf16.msrb.mxu3 %v9625_v56  ;;  %v8529_v56 = vor.u32 %v11136_v45, %v8528_v44  ;;  %v8533_v5 = vor.u32 %v11109_v53, %v8530_v54  ;;  %v7648_v44 = vld [vmem:[#allocation2 + $0x238] sm:$0xf]  ;;  %v10916_v45 = vld [vmem:[#allocation2 + $0x310] sm:$0xf0]  ;;  %v10889_v53 = vld [vmem:[#allocation2 + $0x23c] sm:$0xf] }
 0x200   :  { %6261 = vmatpush.bf16.msrb.mxu0 %v7641_v35  ;;  %v10289_v35 = vor.u32 %v11576_v51, %v10288_v49 }
 0x201   :  { %6274 = vmatpush.bf16.msrb.mxu1 %v9401_v10  ;;  %v11521_v10 = vld [vmem:[#allocation2 + $0x15f8] sm:$0xf0] }
 0x202   :  { %6287 = vmatpush.bf16.msrb.mxu2 %v7645_v12  ;;  %v6005_v12 = vadd.f32 %v12052_v32, %v969_v55  ;;  %v8090_v32 = vld [vmem:[#allocation2 + $0x684] sm:$0xf0]  ;;  %v9633_v55 = vor.u32 %v11384_v47, %v9630_v42  ;;  %v11605_v42 = vld [vmem:[#allocation2 + $0x189c] sm:$0xf] }
 0x203   :  { %6300 = vmatpush.bf16.msrb.mxu3 %v9405_v15  ;;  %v10069_v15 = vor.u32 %v11521_v10, %v10068_v9 }
 0x204   :  { %6262 = vmatpush.bf16.msrb.mxu0 %v7421_v22  ;;  %v9848_v22 = vld [vmem:[#allocation2 + $0x1368] sm:$0xf]  ;;  %v6056_v37 = vpop.f32.mrf.mxu0 }
 0x205   :  { %6275 = vmatpush.bf16.msrb.mxu1 %v9181_v25  ;;  %v6018_v25 = vadd.f32 %v12054_v50, %v6005_v12  ;;  %v6057_v41 = vadd.f32 %v6056_v37, %v971_v20  ;;  %v7870_v50 = vld [vmem:[#allocation2 + $0x4cc] sm:$0xf0]  ;;  %v11220_v20 = vld [vmem:[#allocation2 + $0xc94] sm:$0xf] }
 0x206   :  { %6288 = vmatpush.bf16.msrb.mxu2 %v7425_v26  ;;  %v6926_v26 = vmul.f32 0.5, %v6044_v14  ;;  %v7873_v51 = vor.u32 %v10944_v36, %v7870_v50  ;;  %v10736_v14 = vld [vmem:[#allocation2 + $0x1a50] sm:$0xf]  ;;  %v11660_v37 = vld [vmem:[#allocation2 + $0x1a54] sm:$0xf] }
 0x207   :  { %6301 = vmatpush.bf16.msrb.mxu3 %v9185_v27  ;;  %6263 = vmatmul.bf16.vlgmr.msrb.gmra.mxu0 %v11866_v17  ;;  %v8093_v27 = vor.u32 %v10999_v33, %v8090_v32  ;;  %v6925_v13 = vmul.f32 0.5, %v6018_v25  ;;  %v11274_v33 = vld [vmem:[#allocation2 + $0xe44] sm:$0xf]  ;;  %v9190_v32 = vld [vmem:[#allocation2 + $0xf1c] sm:$0xf0] }
 0x208   :  { %6307 = vmatpush.bf16.msra.mxu0 %v8969_v38  ;;  %6276 = vmatmul.bf16.vlgmr.msrb.gmra.mxu1 %v11868_v19  ;;  %v8089_v38 = vor.u32 %v11026_v18, %v8088_v16  ;;  %11741 = vtanh.f32 %v6926_v26  ;;  %v9413_v16 = vor.u32 %v11329_v28, %v9410_v57  ;;  %v11687_v18 = vld [vmem:[#allocation2 + $0x1b28] sm:$0xf0]  ;;  %v11632_v36 = vld [vmem:[#allocation2 + $0x1970] sm:$0xf0]  ;;  %v11110_v57 = vld [vmem:[#allocation2 + $0x924] sm:$0xf] }
 0x209   :  { %6320 = vmatpush.bf16.msra.mxu1 %v10729_v4  ;;  %6289 = vmatmul.bf16.vlgmr.msrb.gmra.mxu2 %v11866_v17  ;;  %v9849_v4 = vor.u32 %v11466_v23, %v9848_v22 }
 0x20a   :  { %6333 = vmatpush.bf16.msra.mxu2 %v8973_v3  ;;  %6302 = vmatmul.bf16.vlgmr.msrb.gmra.mxu3 %v11868_v19  ;;  %v10971_v3 = vld [vmem:[#allocation2 + $0x4c8] sm:$0xf0] }
 0x20b   :  { %6346 = vmatpush.bf16.msra.mxu3 %v10733_v34  ;;  %v6069_v34 = vpop.f32.mrf.mxu1  ;;  %v7869_v46 = vor.u32 %v10971_v3, %v7868_v7  ;;  %v8756_v7 = vld [vmem:[#allocation2 + $0xad8] sm:$0xf]  ;;  %v11192_v3 = vld [vmem:[#allocation2 + $0xbb0] sm:$0xf0] }
 0x20c   :  { %6308 = vmatpush.bf16.msra.mxu0 %v8749_v40  ;;  %v6070_v40 = vadd.f32 %v6069_v34, %v6057_v41  ;;  %v6082_v54 = vpop.f32.mrf.mxu2  ;;  %v6058_v9 = vpop.f32.mrf.mxu0  ;;  %v10737_v41 = vor.u32 %v11687_v18, %v10736_v14  ;;  %v10516_v34 = vld [vmem:[#allocation2 + $0x1898] sm:$0xf]  ;;  %v8757_v47 = vor.u32 %v11192_v3, %v8756_v7  ;;  %v11440_v3 = vld [vmem:[#allocation2 + $0x1374] sm:$0xf] }
 0x20d   :  { %6321 = vmatpush.bf16.msra.mxu1 %v10509_v43  ;;  %v9629_v43 = vor.u32 %v11411_v6, %v9628_v29  ;;  %v6083_v58 = vadd.f32 %v6082_v54, %v972_v39  ;;  %v6095_v31 = vpop.f32.mrf.mxu3  ;;  %v11165_v39 = vld [vmem:[#allocation2 + $0xadc] sm:$0xf]  ;;  %v10296_v54 = vld [vmem:[#allocation2 + $0x16e0] sm:$0xf] }
 0x20e   :  { %6334 = vmatpush.bf16.msra.mxu2 %v8753_v48  ;;  %v9408_v48 = vld [vmem:[#allocation2 + $0xff8] sm:$0xf]  ;;  %v6927_v49 = vmul.f32 0.5, %v6070_v40 }
 0x20f   :  { %6347 = vmatpush.bf16.msra.mxu3 %v10513_v52  ;;  %v11356_v52 = vld [vmem:[#allocation2 + $0x10d0] sm:$0xf0]  ;;  %v6096_v12 = vadd.f32 %v6095_v31, %v6083_v58  ;;  %v8758_v40 = vld [vmem:[#allocation2 + $0xbb4] sm:$0xf0]  ;;  %v8538_v58 = vld [vmem:[#allocation2 + $0x9fc] sm:$0xf0] }
 0x210   :  { %6309 = vmatpush.bf16.msra.mxu0 %v8529_v56  ;;  %v7650_v56 = vld [vmem:[#allocation2 + $0x314] sm:$0xf0]  ;;  %11743 = vtanh.f32 %v6927_v49  ;;  %v9409_v10 = vor.u32 %v11356_v52, %v9408_v48  ;;  %v10517_v48 = vor.u32 %v11632_v36, %v10516_v34  ;;  %v8536_v49 = vld [vmem:[#allocation2 + $0x920] sm:$0xf]  ;;  %v10972_v34 = vld [vmem:[#allocation2 + $0x4d0] sm:$0xf0] }
 0x211   :  { %6322 = vmatpush.bf16.msra.mxu1 %v10289_v35  ;;  %v7649_v35 = vor.u32 %v10916_v45, %v7648_v44  ;;  %11745 = vtanh.f32 %v6925_v13  ;;  %v6928_v23 = vmul.f32 0.5, %v6096_v12  ;;  %v10741_v13 = vor.u32 %v11660_v37, %v10738_v8  ;;  %v9856_v37 = vld [vmem:[#allocation2 + $0x1370] sm:$0xf]  ;;  %v11467_v8 = vld [vmem:[#allocation2 + $0x1448] sm:$0xf0] }
 0x212   :  { %6335 = vmatpush.bf16.msra.mxu2 %v8533_v5  ;;  %v9188_v5 = vld [vmem:[#allocation2 + $0xe40] sm:$0xf] }
 0x213   :  { %6348 = vmatpush.bf16.msra.mxu3 %v10293_v11  ;;  %v11301_v11 = vld [vmem:[#allocation2 + $0xf18] sm:$0xf0]  ;;  %v6071_v22 = vpop.f32.mrf.mxu1  ;;  %11747 = vtanh.f32 %v6928_v23 }
 0x214   :  { %6310 = vmatpush.bf16.msra.mxu0 %v8309_v60  ;;  %v7653_v60 = vor.u32 %v10889_v53, %v7650_v56  ;;  %v9189_v25 = vor.u32 %v11301_v11, %v9188_v5  ;;  %v6084_v50 = vpop.f32.mrf.mxu2  ;;  %v8761_v53 = vor.u32 %v11165_v39, %v8758_v40  ;;  %v8316_v11 = vld [vmem:[#allocation2 + $0x768] sm:$0xf]  ;;  %v10945_v40 = vld [vmem:[#allocation2 + $0x3fc] sm:$0xf] }
 0x215   :  { %6323 = vmatpush.bf16.msra.mxu1 %v10069_v15  ;;  %v11742_v15 = vpop.eup %11741  ;;  %v10078_v22 = vld [vmem:[#allocation2 + $0x1604] sm:$0xf0]  ;;  %v9636_v50 = vld [vmem:[#allocation2 + $0x11b8] sm:$0xf] }
 0x216   :  { %6336 = vmatpush.bf16.msra.mxu2 %v8313_v21  ;;  %v8978_v21 = vld [vmem:[#allocation2 + $0xd6c] sm:$0xf0]  ;;  %v11744_v2 = vpop.eup %11743  ;;  %v7036_v26 = vadd.f32 1.0, %v11742_v15  ;;  %v11055_v15 = vld [vmem:[#allocation2 + $0x76c] sm:$0xf] }
 0x217   :  { %6349 = vmatpush.bf16.msra.mxu3 %v10073_v24  ;;  %v7429_v24 = vor.u32 %v10861_v1, %v7428_v63  ;;  %v7037_v29 = vadd.f32 1.0, %v11744_v2  ;;  %v8981_v6 = vor.u32 %v11220_v20, %v8978_v21  ;;  %v11550_v63 = vld [vmem:[#allocation2 + $0x16e4] sm:$0xf]  ;;  %v10298_v1 = vld [vmem:[#allocation2 + $0x17bc] sm:$0xf0] }
 0x218   :  { %6311 = vmatpush.bf16.msra.mxu0 %v8089_v38  ;;  %v8977_v38 = vor.u32 %v11247_v0, %v8976_v62  ;;  %v7091_v45 = vmul.f32 0.5, %v7036_v26  ;;  %v10076_v62 = vld [vmem:[#allocation2 + $0x1528] sm:$0xf]  ;;  %v11522_v0 = vld [vmem:[#allocation2 + $0x1600] sm:$0xf0]  ;;  %v10301_v14 = vor.u32 %v11550_v63, %v10298_v1 }
 0x219   :  { %6324 = vmatpush.bf16.msra.mxu1 %v9849_v4  ;;  %v7433_v4 = vor.u32 %v10834_v61, %v7430_v59  ;;  %v7092_v52 = vmul.f32 0.5, %v7037_v29  ;;  %v11082_v61 = vld [vmem:[#allocation2 + $0x840] sm:$0xf0]  ;;  %v11495_v21 = vld [vmem:[#allocation2 + $0x152c] sm:$0xf]  ;;  %v10077_v23 = vor.u32 %v11522_v0, %v10076_v62 }
 0x21a   :  { %6337 = vmatpush.bf16.msra.mxu2 %v8093_v27  ;;  %v11746_v27 = vpop.eup %11745  ;;  %v7195_v9 = vrot.slane %v7091_v45, 6  ;;  %v8317_v20 = vor.u32 %v11082_v61, %v8316_v11  ;;  %v10081_v26 = vor.u32 %v11495_v21, %v10078_v22  ;;  %v10862_v63 = vld [vmem:[#allocation2 + $0x160] sm:$0xf0]  ;;  %v10835_v61 = vld [vmem:[#allocation2 + $0x8c] sm:$0xf] }
 0x21b   :  { %6350 = vmatpush.bf16.msra.mxu3 %v9853_v30  ;;  %v9193_v30 = vor.u32 %v11274_v33, %v9190_v32  ;;  %v7035_v44 = vadd.f32 1.0, %v11746_v27  ;;  %v11748_v56 = vpop.eup %11747  ;;  %v7196_v59 = vrot.slane %v7092_v52, 4  ;;  %v11027_v33 = vld [vmem:[#allocation2 + $0x688] sm:$0xf0]  ;;  %v9858_v27 = vld [vmem:[#allocation2 + $0x144c] sm:$0xf0] }
 0x21c   :  { %6312 = vmatpush.bf16.msra.mxu0 %v7869_v46  ;;  %v6097_v46 = vpop.f32.mrf.mxu3  ;;  %v7038_v31 = vadd.f32 1.0, %v11748_v56  ;;  %v9861_v39 = vor.u32 %v11440_v3, %v9858_v27  ;;  %v9416_v52 = vld [vmem:[#allocation2 + $0x1000] sm:$0xf]  ;;  %v11302_v11 = vld [vmem:[#allocation2 + $0xf20] sm:$0xf0] }
 0x21d   :  { %6325 = vmatpush.bf16.msra.mxu1 %v9629_v43  ;;  %v10518_v43 = vld [vmem:[#allocation2 + $0x1974] sm:$0xf0]  ;;  %v7090_v5 = vmul.f32 0.5, %v7035_v44  ;;  %v7658_v56 = vld [vmem:[#allocation2 + $0x31c] sm:$0xf0] }
 0x21e   :  { %6338 = vmatpush.bf16.msra.mxu2 %v7873_v51  ;;  %v11137_v51 = vld [vmem:[#allocation2 + $0x9f8] sm:$0xf0]  ;;  %v10521_v28 = vor.u32 %v11605_v42, %v10518_v43  ;;  %v7093_v12 = vmul.f32 0.5, %v7038_v31  ;;  %v7878_v46 = vld [vmem:[#allocation2 + $0x4d4] sm:$0xf0] }
 0x21f   :  { %6351 = vmatpush.bf16.msra.mxu3 %v9633_v55  ;;  %v11577_v55 = vld [vmem:[#allocation2 + $0x17b8] sm:$0xf0]  ;;  %v7239_v32 = vsel %vm7221_vm0, %v7090_v5, %v7195_v9  ;;  %v9638_v44 = vld [vmem:[#allocation2 + $0x1294] sm:$0xf0]  ;;  %v9418_v31 = vld [vmem:[#allocation2 + $0x10dc] sm:$0xf0] }
 0x220   :  { %6313 = vmatpush.bf16.msra.mxu0 %v7649_v35  ;;  %v8537_v35 = vor.u32 %v11137_v51, %v8536_v49  ;;  %v7197_v18 = vrot.slane %v7093_v12, 2  ;;  %v11385_v43 = vld [vmem:[#allocation2 + $0x11bc] sm:$0xf]  ;;  %v7881_v51 = vor.u32 %v10945_v40, %v7878_v46  ;;  %v7438_v12 = vld [vmem:[#allocation2 + $0x164] sm:$0xf0] }
 0x221   :  { %6326 = vmatpush.bf16.msra.mxu1 %v9409_v10  ;;  %v10297_v10 = vor.u32 %v11577_v55, %v10296_v54  ;;  %v10917_v49 = vld [vmem:[#allocation2 + $0x318] sm:$0xf0]  ;;  %v9641_v54 = vor.u32 %v11385_v43, %v9638_v44  ;;  %v10890_v55 = vld [vmem:[#allocation2 + $0x244] sm:$0xf]  ;;  %v11248_v62 = vld [vmem:[#allocation2 + $0xd70] sm:$0xf0] }
 0x222   :  { %6339 = vmatpush.bf16.msra.mxu2 %v7653_v60  ;;  %v8541_v60 = vor.u32 %v11110_v57, %v8538_v58  ;;  %v8986_v21 = vld [vmem:[#allocation2 + $0xd74] sm:$0xf0]  ;;  %v11275_v22 = vld [vmem:[#allocation2 + $0xe4c] sm:$0xf]  ;;  %v11633_v3 = vld [vmem:[#allocation2 + $0x1978] sm:$0xf0] }
 0x223   :  { %6352 = vmatpush.bf16.msra.mxu3 %v9413_v16  ;;  %v8318_v16 = vld [vmem:[#allocation2 + $0x844] sm:$0xf0]  ;;  %v11138_v43 = vld [vmem:[#allocation2 + $0xa00] sm:$0xf0] }
 0x224   :  { %6314 = vmatpush.bf16.msra.mxu0 %v7429_v24  ;;  %v8096_v24 = vld [vmem:[#allocation2 + $0x5b0] sm:$0xf]  ;;  %v12082_v29 = vpop.f32.mrf.mxu0 }
 0x225   :  { %6327 = vmatpush.bf16.msra.mxu1 %v9189_v25  ;;  %v7240_v25 = vsel %vm7223_vm1, %v7196_v59, %v7197_v18  ;;  %v8097_v7 = vor.u32 %v11027_v33, %v8096_v24  ;;  %v7661_v59 = vor.u32 %v10890_v55, %v7658_v56  ;;  %v11551_v55 = vld [vmem:[#allocation2 + $0x16ec] sm:$0xf]  ;;  %v10306_v56 = vld [vmem:[#allocation2 + $0x17c4] sm:$0xf0] }
 0x226   :  { %6340 = vmatpush.bf16.msra.mxu2 %v7433_v4  ;;  %v7241_v2 = vsel %vm7225_vm2, %v7239_v32, %v7240_v25  ;;  %v11000_v4 = vld [vmem:[#allocation2 + $0x5b4] sm:$0xf]  ;;  %v11661_v32 = vld [vmem:[#allocation2 + $0x1a5c] sm:$0xf]  ;;  %v10746_v25 = vld [vmem:[#allocation2 + $0x1b34] sm:$0xf0] }
 0x227   :  { %6353 = vmatpush.bf16.msra.mxu3 %v9193_v30  ;;  %6315 = vmatmul.bf16.vlgmr.msra.gmra.mxu0 %v11866_v17  ;;  %7284 = vst [vmem:[%s12285_s3 + $0x28] sm:$0xff] %v7241_v2  ;;  %v7876_v30 = vld [vmem:[#allocation2 + $0x3f8] sm:$0xf]  ;;  %v11193_v2 = vld [vmem:[#allocation2 + $0xbb8] sm:$0xf0] }
 0x228   :  { %6359 = vmatpush.bf16.msrb.mxu0 %v8977_v38  ;;  %6328 = vmatmul.bf16.vlgmr.msra.gmra.mxu1 %v11868_v19  ;;  %v8321_v38 = vor.u32 %v11055_v15, %v8318_v16  ;;  %v7877_v42 = vor.u32 %v10972_v34, %v7876_v30  ;;  %v11688_v15 = vld [vmem:[#allocation2 + $0x1b30] sm:$0xf0]  ;;  %v11221_v16 = vld [vmem:[#allocation2 + $0xc9c] sm:$0xf]  ;;  %v11166_v30 = vld [vmem:[#allocation2 + $0xae4] sm:$0xf] }
 0x229   :  { %6372 = vmatpush.bf16.msrb.mxu1 %v10737_v41  ;;  %6341 = vmatmul.bf16.vlgmr.msra.gmra.mxu2 %v11866_v17  ;;  %v8098_v41 = vld [vmem:[#allocation2 + $0x68c] sm:$0xf0]  ;;  %v8766_v34 = vld [vmem:[#allocation2 + $0xbbc] sm:$0xf0] }
 0x22a   :  { %6385 = vmatpush.bf16.msrb.mxu2 %v8981_v6  ;;  %6354 = vmatmul.bf16.vlgmr.msra.gmra.mxu3 %v11868_v19  ;;  %v9857_v6 = vor.u32 %v11467_v8, %v9856_v37  ;;  %v8101_v36 = vor.u32 %v11000_v4, %v8098_v41  ;;  %v8764_v8 = vld [vmem:[#allocation2 + $0xae0] sm:$0xf]  ;;  %v12093_v4 = vld [vmem:[%s12284_s2 + $0x18] sm:$0xff]  ;;  %v8769_v44 = vor.u32 %v11166_v30, %v8766_v34  ;;  %v10946_v30 = vld [vmem:[#allocation2 + $0x404] sm:$0xf] }
 0x22b   :  { %6398 = vmatpush.bf16.msrb.mxu3 %v10741_v13  ;;  %v11412_v13 = vld [vmem:[#allocation2 + $0x1290] sm:$0xf0]  ;;  %v974_v40 = vperm.slane %v12093_v4, 1 }
 0x22c   :  { %6360 = vmatpush.bf16.msrb.mxu0 %v8757_v47  ;;  %v12084_v47 = vpop.f32.mrf.mxu1  ;;  %v9637_v45 = vor.u32 %v11412_v13, %v9636_v50  ;;  %v12086_v57 = vpop.f32.mrf.mxu2  ;;  %v8765_v50 = vor.u32 %v11193_v2, %v8764_v8  ;;  %v11606_v13 = vld [vmem:[#allocation2 + $0x18a4] sm:$0xf]  ;;  %v7884_v2 = vld [vmem:[#allocation2 + $0x400] sm:$0xf] }
 0x22d   :  { %6373 = vmatpush.bf16.msrb.mxu1 %v10517_v48  ;;  %v7656_v48 = vld [vmem:[#allocation2 + $0x240] sm:$0xf]  ;;  %v12088_v1 = vpop.f32.mrf.mxu3  ;;  %v6110_v5 = vpop.f32.mrf.mxu0 }
 0x22e   :  { %6386 = vmatpush.bf16.msrb.mxu2 %v8761_v53  ;;  %v11357_v53 = vld [vmem:[#allocation2 + $0x10d8] sm:$0xf0]  ;;  %v7657_v58 = vor.u32 %v10917_v49, %v7656_v48  ;;  %v11578_v48 = vld [vmem:[#allocation2 + $0x17c0] sm:$0xf0]  ;;  %v10084_v5 = vld [vmem:[#allocation2 + $0x1530] sm:$0xf] }
 0x22f   :  { %6399 = vmatpush.bf16.msrb.mxu3 %v10521_v28  ;;  %v11330_v28 = vld [vmem:[#allocation2 + $0x1004] sm:$0xf]  ;;  %v9417_v9 = vor.u32 %v11357_v53, %v9416_v52  ;;  %v8546_v52 = vld [vmem:[#allocation2 + $0xa04] sm:$0xf0]  ;;  %v973_v53 = vperm.slane %v12093_v4, 0 }
 0x230   :  { %6361 = vmatpush.bf16.msrb.mxu0 %v8537_v35  ;;  %v7436_v35 = vld [vmem:[#allocation2 + $0x88] sm:$0xf]  ;;  %v9421_v0 = vor.u32 %v11330_v28, %v9418_v31  ;;  %v6135_v28 = vadd.f32 %v12086_v57, %v974_v40  ;;  %v8324_v31 = vld [vmem:[#allocation2 + $0x770] sm:$0xf]  ;;  %v9646_v40 = vld [vmem:[#allocation2 + $0x129c] sm:$0xf0] }
 0x231   :  { %6374 = vmatpush.bf16.msrb.mxu1 %v10297_v10  ;;  %v9196_v10 = vld [vmem:[#allocation2 + $0xe48] sm:$0xf] }
 0x232   :  { %6387 = vmatpush.bf16.msrb.mxu2 %v8541_v60  ;;  %v8984_v60 = vld [vmem:[#allocation2 + $0xc98] sm:$0xf]  ;;  %v9197_v24 = vor.u32 %v11302_v11, %v9196_v10  ;;  %v10309_v10 = vor.u32 %v11551_v55, %v10306_v56  ;;  %v11056_v11 = vld [vmem:[#allocation2 + $0x774] sm:$0xf]  ;;  %v11331_v55 = vld [vmem:[#allocation2 + $0x100c] sm:$0xf] }
 0x233   :  { %6400 = vmatpush.bf16.msrb.mxu3 %v10301_v14  ;;  %v10744_v14 = vld [vmem:[#allocation2 + $0x1a58] sm:$0xf]  ;;  %v8985_v33 = vor.u32 %v11248_v62, %v8984_v60  ;;  %v10086_v60 = vld [vmem:[#allocation2 + $0x160c] sm:$0xf0]  ;;  %v6148_v62 = vadd.f32 %v12088_v1, %v6135_v28  ;;  %v11441_v1 = vld [vmem:[#allocation2 + $0x137c] sm:$0xf] }
 0x234   :  { %6362 = vmatpush.bf16.msrb.mxu0 %v8317_v20  ;;  %v6123_v18 = vpop.f32.mrf.mxu1  ;;  %v7437_v20 = vor.u32 %v10862_v63, %v7436_v35  ;;  %v10745_v37 = vor.u32 %v11688_v15, %v10744_v14  ;;  %v6136_v27 = vpop.f32.mrf.mxu2  ;;  %v11083_v35 = vld [vmem:[#allocation2 + $0x848] sm:$0xf0]  ;;  %v8104_v14 = vld [vmem:[#allocation2 + $0x5b8] sm:$0xf]  ;;  %v11028_v15 = vld [vmem:[#allocation2 + $0x690] sm:$0xf0] }
 0x235   :  { %6375 = vmatpush.bf16.msrb.mxu1 %v10077_v23  ;;  %v9198_v23 = vld [vmem:[#allocation2 + $0xf24] sm:$0xf0]  ;;  %v8325_v57 = vor.u32 %v11083_v35, %v8324_v31  ;;  %v7444_v35 = vld [vmem:[#allocation2 + $0x90] sm:$0xf] }
 0x236   :  { %6388 = vmatpush.bf16.msrb.mxu2 %v8321_v38  ;;  %v7441_v38 = vor.u32 %v10835_v61, %v7438_v12  ;;  %v9201_v41 = vor.u32 %v11275_v22, %v9198_v23  ;;  %v8326_v61 = vld [vmem:[#allocation2 + $0x84c] sm:$0xf0]  ;;  %v11496_v12 = vld [vmem:[#allocation2 + $0x1534] sm:$0xf]  ;;  %v11001_v23 = vld [vmem:[#allocation2 + $0x5bc] sm:$0xf] }
 0x237   :  { %6401 = vmatpush.bf16.msrb.mxu3 %v10081_v26  ;;  %v8989_v26 = vor.u32 %v11221_v16, %v8986_v21  ;;  %v975_v16 = vperm.slane %v12093_v4, 2  ;;  %v8329_v18 = vor.u32 %v11056_v11, %v8326_v61  ;;  %v11468_v21 = vld [vmem:[#allocation2 + $0x1450] sm:$0xf0]  ;;  %v10089_v22 = vor.u32 %v11496_v12, %v10086_v60  ;;  %v9426_v56 = vld [vmem:[#allocation2 + $0x10e4] sm:$0xf0] }
 0x238   :  { %6363 = vmatpush.bf16.msrb.mxu0 %v8097_v7  ;;  %v10524_v7 = vld [vmem:[#allocation2 + $0x18a0] sm:$0xf]  ;;  %v11303_v11 = vld [vmem:[#allocation2 + $0xf28] sm:$0xf0]  ;;  %v10836_v61 = vld [vmem:[#allocation2 + $0x94] sm:$0xf] }
 0x239   :  { %6376 = vmatpush.bf16.msrb.mxu1 %v9857_v6  ;;  %v10749_v6 = vor.u32 %v11661_v32, %v10746_v25  ;;  %v10525_v46 = vor.u32 %v11633_v3, %v10524_v7  ;;  %v9866_v25 = vld [vmem:[#allocation2 + $0x1454] sm:$0xf0]  ;;  %v9644_v7 = vld [vmem:[#allocation2 + $0x11c0] sm:$0xf]  ;;  %v11413_v3 = vld [vmem:[#allocation2 + $0x1298] sm:$0xf0] }
 0x23a   :  { %6389 = vmatpush.bf16.msrb.mxu2 %v8101_v36  ;;  %v6149_v36 = vpop.f32.mrf.mxu3  ;;  %v9869_v27 = vor.u32 %v11441_v1, %v9866_v25  ;;  %v8992_v60 = vld [vmem:[#allocation2 + $0xca0] sm:$0xf]  ;;  %v11662_v1 = vld [vmem:[#allocation2 + $0x1a64] sm:$0xf] }
 0x23b   :  { %6402 = vmatpush.bf16.msrb.mxu3 %v9861_v39  ;;  %v10526_v39 = vld [vmem:[#allocation2 + $0x197c] sm:$0xf0]  ;;  %v976_v36 = vperm.slane %v12093_v4, 3 }
 0x23c   :  { %6364 = vmatpush.bf16.msrb.mxu0 %v7877_v42  ;;  %v8544_v42 = vld [vmem:[#allocation2 + $0x928] sm:$0xf]  ;;  %v10529_v49 = vor.u32 %v11606_v13, %v10526_v39  ;;  %v11386_v39 = vld [vmem:[#allocation2 + $0x11c4] sm:$0xf]  ;;  %v10754_v25 = vld [vmem:[#allocation2 + $0x1b3c] sm:$0xf0] }
 0x23d   :  { %6377 = vmatpush.bf16.msrb.mxu1 %v9637_v45  ;;  %v10304_v45 = vld [vmem:[#allocation2 + $0x16e8] sm:$0xf] }
 0x23e   :  { %6390 = vmatpush.bf16.msrb.mxu2 %v7881_v51  ;;  %v11111_v51 = vld [vmem:[#allocation2 + $0x92c] sm:$0xf] }
 0x23f   :  { %6403 = vmatpush.bf16.msrb.mxu3 %v9641_v54  ;;  %v8545_v54 = vor.u32 %v11138_v43, %v8544_v42  ;;  %v8549_v63 = vor.u32 %v11111_v51, %v8546_v52  ;;  %v7664_v42 = vld [vmem:[#allocation2 + $0x248] sm:$0xf]  ;;  %v10918_v43 = vld [vmem:[#allocation2 + $0x320] sm:$0xf0]  ;;  %v10891_v51 = vld [vmem:[#allocation2 + $0x24c] sm:$0xf] }
 0x240   :  { %6365 = vmatpush.bf16.msrb.mxu0 %v7657_v58  ;;  %v10305_v58 = vor.u32 %v11578_v48, %v10304_v45  ;;  %v7665_v31 = vor.u32 %v10918_v43, %v7664_v42  ;;  %v10534_v42 = vld [vmem:[#allocation2 + $0x1984] sm:$0xf0] }
 0x241   :  { %6378 = vmatpush.bf16.msrb.mxu1 %v9417_v9  ;;  %v11523_v9 = vld [vmem:[#allocation2 + $0x1608] sm:$0xf0] }
 0x242   :  { %6391 = vmatpush.bf16.msrb.mxu2 %v7661_v59  ;;  %v6109_v59 = vadd.f32 %v12082_v29, %v973_v53  ;;  %v8106_v29 = vld [vmem:[#allocation2 + $0x694] sm:$0xf0]  ;;  %v9649_v53 = vor.u32 %v11386_v39, %v9646_v40 }
 0x243   :  { %6404 = vmatpush.bf16.msrb.mxu3 %v9421_v0  ;;  %v10085_v0 = vor.u32 %v11523_v9, %v10084_v5  ;;  %v9204_v5 = vld [vmem:[#allocation2 + $0xe50] sm:$0xf] }
 0x244   :  { %6366 = vmatpush.bf16.msrb.mxu0 %v7437_v20  ;;  %v9864_v20 = vld [vmem:[#allocation2 + $0x1378] sm:$0xf]  ;;  %v6160_v32 = vpop.f32.mrf.mxu0 }
 0x245   :  { %6379 = vmatpush.bf16.msrb.mxu1 %v9197_v24  ;;  %v6122_v24 = vadd.f32 %v12084_v47, %v6109_v59  ;;  %v6161_v8 = vadd.f32 %v6160_v32, %v975_v16  ;;  %v7886_v47 = vld [vmem:[#allocation2 + $0x4dc] sm:$0xf0]  ;;  %v7446_v59 = vld [vmem:[#allocation2 + $0x16c] sm:$0xf0]  ;;  %v11689_v16 = vld [vmem:[#allocation2 + $0x1b38] sm:$0xf0] }
 0x246   :  { %6392 = vmatpush.bf16.msrb.mxu2 %v7441_v38  ;;  %v6930_v38 = vmul.f32 0.5, %v6148_v62  ;;  %v7889_v48 = vor.u32 %v10946_v30, %v7886_v47  ;;  %v11249_v62 = vld [vmem:[#allocation2 + $0xd78] sm:$0xf0]  ;;  %v10532_v30 = vld [vmem:[#allocation2 + $0x18a8] sm:$0xf] }
 0x247   :  { %6405 = vmatpush.bf16.msrb.mxu3 %v9201_v41  ;;  %6367 = vmatmul.bf16.vlgmr.msrb.gmra.mxu0 %v11866_v17  ;;  %v8109_v41 = vor.u32 %v11001_v23, %v8106_v29  ;;  %v6929_v34 = vmul.f32 0.5, %v6122_v24  ;;  %v11276_v29 = vld [vmem:[#allocation2 + $0xe54] sm:$0xf]  ;;  %v9206_v24 = vld [vmem:[#allocation2 + $0xf2c] sm:$0xf0]  ;;  %v8993_v32 = vor.u32 %v11249_v62, %v8992_v60 }
 0x248   :  { %6411 = vmatpush.bf16.msra.mxu0 %v8985_v33  ;;  %6380 = vmatmul.bf16.vlgmr.msrb.gmra.mxu1 %v11868_v19  ;;  %v8105_v33 = vor.u32 %v11028_v15, %v8104_v14  ;;  %11749 = vtanh.f32 %v6930_v38  ;;  %v9429_v15 = vor.u32 %v11331_v55, %v9426_v56  ;;  %v11634_v47 = vld [vmem:[#allocation2 + $0x1980] sm:$0xf0]  ;;  %v10092_v62 = vld [vmem:[#allocation2 + $0x1538] sm:$0xf] }
 0x249   :  { %6424 = vmatpush.bf16.msra.mxu1 %v10745_v37  ;;  %6393 = vmatmul.bf16.vlgmr.msrb.gmra.mxu2 %v11866_v17  ;;  %v9865_v37 = vor.u32 %v11468_v21, %v9864_v20  ;;  %v8994_v20 = vld [vmem:[#allocation2 + $0xd7c] sm:$0xf0] }
 0x24a   :  { %6437 = vmatpush.bf16.msra.mxu2 %v8989_v26  ;;  %6406 = vmatmul.bf16.vlgmr.msrb.gmra.mxu3 %v11868_v19  ;;  %v10973_v26 = vld [vmem:[#allocation2 + $0x4d8] sm:$0xf0] }
 0x24b   :  { %6450 = vmatpush.bf16.msra.mxu3 %v10749_v6  ;;  %v6173_v6 = vpop.f32.mrf.mxu1  ;;  %v7885_v13 = vor.u32 %v10973_v26, %v7884_v2  ;;  %v8772_v26 = vld [vmem:[#allocation2 + $0xae8] sm:$0xf] }
 0x24c   :  { %6412 = vmatpush.bf16.msra.mxu0 %v8765_v50  ;;  %v6174_v50 = vadd.f32 %v6173_v6, %v6161_v8  ;;  %v6186_v52 = vpop.f32.mrf.mxu2  ;;  %v6162_v9 = vpop.f32.mrf.mxu0  ;;  %v7449_v8 = vor.u32 %v10836_v61, %v7446_v59  ;;  %v9209_v6 = vor.u32 %v11276_v29, %v9206_v24  ;;  %v8332_v61 = vld [vmem:[#allocation2 + $0x778] sm:$0xf]  ;;  %v11084_v59 = vld [vmem:[#allocation2 + $0x850] sm:$0xf0]  ;;  %v8112_v29 = vld [vmem:[#allocation2 + $0x5c0] sm:$0xf] }
 0x24d   :  { %6425 = vmatpush.bf16.msra.mxu1 %v10525_v46  ;;  %v9645_v46 = vor.u32 %v11413_v3, %v9644_v7  ;;  %v6187_v28 = vadd.f32 %v6186_v52, %v976_v36  ;;  %v10757_v36 = vor.u32 %v11662_v1, %v10754_v25  ;;  %v11029_v24 = vld [vmem:[#allocation2 + $0x698] sm:$0xf0]  ;;  %v9872_v25 = vld [vmem:[#allocation2 + $0x1380] sm:$0xf] }
 0x24e   :  { %6438 = vmatpush.bf16.msra.mxu2 %v8769_v44  ;;  %v9424_v44 = vld [vmem:[#allocation2 + $0x1008] sm:$0xf]  ;;  %v6931_v45 = vmul.f32 0.5, %v6174_v50  ;;  %v11750_v14 = vpop.eup %11749  ;;  %v11167_v50 = vld [vmem:[#allocation2 + $0xaec] sm:$0xf] }
 0x24f   :  { %6451 = vmatpush.bf16.msra.mxu3 %v10529_v49  ;;  %v11358_v49 = vld [vmem:[#allocation2 + $0x10e0] sm:$0xf0] }
 0x250   :  { %6413 = vmatpush.bf16.msra.mxu0 %v8545_v54  ;;  %v7666_v54 = vld [vmem:[#allocation2 + $0x324] sm:$0xf0]  ;;  %11751 = vtanh.f32 %v6931_v45  ;;  %v10533_v45 = vor.u32 %v11634_v47, %v10532_v30  ;;  %v10974_v47 = vld [vmem:[#allocation2 + $0x4e0] sm:$0xf0] }
 0x251   :  { %6426 = vmatpush.bf16.msra.mxu1 %v10305_v58  ;;  %v6199_v58 = vpop.f32.mrf.mxu3  ;;  %11753 = vtanh.f32 %v6929_v34  ;;  %v7669_v12 = vor.u32 %v10891_v51, %v7666_v54  ;;  %v11579_v54 = vld [vmem:[#allocation2 + $0x17c8] sm:$0xf0]  ;;  %v7892_v30 = vld [vmem:[#allocation2 + $0x408] sm:$0xf] }
 0x252   :  { %6439 = vmatpush.bf16.msra.mxu2 %v8549_v63  ;;  %v10863_v63 = vld [vmem:[#allocation2 + $0x168] sm:$0xf0] }
 0x253   :  { %6452 = vmatpush.bf16.msra.mxu3 %v10309_v10  ;;  %v9425_v10 = vor.u32 %v11358_v49, %v9424_v44  ;;  %v6175_v21 = vpop.f32.mrf.mxu1  ;;  %v7445_v23 = vor.u32 %v10863_v63, %v7444_v35  ;;  %v11139_v49 = vld [vmem:[#allocation2 + $0xa08] sm:$0xf0]  ;;  %v11552_v63 = vld [vmem:[#allocation2 + $0x16f4] sm:$0xf] }
 0x254   :  { %6414 = vmatpush.bf16.msra.mxu0 %v8325_v57  ;;  %v6200_v57 = vadd.f32 %v6199_v58, %v6187_v28  ;;  %v6188_v34 = vpop.f32.mrf.mxu2  ;;  %v11112_v28 = vld [vmem:[#allocation2 + $0x934] sm:$0xf]  ;;  %v8554_v58 = vld [vmem:[#allocation2 + $0xa0c] sm:$0xf0]  ;;  %v11497_v21 = vld [vmem:[#allocation2 + $0x153c] sm:$0xf] }
 0x255   :  { %6427 = vmatpush.bf16.msra.mxu1 %v10085_v0  ;;  %v10752_v0 = vld [vmem:[#allocation2 + $0x1a60] sm:$0xf]  ;;  %v8557_v60 = vor.u32 %v11112_v28, %v8554_v58  ;;  %v11332_v28 = vld [vmem:[#allocation2 + $0x1014] sm:$0xf] }
 0x256   :  { %6440 = vmatpush.bf16.msra.mxu2 %v8329_v18  ;;  %v11222_v18 = vld [vmem:[#allocation2 + $0xca4] sm:$0xf]  ;;  %v11752_v38 = vpop.eup %11751  ;;  %v10753_v2 = vor.u32 %v11689_v16, %v10752_v0  ;;  %v11524_v0 = vld [vmem:[#allocation2 + $0x1610] sm:$0xf0]  ;;  %v8334_v16 = vld [vmem:[#allocation2 + $0x854] sm:$0xf0] }
 0x257   :  { %6453 = vmatpush.bf16.msra.mxu3 %v10089_v22  ;;  %v6932_v22 = vmul.f32 0.5, %v6200_v57  ;;  %v11754_v7 = vpop.eup %11753  ;;  %v7041_v3 = vadd.f32 1.0, %v11752_v38  ;;  %v11469_v38 = vld [vmem:[#allocation2 + $0x1458] sm:$0xf0] }
 0x258   :  { %6415 = vmatpush.bf16.msra.mxu0 %v8105_v33  ;;  %v9205_v33 = vor.u32 %v11303_v11, %v9204_v5  ;;  %v7039_v43 = vadd.f32 1.0, %v11754_v7  ;;  %v10314_v5 = vld [vmem:[#allocation2 + $0x17cc] sm:$0xf0]  ;;  %v11442_v7 = vld [vmem:[#allocation2 + $0x1384] sm:$0xf] }
 0x259   :  { %6428 = vmatpush.bf16.msra.mxu1 %v9865_v37  ;;  %v7040_v37 = vadd.f32 1.0, %v11750_v14  ;;  %11755 = vtanh.f32 %v6932_v22  ;;  %v6201_v39 = vpop.f32.mrf.mxu3  ;;  %v7096_v51 = vmul.f32 0.5, %v7041_v3  ;;  %v10317_v14 = vor.u32 %v11552_v63, %v10314_v5  ;;  %v10094_v22 = vld [vmem:[#allocation2 + $0x1614] sm:$0xf0]  ;;  %v9874_v3 = vld [vmem:[#allocation2 + $0x145c] sm:$0xf0] }
 0x25a   :  { %6441 = vmatpush.bf16.msra.mxu2 %v8109_v41  ;;  %v11194_v41 = vld [vmem:[#allocation2 + $0xbc0] sm:$0xf0]  ;;  %v7094_v9 = vmul.f32 0.5, %v7039_v43  ;;  %v10947_v39 = vld [vmem:[#allocation2 + $0x40c] sm:$0xf] }
 0x25b   :  { %6454 = vmatpush.bf16.msra.mxu3 %v9869_v27  ;;  %v8997_v27 = vor.u32 %v11222_v18, %v8994_v20  ;;  %v8773_v40 = vor.u32 %v11194_v41, %v8772_v26  ;;  %v7095_v44 = vmul.f32 0.5, %v7040_v37  ;;  %v7199_v57 = vrot.slane %v7096_v51, 4  ;;  %v8114_v26 = vld [vmem:[#allocation2 + $0x69c] sm:$0xf0]  ;;  %v11387_v43 = vld [vmem:[#allocation2 + $0x11cc] sm:$0xf] }
 0x25c   :  { %6416 = vmatpush.bf16.msra.mxu0 %v7885_v13  ;;  %v8774_v13 = vld [vmem:[#allocation2 + $0xbc4] sm:$0xf0]  ;;  %v8333_v20 = vor.u32 %v11084_v59, %v8332_v61  ;;  %v8113_v41 = vor.u32 %v11029_v24, %v8112_v29  ;;  %v7452_v63 = vld [vmem:[#allocation2 + $0x98] sm:$0xf]  ;;  %v10864_v5 = vld [vmem:[#allocation2 + $0x170] sm:$0xf0] }
 0x25d   :  { %6429 = vmatpush.bf16.msra.mxu1 %v9645_v46  ;;  %v11607_v46 = vld [vmem:[#allocation2 + $0x18ac] sm:$0xf]  ;;  %v8777_v52 = vor.u32 %v11167_v50, %v8774_v13  ;;  %v11414_v50 = vld [vmem:[#allocation2 + $0x12a0] sm:$0xf0]  ;;  %v9877_v13 = vor.u32 %v11442_v7, %v9874_v3  ;;  %v9212_v61 = vld [vmem:[#allocation2 + $0xe58] sm:$0xf] }
 0x25e   :  { %6442 = vmatpush.bf16.msra.mxu2 %v7889_v48  ;;  %v8552_v48 = vld [vmem:[#allocation2 + $0x930] sm:$0xf]  ;;  %v10537_v56 = vor.u32 %v11607_v46, %v10534_v42  ;;  %v7893_v42 = vor.u32 %v10974_v47, %v7892_v30  ;;  %v11304_v59 = vld [vmem:[#allocation2 + $0xf30] sm:$0xf0]  ;;  %v9214_v29 = vld [vmem:[#allocation2 + $0xf34] sm:$0xf0] }
 0x25f   :  { %6455 = vmatpush.bf16.msra.mxu3 %v9649_v53  ;;  %v10312_v53 = vld [vmem:[#allocation2 + $0x16f0] sm:$0xf]  ;;  %v11756_v55 = vpop.eup %11755  ;;  %v8553_v35 = vor.u32 %v11139_v49, %v8552_v48  ;;  %v10919_v49 = vld [vmem:[#allocation2 + $0x328] sm:$0xf0]  ;;  %v9213_v24 = vor.u32 %v11304_v59, %v9212_v61  ;;  %v11168_v30 = vld [vmem:[#allocation2 + $0xaf4] sm:$0xf] }
 0x260   :  { %6417 = vmatpush.bf16.msra.mxu0 %v7665_v31  ;;  %v7042_v31 = vadd.f32 1.0, %v11756_v55  ;;  %v10313_v11 = vor.u32 %v11579_v54, %v10312_v53  ;;  %v7672_v48 = vld [vmem:[#allocation2 + $0x250] sm:$0xf]  ;;  %v11359_v53 = vld [vmem:[#allocation2 + $0x10e8] sm:$0xf0] }
 0x261   :  { %6430 = vmatpush.bf16.msra.mxu1 %v9425_v10  ;;  %v7198_v10 = vrot.slane %v7095_v44, 6  ;;  %v9654_v44 = vld [vmem:[#allocation2 + $0x12a4] sm:$0xf0]  ;;  %v10892_v55 = vld [vmem:[#allocation2 + $0x254] sm:$0xf] }
 0x262   :  { %6443 = vmatpush.bf16.msra.mxu2 %v7669_v12  ;;  %v7097_v12 = vmul.f32 0.5, %v7042_v31  ;;  %v9657_v54 = vor.u32 %v11387_v43, %v9654_v44  ;;  %v7673_v31 = vor.u32 %v10919_v49, %v7672_v48  ;;  %v11635_v7 = vld [vmem:[#allocation2 + $0x1988] sm:$0xf0]  ;;  %v8782_v47 = vld [vmem:[#allocation2 + $0xbcc] sm:$0xf0] }
 0x263   :  { %6456 = vmatpush.bf16.msra.mxu3 %v9429_v15  ;;  %v11057_v15 = vld [vmem:[#allocation2 + $0x77c] sm:$0xf]  ;;  %v11140_v43 = vld [vmem:[#allocation2 + $0xa10] sm:$0xf0]  ;;  %v8785_v44 = vor.u32 %v11168_v30, %v8782_v47  ;;  %v11058_v59 = vld [vmem:[#allocation2 + $0x784] sm:$0xf] }
 0x264   :  { %6418 = vmatpush.bf16.msra.mxu0 %v7445_v23  ;;  %v7200_v18 = vrot.slane %v7097_v12, 2  ;;  %v10093_v23 = vor.u32 %v11524_v0, %v10092_v62  ;;  %v8337_v1 = vor.u32 %v11057_v15, %v8334_v16  ;;  %v9000_v62 = vld [vmem:[#allocation2 + $0xca8] sm:$0xf]  ;;  %v11250_v0 = vld [vmem:[#allocation2 + $0xd80] sm:$0xf0] }
 0x265   :  { %6431 = vmatpush.bf16.msra.mxu1 %v9205_v33  ;;  %v7242_v33 = vsel %vm7221_vm0, %v7094_v9, %v7198_v10  ;;  %v12119_v46 = vpop.f32.mrf.mxu1  ;;  %v10760_v15 = vld [vmem:[#allocation2 + $0x1a68] sm:$0xf]  ;;  %v11690_v16 = vld [vmem:[#allocation2 + $0x1b40] sm:$0xf0]  ;;  %v11580_v48 = vld [vmem:[#allocation2 + $0x17d0] sm:$0xf0] }
 0x266   :  { %6444 = vmatpush.bf16.msra.mxu2 %v7449_v8  ;;  %v10097_v8 = vor.u32 %v11497_v21, %v10094_v22  ;;  %v7453_v21 = vor.u32 %v10864_v5, %v7452_v63  ;;  %v9002_v22 = vld [vmem:[#allocation2 + $0xd84] sm:$0xf0]  ;;  %v11085_v63 = vld [vmem:[#allocation2 + $0x858] sm:$0xf0]  ;;  %v10948_v30 = vld [vmem:[#allocation2 + $0x414] sm:$0xf] }
 0x267   :  { %6457 = vmatpush.bf16.msra.mxu3 %v9209_v6  ;;  %6419 = vmatmul.bf16.vlgmr.msra.gmra.mxu0 %v11866_v17  ;;  %v9873_v6 = vor.u32 %v11469_v38, %v9872_v25  ;;  %v10761_v38 = vor.u32 %v11690_v16, %v10760_v15  ;;  %v8120_v15 = vld [vmem:[#allocation2 + $0x5c8] sm:$0xf]  ;;  %v11030_v16 = vld [vmem:[#allocation2 + $0x6a0] sm:$0xf0] }
 0x268   :  { %6463 = vmatpush.bf16.msrb.mxu0 %v8993_v32  ;;  %6432 = vmatmul.bf16.vlgmr.msra.gmra.mxu1 %v11868_v19  ;;  %v7243_v32 = vsel %vm7223_vm1, %v7199_v57, %v7200_v18  ;;  %v10837_v57 = vld [vmem:[#allocation2 + $0x9c] sm:$0xf]  ;;  %v11223_v18 = vld [vmem:[#allocation2 + $0xcac] sm:$0xf] }
 0x269   :  { %6476 = vmatpush.bf16.msrb.mxu1 %v10753_v2  ;;  %6445 = vmatmul.bf16.vlgmr.msra.gmra.mxu2 %v11866_v17  ;;  %v7244_v37 = vsel %vm7225_vm2, %v7242_v33, %v7243_v32  ;;  %v11002_v2 = vld [vmem:[#allocation2 + $0x5c4] sm:$0xf]  ;;  %v9001_v33 = vor.u32 %v11250_v0, %v9000_v62  ;;  %v11663_v32 = vld [vmem:[#allocation2 + $0x1a6c] sm:$0xf]  ;;  %v10102_v62 = vld [vmem:[#allocation2 + $0x161c] sm:$0xf0] }
 0x26a   :  { %6489 = vmatpush.bf16.msrb.mxu2 %v8997_v27  ;;  %6458 = vmatmul.bf16.vlgmr.msra.gmra.mxu3 %v11868_v19  ;;  %7285 = vst [vmem:[%s12285_s3 + $0x30] sm:$0xff] %v7244_v37  ;;  %v12117_v27 = vpop.f32.mrf.mxu0  ;;  %v8117_v34 = vor.u32 %v11002_v2, %v8114_v26  ;;  %v8780_v37 = vld [vmem:[#allocation2 + $0xaf0] sm:$0xf]  ;;  %v9005_v2 = vor.u32 %v11223_v18, %v9002_v22  ;;  %v979_v18 = vperm.slane %v12093_v4, 6  ;;  %v11470_v22 = vld [vmem:[#allocation2 + $0x1460] sm:$0xf0] }
 0x26b   :  { %6502 = vmatpush.bf16.msrb.mxu3 %v10757_v36  ;;  %v9652_v36 = vld [vmem:[#allocation2 + $0x11c8] sm:$0xf] }
 0x26c   :  { %6464 = vmatpush.bf16.msrb.mxu0 %v8773_v40  ;;  %v7894_v40 = vld [vmem:[#allocation2 + $0x4e4] sm:$0xf0]  ;;  %v12121_v58 = vpop.f32.mrf.mxu2 }
 0x26d   :  { %6477 = vmatpush.bf16.msrb.mxu1 %v10533_v45  ;;  %v9653_v45 = vor.u32 %v11414_v50, %v9652_v36  ;;  %v7897_v51 = vor.u32 %v10947_v39, %v7894_v40  ;;  %v12123_v9 = vpop.f32.mrf.mxu3  ;;  %v11608_v50 = vld [vmem:[#allocation2 + $0x18b4] sm:$0xf]  ;;  %v978_v39 = vperm.slane %v12093_v4, 5 }
 0x26e   :  { %6490 = vmatpush.bf16.msrb.mxu2 %v8777_v52  ;;  %v9432_v52 = vld [vmem:[#allocation2 + $0x1010] sm:$0xf] }
 0x26f   :  { %6503 = vmatpush.bf16.msrb.mxu3 %v10537_v56  ;;  %v7674_v56 = vld [vmem:[#allocation2 + $0x32c] sm:$0xf0] }
 0x270   :  { %6465 = vmatpush.bf16.msrb.mxu0 %v8553_v35  ;;  %v9434_v35 = vld [vmem:[#allocation2 + $0x10ec] sm:$0xf0]  ;;  %v7677_v12 = vor.u32 %v10892_v55, %v7674_v56  ;;  %v11553_v55 = vld [vmem:[#allocation2 + $0x16fc] sm:$0xf]  ;;  %v10322_v56 = vld [vmem:[#allocation2 + $0x17d4] sm:$0xf0] }
 0x271   :  { %6478 = vmatpush.bf16.msrb.mxu1 %v10313_v11  ;;  %v9433_v11 = vor.u32 %v11359_v53, %v9432_v52  ;;  %v8562_v52 = vld [vmem:[#allocation2 + $0xa14] sm:$0xf0]  ;;  %v977_v53 = vperm.slane %v12093_v4, 4  ;;  %v10325_v61 = vor.u32 %v11553_v55, %v10322_v56 }
 0x272   :  { %6491 = vmatpush.bf16.msrb.mxu2 %v8557_v60  ;;  %v6214_v10 = vpop.f32.mrf.mxu0  ;;  %v7454_v60 = vld [vmem:[#allocation2 + $0x174] sm:$0xf0] }
 0x273   :  { %6504 = vmatpush.bf16.msrb.mxu3 %v10317_v14  ;;  %v9437_v14 = vor.u32 %v11332_v28, %v9434_v35  ;;  %v7457_v25 = vor.u32 %v10837_v57, %v7454_v60  ;;  %v6239_v28 = vadd.f32 %v12121_v58, %v978_v39  ;;  %v8340_v35 = vld [vmem:[#allocation2 + $0x780] sm:$0xf]  ;;  %v11498_v60 = vld [vmem:[#allocation2 + $0x1544] sm:$0xf]  ;;  %v9662_v39 = vld [vmem:[#allocation2 + $0x12ac] sm:$0xf0] }
 0x274   :  { %6466 = vmatpush.bf16.msrb.mxu0 %v8333_v20  ;;  %v6227_v20 = vpop.f32.mrf.mxu1  ;;  %v6240_v3 = vpop.f32.mrf.mxu2  ;;  %v10100_v10 = vld [vmem:[#allocation2 + $0x1540] sm:$0xf]  ;;  %v8341_v58 = vor.u32 %v11085_v63, %v8340_v35  ;;  %v9442_v55 = vld [vmem:[#allocation2 + $0x10f4] sm:$0xf0]  ;;  %v10865_v63 = vld [vmem:[#allocation2 + $0x178] sm:$0xf0] }
 0x275   :  { %6479 = vmatpush.bf16.msrb.mxu1 %v10093_v23  ;;  %v11277_v23 = vld [vmem:[#allocation2 + $0xe5c] sm:$0xf]  ;;  %v8342_v57 = vld [vmem:[#allocation2 + $0x85c] sm:$0xf0]  ;;  %v6252_v0 = vadd.f32 %v12123_v9, %v6239_v28  ;;  %v11443_v9 = vld [vmem:[#allocation2 + $0x138c] sm:$0xf] }
 0x276   :  { %6492 = vmatpush.bf16.msrb.mxu2 %v8337_v1  ;;  %v10762_v1 = vld [vmem:[#allocation2 + $0x1b44] sm:$0xf0]  ;;  %v9217_v26 = vor.u32 %v11277_v23, %v9214_v29  ;;  %v8345_v20 = vor.u32 %v11058_v59, %v8342_v57  ;;  %v10105_v23 = vor.u32 %v11498_v60, %v10102_v62  ;;  %v11003_v29 = vld [vmem:[#allocation2 + $0x5cc] sm:$0xf]  ;;  %v7460_v35 = vld [vmem:[#allocation2 + $0xa0] sm:$0xf] }
 0x277   :  { %6505 = vmatpush.bf16.msrb.mxu3 %v10097_v8  ;;  %v11195_v8 = vld [vmem:[#allocation2 + $0xbc8] sm:$0xf0]  ;;  %v10838_v59 = vld [vmem:[#allocation2 + $0xa4] sm:$0xf]  ;;  %v7462_v57 = vld [vmem:[#allocation2 + $0x17c] sm:$0xf0] }
 0x278   :  { %6467 = vmatpush.bf16.msrb.mxu0 %v8113_v41  ;;  %v10540_v41 = vld [vmem:[#allocation2 + $0x18b0] sm:$0xf]  ;;  %v8781_v36 = vor.u32 %v11195_v8, %v8780_v37  ;;  %v11251_v62 = vld [vmem:[#allocation2 + $0xd88] sm:$0xf0] }
 0x279   :  { %6480 = vmatpush.bf16.msrb.mxu1 %v9873_v6  ;;  %v10765_v6 = vor.u32 %v11663_v32, %v10762_v1  ;;  %v10541_v40 = vor.u32 %v11635_v7, %v10540_v41  ;;  %v9882_v1 = vld [vmem:[#allocation2 + $0x1464] sm:$0xf0]  ;;  %v7900_v8 = vld [vmem:[#allocation2 + $0x410] sm:$0xf]  ;;  %v11415_v7 = vld [vmem:[#allocation2 + $0x12a8] sm:$0xf0] }
 0x27a   :  { %6493 = vmatpush.bf16.msrb.mxu2 %v8117_v34  ;;  %v6253_v34 = vpop.f32.mrf.mxu3  ;;  %v9660_v41 = vld [vmem:[#allocation2 + $0x11d0] sm:$0xf]  ;;  %v9885_v3 = vor.u32 %v11443_v9, %v9882_v1 }
 0x27b   :  { %6506 = vmatpush.bf16.msrb.mxu3 %v9877_v13  ;;  %v10542_v13 = vld [vmem:[#allocation2 + $0x198c] sm:$0xf0]  ;;  %v980_v34 = vperm.slane %v12093_v4, 7  ;;  %v11333_v4 = vld [vmem:[#allocation2 + $0x101c] sm:$0xf] }
 0x27c   :  { %6468 = vmatpush.bf16.msrb.mxu0 %v7893_v42  ;;  %v8560_v42 = vld [vmem:[#allocation2 + $0x938] sm:$0xf]  ;;  %v10545_v49 = vor.u32 %v11608_v50, %v10542_v13  ;;  %v11388_v13 = vld [vmem:[#allocation2 + $0x11d4] sm:$0xf]  ;;  %v9008_v60 = vld [vmem:[#allocation2 + $0xcb0] sm:$0xf] }
 0x27d   :  { %6481 = vmatpush.bf16.msrb.mxu1 %v9653_v45  ;;  %v10320_v45 = vld [vmem:[#allocation2 + $0x16f8] sm:$0xf]  ;;  %v10770_v9 = vld [vmem:[#allocation2 + $0x1b4c] sm:$0xf0] }
 0x27e   :  { %6494 = vmatpush.bf16.msrb.mxu2 %v7897_v51  ;;  %v11113_v51 = vld [vmem:[#allocation2 + $0x93c] sm:$0xf] }
 0x27f   :  { %6507 = vmatpush.bf16.msrb.mxu3 %v9657_v54  ;;  %v8561_v54 = vor.u32 %v11140_v43, %v8560_v42  ;;  %v8565_v5 = vor.u32 %v11113_v51, %v8562_v52  ;;  %v7680_v42 = vld [vmem:[#allocation2 + $0x258] sm:$0xf]  ;;  %v10920_v43 = vld [vmem:[#allocation2 + $0x330] sm:$0xf0]  ;;  %v10893_v51 = vld [vmem:[#allocation2 + $0x25c] sm:$0xf] }
 0x280   :  { %6469 = vmatpush.bf16.msrb.mxu0 %v7673_v31  ;;  %v10321_v31 = vor.u32 %v11580_v48, %v10320_v45 }
 0x281   :  { %6482 = vmatpush.bf16.msrb.mxu1 %v9433_v11  ;;  %v11525_v11 = vld [vmem:[#allocation2 + $0x1618] sm:$0xf0] }
 0x282   :  { %6495 = vmatpush.bf16.msrb.mxu2 %v7677_v12  ;;  %v6213_v12 = vadd.f32 %v12117_v27, %v977_v53  ;;  %v8122_v27 = vld [vmem:[#allocation2 + $0x6a4] sm:$0xf0]  ;;  %v9665_v53 = vor.u32 %v11388_v13, %v9662_v39  ;;  %v11609_v39 = vld [vmem:[#allocation2 + $0x18bc] sm:$0xf] }
 0x283   :  { %6508 = vmatpush.bf16.msrb.mxu3 %v9437_v14  ;;  %v10101_v14 = vor.u32 %v11525_v11, %v10100_v10 }
 0x284   :  { %6470 = vmatpush.bf16.msrb.mxu0 %v7453_v21  ;;  %v9880_v21 = vld [vmem:[#allocation2 + $0x1388] sm:$0xf]  ;;  %v6264_v32 = vpop.f32.mrf.mxu0 }
 0x285   :  { %6483 = vmatpush.bf16.msrb.mxu1 %v9213_v24  ;;  %v6226_v24 = vadd.f32 %v12119_v46, %v6213_v12  ;;  %v6265_v37 = vadd.f32 %v6264_v32, %v979_v18  ;;  %v7902_v46 = vld [vmem:[#allocation2 + $0x4ec] sm:$0xf0]  ;;  %v11224_v18 = vld [vmem:[#allocation2 + $0xcb4] sm:$0xf] }
 0x286   :  { %6496 = vmatpush.bf16.msrb.mxu2 %v7457_v25  ;;  %v6934_v25 = vmul.f32 0.5, %v6252_v0  ;;  %v7905_v48 = vor.u32 %v10948_v30, %v7902_v46  ;;  %v10768_v0 = vld [vmem:[#allocation2 + $0x1a70] sm:$0xf]  ;;  %v11664_v32 = vld [vmem:[#allocation2 + $0x1a74] sm:$0xf] }
 0x287   :  { %6509 = vmatpush.bf16.msrb.mxu3 %v9217_v26  ;;  %6471 = vmatmul.bf16.vlgmr.msrb.gmra.mxu0 %v11866_v17  ;;  %v8125_v26 = vor.u32 %v11003_v29, %v8122_v27  ;;  %v6933_v47 = vmul.f32 0.5, %v6226_v24  ;;  %v11278_v29 = vld [vmem:[#allocation2 + $0xe64] sm:$0xf]  ;;  %v9222_v27 = vld [vmem:[#allocation2 + $0xf3c] sm:$0xf0] }
 0x288   :  { %6515 = vmatpush.bf16.msra.mxu0 %v9001_v33  ;;  %6484 = vmatmul.bf16.vlgmr.msrb.gmra.mxu1 %v11868_v19  ;;  %v8121_v33 = vor.u32 %v11030_v16, %v8120_v15  ;;  %11757 = vtanh.f32 %v6934_v25  ;;  %v9445_v15 = vor.u32 %v11333_v4, %v9442_v55  ;;  %v11691_v16 = vld [vmem:[#allocation2 + $0x1b48] sm:$0xf0]  ;;  %v11636_v30 = vld [vmem:[#allocation2 + $0x1990] sm:$0xf0]  ;;  %v11114_v55 = vld [vmem:[#allocation2 + $0x944] sm:$0xf] }
 0x289   :  { %6528 = vmatpush.bf16.msra.mxu1 %v10761_v38  ;;  %6497 = vmatmul.bf16.vlgmr.msrb.gmra.mxu2 %v11866_v17  ;;  %v9881_v38 = vor.u32 %v11470_v22, %v9880_v21 }
 0x28a   :  { %6541 = vmatpush.bf16.msra.mxu2 %v9005_v2  ;;  %6510 = vmatmul.bf16.vlgmr.msrb.gmra.mxu3 %v11868_v19  ;;  %v10975_v2 = vld [vmem:[#allocation2 + $0x4e8] sm:$0xf0] }
 0x28b   :  { %6554 = vmatpush.bf16.msra.mxu3 %v10765_v6  ;;  %v6277_v6 = vpop.f32.mrf.mxu1  ;;  %v7901_v50 = vor.u32 %v10975_v2, %v7900_v8  ;;  %v8788_v8 = vld [vmem:[#allocation2 + $0xaf8] sm:$0xf]  ;;  %v11196_v2 = vld [vmem:[#allocation2 + $0xbd0] sm:$0xf0] }
 0x28c   :  { %6516 = vmatpush.bf16.msra.mxu0 %v8781_v36  ;;  %v6278_v36 = vadd.f32 %v6277_v6, %v6265_v37  ;;  %v6290_v52 = vpop.f32.mrf.mxu2  ;;  %v6266_v10 = vpop.f32.mrf.mxu0  ;;  %v10769_v37 = vor.u32 %v11691_v16, %v10768_v0  ;;  %v10548_v6 = vld [vmem:[#allocation2 + $0x18b8] sm:$0xf]  ;;  %v8789_v13 = vor.u32 %v11196_v2, %v8788_v8  ;;  %v11444_v2 = vld [vmem:[#allocation2 + $0x1394] sm:$0xf] }
 0x28d   :  { %6529 = vmatpush.bf16.msra.mxu1 %v10541_v40  ;;  %v9661_v40 = vor.u32 %v11415_v7, %v9660_v41  ;;  %v6291_v56 = vadd.f32 %v6290_v52, %v980_v34  ;;  %v6303_v28 = vpop.f32.mrf.mxu3  ;;  %v11169_v34 = vld [vmem:[#allocation2 + $0xafc] sm:$0xf]  ;;  %v10328_v52 = vld [vmem:[#allocation2 + $0x1700] sm:$0xf] }
 0x28e   :  { %6542 = vmatpush.bf16.msra.mxu2 %v8785_v44  ;;  %v9440_v44 = vld [vmem:[#allocation2 + $0x1018] sm:$0xf]  ;;  %v6935_v45 = vmul.f32 0.5, %v6278_v36 }
 0x28f   :  { %6555 = vmatpush.bf16.msra.mxu3 %v10545_v49  ;;  %v11360_v49 = vld [vmem:[#allocation2 + $0x10f0] sm:$0xf0]  ;;  %v6304_v12 = vadd.f32 %v6303_v28, %v6291_v56  ;;  %v8790_v36 = vld [vmem:[#allocation2 + $0xbd4] sm:$0xf0]  ;;  %v8570_v56 = vld [vmem:[#allocation2 + $0xa1c] sm:$0xf0] }
 0x290   :  { %6517 = vmatpush.bf16.msra.mxu0 %v8561_v54  ;;  %v7682_v54 = vld [vmem:[#allocation2 + $0x334] sm:$0xf0]  ;;  %11759 = vtanh.f32 %v6935_v45  ;;  %v9441_v11 = vor.u32 %v11360_v49, %v9440_v44  ;;  %v10549_v44 = vor.u32 %v11636_v30, %v10548_v6  ;;  %v8568_v45 = vld [vmem:[#allocation2 + $0x940] sm:$0xf]  ;;  %v10976_v6 = vld [vmem:[#allocation2 + $0x4f0] sm:$0xf0] }
 0x291   :  { %6530 = vmatpush.bf16.msra.mxu1 %v10321_v31  ;;  %v7681_v31 = vor.u32 %v10920_v43, %v7680_v42  ;;  %11761 = vtanh.f32 %v6933_v47  ;;  %v6936_v22 = vmul.f32 0.5, %v6304_v12  ;;  %v10773_v47 = vor.u32 %v11664_v32, %v10770_v9  ;;  %v9888_v32 = vld [vmem:[#allocation2 + $0x1390] sm:$0xf]  ;;  %v11471_v9 = vld [vmem:[#allocation2 + $0x1468] sm:$0xf0] }
 0x292   :  { %6543 = vmatpush.bf16.msra.mxu2 %v8565_v5  ;;  %v9220_v5 = vld [vmem:[#allocation2 + $0xe60] sm:$0xf] }
 0x293   :  { %6556 = vmatpush.bf16.msra.mxu3 %v10325_v61  ;;  %v11305_v61 = vld [vmem:[#allocation2 + $0xf38] sm:$0xf0]  ;;  %v6279_v21 = vpop.f32.mrf.mxu1  ;;  %11763 = vtanh.f32 %v6936_v22 }
 0x294   :  { %6518 = vmatpush.bf16.msra.mxu0 %v8341_v58  ;;  %v7685_v58 = vor.u32 %v10893_v51, %v7682_v54  ;;  %v9221_v24 = vor.u32 %v11305_v61, %v9220_v5  ;;  %v6292_v46 = vpop.f32.mrf.mxu2  ;;  %v8793_v51 = vor.u32 %v11169_v34, %v8790_v36  ;;  %v8348_v61 = vld [vmem:[#allocation2 + $0x788] sm:$0xf]  ;;  %v10949_v36 = vld [vmem:[#allocation2 + $0x41c] sm:$0xf] }
 0x295   :  { %6531 = vmatpush.bf16.msra.mxu1 %v10101_v14  ;;  %v11758_v14 = vpop.eup %11757  ;;  %v10110_v21 = vld [vmem:[#allocation2 + $0x1624] sm:$0xf0]  ;;  %v9668_v46 = vld [vmem:[#allocation2 + $0x11d8] sm:$0xf] }
 0x296   :  { %6544 = vmatpush.bf16.msra.mxu2 %v8345_v20  ;;  %v9010_v20 = vld [vmem:[#allocation2 + $0xd8c] sm:$0xf0]  ;;  %v11760_v1 = vpop.eup %11759  ;;  %v7044_v25 = vadd.f32 1.0, %v11758_v14  ;;  %v11059_v14 = vld [vmem:[#allocation2 + $0x78c] sm:$0xf] }
 0x297   :  { %6557 = vmatpush.bf16.msra.mxu3 %v10105_v23  ;;  %v7461_v23 = vor.u32 %v10865_v63, %v7460_v35  ;;  %v7045_v41 = vadd.f32 1.0, %v11760_v1  ;;  %v9013_v7 = vor.u32 %v11224_v18, %v9010_v20  ;;  %v11554_v35 = vld [vmem:[#allocation2 + $0x1704] sm:$0xf]  ;;  %v10330_v63 = vld [vmem:[#allocation2 + $0x17dc] sm:$0xf0] }
 0x298   :  { %6519 = vmatpush.bf16.msra.mxu0 %v8121_v33  ;;  %v9009_v33 = vor.u32 %v11251_v62, %v9008_v60  ;;  %v7099_v43 = vmul.f32 0.5, %v7044_v25  ;;  %v10108_v60 = vld [vmem:[#allocation2 + $0x1548] sm:$0xf]  ;;  %v11526_v62 = vld [vmem:[#allocation2 + $0x1620] sm:$0xf0]  ;;  %v10333_v0 = vor.u32 %v11554_v35, %v10330_v63 }
 0x299   :  { %6532 = vmatpush.bf16.msra.mxu1 %v9881_v38  ;;  %v7465_v38 = vor.u32 %v10838_v59, %v7462_v57  ;;  %v7100_v49 = vmul.f32 0.5, %v7045_v41  ;;  %v11086_v59 = vld [vmem:[#allocation2 + $0x860] sm:$0xf0]  ;;  %v11499_v20 = vld [vmem:[#allocation2 + $0x154c] sm:$0xf]  ;;  %v10109_v22 = vor.u32 %v11526_v62, %v10108_v60 }
 0x29a   :  { %6545 = vmatpush.bf16.msra.mxu2 %v8125_v26  ;;  %v11762_v26 = vpop.eup %11761  ;;  %v7201_v10 = vrot.slane %v7099_v43, 6  ;;  %v8349_v18 = vor.u32 %v11086_v59, %v8348_v61  ;;  %v10113_v25 = vor.u32 %v11499_v20, %v10110_v21  ;;  %v10866_v35 = vld [vmem:[#allocation2 + $0x180] sm:$0xf0]  ;;  %v10839_v59 = vld [vmem:[#allocation2 + $0xac] sm:$0xf] }
 0x29b   :  { %6558 = vmatpush.bf16.msra.mxu3 %v9885_v3  ;;  %v9225_v3 = vor.u32 %v11278_v29, %v9222_v27  ;;  %v7043_v42 = vadd.f32 1.0, %v11762_v26  ;;  %v11764_v54 = vpop.eup %11763  ;;  %v7202_v57 = vrot.slane %v7100_v49, 4  ;;  %v11031_v29 = vld [vmem:[#allocation2 + $0x6a8] sm:$0xf0]  ;;  %v9890_v26 = vld [vmem:[#allocation2 + $0x146c] sm:$0xf0] }
 0x29c   :  { %6520 = vmatpush.bf16.msra.mxu0 %v7901_v50  ;;  %v6305_v50 = vpop.f32.mrf.mxu3  ;;  %v7046_v28 = vadd.f32 1.0, %v11764_v54  ;;  %v9893_v34 = vor.u32 %v11444_v2, %v9890_v26  ;;  %v9448_v49 = vld [vmem:[#allocation2 + $0x1020] sm:$0xf]  ;;  %v11306_v61 = vld [vmem:[#allocation2 + $0xf40] sm:$0xf0] }
 0x29d   :  { %6533 = vmatpush.bf16.msra.mxu1 %v9661_v40  ;;  %v10550_v40 = vld [vmem:[#allocation2 + $0x1994] sm:$0xf0]  ;;  %v7098_v5 = vmul.f32 0.5, %v7043_v42  ;;  %v7690_v54 = vld [vmem:[#allocation2 + $0x33c] sm:$0xf0] }
 0x29e   :  { %6546 = vmatpush.bf16.msra.mxu2 %v7905_v48  ;;  %v11141_v48 = vld [vmem:[#allocation2 + $0xa18] sm:$0xf0]  ;;  %v10553_v4 = vor.u32 %v11609_v39, %v10550_v40  ;;  %v7101_v12 = vmul.f32 0.5, %v7046_v28  ;;  %v7910_v50 = vld [vmem:[#allocation2 + $0x4f4] sm:$0xf0] }
 0x29f   :  { %6559 = vmatpush.bf16.msra.mxu3 %v9665_v53  ;;  %v11581_v53 = vld [vmem:[#allocation2 + $0x17d8] sm:$0xf0]  ;;  %v7245_v27 = vsel %vm7221_vm0, %v7098_v5, %v7201_v10  ;;  %v9670_v42 = vld [vmem:[#allocation2 + $0x12b4] sm:$0xf0]  ;;  %v9450_v28 = vld [vmem:[#allocation2 + $0x10fc] sm:$0xf0] }
 0x2a0   :  { %6521 = vmatpush.bf16.msra.mxu0 %v7681_v31  ;;  %v8569_v31 = vor.u32 %v11141_v48, %v8568_v45  ;;  %v7203_v16 = vrot.slane %v7101_v12, 2  ;;  %v11389_v40 = vld [vmem:[#allocation2 + $0x11dc] sm:$0xf]  ;;  %v7913_v48 = vor.u32 %v10949_v36, %v7910_v50  ;;  %v7470_v12 = vld [vmem:[#allocation2 + $0x184] sm:$0xf0] }
 0x2a1   :  { %6534 = vmatpush.bf16.msra.mxu1 %v9441_v11  ;;  %v10329_v11 = vor.u32 %v11581_v53, %v10328_v52  ;;  %v10921_v45 = vld [vmem:[#allocation2 + $0x338] sm:$0xf0]  ;;  %v9673_v52 = vor.u32 %v11389_v40, %v9670_v42  ;;  %v10894_v53 = vld [vmem:[#allocation2 + $0x264] sm:$0xf]  ;;  %v11252_v60 = vld [vmem:[#allocation2 + $0xd90] sm:$0xf0] }
 0x2a2   :  { %6547 = vmatpush.bf16.msra.mxu2 %v7685_v58  ;;  %v8573_v58 = vor.u32 %v11114_v55, %v8570_v56  ;;  %v9018_v20 = vld [vmem:[#allocation2 + $0xd94] sm:$0xf0]  ;;  %v11279_v21 = vld [vmem:[#allocation2 + $0xe6c] sm:$0xf]  ;;  %v11637_v2 = vld [vmem:[#allocation2 + $0x1998] sm:$0xf0] }
 0x2a3   :  { %6560 = vmatpush.bf16.msra.mxu3 %v9445_v15  ;;  %v8350_v15 = vld [vmem:[#allocation2 + $0x864] sm:$0xf0]  ;;  %v11142_v40 = vld [vmem:[#allocation2 + $0xa20] sm:$0xf0] }
 0x2a4   :  { %6522 = vmatpush.bf16.msra.mxu0 %v7461_v23  ;;  %v8128_v23 = vld [vmem:[#allocation2 + $0x5d0] sm:$0xf]  ;;  %v12147_v41 = vpop.f32.mrf.mxu0 }
 0x2a5   :  { %6535 = vmatpush.bf16.msra.mxu1 %v9221_v24  ;;  %v7246_v24 = vsel %vm7223_vm1, %v7202_v57, %v7203_v16  ;;  %v8129_v8 = vor.u32 %v11031_v29, %v8128_v23  ;;  %v7693_v57 = vor.u32 %v10894_v53, %v7690_v54  ;;  %v11555_v53 = vld [vmem:[#allocation2 + $0x170c] sm:$0xf]  ;;  %v10338_v54 = vld [vmem:[#allocation2 + $0x17e4] sm:$0xf0] }
 0x2a6   :  { %6548 = vmatpush.bf16.msra.mxu2 %v7465_v38  ;;  %v7247_v1 = vsel %vm7225_vm2, %v7245_v27, %v7246_v24  ;;  %v11004_v38 = vld [vmem:[#allocation2 + $0x5d4] sm:$0xf]  ;;  %v11665_v27 = vld [vmem:[#allocation2 + $0x1a7c] sm:$0xf]  ;;  %v10778_v24 = vld [vmem:[#allocation2 + $0x1b54] sm:$0xf0] }
 0x2a7   :  { %6561 = vmatpush.bf16.msra.mxu3 %v9225_v3  ;;  %6523 = vmatmul.bf16.vlgmr.msra.gmra.mxu0 %v11866_v17  ;;  %7286 = vst [vmem:[%s12285_s3 + $0x38] sm:$0xff] %v7247_v1  ;;  %v7908_v3 = vld [vmem:[#allocation2 + $0x418] sm:$0xf]  ;;  %v11197_v1 = vld [vmem:[#allocation2 + $0xbd8] sm:$0xf0] }
 0x2a8   :  { %6567 = vmatpush.bf16.msrb.mxu0 %v9009_v33  ;;  %6536 = vmatmul.bf16.vlgmr.msra.gmra.mxu1 %v11868_v19  ;;  %v8353_v33 = vor.u32 %v11059_v14, %v8350_v15  ;;  %v7909_v39 = vor.u32 %v10976_v6, %v7908_v3  ;;  %v11692_v14 = vld [vmem:[#allocation2 + $0x1b50] sm:$0xf0]  ;;  %v11225_v15 = vld [vmem:[#allocation2 + $0xcbc] sm:$0xf]  ;;  %v11170_v3 = vld [vmem:[#allocation2 + $0xb04] sm:$0xf] }
 0x2a9   :  { %6580 = vmatpush.bf16.msrb.mxu1 %v10769_v37  ;;  %6549 = vmatmul.bf16.vlgmr.msra.gmra.mxu2 %v11866_v17  ;;  %v8130_v37 = vld [vmem:[#allocation2 + $0x6ac] sm:$0xf0]  ;;  %v8798_v6 = vld [vmem:[#allocation2 + $0xbdc] sm:$0xf0] }
 0x2aa   :  { %6593 = vmatpush.bf16.msrb.mxu2 %v9013_v7  ;;  %6562 = vmatmul.bf16.vlgmr.msra.gmra.mxu3 %v11868_v19  ;;  %v9889_v7 = vor.u32 %v11471_v9, %v9888_v32  ;;  %v8133_v30 = vor.u32 %v11004_v38, %v8130_v37  ;;  %v8796_v9 = vld [vmem:[#allocation2 + $0xb00] sm:$0xf]  ;;  %v12158_v38 = vld [vmem:[%s12284_s2 + $0x20] sm:$0xff]  ;;  %v8801_v42 = vor.u32 %v11170_v3, %v8798_v6  ;;  %v10950_v3 = vld [vmem:[#allocation2 + $0x424] sm:$0xf] }
 0x2ab   :  { %6606 = vmatpush.bf16.msrb.mxu3 %v10773_v47  ;;  %v11416_v47 = vld [vmem:[#allocation2 + $0x12b0] sm:$0xf0]  ;;  %v982_v36 = vperm.slane %v12158_v38, 1 }
 0x2ac   :  { %6568 = vmatpush.bf16.msrb.mxu0 %v8789_v13  ;;  %v12149_v13 = vpop.f32.mrf.mxu1  ;;  %v9669_v43 = vor.u32 %v11416_v47, %v9668_v46  ;;  %v12151_v55 = vpop.f32.mrf.mxu2  ;;  %v8797_v46 = vor.u32 %v11197_v1, %v8796_v9  ;;  %v11610_v47 = vld [vmem:[#allocation2 + $0x18c4] sm:$0xf]  ;;  %v7916_v1 = vld [vmem:[#allocation2 + $0x420] sm:$0xf] }
 0x2ad   :  { %6581 = vmatpush.bf16.msrb.mxu1 %v10549_v44  ;;  %v7688_v44 = vld [vmem:[#allocation2 + $0x260] sm:$0xf]  ;;  %v12153_v63 = vpop.f32.mrf.mxu3  ;;  %v6318_v5 = vpop.f32.mrf.mxu0 }
 0x2ae   :  { %6594 = vmatpush.bf16.msrb.mxu2 %v8793_v51  ;;  %v11361_v51 = vld [vmem:[#allocation2 + $0x10f8] sm:$0xf0]  ;;  %v7689_v56 = vor.u32 %v10921_v45, %v7688_v44  ;;  %v11582_v44 = vld [vmem:[#allocation2 + $0x17e0] sm:$0xf0]  ;;  %v10116_v5 = vld [vmem:[#allocation2 + $0x1550] sm:$0xf] }
 0x2af   :  { %6607 = vmatpush.bf16.msrb.mxu3 %v10553_v4  ;;  %v11334_v4 = vld [vmem:[#allocation2 + $0x1024] sm:$0xf]  ;;  %v9449_v10 = vor.u32 %v11361_v51, %v9448_v49  ;;  %v8578_v49 = vld [vmem:[#allocation2 + $0xa24] sm:$0xf0]  ;;  %v981_v51 = vperm.slane %v12158_v38, 0 }
 0x2b0   :  { %6569 = vmatpush.bf16.msrb.mxu0 %v8569_v31  ;;  %v7468_v31 = vld [vmem:[#allocation2 + $0xa8] sm:$0xf]  ;;  %v9453_v62 = vor.u32 %v11334_v4, %v9450_v28  ;;  %v6343_v4 = vadd.f32 %v12151_v55, %v982_v36  ;;  %v8356_v28 = vld [vmem:[#allocation2 + $0x790] sm:$0xf]  ;;  %v9678_v36 = vld [vmem:[#allocation2 + $0x12bc] sm:$0xf0] }
 0x2b1   :  { %6582 = vmatpush.bf16.msrb.mxu1 %v10329_v11  ;;  %v9228_v11 = vld [vmem:[#allocation2 + $0xe68] sm:$0xf] }
 0x2b2   :  { %6595 = vmatpush.bf16.msrb.mxu2 %v8573_v58  ;;  %v9016_v58 = vld [vmem:[#allocation2 + $0xcb8] sm:$0xf]  ;;  %v9229_v23 = vor.u32 %v11306_v61, %v9228_v11  ;;  %v10341_v11 = vor.u32 %v11555_v53, %v10338_v54  ;;  %v11060_v61 = vld [vmem:[#allocation2 + $0x794] sm:$0xf]  ;;  %v11335_v53 = vld [vmem:[#allocation2 + $0x102c] sm:$0xf] }
 0x2b3   :  { %6608 = vmatpush.bf16.msrb.mxu3 %v10333_v0  ;;  %v10776_v0 = vld [vmem:[#allocation2 + $0x1a78] sm:$0xf]  ;;  %v9017_v29 = vor.u32 %v11252_v60, %v9016_v58  ;;  %v10118_v58 = vld [vmem:[#allocation2 + $0x162c] sm:$0xf0]  ;;  %v6356_v60 = vadd.f32 %v12153_v63, %v6343_v4  ;;  %v11445_v63 = vld [vmem:[#allocation2 + $0x139c] sm:$0xf] }
 0x2b4   :  { %6570 = vmatpush.bf16.msrb.mxu0 %v8349_v18  ;;  %v6331_v16 = vpop.f32.mrf.mxu1  ;;  %v7469_v18 = vor.u32 %v10866_v35, %v7468_v31  ;;  %v10777_v32 = vor.u32 %v11692_v14, %v10776_v0  ;;  %v6344_v26 = vpop.f32.mrf.mxu2  ;;  %v11087_v31 = vld [vmem:[#allocation2 + $0x868] sm:$0xf0]  ;;  %v8136_v0 = vld [vmem:[#allocation2 + $0x5d8] sm:$0xf]  ;;  %v11032_v14 = vld [vmem:[#allocation2 + $0x6b0] sm:$0xf0] }
 0x2b5   :  { %6583 = vmatpush.bf16.msrb.mxu1 %v10109_v22  ;;  %v9230_v22 = vld [vmem:[#allocation2 + $0xf44] sm:$0xf0]  ;;  %v8357_v55 = vor.u32 %v11087_v31, %v8356_v28  ;;  %v7476_v31 = vld [vmem:[#allocation2 + $0xb0] sm:$0xf] }
 0x2b6   :  { %6596 = vmatpush.bf16.msrb.mxu2 %v8353_v33  ;;  %v7473_v33 = vor.u32 %v10839_v59, %v7470_v12  ;;  %v9233_v37 = vor.u32 %v11279_v21, %v9230_v22  ;;  %v8358_v59 = vld [vmem:[#allocation2 + $0x86c] sm:$0xf0]  ;;  %v11500_v12 = vld [vmem:[#allocation2 + $0x1554] sm:$0xf]  ;;  %v11005_v22 = vld [vmem:[#allocation2 + $0x5dc] sm:$0xf] }
 0x2b7   :  { %6609 = vmatpush.bf16.msrb.mxu3 %v10113_v25  ;;  %v9021_v25 = vor.u32 %v11225_v15, %v9018_v20  ;;  %v983_v15 = vperm.slane %v12158_v38, 2  ;;  %v8361_v16 = vor.u32 %v11060_v61, %v8358_v59  ;;  %v11472_v20 = vld [vmem:[#allocation2 + $0x1470] sm:$0xf0]  ;;  %v10121_v21 = vor.u32 %v11500_v12, %v10118_v58  ;;  %v9458_v54 = vld [vmem:[#allocation2 + $0x1104] sm:$0xf0] }
 0x2b8   :  { %6571 = vmatpush.bf16.msrb.mxu0 %v8129_v8  ;;  %v10556_v8 = vld [vmem:[#allocation2 + $0x18c0] sm:$0xf]  ;;  %v11307_v61 = vld [vmem:[#allocation2 + $0xf48] sm:$0xf0]  ;;  %v10840_v59 = vld [vmem:[#allocation2 + $0xb4] sm:$0xf] }
 0x2b9   :  { %6584 = vmatpush.bf16.msrb.mxu1 %v9889_v7  ;;  %v10781_v7 = vor.u32 %v11665_v27, %v10778_v24  ;;  %v10557_v50 = vor.u32 %v11637_v2, %v10556_v8  ;;  %v9898_v24 = vld [vmem:[#allocation2 + $0x1474] sm:$0xf0]  ;;  %v9676_v8 = vld [vmem:[#allocation2 + $0x11e0] sm:$0xf]  ;;  %v11417_v2 = vld [vmem:[#allocation2 + $0x12b8] sm:$0xf0] }
 0x2ba   :  { %6597 = vmatpush.bf16.msrb.mxu2 %v8133_v30  ;;  %v6357_v30 = vpop.f32.mrf.mxu3  ;;  %v9901_v26 = vor.u32 %v11445_v63, %v9898_v24  ;;  %v9024_v58 = vld [vmem:[#allocation2 + $0xcc0] sm:$0xf]  ;;  %v11666_v63 = vld [vmem:[#allocation2 + $0x1a84] sm:$0xf] }
 0x2bb   :  { %6610 = vmatpush.bf16.msrb.mxu3 %v9893_v34  ;;  %v10558_v34 = vld [vmem:[#allocation2 + $0x199c] sm:$0xf0]  ;;  %v984_v30 = vperm.slane %v12158_v38, 3 }
 0x2bc   :  { %6572 = vmatpush.bf16.msrb.mxu0 %v7909_v39  ;;  %v8576_v39 = vld [vmem:[#allocation2 + $0x948] sm:$0xf]  ;;  %v10561_v45 = vor.u32 %v11610_v47, %v10558_v34  ;;  %v11390_v34 = vld [vmem:[#allocation2 + $0x11e4] sm:$0xf]  ;;  %v10786_v24 = vld [vmem:[#allocation2 + $0x1b5c] sm:$0xf0] }
 0x2bd   :  { %6585 = vmatpush.bf16.msrb.mxu1 %v9669_v43  ;;  %v10336_v43 = vld [vmem:[#allocation2 + $0x1708] sm:$0xf] }
 0x2be   :  { %6598 = vmatpush.bf16.msrb.mxu2 %v7913_v48  ;;  %v11115_v48 = vld [vmem:[#allocation2 + $0x94c] sm:$0xf] }
 0x2bf   :  { %6611 = vmatpush.bf16.msrb.mxu3 %v9673_v52  ;;  %v8577_v52 = vor.u32 %v11142_v40, %v8576_v39  ;;  %v8581_v35 = vor.u32 %v11115_v48, %v8578_v49  ;;  %v7696_v39 = vld [vmem:[#allocation2 + $0x268] sm:$0xf]  ;;  %v10922_v40 = vld [vmem:[#allocation2 + $0x340] sm:$0xf0]  ;;  %v10895_v48 = vld [vmem:[#allocation2 + $0x26c] sm:$0xf] }
 0x2c0   :  { %6573 = vmatpush.bf16.msrb.mxu0 %v7689_v56  ;;  %v10337_v56 = vor.u32 %v11582_v44, %v10336_v43  ;;  %v7697_v28 = vor.u32 %v10922_v40, %v7696_v39  ;;  %v10566_v39 = vld [vmem:[#allocation2 + $0x19a4] sm:$0xf0] }
 0x2c1   :  { %6586 = vmatpush.bf16.msrb.mxu1 %v9449_v10  ;;  %v11527_v10 = vld [vmem:[#allocation2 + $0x1628] sm:$0xf0] }
 0x2c2   :  { %6599 = vmatpush.bf16.msrb.mxu2 %v7693_v57  ;;  %v6317_v57 = vadd.f32 %v12147_v41, %v981_v51  ;;  %v8138_v41 = vld [vmem:[#allocation2 + $0x6b4] sm:$0xf0]  ;;  %v9681_v51 = vor.u32 %v11390_v34, %v9678_v36 }
 0x2c3   :  { %6612 = vmatpush.bf16.msrb.mxu3 %v9453_v62  ;;  %v10117_v62 = vor.u32 %v11527_v10, %v10116_v5  ;;  %v9236_v5 = vld [vmem:[#allocation2 + $0xe70] sm:$0xf] }
 0x2c4   :  { %6574 = vmatpush.bf16.msrb.mxu0 %v7469_v18  ;;  %v9896_v18 = vld [vmem:[#allocation2 + $0x1398] sm:$0xf]  ;;  %v6368_v27 = vpop.f32.mrf.mxu0 }
 0x2c5   :  { %6587 = vmatpush.bf16.msrb.mxu1 %v9229_v23  ;;  %v6330_v23 = vadd.f32 %v12149_v13, %v6317_v57  ;;  %v6369_v9 = vadd.f32 %v6368_v27, %v983_v15  ;;  %v7918_v13 = vld [vmem:[#allocation2 + $0x4fc] sm:$0xf0]  ;;  %v7478_v57 = vld [vmem:[#allocation2 + $0x18c] sm:$0xf0]  ;;  %v11693_v15 = vld [vmem:[#allocation2 + $0x1b58] sm:$0xf0] }
 0x2c6   :  { %6600 = vmatpush.bf16.msrb.mxu2 %v7473_v33  ;;  %v6938_v33 = vmul.f32 0.5, %v6356_v60  ;;  %v7921_v44 = vor.u32 %v10950_v3, %v7918_v13  ;;  %v11253_v60 = vld [vmem:[#allocation2 + $0xd98] sm:$0xf0]  ;;  %v10564_v3 = vld [vmem:[#allocation2 + $0x18c8] sm:$0xf] }
 0x2c7   :  { %6613 = vmatpush.bf16.msrb.mxu3 %v9233_v37  ;;  %6575 = vmatmul.bf16.vlgmr.msrb.gmra.mxu0 %v11866_v17  ;;  %v8141_v37 = vor.u32 %v11005_v22, %v8138_v41  ;;  %v6937_v6 = vmul.f32 0.5, %v6330_v23  ;;  %v11280_v41 = vld [vmem:[#allocation2 + $0xe74] sm:$0xf]  ;;  %v9238_v23 = vld [vmem:[#allocation2 + $0xf4c] sm:$0xf0]  ;;  %v9025_v27 = vor.u32 %v11253_v60, %v9024_v58 }
 0x2c8   :  { %6619 = vmatpush.bf16.msra.mxu0 %v9017_v29  ;;  %6588 = vmatmul.bf16.vlgmr.msrb.gmra.mxu1 %v11868_v19  ;;  %v8137_v29 = vor.u32 %v11032_v14, %v8136_v0  ;;  %11765 = vtanh.f32 %v6938_v33  ;;  %v9461_v14 = vor.u32 %v11335_v53, %v9458_v54  ;;  %v11638_v13 = vld [vmem:[#allocation2 + $0x19a0] sm:$0xf0]  ;;  %v10124_v60 = vld [vmem:[#allocation2 + $0x1558] sm:$0xf] }
 0x2c9   :  { %6632 = vmatpush.bf16.msra.mxu1 %v10777_v32  ;;  %6601 = vmatmul.bf16.vlgmr.msrb.gmra.mxu2 %v11866_v17  ;;  %v9897_v32 = vor.u32 %v11472_v20, %v9896_v18  ;;  %v9026_v18 = vld [vmem:[#allocation2 + $0xd9c] sm:$0xf0] }
 0x2ca   :  { %6645 = vmatpush.bf16.msra.mxu2 %v9021_v25  ;;  %6614 = vmatmul.bf16.vlgmr.msrb.gmra.mxu3 %v11868_v19  ;;  %v10977_v25 = vld [vmem:[#allocation2 + $0x4f8] sm:$0xf0] }
 0x2cb   :  { %6658 = vmatpush.bf16.msra.mxu3 %v10781_v7  ;;  %v6381_v7 = vpop.f32.mrf.mxu1  ;;  %v7917_v47 = vor.u32 %v10977_v25, %v7916_v1  ;;  %v8804_v25 = vld [vmem:[#allocation2 + $0xb08] sm:$0xf] }
 0x2cc   :  { %6620 = vmatpush.bf16.msra.mxu0 %v8797_v46  ;;  %v6382_v46 = vadd.f32 %v6381_v7, %v6369_v9  ;;  %v6394_v49 = vpop.f32.mrf.mxu2  ;;  %v6370_v10 = vpop.f32.mrf.mxu0  ;;  %v7481_v9 = vor.u32 %v10840_v59, %v7478_v57  ;;  %v9241_v7 = vor.u32 %v11280_v41, %v9238_v23  ;;  %v8364_v59 = vld [vmem:[#allocation2 + $0x798] sm:$0xf]  ;;  %v11088_v57 = vld [vmem:[#allocation2 + $0x870] sm:$0xf0]  ;;  %v8144_v41 = vld [vmem:[#allocation2 + $0x5e0] sm:$0xf] }
 0x2cd   :  { %6633 = vmatpush.bf16.msra.mxu1 %v10557_v50  ;;  %v9677_v50 = vor.u32 %v11417_v2, %v9676_v8  ;;  %v6395_v4 = vadd.f32 %v6394_v49, %v984_v30  ;;  %v10789_v30 = vor.u32 %v11666_v63, %v10786_v24  ;;  %v11033_v23 = vld [vmem:[#allocation2 + $0x6b8] sm:$0xf0]  ;;  %v9904_v24 = vld [vmem:[#allocation2 + $0x13a0] sm:$0xf] }
 0x2ce   :  { %6646 = vmatpush.bf16.msra.mxu2 %v8801_v42  ;;  %v9456_v42 = vld [vmem:[#allocation2 + $0x1028] sm:$0xf]  ;;  %v6939_v43 = vmul.f32 0.5, %v6382_v46  ;;  %v11766_v0 = vpop.eup %11765  ;;  %v11171_v46 = vld [vmem:[#allocation2 + $0xb0c] sm:$0xf] }
 0x2cf   :  { %6659 = vmatpush.bf16.msra.mxu3 %v10561_v45  ;;  %v11362_v45 = vld [vmem:[#allocation2 + $0x1100] sm:$0xf0] }
 0x2d0   :  { %6621 = vmatpush.bf16.msra.mxu0 %v8577_v52  ;;  %v7698_v52 = vld [vmem:[#allocation2 + $0x344] sm:$0xf0]  ;;  %11767 = vtanh.f32 %v6939_v43  ;;  %v10565_v43 = vor.u32 %v11638_v13, %v10564_v3  ;;  %v10978_v13 = vld [vmem:[#allocation2 + $0x500] sm:$0xf0] }
 0x2d1   :  { %6634 = vmatpush.bf16.msra.mxu1 %v10337_v56  ;;  %v6407_v56 = vpop.f32.mrf.mxu3  ;;  %11769 = vtanh.f32 %v6937_v6  ;;  %v7701_v12 = vor.u32 %v10895_v48, %v7698_v52  ;;  %v11583_v52 = vld [vmem:[#allocation2 + $0x17e8] sm:$0xf0]  ;;  %v7924_v3 = vld [vmem:[#allocation2 + $0x428] sm:$0xf] }
 0x2d2   :  { %6647 = vmatpush.bf16.msra.mxu2 %v8581_v35  ;;  %v10867_v35 = vld [vmem:[#allocation2 + $0x188] sm:$0xf0] }
 0x2d3   :  { %6660 = vmatpush.bf16.msra.mxu3 %v10341_v11  ;;  %v9457_v11 = vor.u32 %v11362_v45, %v9456_v42  ;;  %v6383_v20 = vpop.f32.mrf.mxu1  ;;  %v7477_v22 = vor.u32 %v10867_v35, %v7476_v31  ;;  %v11143_v45 = vld [vmem:[#allocation2 + $0xa28] sm:$0xf0]  ;;  %v11556_v35 = vld [vmem:[#allocation2 + $0x1714] sm:$0xf] }
 0x2d4   :  { %6622 = vmatpush.bf16.msra.mxu0 %v8357_v55  ;;  %v6408_v55 = vadd.f32 %v6407_v56, %v6395_v4  ;;  %v6396_v6 = vpop.f32.mrf.mxu2  ;;  %v11116_v4 = vld [vmem:[#allocation2 + $0x954] sm:$0xf]  ;;  %v8586_v56 = vld [vmem:[#allocation2 + $0xa2c] sm:$0xf0]  ;;  %v11501_v20 = vld [vmem:[#allocation2 + $0x155c] sm:$0xf] }
 0x2d5   :  { %6635 = vmatpush.bf16.msra.mxu1 %v10117_v62  ;;  %v10784_v62 = vld [vmem:[#allocation2 + $0x1a80] sm:$0xf]  ;;  %v8589_v58 = vor.u32 %v11116_v4, %v8586_v56  ;;  %v11336_v4 = vld [vmem:[#allocation2 + $0x1034] sm:$0xf] }
 0x2d6   :  { %6648 = vmatpush.bf16.msra.mxu2 %v8361_v16  ;;  %v11226_v16 = vld [vmem:[#allocation2 + $0xcc4] sm:$0xf]  ;;  %v11768_v33 = vpop.eup %11767  ;;  %v10785_v1 = vor.u32 %v11693_v15, %v10784_v62  ;;  %v11528_v62 = vld [vmem:[#allocation2 + $0x1630] sm:$0xf0]  ;;  %v8366_v15 = vld [vmem:[#allocation2 + $0x874] sm:$0xf0] }
 0x2d7   :  { %6661 = vmatpush.bf16.msra.mxu3 %v10121_v21  ;;  %v6940_v21 = vmul.f32 0.5, %v6408_v55  ;;  %v11770_v8 = vpop.eup %11769  ;;  %v7049_v2 = vadd.f32 1.0, %v11768_v33  ;;  %v11473_v33 = vld [vmem:[#allocation2 + $0x1478] sm:$0xf0] }
 0x2d8   :  { %6623 = vmatpush.bf16.msra.mxu0 %v8137_v29  ;;  %v9237_v29 = vor.u32 %v11307_v61, %v9236_v5  ;;  %v7047_v40 = vadd.f32 1.0, %v11770_v8  ;;  %v10346_v5 = vld [vmem:[#allocation2 + $0x17ec] sm:$0xf0]  ;;  %v11446_v8 = vld [vmem:[#allocation2 + $0x13a4] sm:$0xf] }
 0x2d9   :  { %6636 = vmatpush.bf16.msra.mxu1 %v9897_v32  ;;  %v7048_v32 = vadd.f32 1.0, %v11766_v0  ;;  %11771 = vtanh.f32 %v6940_v21  ;;  %v6409_v34 = vpop.f32.mrf.mxu3  ;;  %v7104_v48 = vmul.f32 0.5, %v7049_v2  ;;  %v10349_v0 = vor.u32 %v11556_v35, %v10346_v5  ;;  %v10126_v21 = vld [vmem:[#allocation2 + $0x1634] sm:$0xf0]  ;;  %v9906_v2 = vld [vmem:[#allocation2 + $0x147c] sm:$0xf0] }
 0x2da   :  { %6649 = vmatpush.bf16.msra.mxu2 %v8141_v37  ;;  %v11198_v37 = vld [vmem:[#allocation2 + $0xbe0] sm:$0xf0]  ;;  %v7102_v10 = vmul.f32 0.5, %v7047_v40  ;;  %v10951_v34 = vld [vmem:[#allocation2 + $0x42c] sm:$0xf] }
 0x2db   :  { %6662 = vmatpush.bf16.msra.mxu3 %v9901_v26  ;;  %v9029_v26 = vor.u32 %v11226_v16, %v9026_v18  ;;  %v8805_v36 = vor.u32 %v11198_v37, %v8804_v25  ;;  %v7103_v42 = vmul.f32 0.5, %v7048_v32  ;;  %v7205_v55 = vrot.slane %v7104_v48, 4  ;;  %v8146_v25 = vld [vmem:[#allocation2 + $0x6bc] sm:$0xf0]  ;;  %v11391_v40 = vld [vmem:[#allocation2 + $0x11ec] sm:$0xf] }
 0x2dc   :  { %6624 = vmatpush.bf16.msra.mxu0 %v7917_v47  ;;  %v8806_v47 = vld [vmem:[#allocation2 + $0xbe4] sm:$0xf0]  ;;  %v8365_v18 = vor.u32 %v11088_v57, %v8364_v59  ;;  %v8145_v37 = vor.u32 %v11033_v23, %v8144_v41  ;;  %v7484_v35 = vld [vmem:[#allocation2 + $0xb8] sm:$0xf]  ;;  %v10868_v5 = vld [vmem:[#allocation2 + $0x190] sm:$0xf0] }
 0x2dd   :  { %6637 = vmatpush.bf16.msra.mxu1 %v9677_v50  ;;  %v11611_v50 = vld [vmem:[#allocation2 + $0x18cc] sm:$0xf]  ;;  %v8809_v49 = vor.u32 %v11171_v46, %v8806_v47  ;;  %v11418_v46 = vld [vmem:[#allocation2 + $0x12c0] sm:$0xf0]  ;;  %v9909_v47 = vor.u32 %v11446_v8, %v9906_v2  ;;  %v9244_v59 = vld [vmem:[#allocation2 + $0xe78] sm:$0xf] }
 0x2de   :  { %6650 = vmatpush.bf16.msra.mxu2 %v7921_v44  ;;  %v8584_v44 = vld [vmem:[#allocation2 + $0x950] sm:$0xf]  ;;  %v10569_v54 = vor.u32 %v11611_v50, %v10566_v39  ;;  %v7925_v39 = vor.u32 %v10978_v13, %v7924_v3  ;;  %v11308_v57 = vld [vmem:[#allocation2 + $0xf50] sm:$0xf0]  ;;  %v9246_v41 = vld [vmem:[#allocation2 + $0xf54] sm:$0xf0] }
 0x2df   :  { %6663 = vmatpush.bf16.msra.mxu3 %v9681_v51  ;;  %v10344_v51 = vld [vmem:[#allocation2 + $0x1710] sm:$0xf]  ;;  %v11772_v53 = vpop.eup %11771  ;;  %v8585_v31 = vor.u32 %v11143_v45, %v8584_v44  ;;  %v10923_v45 = vld [vmem:[#allocation2 + $0x348] sm:$0xf0]  ;;  %v9245_v23 = vor.u32 %v11308_v57, %v9244_v59  ;;  %v11172_v3 = vld [vmem:[#allocation2 + $0xb14] sm:$0xf] }
 0x2e0   :  { %6625 = vmatpush.bf16.msra.mxu0 %v7697_v28  ;;  %v7050_v28 = vadd.f32 1.0, %v11772_v53  ;;  %v10345_v61 = vor.u32 %v11583_v52, %v10344_v51  ;;  %v7704_v44 = vld [vmem:[#allocation2 + $0x270] sm:$0xf]  ;;  %v11363_v51 = vld [vmem:[#allocation2 + $0x1108] sm:$0xf0] }
 0x2e1   :  { %6638 = vmatpush.bf16.msra.mxu1 %v9457_v11  ;;  %v7204_v11 = vrot.slane %v7103_v42, 6  ;;  %v9686_v42 = vld [vmem:[#allocation2 + $0x12c4] sm:$0xf0]  ;;  %v10896_v53 = vld [vmem:[#allocation2 + $0x274] sm:$0xf] }
 0x2e2   :  { %6651 = vmatpush.bf16.msra.mxu2 %v7701_v12  ;;  %v7105_v12 = vmul.f32 0.5, %v7050_v28  ;;  %v9689_v52 = vor.u32 %v11391_v40, %v9686_v42  ;;  %v7705_v28 = vor.u32 %v10923_v45, %v7704_v44  ;;  %v11639_v8 = vld [vmem:[#allocation2 + $0x19a8] sm:$0xf0]  ;;  %v8814_v13 = vld [vmem:[#allocation2 + $0xbec] sm:$0xf0] }
 0x2e3   :  { %6664 = vmatpush.bf16.msra.mxu3 %v9461_v14  ;;  %v11061_v14 = vld [vmem:[#allocation2 + $0x79c] sm:$0xf]  ;;  %v11144_v40 = vld [vmem:[#allocation2 + $0xa30] sm:$0xf0]  ;;  %v8817_v42 = vor.u32 %v11172_v3, %v8814_v13  ;;  %v11062_v57 = vld [vmem:[#allocation2 + $0x7a4] sm:$0xf] }
 0x2e4   :  { %6626 = vmatpush.bf16.msra.mxu0 %v7477_v22  ;;  %v7206_v16 = vrot.slane %v7105_v12, 2  ;;  %v10125_v22 = vor.u32 %v11528_v62, %v10124_v60  ;;  %v8369_v63 = vor.u32 %v11061_v14, %v8366_v15  ;;  %v9032_v60 = vld [vmem:[#allocation2 + $0xcc8] sm:$0xf]  ;;  %v11254_v62 = vld [vmem:[#allocation2 + $0xda0] sm:$0xf0] }
 0x2e5   :  { %6639 = vmatpush.bf16.msra.mxu1 %v9237_v29  ;;  %v7248_v29 = vsel %vm7221_vm0, %v7102_v10, %v7204_v11  ;;  %v12184_v50 = vpop.f32.mrf.mxu1  ;;  %v10792_v14 = vld [vmem:[#allocation2 + $0x1a88] sm:$0xf]  ;;  %v11694_v15 = vld [vmem:[#allocation2 + $0x1b60] sm:$0xf0]  ;;  %v11584_v44 = vld [vmem:[#allocation2 + $0x17f0] sm:$0xf0] }
 0x2e6   :  { %6652 = vmatpush.bf16.msra.mxu2 %v7481_v9  ;;  %v10129_v9 = vor.u32 %v11501_v20, %v10126_v21  ;;  %v7485_v20 = vor.u32 %v10868_v5, %v7484_v35  ;;  %v9034_v21 = vld [vmem:[#allocation2 + $0xda4] sm:$0xf0]  ;;  %v11089_v35 = vld [vmem:[#allocation2 + $0x878] sm:$0xf0]  ;;  %v10952_v3 = vld [vmem:[#allocation2 + $0x434] sm:$0xf] }
 0x2e7   :  { %6665 = vmatpush.bf16.msra.mxu3 %v9241_v7  ;;  %6627 = vmatmul.bf16.vlgmr.msra.gmra.mxu0 %v11866_v17  ;;  %v9905_v7 = vor.u32 %v11473_v33, %v9904_v24  ;;  %v10793_v33 = vor.u32 %v11694_v15, %v10792_v14  ;;  %v8152_v14 = vld [vmem:[#allocation2 + $0x5e8] sm:$0xf]  ;;  %v11034_v15 = vld [vmem:[#allocation2 + $0x6c0] sm:$0xf0] }
 0x2e8   :  { %6671 = vmatpush.bf16.msrb.mxu0 %v9025_v27  ;;  %6640 = vmatmul.bf16.vlgmr.msra.gmra.mxu1 %v11868_v19  ;;  %v7249_v27 = vsel %vm7223_vm1, %v7205_v55, %v7206_v16  ;;  %v10841_v55 = vld [vmem:[#allocation2 + $0xbc] sm:$0xf]  ;;  %v11227_v16 = vld [vmem:[#allocation2 + $0xccc] sm:$0xf] }
 0x2e9   :  { %6684 = vmatpush.bf16.msrb.mxu1 %v10785_v1  ;;  %6653 = vmatmul.bf16.vlgmr.msra.gmra.mxu2 %v11866_v17  ;;  %v7250_v32 = vsel %vm7225_vm2, %v7248_v29, %v7249_v27  ;;  %v11006_v1 = vld [vmem:[#allocation2 + $0x5e4] sm:$0xf]  ;;  %v9033_v29 = vor.u32 %v11254_v62, %v9032_v60  ;;  %v11667_v27 = vld [vmem:[#allocation2 + $0x1a8c] sm:$0xf]  ;;  %v10134_v60 = vld [vmem:[#allocation2 + $0x163c] sm:$0xf0] }
 0x2ea   :  { %6697 = vmatpush.bf16.msrb.mxu2 %v9029_v26  ;;  %6666 = vmatmul.bf16.vlgmr.msra.gmra.mxu3 %v11868_v19  ;;  %7287 = vst [vmem:[%s12285_s3 + $0x40] sm:$0xff] %v7250_v32  ;;  %v12182_v26 = vpop.f32.mrf.mxu0  ;;  %v8149_v6 = vor.u32 %v11006_v1, %v8146_v25  ;;  %v8812_v32 = vld [vmem:[#allocation2 + $0xb10] sm:$0xf]  ;;  %v9037_v1 = vor.u32 %v11227_v16, %v9034_v21  ;;  %v987_v16 = vperm.slane %v12158_v38, 6  ;;  %v11474_v21 = vld [vmem:[#allocation2 + $0x1480] sm:$0xf0] }
 0x2eb   :  { %6710 = vmatpush.bf16.msrb.mxu3 %v10789_v30  ;;  %v9684_v30 = vld [vmem:[#allocation2 + $0x11e8] sm:$0xf] }
 0x2ec   :  { %6672 = vmatpush.bf16.msrb.mxu0 %v8805_v36  ;;  %v7926_v36 = vld [vmem:[#allocation2 + $0x504] sm:$0xf0]  ;;  %v12186_v56 = vpop.f32.mrf.mxu2 }
 0x2ed   :  { %6685 = vmatpush.bf16.msrb.mxu1 %v10565_v43  ;;  %v9685_v43 = vor.u32 %v11418_v46, %v9684_v30  ;;  %v7929_v48 = vor.u32 %v10951_v34, %v7926_v36  ;;  %v12188_v10 = vpop.f32.mrf.mxu3  ;;  %v11612_v46 = vld [vmem:[#allocation2 + $0x18d4] sm:$0xf]  ;;  %v986_v34 = vperm.slane %v12158_v38, 5 }
 0x2ee   :  { %6698 = vmatpush.bf16.msrb.mxu2 %v8809_v49  ;;  %v9464_v49 = vld [vmem:[#allocation2 + $0x1030] sm:$0xf] }
 0x2ef   :  { %6711 = vmatpush.bf16.msrb.mxu3 %v10569_v54  ;;  %v7706_v54 = vld [vmem:[#allocation2 + $0x34c] sm:$0xf0] }
 0x2f0   :  { %6673 = vmatpush.bf16.msrb.mxu0 %v8585_v31  ;;  %v9466_v31 = vld [vmem:[#allocation2 + $0x110c] sm:$0xf0]  ;;  %v7709_v12 = vor.u32 %v10896_v53, %v7706_v54  ;;  %v11557_v53 = vld [vmem:[#allocation2 + $0x171c] sm:$0xf]  ;;  %v10354_v54 = vld [vmem:[#allocation2 + $0x17f4] sm:$0xf0] }
 0x2f1   :  { %6686 = vmatpush.bf16.msrb.mxu1 %v10345_v61  ;;  %v9465_v61 = vor.u32 %v11363_v51, %v9464_v49  ;;  %v8594_v49 = vld [vmem:[#allocation2 + $0xa34] sm:$0xf0]  ;;  %v985_v51 = vperm.slane %v12158_v38, 4  ;;  %v10357_v59 = vor.u32 %v11557_v53, %v10354_v54 }
 0x2f2   :  { %6699 = vmatpush.bf16.msrb.mxu2 %v8589_v58  ;;  %v6422_v11 = vpop.f32.mrf.mxu0  ;;  %v7486_v58 = vld [vmem:[#allocation2 + $0x194] sm:$0xf0] }
 0x2f3   :  { %6712 = vmatpush.bf16.msrb.mxu3 %v10349_v0  ;;  %v9469_v0 = vor.u32 %v11336_v4, %v9466_v31  ;;  %v7489_v24 = vor.u32 %v10841_v55, %v7486_v58  ;;  %v6447_v4 = vadd.f32 %v12186_v56, %v986_v34  ;;  %v8372_v31 = vld [vmem:[#allocation2 + $0x7a0] sm:$0xf]  ;;  %v11502_v58 = vld [vmem:[#allocation2 + $0x1564] sm:$0xf]  ;;  %v9694_v34 = vld [vmem:[#allocation2 + $0x12cc] sm:$0xf0] }
 0x2f4   :  { %6674 = vmatpush.bf16.msrb.mxu0 %v8365_v18  ;;  %v6435_v18 = vpop.f32.mrf.mxu1  ;;  %v6448_v2 = vpop.f32.mrf.mxu2  ;;  %v10132_v11 = vld [vmem:[#allocation2 + $0x1560] sm:$0xf]  ;;  %v8373_v56 = vor.u32 %v11089_v35, %v8372_v31  ;;  %v9474_v53 = vld [vmem:[#allocation2 + $0x1114] sm:$0xf0]  ;;  %v10869_v35 = vld [vmem:[#allocation2 + $0x198] sm:$0xf0] }
 0x2f5   :  { %6687 = vmatpush.bf16.msrb.mxu1 %v10125_v22  ;;  %v11281_v22 = vld [vmem:[#allocation2 + $0xe7c] sm:$0xf]  ;;  %v8374_v55 = vld [vmem:[#allocation2 + $0x87c] sm:$0xf0]  ;;  %v6460_v62 = vadd.f32 %v12188_v10, %v6447_v4  ;;  %v11447_v10 = vld [vmem:[#allocation2 + $0x13ac] sm:$0xf] }
 0x2f6   :  { %6700 = vmatpush.bf16.msrb.mxu2 %v8369_v63  ;;  %v10794_v63 = vld [vmem:[#allocation2 + $0x1b64] sm:$0xf0]  ;;  %v9249_v25 = vor.u32 %v11281_v22, %v9246_v41  ;;  %v8377_v18 = vor.u32 %v11062_v57, %v8374_v55  ;;  %v10137_v22 = vor.u32 %v11502_v58, %v10134_v60  ;;  %v11007_v41 = vld [vmem:[#allocation2 + $0x5ec] sm:$0xf]  ;;  %v7492_v31 = vld [vmem:[#allocation2 + $0xc0] sm:$0xf] }
 0x2f7   :  { %6713 = vmatpush.bf16.msrb.mxu3 %v10129_v9  ;;  %v11199_v9 = vld [vmem:[#allocation2 + $0xbe8] sm:$0xf0]  ;;  %v10842_v57 = vld [vmem:[#allocation2 + $0xc4] sm:$0xf]  ;;  %v7494_v55 = vld [vmem:[#allocation2 + $0x19c] sm:$0xf0] }
 0x2f8   :  { %6675 = vmatpush.bf16.msrb.mxu0 %v8145_v37  ;;  %v10572_v37 = vld [vmem:[#allocation2 + $0x18d0] sm:$0xf]  ;;  %v8813_v30 = vor.u32 %v11199_v9, %v8812_v32  ;;  %v11255_v60 = vld [vmem:[#allocation2 + $0xda8] sm:$0xf0] }
 0x2f9   :  { %6688 = vmatpush.bf16.msrb.mxu1 %v9905_v7  ;;  %v10797_v7 = vor.u32 %v11667_v27, %v10794_v63  ;;  %v10573_v36 = vor.u32 %v11639_v8, %v10572_v37  ;;  %v9914_v63 = vld [vmem:[#allocation2 + $0x1484] sm:$0xf0]  ;;  %v7932_v9 = vld [vmem:[#allocation2 + $0x430] sm:$0xf]  ;;  %v11419_v8 = vld [vmem:[#allocation2 + $0x12c8] sm:$0xf0] }
 0x2fa   :  { %6701 = vmatpush.bf16.msrb.mxu2 %v8149_v6  ;;  %v6461_v6 = vpop.f32.mrf.mxu3  ;;  %v9692_v37 = vld [vmem:[#allocation2 + $0x11f0] sm:$0xf]  ;;  %v9917_v2 = vor.u32 %v11447_v10, %v9914_v63 }
 0x2fb   :  { %6714 = vmatpush.bf16.msrb.mxu3 %v9909_v47  ;;  %v10574_v47 = vld [vmem:[#allocation2 + $0x19ac] sm:$0xf0]  ;;  %v988_v6 = vperm.slane %v12158_v38, 7  ;;  %v11337_v38 = vld [vmem:[#allocation2 + $0x103c] sm:$0xf] }
 0x2fc   :  { %6676 = vmatpush.bf16.msrb.mxu0 %v7925_v39  ;;  %v8592_v39 = vld [vmem:[#allocation2 + $0x958] sm:$0xf]  ;;  %v10577_v45 = vor.u32 %v11612_v46, %v10574_v47  ;;  %v11392_v47 = vld [vmem:[#allocation2 + $0x11f4] sm:$0xf]  ;;  %v9040_v58 = vld [vmem:[#allocation2 + $0xcd0] sm:$0xf] }
 0x2fd   :  { %6689 = vmatpush.bf16.msrb.mxu1 %v9685_v43  ;;  %v10352_v43 = vld [vmem:[#allocation2 + $0x1718] sm:$0xf]  ;;  %v10802_v10 = vld [vmem:[#allocation2 + $0x1b6c] sm:$0xf0] }
 0x2fe   :  { %6702 = vmatpush.bf16.msrb.mxu2 %v7929_v48  ;;  %v11117_v48 = vld [vmem:[#allocation2 + $0x95c] sm:$0xf] }
 0x2ff   :  { %6715 = vmatpush.bf16.msrb.mxu3 %v9689_v52  ;;  %v8593_v52 = vor.u32 %v11144_v40, %v8592_v39  ;;  %v8597_v5 = vor.u32 %v11117_v48, %v8594_v49  ;;  %v7712_v39 = vld [vmem:[#allocation2 + $0x278] sm:$0xf]  ;;  %v10924_v40 = vld [vmem:[#allocation2 + $0x350] sm:$0xf0]  ;;  %v10897_v48 = vld [vmem:[#allocation2 + $0x27c] sm:$0xf] }
 0x300   :  { %6677 = vmatpush.bf16.msrb.mxu0 %v7705_v28  ;;  %v10353_v28 = vor.u32 %v11584_v44, %v10352_v43 }
 0x301   :  { %6690 = vmatpush.bf16.msrb.mxu1 %v9465_v61  ;;  %v11529_v61 = vld [vmem:[#allocation2 + $0x1638] sm:$0xf0] }
 0x302   :  { %6703 = vmatpush.bf16.msrb.mxu2 %v7709_v12  ;;  %v6421_v12 = vadd.f32 %v12182_v26, %v985_v51  ;;  %v8154_v26 = vld [vmem:[#allocation2 + $0x6c4] sm:$0xf0]  ;;  %v9697_v51 = vor.u32 %v11392_v47, %v9694_v34  ;;  %v11613_v34 = vld [vmem:[#allocation2 + $0x18dc] sm:$0xf] }
 0x303   :  { %6716 = vmatpush.bf16.msrb.mxu3 %v9469_v0  ;;  %v10133_v0 = vor.u32 %v11529_v61, %v10132_v11 }
 0x304   :  { %6678 = vmatpush.bf16.msrb.mxu0 %v7485_v20  ;;  %v9912_v20 = vld [vmem:[#allocation2 + $0x13a8] sm:$0xf]  ;;  %v6472_v27 = vpop.f32.mrf.mxu0 }
 0x305   :  { %6691 = vmatpush.bf16.msrb.mxu1 %v9245_v23  ;;  %v6434_v23 = vadd.f32 %v12184_v50, %v6421_v12  ;;  %v6473_v32 = vadd.f32 %v6472_v27, %v987_v16  ;;  %v7934_v50 = vld [vmem:[#allocation2 + $0x50c] sm:$0xf0]  ;;  %v11228_v16 = vld [vmem:[#allocation2 + $0xcd4] sm:$0xf] }
 0x306   :  { %6704 = vmatpush.bf16.msrb.mxu2 %v7489_v24  ;;  %v6942_v24 = vmul.f32 0.5, %v6460_v62  ;;  %v7937_v44 = vor.u32 %v10952_v3, %v7934_v50  ;;  %v10800_v62 = vld [vmem:[#allocation2 + $0x1a90] sm:$0xf]  ;;  %v11668_v27 = vld [vmem:[#allocation2 + $0x1a94] sm:$0xf] }
 0x307   :  { %6717 = vmatpush.bf16.msrb.mxu3 %v9249_v25  ;;  %6679 = vmatmul.bf16.vlgmr.msrb.gmra.mxu0 %v11866_v17  ;;  %v8157_v25 = vor.u32 %v11007_v41, %v8154_v26  ;;  %v6941_v13 = vmul.f32 0.5, %v6434_v23  ;;  %v11282_v41 = vld [vmem:[#allocation2 + $0xe84] sm:$0xf]  ;;  %v9254_v26 = vld [vmem:[#allocation2 + $0xf5c] sm:$0xf0] }
 0x308   :  { %6723 = vmatpush.bf16.msra.mxu0 %v9033_v29  ;;  %6692 = vmatmul.bf16.vlgmr.msrb.gmra.mxu1 %v11868_v19  ;;  %v8153_v29 = vor.u32 %v11034_v15, %v8152_v14  ;;  %11773 = vtanh.f32 %v6942_v24  ;;  %v9477_v14 = vor.u32 %v11337_v38, %v9474_v53  ;;  %v11695_v15 = vld [vmem:[#allocation2 + $0x1b68] sm:$0xf0]  ;;  %v11640_v3 = vld [vmem:[#allocation2 + $0x19b0] sm:$0xf0]  ;;  %v11118_v53 = vld [vmem:[#allocation2 + $0x964] sm:$0xf] }
 0x309   :  { %6736 = vmatpush.bf16.msra.mxu1 %v10793_v33  ;;  %6705 = vmatmul.bf16.vlgmr.msrb.gmra.mxu2 %v11866_v17  ;;  %v9913_v33 = vor.u32 %v11474_v21, %v9912_v20 }
 0x30a   :  { %6749 = vmatpush.bf16.msra.mxu2 %v9037_v1  ;;  %6718 = vmatmul.bf16.vlgmr.msrb.gmra.mxu3 %v11868_v19  ;;  %v10979_v1 = vld [vmem:[#allocation2 + $0x508] sm:$0xf0] }
 0x30b   :  { %6762 = vmatpush.bf16.msra.mxu3 %v10797_v7  ;;  %v6485_v7 = vpop.f32.mrf.mxu1  ;;  %v7933_v46 = vor.u32 %v10979_v1, %v7932_v9  ;;  %v8820_v9 = vld [vmem:[#allocation2 + $0xb18] sm:$0xf]  ;;  %v11200_v1 = vld [vmem:[#allocation2 + $0xbf0] sm:$0xf0] }
 0x30c   :  { %6724 = vmatpush.bf16.msra.mxu0 %v8813_v30  ;;  %v6486_v30 = vadd.f32 %v6485_v7, %v6473_v32  ;;  %v6498_v49 = vpop.f32.mrf.mxu2  ;;  %v6474_v11 = vpop.f32.mrf.mxu0  ;;  %v10801_v32 = vor.u32 %v11695_v15, %v10800_v62  ;;  %v10580_v7 = vld [vmem:[#allocation2 + $0x18d8] sm:$0xf]  ;;  %v8821_v47 = vor.u32 %v11200_v1, %v8820_v9  ;;  %v11448_v1 = vld [vmem:[#allocation2 + $0x13b4] sm:$0xf] }
 0x30d   :  { %6737 = vmatpush.bf16.msra.mxu1 %v10573_v36  ;;  %v9693_v36 = vor.u32 %v11419_v8, %v9692_v37  ;;  %v6499_v54 = vadd.f32 %v6498_v49, %v988_v6  ;;  %v6511_v4 = vpop.f32.mrf.mxu3  ;;  %v11173_v6 = vld [vmem:[#allocation2 + $0xb1c] sm:$0xf]  ;;  %v10360_v49 = vld [vmem:[#allocation2 + $0x1720] sm:$0xf] }
 0x30e   :  { %6750 = vmatpush.bf16.msra.mxu2 %v8817_v42  ;;  %v9472_v42 = vld [vmem:[#allocation2 + $0x1038] sm:$0xf]  ;;  %v6943_v43 = vmul.f32 0.5, %v6486_v30 }
 0x30f   :  { %6763 = vmatpush.bf16.msra.mxu3 %v10577_v45  ;;  %v11364_v45 = vld [vmem:[#allocation2 + $0x1110] sm:$0xf0]  ;;  %v6512_v12 = vadd.f32 %v6511_v4, %v6499_v54  ;;  %v8822_v30 = vld [vmem:[#allocation2 + $0xbf4] sm:$0xf0]  ;;  %v8602_v54 = vld [vmem:[#allocation2 + $0xa3c] sm:$0xf0] }
 0x310   :  { %6725 = vmatpush.bf16.msra.mxu0 %v8593_v52  ;;  %v7714_v52 = vld [vmem:[#allocation2 + $0x354] sm:$0xf0]  ;;  %11775 = vtanh.f32 %v6943_v43  ;;  %v9473_v61 = vor.u32 %v11364_v45, %v9472_v42  ;;  %v10581_v42 = vor.u32 %v11640_v3, %v10580_v7  ;;  %v8600_v43 = vld [vmem:[#allocation2 + $0x960] sm:$0xf]  ;;  %v10980_v7 = vld [vmem:[#allocation2 + $0x510] sm:$0xf0] }
 0x311   :  { %6738 = vmatpush.bf16.msra.mxu1 %v10353_v28  ;;  %v7713_v28 = vor.u32 %v10924_v40, %v7712_v39  ;;  %11777 = vtanh.f32 %v6941_v13  ;;  %v6944_v21 = vmul.f32 0.5, %v6512_v12  ;;  %v10805_v13 = vor.u32 %v11668_v27, %v10802_v10  ;;  %v9920_v27 = vld [vmem:[#allocation2 + $0x13b0] sm:$0xf]  ;;  %v11475_v10 = vld [vmem:[#allocation2 + $0x1488] sm:$0xf0] }
 0x312   :  { %6751 = vmatpush.bf16.msra.mxu2 %v8597_v5  ;;  %v9252_v5 = vld [vmem:[#allocation2 + $0xe80] sm:$0xf] }
 0x313   :  { %6764 = vmatpush.bf16.msra.mxu3 %v10357_v59  ;;  %v11309_v59 = vld [vmem:[#allocation2 + $0xf58] sm:$0xf0]  ;;  %v6487_v20 = vpop.f32.mrf.mxu1  ;;  %11779 = vtanh.f32 %v6944_v21 }
 0x314   :  { %6726 = vmatpush.bf16.msra.mxu0 %v8373_v56  ;;  %v7717_v56 = vor.u32 %v10897_v48, %v7714_v52  ;;  %v9253_v23 = vor.u32 %v11309_v59, %v9252_v5  ;;  %v6500_v50 = vpop.f32.mrf.mxu2  ;;  %v8825_v48 = vor.u32 %v11173_v6, %v8822_v30  ;;  %v8380_v59 = vld [vmem:[#allocation2 + $0x7a8] sm:$0xf]  ;;  %v10953_v30 = vld [vmem:[#allocation2 + $0x43c] sm:$0xf] }
 0x315   :  { %6739 = vmatpush.bf16.msra.mxu1 %v10133_v0  ;;  %v11774_v0 = vpop.eup %11773  ;;  %v10142_v20 = vld [vmem:[#allocation2 + $0x1644] sm:$0xf0]  ;;  %v9700_v50 = vld [vmem:[#allocation2 + $0x11f8] sm:$0xf] }
 0x316   :  { %6752 = vmatpush.bf16.msra.mxu2 %v8377_v18  ;;  %v9042_v18 = vld [vmem:[#allocation2 + $0xdac] sm:$0xf0]  ;;  %v11776_v63 = vpop.eup %11775  ;;  %v7052_v24 = vadd.f32 1.0, %v11774_v0  ;;  %v11063_v0 = vld [vmem:[#allocation2 + $0x7ac] sm:$0xf] }
 0x317   :  { %6765 = vmatpush.bf16.msra.mxu3 %v10137_v22  ;;  %v7493_v22 = vor.u32 %v10869_v35, %v7492_v31  ;;  %v7053_v37 = vadd.f32 1.0, %v11776_v63  ;;  %v9045_v8 = vor.u32 %v11228_v16, %v9042_v18  ;;  %v11558_v31 = vld [vmem:[#allocation2 + $0x1724] sm:$0xf]  ;;  %v10362_v35 = vld [vmem:[#allocation2 + $0x17fc] sm:$0xf0] }
 0x318   :  { %6727 = vmatpush.bf16.msra.mxu0 %v8153_v29  ;;  %v9041_v29 = vor.u32 %v11255_v60, %v9040_v58  ;;  %v7107_v40 = vmul.f32 0.5, %v7052_v24  ;;  %v10140_v58 = vld [vmem:[#allocation2 + $0x1568] sm:$0xf]  ;;  %v11530_v60 = vld [vmem:[#allocation2 + $0x1640] sm:$0xf0]  ;;  %v10365_v62 = vor.u32 %v11558_v31, %v10362_v35 }
 0x319   :  { %6740 = vmatpush.bf16.msra.mxu1 %v9913_v33  ;;  %v7497_v33 = vor.u32 %v10842_v57, %v7494_v55  ;;  %v7108_v45 = vmul.f32 0.5, %v7053_v37  ;;  %v11090_v57 = vld [vmem:[#allocation2 + $0x880] sm:$0xf0]  ;;  %v11503_v18 = vld [vmem:[#allocation2 + $0x156c] sm:$0xf]  ;;  %v10141_v21 = vor.u32 %v11530_v60, %v10140_v58 }
 0x31a   :  { %6753 = vmatpush.bf16.msra.mxu2 %v8157_v25  ;;  %v11778_v25 = vpop.eup %11777  ;;  %v7207_v11 = vrot.slane %v7107_v40, 6  ;;  %v8381_v16 = vor.u32 %v11090_v57, %v8380_v59  ;;  %v10145_v24 = vor.u32 %v11503_v18, %v10142_v20  ;;  %v10870_v31 = vld [vmem:[#allocation2 + $0x1a0] sm:$0xf0]  ;;  %v10843_v57 = vld [vmem:[#allocation2 + $0xcc] sm:$0xf] }
 0x31b   :  { %6766 = vmatpush.bf16.msra.mxu3 %v9917_v2  ;;  %v9257_v2 = vor.u32 %v11282_v41, %v9254_v26  ;;  %v7051_v39 = vadd.f32 1.0, %v11778_v25  ;;  %v11780_v52 = vpop.eup %11779  ;;  %v7208_v55 = vrot.slane %v7108_v45, 4  ;;  %v11035_v41 = vld [vmem:[#allocation2 + $0x6c8] sm:$0xf0]  ;;  %v9922_v25 = vld [vmem:[#allocation2 + $0x148c] sm:$0xf0] }
 0x31c   :  { %6728 = vmatpush.bf16.msra.mxu0 %v7933_v46  ;;  %v6513_v46 = vpop.f32.mrf.mxu3  ;;  %v7054_v4 = vadd.f32 1.0, %v11780_v52  ;;  %v9925_v6 = vor.u32 %v11448_v1, %v9922_v25  ;;  %v9480_v45 = vld [vmem:[#allocation2 + $0x1040] sm:$0xf]  ;;  %v11310_v59 = vld [vmem:[#allocation2 + $0xf60] sm:$0xf0] }
 0x31d   :  { %6741 = vmatpush.bf16.msra.mxu1 %v9693_v36  ;;  %v10582_v36 = vld [vmem:[#allocation2 + $0x19b4] sm:$0xf0]  ;;  %v7106_v5 = vmul.f32 0.5, %v7051_v39  ;;  %v7722_v52 = vld [vmem:[#allocation2 + $0x35c] sm:$0xf0] }
 0x31e   :  { %6754 = vmatpush.bf16.msra.mxu2 %v7937_v44  ;;  %v11145_v44 = vld [vmem:[#allocation2 + $0xa38] sm:$0xf0]  ;;  %v10585_v38 = vor.u32 %v11613_v34, %v10582_v36  ;;  %v7109_v12 = vmul.f32 0.5, %v7054_v4  ;;  %v7942_v46 = vld [vmem:[#allocation2 + $0x514] sm:$0xf0] }
 0x31f   :  { %6767 = vmatpush.bf16.msra.mxu3 %v9697_v51  ;;  %v11585_v51 = vld [vmem:[#allocation2 + $0x17f8] sm:$0xf0]  ;;  %v7251_v26 = vsel %vm7221_vm0, %v7106_v5, %v7207_v11  ;;  %v9702_v39 = vld [vmem:[#allocation2 + $0x12d4] sm:$0xf0]  ;;  %v9482_v4 = vld [vmem:[#allocation2 + $0x111c] sm:$0xf0] }
 0x320   :  { %6729 = vmatpush.bf16.msra.mxu0 %v7713_v28  ;;  %v8601_v28 = vor.u32 %v11145_v44, %v8600_v43  ;;  %v7209_v15 = vrot.slane %v7109_v12, 2  ;;  %v11393_v36 = vld [vmem:[#allocation2 + $0x11fc] sm:$0xf]  ;;  %v7945_v44 = vor.u32 %v10953_v30, %v7942_v46  ;;  %v7502_v12 = vld [vmem:[#allocation2 + $0x1a4] sm:$0xf0] }
 0x321   :  { %6742 = vmatpush.bf16.msra.mxu1 %v9473_v61  ;;  %v10361_v61 = vor.u32 %v11585_v51, %v10360_v49  ;;  %v10925_v43 = vld [vmem:[#allocation2 + $0x358] sm:$0xf0]  ;;  %v9705_v49 = vor.u32 %v11393_v36, %v9702_v39  ;;  %v10898_v51 = vld [vmem:[#allocation2 + $0x284] sm:$0xf]  ;;  %v11256_v58 = vld [vmem:[#allocation2 + $0xdb0] sm:$0xf0] }
 0x322   :  { %6755 = vmatpush.bf16.msra.mxu2 %v7717_v56  ;;  %v8605_v56 = vor.u32 %v11118_v53, %v8602_v54  ;;  %v9262_v18 = vld [vmem:[#allocation2 + $0xf64] sm:$0xf0]  ;;  %v11229_v20 = vld [vmem:[#allocation2 + $0xcdc] sm:$0xf]  ;;  %v11146_v36 = vld [vmem:[#allocation2 + $0xa40] sm:$0xf0] }
 0x323   :  { %6768 = vmatpush.bf16.msra.mxu3 %v9477_v14  ;;  %v8382_v14 = vld [vmem:[#allocation2 + $0x884] sm:$0xf0] }
 0x324   :  { %6730 = vmatpush.bf16.msra.mxu0 %v7493_v22  ;;  %v8160_v22 = vld [vmem:[#allocation2 + $0x5f0] sm:$0xf]  ;;  %v12212_v37 = vpop.f32.mrf.mxu0  ;;  %v10368_v39 = vld [vmem:[#allocation2 + $0x1728] sm:$0xf] }
 0x325   :  { %6743 = vmatpush.bf16.msra.mxu1 %v9253_v23  ;;  %v7252_v23 = vsel %vm7223_vm1, %v7208_v55, %v7209_v15  ;;  %v8161_v9 = vor.u32 %v11035_v41, %v8160_v22  ;;  %v7725_v55 = vor.u32 %v10898_v51, %v7722_v52  ;;  %v10370_v51 = vld [vmem:[#allocation2 + $0x1804] sm:$0xf0] }
 0x326   :  { %6756 = vmatpush.bf16.msra.mxu2 %v7497_v33  ;;  %v7253_v63 = vsel %vm7225_vm2, %v7251_v26, %v7252_v23  ;;  %v11008_v33 = vld [vmem:[#allocation2 + $0x5f4] sm:$0xf]  ;;  %v11669_v26 = vld [vmem:[#allocation2 + $0x1a9c] sm:$0xf]  ;;  %v10810_v23 = vld [vmem:[#allocation2 + $0x1b74] sm:$0xf0] }
 0x327   :  { %6769 = vmatpush.bf16.msra.mxu3 %v9257_v2  ;;  %6731 = vmatmul.bf16.vlgmr.msra.gmra.mxu0 %v11866_v17  ;;  %7288 = vst [vmem:[%s12285_s3 + $0x48] sm:$0xff] %v7253_v63  ;;  %v7940_v2 = vld [vmem:[#allocation2 + $0x438] sm:$0xf]  ;;  %v11201_v63 = vld [vmem:[#allocation2 + $0xbf8] sm:$0xf0] }
 0x328   :  { %6775 = vmatpush.bf16.msrb.mxu0 %v9041_v29  ;;  %6744 = vmatmul.bf16.vlgmr.msra.gmra.mxu1 %v11868_v19  ;;  %v8385_v29 = vor.u32 %v11063_v0, %v8382_v14  ;;  %v7941_v34 = vor.u32 %v10980_v7, %v7940_v2  ;;  %v11696_v0 = vld [vmem:[#allocation2 + $0x1b70] sm:$0xf0]  ;;  %v11283_v14 = vld [vmem:[#allocation2 + $0xe8c] sm:$0xf]  ;;  %v11174_v2 = vld [vmem:[#allocation2 + $0xb24] sm:$0xf] }
 0x329   :  { %6788 = vmatpush.bf16.msrb.mxu1 %v10801_v32  ;;  %6757 = vmatmul.bf16.vlgmr.msra.gmra.mxu2 %v11866_v17  ;;  %v8162_v32 = vld [vmem:[#allocation2 + $0x6cc] sm:$0xf0]  ;;  %v8830_v7 = vld [vmem:[#allocation2 + $0xbfc] sm:$0xf0] }
 0x32a   :  { %6801 = vmatpush.bf16.msrb.mxu2 %v9045_v8  ;;  %6770 = vmatmul.bf16.vlgmr.msra.gmra.mxu3 %v11868_v19  ;;  %v9921_v8 = vor.u32 %v11475_v10, %v9920_v27  ;;  %v8165_v3 = vor.u32 %v11008_v33, %v8162_v32  ;;  %v8828_v10 = vld [vmem:[#allocation2 + $0xb20] sm:$0xf]  ;;  %v9265_v33 = vor.u32 %v11283_v14, %v9262_v18 }
 0x32b   :  { %6814 = vmatpush.bf16.msrb.mxu3 %v10805_v13  ;;  %v11420_v13 = vld [vmem:[#allocation2 + $0x12d0] sm:$0xf0]  ;;  %v10588_v32 = vld [vmem:[#allocation2 + $0x18e0] sm:$0xf] }
 0x32c   :  { %6776 = vmatpush.bf16.msrb.mxu0 %v8821_v47  ;;  %v12214_v47 = vpop.f32.mrf.mxu1  ;;  %v9701_v40 = vor.u32 %v11420_v13, %v9700_v50  ;;  %v12216_v53 = vpop.f32.mrf.mxu2  ;;  %v8829_v50 = vor.u32 %v11201_v63, %v8828_v10  ;;  %v11614_v13 = vld [vmem:[#allocation2 + $0x18e4] sm:$0xf]  ;;  %v7948_v63 = vld [vmem:[#allocation2 + $0x440] sm:$0xf] }
 0x32d   :  { %6789 = vmatpush.bf16.msrb.mxu1 %v10581_v42  ;;  %v7720_v42 = vld [vmem:[#allocation2 + $0x280] sm:$0xf]  ;;  %v12218_v35 = vpop.f32.mrf.mxu3  ;;  %v6526_v5 = vpop.f32.mrf.mxu0 }
 0x32e   :  { %6802 = vmatpush.bf16.msrb.mxu2 %v8825_v48  ;;  %v11365_v48 = vld [vmem:[#allocation2 + $0x1118] sm:$0xf0]  ;;  %v7721_v54 = vor.u32 %v10925_v43, %v7720_v42  ;;  %v8833_v42 = vor.u32 %v11174_v2, %v8830_v7  ;;  %v11531_v5 = vld [vmem:[#allocation2 + $0x1648] sm:$0xf0]  ;;  %v10954_v2 = vld [vmem:[#allocation2 + $0x444] sm:$0xf] }
 0x32f   :  { %6815 = vmatpush.bf16.msrb.mxu3 %v10585_v38  ;;  %v11338_v38 = vld [vmem:[#allocation2 + $0x1044] sm:$0xf]  ;;  %v9481_v11 = vor.u32 %v11365_v48, %v9480_v45  ;;  %v8610_v45 = vld [vmem:[#allocation2 + $0xa44] sm:$0xf0]  ;;  %v7950_v7 = vld [vmem:[#allocation2 + $0x51c] sm:$0xf0] }
 0x330   :  { %6777 = vmatpush.bf16.msrb.mxu0 %v8601_v28  ;;  %v7500_v28 = vld [vmem:[#allocation2 + $0xc8] sm:$0xf]  ;;  %v9485_v60 = vor.u32 %v11338_v38, %v9482_v4  ;;  %v8388_v4 = vld [vmem:[#allocation2 + $0x7b0] sm:$0xf] }
 0x331   :  { %6790 = vmatpush.bf16.msrb.mxu1 %v10361_v61  ;;  %v9260_v61 = vld [vmem:[#allocation2 + $0xe88] sm:$0xf] }
 0x332   :  { %6803 = vmatpush.bf16.msrb.mxu2 %v8605_v56  ;;  %v9048_v56 = vld [vmem:[#allocation2 + $0xcd8] sm:$0xf]  ;;  %v9261_v22 = vor.u32 %v11310_v59, %v9260_v61  ;;  %v11064_v59 = vld [vmem:[#allocation2 + $0x7b4] sm:$0xf] }
 0x333   :  { %6816 = vmatpush.bf16.msrb.mxu3 %v10365_v62  ;;  %v10808_v62 = vld [vmem:[#allocation2 + $0x1a98] sm:$0xf]  ;;  %v9049_v41 = vor.u32 %v11256_v58, %v9048_v56 }
 0x334   :  { %6778 = vmatpush.bf16.msrb.mxu0 %v8381_v16  ;;  %v6539_v15 = vpop.f32.mrf.mxu1  ;;  %v7501_v16 = vor.u32 %v10870_v31, %v7500_v28  ;;  %v10809_v27 = vor.u32 %v11696_v0, %v10808_v62  ;;  %v6552_v25 = vpop.f32.mrf.mxu2  ;;  %v11091_v28 = vld [vmem:[#allocation2 + $0x888] sm:$0xf0]  ;;  %v10148_v31 = vld [vmem:[#allocation2 + $0x1570] sm:$0xf]  ;;  %v8168_v62 = vld [vmem:[#allocation2 + $0x5f8] sm:$0xf] }
 0x335   :  { %6791 = vmatpush.bf16.msrb.mxu1 %v10141_v21  ;;  %v9050_v21 = vld [vmem:[#allocation2 + $0xdb4] sm:$0xf0]  ;;  %v11036_v0 = vld [vmem:[#allocation2 + $0x6d0] sm:$0xf0] }
 0x336   :  { %6804 = vmatpush.bf16.msrb.mxu2 %v8385_v29  ;;  %v7505_v29 = vor.u32 %v10843_v57, %v7502_v12  ;;  %v9053_v1 = vor.u32 %v11229_v20, %v9050_v21  ;;  %v8390_v57 = vld [vmem:[#allocation2 + $0x88c] sm:$0xf0]  ;;  %v11504_v12 = vld [vmem:[#allocation2 + $0x1574] sm:$0xf]  ;;  %v9928_v15 = vld [vmem:[#allocation2 + $0x13b8] sm:$0xf] }
 0x337   :  { %6817 = vmatpush.bf16.msrb.mxu3 %v10145_v24  ;;  %v12223_v24 = vld [vmem:[%s12284_s2 + $0x28] sm:$0xff]  ;;  %v8393_v18 = vor.u32 %v11064_v59, %v8390_v57  ;;  %v11009_v21 = vld [vmem:[#allocation2 + $0x5fc] sm:$0xf]  ;;  %v11311_v59 = vld [vmem:[#allocation2 + $0xf68] sm:$0xf0] }
 0x338   :  { %6779 = vmatpush.bf16.msrb.mxu0 %v8161_v9  ;;  %v11641_v9 = vld [vmem:[#allocation2 + $0x19b8] sm:$0xf0]  ;;  %v990_v30 = vperm.slane %v12223_v24, 1  ;;  %v989_v52 = vperm.slane %v12223_v24, 0  ;;  %v991_v14 = vperm.slane %v12223_v24, 2 }
 0x339   :  { %6792 = vmatpush.bf16.msrb.mxu1 %v9921_v8  ;;  %v10813_v8 = vor.u32 %v11669_v26, %v10810_v23  ;;  %v10589_v46 = vor.u32 %v11641_v9, %v10588_v32  ;;  %v9930_v23 = vld [vmem:[#allocation2 + $0x1494] sm:$0xf0]  ;;  %v9708_v32 = vld [vmem:[#allocation2 + $0x1200] sm:$0xf]  ;;  %v11421_v9 = vld [vmem:[#allocation2 + $0x12d8] sm:$0xf0] }
 0x33a   :  { %6805 = vmatpush.bf16.msrb.mxu2 %v8165_v3  ;;  %v6565_v3 = vpop.f32.mrf.mxu3  ;;  %v6551_v38 = vadd.f32 %v12216_v53, %v990_v30  ;;  %v10150_v53 = vld [vmem:[#allocation2 + $0x164c] sm:$0xf0]  ;;  %v6525_v56 = vadd.f32 %v12212_v37, %v989_v52  ;;  %v11449_v37 = vld [vmem:[#allocation2 + $0x13bc] sm:$0xf] }
 0x33b   :  { %6818 = vmatpush.bf16.msrb.mxu3 %v9925_v6  ;;  %v10590_v6 = vld [vmem:[#allocation2 + $0x19bc] sm:$0xf0]  ;;  %v10153_v20 = vor.u32 %v11504_v12, %v10150_v53  ;;  %v992_v3 = vperm.slane %v12223_v24, 3  ;;  %v11257_v53 = vld [vmem:[#allocation2 + $0xdb8] sm:$0xf0] }
 0x33c   :  { %6780 = vmatpush.bf16.msrb.mxu0 %v7941_v34  ;;  %v8608_v34 = vld [vmem:[#allocation2 + $0x968] sm:$0xf]  ;;  %v10593_v43 = vor.u32 %v11614_v13, %v10590_v6  ;;  %v6564_v58 = vadd.f32 %v12218_v35, %v6551_v38  ;;  %v6538_v35 = vadd.f32 %v12214_v47, %v6525_v56  ;;  %v11394_v13 = vld [vmem:[#allocation2 + $0x1204] sm:$0xf]  ;;  %v9710_v6 = vld [vmem:[#allocation2 + $0x12dc] sm:$0xf0] }
 0x33d   :  { %6793 = vmatpush.bf16.msrb.mxu1 %v9701_v40  ;;  %v11586_v40 = vld [vmem:[#allocation2 + $0x1800] sm:$0xf0]  ;;  %v8609_v48 = vor.u32 %v11146_v36, %v8608_v34  ;;  %v7728_v34 = vld [vmem:[#allocation2 + $0x288] sm:$0xf]  ;;  %v9056_v12 = vld [vmem:[#allocation2 + $0xce0] sm:$0xf] }
 0x33e   :  { %6806 = vmatpush.bf16.msrb.mxu2 %v7945_v44  ;;  %v11119_v44 = vld [vmem:[#allocation2 + $0x96c] sm:$0xf]  ;;  %v6945_v30 = vmul.f32 0.5, %v6538_v35  ;;  %v10926_v36 = vld [vmem:[#allocation2 + $0x360] sm:$0xf0] }
 0x33f   :  { %6819 = vmatpush.bf16.msrb.mxu3 %v9705_v49  ;;  %v11559_v49 = vld [vmem:[#allocation2 + $0x172c] sm:$0xf]  ;;  %v7729_v38 = vor.u32 %v10926_v36, %v7728_v34  ;;  %v10816_v56 = vld [vmem:[#allocation2 + $0x1aa0] sm:$0xf] }
 0x340   :  { %6781 = vmatpush.bf16.msrb.mxu0 %v7721_v54  ;;  %v10369_v54 = vor.u32 %v11586_v40, %v10368_v39  ;;  %v10373_v61 = vor.u32 %v11559_v49, %v10370_v51  ;;  %v9488_v40 = vld [vmem:[#allocation2 + $0x1048] sm:$0xf] }
 0x341   :  { %6794 = vmatpush.bf16.msrb.mxu1 %v9481_v11  ;;  %v8613_v11 = vor.u32 %v11119_v44, %v8610_v45  ;;  %v9713_v45 = vor.u32 %v11394_v13, %v9710_v6  ;;  %v7730_v49 = vld [vmem:[#allocation2 + $0x364] sm:$0xf0]  ;;  %v10376_v6 = vld [vmem:[#allocation2 + $0x1730] sm:$0xf] }
 0x342   :  { %6807 = vmatpush.bf16.msrb.mxu2 %v7725_v55  ;;  %v8389_v55 = vor.u32 %v11091_v28, %v8388_v4  ;;  %v11339_v4 = vld [vmem:[#allocation2 + $0x104c] sm:$0xf]  ;;  %v9490_v28 = vld [vmem:[#allocation2 + $0x1124] sm:$0xf0] }
 0x343   :  { %6820 = vmatpush.bf16.msrb.mxu3 %v9485_v60  ;;  %v10149_v60 = vor.u32 %v11531_v5, %v10148_v31 }
 0x344   :  { %6782 = vmatpush.bf16.msrb.mxu0 %v7501_v16  ;;  %v11476_v16 = vld [vmem:[#allocation2 + $0x1490] sm:$0xf0]  ;;  %v6576_v26 = vpop.f32.mrf.mxu0 }
 0x345   :  { %6795 = vmatpush.bf16.msrb.mxu1 %v9261_v22  ;;  %v8170_v22 = vld [vmem:[#allocation2 + $0x6d4] sm:$0xf0]  ;;  %v6577_v10 = vadd.f32 %v6576_v26, %v991_v14  ;;  %v6589_v25 = vpop.f32.mrf.mxu1  ;;  %v7510_v14 = vld [vmem:[#allocation2 + $0x1ac] sm:$0xf0] }
 0x346   :  { %6808 = vmatpush.bf16.msrb.mxu2 %v7505_v29  ;;  %v6946_v29 = vmul.f32 0.5, %v6564_v58 }
 0x347   :  { %6821 = vmatpush.bf16.msrb.mxu3 %v9265_v33  ;;  %6783 = vmatmul.bf16.vlgmr.msrb.gmra.mxu0 %v11866_v17  ;;  %v10981_v33 = vld [vmem:[#allocation2 + $0x518] sm:$0xf0] }
 0x348   :  { %6827 = vmatpush.bf16.msra.mxu0 %v9049_v41  ;;  %6796 = vmatmul.bf16.vlgmr.msrb.gmra.mxu1 %v11868_v19  ;;  %v8169_v41 = vor.u32 %v11036_v0, %v8168_v62  ;;  %v7949_v47 = vor.u32 %v10981_v33, %v7948_v63  ;;  %11781 = vtanh.f32 %v6946_v29  ;;  %v9493_v62 = vor.u32 %v11339_v4, %v9490_v28  ;;  %v10844_v0 = vld [vmem:[#allocation2 + $0xd4] sm:$0xf]  ;;  %v8836_v29 = vld [vmem:[#allocation2 + $0xb28] sm:$0xf]  ;;  %v8176_v4 = vld [vmem:[#allocation2 + $0x600] sm:$0xf] }
 0x349   :  { %6840 = vmatpush.bf16.msra.mxu1 %v10809_v27  ;;  %6809 = vmatmul.bf16.vlgmr.msrb.gmra.mxu2 %v11866_v17  ;;  %v9929_v27 = vor.u32 %v11476_v16, %v9928_v15  ;;  %v7513_v35 = vor.u32 %v10844_v0, %v7510_v14  ;;  %v10596_v33 = vld [vmem:[#allocation2 + $0x18e8] sm:$0xf]  ;;  %v11037_v28 = vld [vmem:[#allocation2 + $0x6d8] sm:$0xf0] }
 0x34a   :  { %6853 = vmatpush.bf16.msra.mxu2 %v9053_v1  ;;  %6822 = vmatmul.bf16.vlgmr.msrb.gmra.mxu3 %v11868_v19  ;;  %v8173_v1 = vor.u32 %v11009_v21, %v8170_v22  ;;  %v9270_v21 = vld [vmem:[#allocation2 + $0xf6c] sm:$0xf0] }
 0x34b   :  { %6866 = vmatpush.bf16.msra.mxu3 %v10813_v8  ;;  %v9933_v8 = vor.u32 %v11449_v37, %v9930_v23 }
 0x34c   :  { %6828 = vmatpush.bf16.msra.mxu0 %v8829_v50  ;;  %v6590_v50 = vadd.f32 %v6589_v25, %v6577_v10  ;;  %v6602_v44 = vpop.f32.mrf.mxu2  ;;  %v6578_v31 = vpop.f32.mrf.mxu0 }
 0x34d   :  { %6841 = vmatpush.bf16.msra.mxu1 %v10589_v46  ;;  %v9709_v46 = vor.u32 %v11421_v9, %v9708_v32  ;;  %v6603_v51 = vadd.f32 %v6602_v44, %v992_v3  ;;  %v6615_v52 = vpop.f32.mrf.mxu3  ;;  %v6591_v15 = vpop.f32.mrf.mxu1  ;;  %v11642_v32 = vld [vmem:[#allocation2 + $0x19c0] sm:$0xf0]  ;;  %v11092_v44 = vld [vmem:[#allocation2 + $0x890] sm:$0xf0] }
 0x34e   :  { %6854 = vmatpush.bf16.msra.mxu2 %v8833_v42  ;;  %v6947_v39 = vmul.f32 0.5, %v6590_v50  ;;  %v11366_v42 = vld [vmem:[#allocation2 + $0x1120] sm:$0xf0]  ;;  %v11782_v58 = vpop.eup %11781  ;;  %v10597_v3 = vor.u32 %v11642_v32, %v10596_v33  ;;  %v8616_v50 = vld [vmem:[#allocation2 + $0x970] sm:$0xf] }
 0x34f   :  { %6867 = vmatpush.bf16.msra.mxu3 %v10593_v43  ;;  %v7953_v43 = vor.u32 %v10954_v2, %v7950_v7  ;;  %v9489_v5 = vor.u32 %v11366_v42, %v9488_v40  ;;  %v6616_v57 = vadd.f32 %v6615_v52, %v6603_v51  ;;  %v7056_v37 = vadd.f32 1.0, %v11782_v58  ;;  %v11532_v51 = vld [vmem:[#allocation2 + $0x1650] sm:$0xf0]  ;;  %v9716_v58 = vld [vmem:[#allocation2 + $0x1208] sm:$0xf] }
 0x350   :  { %6829 = vmatpush.bf16.msra.mxu0 %v8609_v48  ;;  %v10899_v48 = vld [vmem:[#allocation2 + $0x28c] sm:$0xf]  ;;  %11783 = vtanh.f32 %v6947_v39  ;;  %v7736_v15 = vld [vmem:[#allocation2 + $0x290] sm:$0xf] }
 0x351   :  { %6842 = vmatpush.bf16.msra.mxu1 %v10369_v54  ;;  %v7508_v54 = vld [vmem:[#allocation2 + $0xd0] sm:$0xf]  ;;  %11785 = vtanh.f32 %v6945_v30  ;;  %v6948_v16 = vmul.f32 0.5, %v6616_v57  ;;  %v7111_v7 = vmul.f32 0.5, %v7056_v37  ;;  %v11587_v30 = vld [vmem:[#allocation2 + $0x1808] sm:$0xf0]  ;;  %v8177_v57 = vor.u32 %v11037_v28, %v8176_v4 }
 0x352   :  { %6855 = vmatpush.bf16.msra.mxu2 %v8613_v11  ;;  %v10871_v11 = vld [vmem:[#allocation2 + $0x1a8] sm:$0xf0]  ;;  %v10377_v42 = vor.u32 %v11587_v30, %v10376_v6 }
 0x353   :  { %6868 = vmatpush.bf16.msra.mxu3 %v10373_v61  ;;  %v9268_v61 = vld [vmem:[#allocation2 + $0xe90] sm:$0xf]  ;;  %11787 = vtanh.f32 %v6948_v16  ;;  %v7210_v40 = vrot.slane %v7111_v7, 6  ;;  %v10927_v16 = vld [vmem:[#allocation2 + $0x368] sm:$0xf0] }
 0x354   :  { %6830 = vmatpush.bf16.msra.mxu0 %v8389_v55  ;;  %v7733_v55 = vor.u32 %v10899_v48, %v7730_v49  ;;  %v9269_v22 = vor.u32 %v11311_v59, %v9268_v61  ;;  %v10156_v49 = vld [vmem:[#allocation2 + $0x1578] sm:$0xf]  ;;  %v11477_v61 = vld [vmem:[#allocation2 + $0x1498] sm:$0xf0] }
 0x355   :  { %6843 = vmatpush.bf16.msra.mxu1 %v10149_v60  ;;  %v11697_v60 = vld [vmem:[#allocation2 + $0x1b78] sm:$0xf0]  ;;  %v6617_v25 = vpop.f32.mrf.mxu3 }
 0x356   :  { %6856 = vmatpush.bf16.msra.mxu2 %v8393_v18  ;;  %v7509_v18 = vor.u32 %v10871_v11, %v7508_v54  ;;  %v11784_v26 = vpop.eup %11783  ;;  %v10817_v23 = vor.u32 %v11697_v60, %v10816_v56  ;;  %v10157_v54 = vor.u32 %v11532_v51, %v10156_v49  ;;  %v9936_v11 = vld [vmem:[#allocation2 + $0x13c0] sm:$0xf]  ;;  %v10982_v56 = vld [vmem:[#allocation2 + $0x520] sm:$0xf0]  ;;  %v993_v25 = vperm.slane %v12223_v24, 4 }
 0x357   :  { %6869 = vmatpush.bf16.msra.mxu3 %v10153_v20  ;;  %v11284_v20 = vld [vmem:[#allocation2 + $0xe94] sm:$0xf]  ;;  %v11786_v10 = vpop.eup %11785  ;;  %v7057_v63 = vadd.f32 1.0, %v11784_v26  ;;  %v11422_v60 = vld [vmem:[#allocation2 + $0x12e0] sm:$0xf0] }
 0x358   :  { %6831 = vmatpush.bf16.msra.mxu0 %v8169_v41  ;;  %v9057_v41 = vor.u32 %v11257_v53, %v9056_v12  ;;  %v9273_v9 = vor.u32 %v11284_v20, %v9270_v21  ;;  %v7055_v2 = vadd.f32 1.0, %v11786_v10  ;;  %v9937_v12 = vor.u32 %v11477_v61, %v9936_v11  ;;  %v7956_v53 = vld [vmem:[#allocation2 + $0x448] sm:$0xf]  ;;  %v11367_v20 = vld [vmem:[#allocation2 + $0x1128] sm:$0xf0] }
 0x359   :  { %6844 = vmatpush.bf16.msra.mxu1 %v9929_v27  ;;  %v11202_v27 = vld [vmem:[#allocation2 + $0xc00] sm:$0xf0]  ;;  %v7112_v13 = vmul.f32 0.5, %v7057_v63  ;;  %v7957_v0 = vor.u32 %v10982_v56, %v7956_v53  ;;  %v9717_v14 = vor.u32 %v11422_v60, %v9716_v58 }
 0x35a   :  { %6857 = vmatpush.bf16.msra.mxu2 %v8173_v1  ;;  %v6604_v1 = vpop.f32.mrf.mxu2  ;;  %v7110_v39 = vmul.f32 0.5, %v7055_v2  ;;  %v995_v2 = vperm.slane %v12223_v24, 6 }
 0x35b   :  { %6870 = vmatpush.bf16.msra.mxu3 %v9933_v8  ;;  %v8837_v8 = vor.u32 %v11202_v27, %v8836_v29  ;;  %v9276_v29 = vld [vmem:[#allocation2 + $0xe98] sm:$0xf]  ;;  %v11312_v27 = vld [vmem:[#allocation2 + $0xf70] sm:$0xf0]  ;;  %v994_v1 = vperm.slane %v12223_v24, 5 }
 0x35c   :  { %6832 = vmatpush.bf16.msra.mxu0 %v7949_v47  ;;  %v11147_v47 = vld [vmem:[#allocation2 + $0xa48] sm:$0xf0]  ;;  %v7254_v31 = vsel %vm7221_vm0, %v7110_v39, %v7210_v40  ;;  %v9277_v33 = vor.u32 %v11312_v27, %v9276_v29 }
 0x35d   :  { %6845 = vmatpush.bf16.msra.mxu1 %v9709_v46  ;;  %v11788_v46 = vpop.eup %11787  ;;  %v8617_v36 = vor.u32 %v11147_v47, %v8616_v50 }
 0x35e   :  { %6858 = vmatpush.bf16.msra.mxu2 %v7953_v43  ;;  %v7058_v34 = vadd.f32 1.0, %v11788_v46  ;;  %v8396_v43 = vld [vmem:[#allocation2 + $0x7b8] sm:$0xf]  ;;  %v996_v46 = vperm.slane %v12223_v24, 7 }
 0x35f   :  { %6871 = vmatpush.bf16.msra.mxu3 %v9713_v45  ;;  %v7211_v45 = vrot.slane %v7112_v13, 4 }
 0x360   :  { %6833 = vmatpush.bf16.msra.mxu0 %v7729_v38  ;;  %v7113_v48 = vmul.f32 0.5, %v7058_v34  ;;  %v8397_v38 = vor.u32 %v11092_v44, %v8396_v43 }
 0x361   :  { %6846 = vmatpush.bf16.msra.mxu1 %v9489_v5 }
 0x362   :  { %6859 = vmatpush.bf16.msra.mxu2 %v7733_v55  ;;  %v7212_v52 = vrot.slane %v7113_v48, 2 }
 0x363   :  { %6872 = vmatpush.bf16.msra.mxu3 %v9493_v62 }
 0x364   :  { %6834 = vmatpush.bf16.msra.mxu0 %v7509_v18  ;;  %v7255_v5 = vsel %vm7223_vm1, %v7211_v45, %v7212_v52  ;;  %v6628_v55 = vpop.f32.mrf.mxu0  ;;  %v9496_v18 = vld [vmem:[#allocation2 + $0x1050] sm:$0xf] }
 0x365   :  { %6847 = vmatpush.bf16.msra.mxu1 %v9269_v22  ;;  %v7256_v59 = vsel %vm7225_vm2, %v7254_v31, %v7255_v5  ;;  %v6641_v62 = vpop.f32.mrf.mxu1  ;;  %v7737_v22 = vor.u32 %v10927_v16, %v7736_v15  ;;  %v9497_v37 = vor.u32 %v11367_v20, %v9496_v18  ;;  %v6629_v7 = vadd.f32 %v6628_v55, %v993_v25  ;;  %v12262_v20 = vld [vmem:[%s12284_s2 + $0x30] sm:$0xff] }
 0x366   :  { %6860 = vmatpush.bf16.msra.mxu2 %v7513_v35  ;;  %7289 = vst [vmem:[%s12285_s3 + $0x50] sm:$0xff] %v7256_v59  ;;  %v10872_v35 = vld [vmem:[#allocation2 + $0x1b0] sm:$0xf0] }
 0x367   :  { %6873 = vmatpush.bf16.msra.mxu3 %v9273_v9  ;;  %6835 = vmatmul.bf16.vlgmr.msra.gmra.mxu0 %v11866_v17  ;;  %v6642_v13 = vadd.f32 %v6641_v62, %v6629_v7 }
 0x368   :  { %6879 = vmatpush.bf16.msrb.mxu0 %v9057_v41  ;;  %6848 = vmatmul.bf16.vlgmr.msra.gmra.mxu1 %v11868_v19 }
 0x369   :  { %6892 = vmatpush.bf16.msrb.mxu1 %v10817_v23  ;;  %6861 = vmatmul.bf16.vlgmr.msra.gmra.mxu2 %v11866_v17  ;;  %v7516_v23 = vld [vmem:[#allocation2 + $0xd8] sm:$0xf] }
 0x36a   :  { %6874 = vmatmul.bf16.vlgmr.msra.gmra.mxu3 %v11868_v19  ;;  %v7517_v63 = vor.u32 %v10872_v35, %v7516_v23 }
 0x36c   :  { %6880 = vmatpush.bf16.msrb.mxu0 %v8837_v8  ;;  %v6654_v21 = vpop.f32.mrf.mxu2  ;;  %v6630_v26 = vpop.f32.mrf.mxu0 }
 0x36d   :  { %6893 = vmatpush.bf16.msrb.mxu1 %v10597_v3  ;;  %v6667_v41 = vpop.f32.mrf.mxu3  ;;  %v6643_v10 = vpop.f32.mrf.mxu1  ;;  %v6655_v8 = vadd.f32 %v6654_v21, %v994_v1 }
 0x36f   :  { %v6668_v3 = vadd.f32 %v6667_v41, %v6655_v8  ;;  %v997_v41 = vperm.slane %v12262_v20, 0 }
 0x370   :  { %6881 = vmatpush.bf16.msrb.mxu0 %v8617_v36  ;;  %v6949_v36 = vmul.f32 0.5, %v6642_v13 }
 0x371   :  { %6894 = vmatpush.bf16.msrb.mxu1 %v10377_v42  ;;  %v6950_v6 = vmul.f32 0.5, %v6668_v3 }
 0x373   :  { %11789 = vtanh.f32 %v6950_v6 }
 0x374   :  { %6882 = vmatpush.bf16.msrb.mxu0 %v8397_v38  ;;  %v6656_v32 = vpop.f32.mrf.mxu2 }
 0x375   :  { %6895 = vmatpush.bf16.msrb.mxu1 %v10157_v54  ;;  %v6669_v9 = vpop.f32.mrf.mxu3  ;;  %v1000_v32 = vperm.slane %v12262_v20, 3 }
 0x378   :  { %6883 = vmatpush.bf16.msrb.mxu0 %v8177_v57 }
 0x379   :  { %6896 = vmatpush.bf16.msrb.mxu1 %v9937_v12  ;;  %v11790_v45 = vpop.eup %11789 }
 0x37a   :  { %v7060_v51 = vadd.f32 1.0, %v11790_v45 }
 0x37c   :  { %6884 = vmatpush.bf16.msrb.mxu0 %v7957_v0  ;;  %v7115_v28 = vmul.f32 0.5, %v7060_v51 }
 0x37d   :  { %6897 = vmatpush.bf16.msrb.mxu1 %v9717_v14 }
 0x37e   :  { %v7213_v59 = vrot.slane %v7115_v28, 6 }
 0x380   :  { %6885 = vmatpush.bf16.msrb.mxu0 %v7737_v22  ;;  %v998_v22 = vperm.slane %v12262_v20, 1 }
 0x381   :  { %6898 = vmatpush.bf16.msrb.mxu1 %v9497_v37  ;;  %v999_v37 = vperm.slane %v12262_v20, 2 }
 0x384   :  { %6886 = vmatpush.bf16.msrb.mxu0 %v7517_v63  ;;  %v6680_v50 = vpop.f32.mrf.mxu0 }
 0x385   :  { %6899 = vmatpush.bf16.msrb.mxu1 %v9277_v33  ;;  %v6681_v47 = vadd.f32 %v6680_v50, %v995_v2  ;;  %v6693_v30 = vpop.f32.mrf.mxu1 }
 0x387   :  { %6887 = vmatmul.bf16.vlgmr.msrb.gmra.mxu0 %v11866_v17  ;;  %v6694_v34 = vadd.f32 %v6693_v30, %v6681_v47 }
 0x388   :  { %6900 = vmatmul.bf16.vlgmr.msrb.gmra.mxu1 %v11868_v19 }
 0x389   :  { %v6951_v17 = vmul.f32 0.5, %v6694_v34 }
 0x38b   :  { %11791 = vtanh.f32 %v6951_v17 }
 0x38c   :  { %v6706_v39 = vpop.f32.mrf.mxu2  ;;  %v6682_v42 = vpop.f32.mrf.mxu0  ;;  %11793 = vtanh.f32 %v6949_v36 }
 0x38d   :  { %v6707_v19 = vadd.f32 %v6706_v39, %v996_v46  ;;  %v6719_v40 = vpop.f32.mrf.mxu3  ;;  %v6695_v44 = vpop.f32.mrf.mxu1 }
 0x38f   :  { %v6720_v43 = vadd.f32 %v6719_v40, %v6707_v19 }
 0x391   :  { %v6952_v48 = vmul.f32 0.5, %v6720_v43  ;;  %v11792_v49 = vpop.eup %11791 }
 0x392   :  { %v7061_v52 = vadd.f32 1.0, %v11792_v49  ;;  %v11794_v24 = vpop.eup %11793 }
 0x393   :  { %11795 = vtanh.f32 %v6952_v48  ;;  %v7059_v4 = vadd.f32 1.0, %v11794_v24 }
 0x394   :  { %v6708_v38 = vpop.f32.mrf.mxu2  ;;  %v7116_v31 = vmul.f32 0.5, %v7061_v52 }
 0x395   :  { %v6721_v54 = vpop.f32.mrf.mxu3  ;;  %v7114_v61 = vmul.f32 0.5, %v7059_v4 }
 0x396   :  { %v7214_v57 = vrot.slane %v7116_v31, 4 }
 0x397   :  { %v7257_v53 = vsel %vm7221_vm0, %v7114_v61, %v7213_v59  ;;  %v1002_v59 = vperm.slane %v12262_v20, 5 }
 0x399   :  { %v11796_v5 = vpop.eup %11795 }
 0x39a   :  { %v7062_v11 = vadd.f32 1.0, %v11796_v5 }
 0x39c   :  { %v7117_v55 = vmul.f32 0.5, %v7062_v11 }
 0x39e   :  { %v7215_v12 = vrot.slane %v7117_v55, 2 }
 0x3a0   :  { %v7258_v56 = vsel %vm7223_vm1, %v7214_v57, %v7215_v12  ;;  %v1001_v57 = vperm.slane %v12262_v20, 4 }
 0x3a1   :  { %v7259_v58 = vsel %vm7225_vm2, %v7257_v53, %v7258_v56 }
 0x3a2   :  { %7290 = vst [vmem:[%s12285_s3 + $0x58] sm:$0xff] %v7259_v58 }
 0x3a4   :  { %v6732_v60 = vpop.f32.mrf.mxu0 }
 0x3a5   :  { %v6745_v62 = vpop.f32.mrf.mxu1  ;;  %v6733_v23 = vadd.f32 %v6732_v60, %v997_v41 }
 0x3a7   :  { %v6746_v10 = vadd.f32 %v6745_v62, %v6733_v23 }
 0x3a9   :  { %v6953_v1 = vmul.f32 0.5, %v6746_v10 }
 0x3ac   :  { %v6758_v0 = vpop.f32.mrf.mxu2  ;;  %v6734_v15 = vpop.f32.mrf.mxu0 }
 0x3ad   :  { %v6771_v14 = vpop.f32.mrf.mxu3  ;;  %v6747_v16 = vpop.f32.mrf.mxu1  ;;  %v6759_v26 = vadd.f32 %v6758_v0, %v998_v22  ;;  %v1003_v0 = vperm.slane %v12262_v20, 6 }
 0x3af   :  { %v6772_v35 = vadd.f32 %v6771_v14, %v6759_v26 }
 0x3b1   :  { %v6954_v63 = vmul.f32 0.5, %v6772_v35 }
 0x3b3   :  { %11797 = vtanh.f32 %v6954_v63 }
 0x3b4   :  { %v6760_v18 = vpop.f32.mrf.mxu2 }
 0x3b5   :  { %v6773_v21 = vpop.f32.mrf.mxu3 }
 0x3b9   :  { %v11798_v13 = vpop.eup %11797 }
 0x3ba   :  { %v7064_v46 = vadd.f32 1.0, %v11798_v13 }
 0x3bc   :  { %v7119_v40 = vmul.f32 0.5, %v7064_v46 }
 0x3be   :  { %v7216_v48 = vrot.slane %v7119_v40, 6 }
 0x3c4   :  { %v6784_v29 = vpop.f32.mrf.mxu0 }
 0x3c5   :  { %v6785_v27 = vadd.f32 %v6784_v29, %v999_v37  ;;  %v6797_v33 = vpop.f32.mrf.mxu1 }
 0x3c7   :  { %v6798_v9 = vadd.f32 %v6797_v33, %v6785_v27 }
 0x3c9   :  { %v6955_v25 = vmul.f32 0.5, %v6798_v9 }
 0x3cb   :  { %11799 = vtanh.f32 %v6955_v25 }
 0x3cc   :  { %v6810_v8 = vpop.f32.mrf.mxu2  ;;  %v6786_v3 = vpop.f32.mrf.mxu0  ;;  %11801 = vtanh.f32 %v6953_v1 }
 0x3cd   :  { %v6811_v2 = vadd.f32 %v6810_v8, %v1000_v32  ;;  %v6823_v7 = vpop.f32.mrf.mxu3  ;;  %v6799_v47 = vpop.f32.mrf.mxu1 }
 0x3cf   :  { %v6824_v50 = vadd.f32 %v6823_v7, %v6811_v2 }
 0x3d1   :  { %v6956_v6 = vmul.f32 0.5, %v6824_v50  ;;  %v11800_v30 = vpop.eup %11799 }
 0x3d2   :  { %v7065_v34 = vadd.f32 1.0, %v11800_v30  ;;  %v11802_v17 = vpop.eup %11801 }
 0x3d3   :  { %11803 = vtanh.f32 %v6956_v6  ;;  %v7063_v19 = vadd.f32 1.0, %v11802_v17 }
 0x3d4   :  { %v6812_v36 = vpop.f32.mrf.mxu2  ;;  %v7120_v42 = vmul.f32 0.5, %v7065_v34 }
 0x3d5   :  { %v6825_v39 = vpop.f32.mrf.mxu3  ;;  %v7118_v45 = vmul.f32 0.5, %v7063_v19 }
 0x3d6   :  { %v7217_v49 = vrot.slane %v7120_v42, 4 }
 0x3d7   :  { %v7260_v38 = vsel %vm7221_vm0, %v7118_v45, %v7216_v48 }
 0x3d9   :  { %v11804_v43 = vpop.eup %11803 }
 0x3da   :  { %v7066_v44 = vadd.f32 1.0, %v11804_v43 }
 0x3dc   :  { %v7121_v51 = vmul.f32 0.5, %v7066_v44 }
 0x3de   :  { %v7218_v52 = vrot.slane %v7121_v51, 2 }
 0x3e0   :  { %v7261_v24 = vsel %vm7223_vm1, %v7217_v49, %v7218_v52 }
 0x3e1   :  { %v7262_v54 = vsel %vm7225_vm2, %v7260_v38, %v7261_v24 }
 0x3e2   :  { %7291 = vst [vmem:[%s12285_s3 + $0x60] sm:$0xff] %v7262_v54 }
 0x3e4   :  { %v6836_v4 = vpop.f32.mrf.mxu0 }
 0x3e5   :  { %v6849_v28 = vpop.f32.mrf.mxu1  ;;  %v6837_v56 = vadd.f32 %v6836_v4, %v1001_v57 }
 0x3e7   :  { %v6850_v60 = vadd.f32 %v6849_v28, %v6837_v56 }
 0x3e9   :  { %v6957_v14 = vmul.f32 0.5, %v6850_v60 }
 0x3ec   :  { %v6862_v31 = vpop.f32.mrf.mxu2  ;;  %v6838_v5 = vpop.f32.mrf.mxu0 }
 0x3ed   :  { %v6875_v11 = vpop.f32.mrf.mxu3  ;;  %v6851_v61 = vpop.f32.mrf.mxu1  ;;  %v6863_v55 = vadd.f32 %v6862_v31, %v1002_v59 }
 0x3ef   :  { %v6876_v58 = vadd.f32 %v6875_v11, %v6863_v55 }
 0x3f1   :  { %v6958_v62 = vmul.f32 0.5, %v6876_v58 }
 0x3f3   :  { %11805 = vtanh.f32 %v6958_v62 }
 0x3f4   :  { %v6864_v12 = vpop.f32.mrf.mxu2  ;;  %11807 = vtanh.f32 %v6957_v14 }
 0x3f5   :  { %v6877_v53 = vpop.f32.mrf.mxu3 }
 0x3f9   :  { %v11806_v22 = vpop.eup %11805 }
 0x3fa   :  { %v7068_v26 = vadd.f32 1.0, %v11806_v22  ;;  %v11808_v37 = vpop.eup %11807 }
 0x3fb   :  { %v7067_v29 = vadd.f32 1.0, %v11808_v37 }
 0x3fc   :  { %v7123_v27 = vmul.f32 0.5, %v7068_v26 }
 0x3fd   :  { %v7122_v33 = vmul.f32 0.5, %v7067_v29 }
 0x3fe   :  { %v7219_v20 = vrot.slane %v7123_v27, 6 }
 0x400   :  { %v7263_v1 = vsel %vm7221_vm0, %v7122_v33, %v7219_v20 }
 0x404   :  { %v6888_v15 = vpop.f32.mrf.mxu0 }
 0x405   :  { %v6889_v16 = vadd.f32 %v6888_v15, %v1003_v0  ;;  %v6901_v18 = vpop.f32.mrf.mxu1 }
 0x407   :  { %v6902_v21 = vadd.f32 %v6901_v18, %v6889_v16 }
 0x409   :  { %v6959_v41 = vmul.f32 0.5, %v6902_v21 }
 0x40b   :  { %11809 = vtanh.f32 %v6959_v41 }
 0x40c   :  { %v6890_v23 = vpop.f32.mrf.mxu0 }
 0x40d   :  { %v6903_v35 = vpop.f32.mrf.mxu1 }
 0x411   :  { %v11810_v10 = vpop.eup %11809 }
 0x412   :  { %v7069_v63 = vadd.f32 1.0, %v11810_v10 }
 0x414   :  { %v7124_v32 = vmul.f32 0.5, %v7069_v63 }
 0x416   :  { %v7220_v9 = vrot.slane %v7124_v32, 4 }
 0x418   :  { %v7264_v25 = vsel %vm7225_vm2, %v7263_v1, %v7220_v9 }
 0x419   :  { %7292 = vst [vmem:[%s12285_s3 + $0x68] sm:$0x3f] %v7264_v25 }
 0x41a   :  { %7297 = vsyncpa [#allocation3], 1 }

</bundles_post_ra>
